<compile_context>
chip_gen: v6e
topology: v6e:2x2x1
jax: 0.10.0
libtpu: 0.0.40
codegen_flags: <defaults>
</compile_context>

<pallas_src>
import functools

import numpy as np
import jax
import jax.numpy as jnp
from jax.experimental import pallas as pl
from jax.experimental.pallas import tpu as pltpu


VMEM_LIMIT = 32 * 1024 * 1024  # <= scoped default on v6e/v7x, < v7x physical.


# --------------------------- Fused MLP (l1 + l2) -----------------------------

def _mlp_kernel(x_ref, w1_ref, b1_ref, w2_ref, b2_ref, o_ref):
    h = jnp.dot(x_ref[...], w1_ref[...], preferred_element_type=jnp.float32)
    h = jnp.maximum(h + b1_ref[...], 0.0)
    y = jnp.dot(h, w2_ref[...], preferred_element_type=jnp.float32)
    o_ref[...] = jnp.maximum(y + b2_ref[...], 0.0)


def mlp_pallas(x, w1, b1, w2, b2):
    B = x.shape[0]
    N = w2.shape[1]
    return pl.pallas_call(
        _mlp_kernel,
        out_shape=jax.ShapeDtypeStruct((B, N), jnp.float32),
        compiler_params=pltpu.CompilerParams(vmem_limit_bytes=VMEM_LIMIT),
    )(x, w1, b1.reshape(1, -1), w2, b2.reshape(1, -1))


# ----------------- ConvTranspose2d via phase decomposition -------------------
#
# out[2*ya+ry, 2*xa+rx, co] = b[co] +
#   sum_{(dy,ky) in taps(ry)} sum_{(dx,kx) in taps(rx)} sum_ci
#       x[ya+dy, xa+dx, ci] * w[ci, co, ky, kx]
#
# The (rx, dx) taps and the channel contraction are folded into a block-banded
# weight matrix over a width tile, so the kernel only does per-(ry, dy) matmuls
# on lane-flat (rows, W*C) slices.

def _convt_kernel(x_ref, w_ref, b_ref, o_ref, *, tile_h, wt_size, n_wt, cin,
                  cout, wo, span_in, span_out, sched, act):
    # x_ref : (1, Hi+halo, (Wi+halo)*Cin)   whole padded image (lane-flat NHWC)
    # w_ref : (K, span_in, span_out)        block-banded phase weights
    # b_ref : (1, 2*Wo*Cout)                bias broadcast row
    # o_ref : (1, tile_h, 2*Wo*Cout)        two interleaved output rows per row
    t = pl.program_id(1)
    row0 = t * tile_h
    for wt in range(n_wt):
        in_off = wt * wt_size * cin
        for ry in (0, 1):
            acc = None
            for (mi, dy) in sched[ry]:
                lhs = x_ref[0, pl.ds(row0 + dy, tile_h),
                            in_off:in_off + span_in]
                part = jnp.dot(lhs, w_ref[mi],
                               preferred_element_type=jnp.float32)
                acc = part if acc is None else acc + part
            out_off = ry * wo * cout + wt * span_out
            acc = acc + b_ref[:, out_off:out_off + span_out]
            if act == "relu":
                acc = jnp.maximum(acc, 0.0)
            else:  # sigmoid: exp on the EUP, approx reciprocal (also EUP)
                acc = pl.reciprocal(1.0 + jnp.exp(-acc), approx=True)
            o_ref[0, :, out_off:out_off + span_out] = acc


def _phase_taps(K, p):
    """For stride 2: per output parity r, list of (input offset d, tap k)."""
    taps = []
    for r in (0, 1):
        lst = []
        for k in range(K):
            if (k % 2) == ((r + p) % 2):
                lst.append(((r + p - k) // 2, k))
        taps.append(lst)
    return taps


def prep_conv_layer(w, b, Hi, Wi, K, pad, wt_size, n_t):
    """Host-side, one-time: build block-banded phase weights + flat bias row."""
    w_np = np.asarray(w, np.float32)                  # (Cin, Cout, K, K)
    b_np = np.asarray(b, np.float32)
    cin, cout = w_np.shape[0], w_np.shape[1]
    Wo = 2 * Wi
    taps = _phase_taps(K, pad)
    all_d = [d for lst in taps for (d, _k) in lst]
    pad_lo, pad_hi = max(0, -min(all_d)), max(0, max(all_d))
    halo = pad_lo + pad_hi
    span_in = (wt_size + halo) * cin
    span_out = wt_size * 2 * cout

    mats, sched = [], []
    for ry in (0, 1):
        entries = []
        for (dy, ky) in taps[ry]:
            M = np.zeros((span_in, span_out), np.float32)
            for xl in range(wt_size):
                for rx in (0, 1):
                    for (dx, kx) in taps[rx]:
                        r0 = (xl + dx + pad_lo) * cin
                        c0 = xl * 2 * cout + rx * cout
                        M[r0:r0 + cin, c0:c0 + cout] += w_np[:, :, ky, kx]
            entries.append((len(mats), dy + pad_lo))
            mats.append(M)
        sched.append(tuple(entries))

    return dict(
        Hi=Hi, Wi=Wi, cin=cin, cout=cout, Wo=Wo,
        pad_lo=pad_lo, pad_hi=pad_hi, halo=halo,
        wt_size=wt_size, n_wt=Wi // wt_size, n_t=n_t, tile_h=Hi // n_t,
        span_in=span_in, span_out=span_out, sched=tuple(sched),
        wband=jnp.asarray(np.stack(mats)),            # (K, span_in, span_out)
        bias_row=jnp.asarray(np.tile(b_np, 2 * Wo)).reshape(1, -1),
    )


def conv_transpose_phase_pallas(x_flat, lp, act):
    """x_flat: (B, Hi, Wi*Cin) lane-flat NHWC -> (B, 2*Hi, Wo*Cout)."""
    B = x_flat.shape[0]
    Hi, Wi, cin, cout, Wo = lp["Hi"], lp["Wi"], lp["cin"], lp["cout"], lp["Wo"]
    Hip, Wip = Hi + lp["halo"], Wi + lp["halo"]
    # TODO(synk): the tiny zero-pad halo stays as plain-JAX glue; it could be
    # fused into the previous layer's output kernel to save one HBM pass.
    x4 = x_flat.reshape(B, Hi, Wi, cin)
    xp = jnp.pad(x4, ((0, 0), (lp["pad_lo"], lp["pad_hi"]),
                      (lp["pad_lo"], lp["pad_hi"]), (0, 0)))
    xpf = xp.reshape(B, Hip, Wip * cin)

    tile_h, n_t = lp["tile_h"], lp["n_t"]
    out_lanes = 2 * Wo * cout
    kernel = functools.partial(
        _convt_kernel, tile_h=tile_h, wt_size=lp["wt_size"], n_wt=lp["n_wt"],
        cin=cin, cout=cout, wo=Wo, span_in=lp["span_in"],
        span_out=lp["span_out"], sched=lp["sched"], act=act)
    out = pl.pallas_call(
        kernel,
        out_shape=jax.ShapeDtypeStruct((B, Hi, out_lanes), jnp.float32),
        grid=(B, n_t),
        in_specs=[
            pl.BlockSpec((1, Hip, Wip * cin), lambda bb, tt: (bb, 0, 0)),
            pl.BlockSpec(lp["wband"].shape, lambda bb, tt: (0, 0, 0)),
            pl.BlockSpec((1, out_lanes), lambda bb, tt: (0, 0)),
        ],
        out_specs=pl.BlockSpec((1, tile_h, out_lanes),
                               lambda bb, tt: (bb, tt, 0)),
        compiler_params=pltpu.CompilerParams(
            dimension_semantics=("parallel", "parallel"),
            vmem_limit_bytes=VMEM_LIMIT),
    )(xpf, lp["wband"], lp["bias_row"])
    # (B, Hi, 2*Wo*Cout) has exactly the memory layout of NHWC (B, 2*Hi, Wo, C).
    return out.reshape(B, 2 * Hi, Wo * cout)


# ------------------------------ Decoder model --------------------------------

CONV_CFGS = [
    # (name, Cin, Cout, K, stride, padding, output_padding, activation)
    ("ct1", 8, 16, 5, 2, 2, 1, "relu"),
    ("ct2", 16, 32, 3, 2, 1, 1, "relu"),
    ("ct3", 32, 16, 3, 2, 1, 1, "relu"),
    ("ct4", 16, 8, 3, 2, 1, 1, "relu"),
    ("ct5", 8, 3, 3, 2, 1, 1, "sigmoid"),
]

# Per-layer (input H, input W, width-tile size, number of output-row tiles).
# tile_h = Hi // n_t is either the full H or a multiple of 8 (BlockSpec rule).
CONV_TILING = {
    "ct1": (15, 20, 10, 1),
    "ct2": (30, 40, 10, 1),
    "ct3": (60, 80, 10, 1),
    "ct4": (120, 160, 16, 5),
    "ct5": (240, 320, 16, 5),
}


def init_params(key, latent_dim=512):
    """Deterministic synthetic parameters (PyTorch-like uniform init)."""
    ks = jax.random.split(key, 2 + len(CONV_CFGS))

    def u(k, shape, fan_in):
        lim = 1.0 / jnp.sqrt(float(fan_in))
        return jax.random.uniform(k, shape, jnp.float32, -lim, lim)

    p = {}
    k1w, k1b = jax.random.split(ks[0])
    p["W1"] = u(k1w, (latent_dim, 1024), latent_dim)   # stored (in, out)
    p["b1"] = u(k1b, (1024,), latent_dim)
    k2w, k2b = jax.random.split(ks[1])
    p["W2"] = u(k2w, (1024, 2400), 1024)
    p["b2"] = u(k2b, (2400,), 1024)
    for i, (name, cin, cout, K, *_rest) in enumerate(CONV_CFGS):
        kw, kb = jax.random.split(ks[2 + i])
        fan = cin * K * K
        p[name + "_w"] = u(kw, (cin, cout, K, K), fan)  # PyTorch layout
        p[name + "_b"] = u(kb, (cout,), fan)
    return p


def preprocess_params(p):
    """One-time host-side weight layout transforms for the Pallas forward."""
    # Permute l2 columns from (C=8, H=15, W=20) to NHWC (H, W, C) order so the
    # fused MLP output is directly the convt1 input layout (no transpose op).
    W2p = np.asarray(p["W2"], np.float32).reshape(1024, 8, 15, 20)
    W2p = np.ascontiguousarray(W2p.transpose(0, 2, 3, 1)).reshape(1024, 2400)
    b2p = np.asarray(p["b2"], np.float32).reshape(8, 15, 20)
    b2p = np.ascontiguousarray(b2p.transpose(1, 2, 0)).reshape(2400)

    prep = {"W1": p["W1"], "b1": p["b1"],
            "W2p": jnp.asarray(W2p), "b2p": jnp.asarray(b2p), "convs": []}
    for (name, _cin, _cout, K, _s, pad, _op, act) in CONV_CFGS:
        Hi, Wi, wt_size, n_t = CONV_TILING[name]
        lp = prep_conv_layer(p[name + "_w"], p[name + "_b"], Hi, Wi, K, pad,
                             wt_size, n_t)
        prep["convs"].append((lp, act))
    return prep


def decoder_forward_pallas(x, prep):
    B = x.shape[0]
    h = mlp_pallas(x, prep["W1"], prep["b1"], prep["W2p"], prep["b2p"])
    h = h.reshape(B, 15, 20 * 8)                  # lane-flat NHWC (15, 20, 8)
    for (lp, act) in prep["convs"]:
        h = conv_transpose_phase_pallas(h, lp, act)
    out = h.reshape(B, 480, 640, 3)
    # TODO(synk): final NHWC -> NCHW transpose is plain-JAX layout glue to
    # match the PyTorch output convention.
    return out.transpose(0, 3, 1, 2)


# ------------------------- Plain-JAX reference check -------------------------

def decoder_forward_ref(x, p):
    B = x.shape[0]
    h = jnp.maximum(x @ p["W1"] + p["b1"], 0.0)
    h = jnp.maximum(h @ p["W2"] + p["b2"], 0.0)
    h = h.reshape(B, 8, 15, 20).transpose(0, 2, 3, 1)
    for (name, _cin, _cout, K, s, pad, op, act) in CONV_CFGS:
        w = p[name + "_w"]
        w_conv = jnp.flip(w, axis=(2, 3)).transpose(2, 3, 0, 1)  # HWIO
        h = jax.lax.conv_general_dilated(
            h, w_conv, window_strides=(1, 1),
            padding=[(K - 1 - pad, K - 1 - pad + op)] * 2,
            lhs_dilation=(s, s),
            dimension_numbers=("NHWC", "HWIO", "NHWC"))
        h = h + p[name + "_b"][None, None, None, :]
        h = jnp.maximum(h, 0.0) if act == "relu" else jax.nn.sigmoid(h)
    return h.transpose(0, 3, 1, 2)


if __name__ == "__main__":
    key = jax.random.PRNGKey(0)
    pkey, xkey = jax.random.split(key)
    params = init_params(pkey, latent_dim=512)
    x = jax.random.normal(xkey, (2, 512), jnp.float32)          # (B, latent)

    prep = preprocess_params(params)
    out = decoder_forward_pallas(x, prep)
    out = jax.block_until_ready(out)
    assert out.shape == (2, 3, 480, 640), out.shape

    ref = jax.block_until_ready(decoder_forward_ref(x, params))
    err = float(jnp.max(jnp.abs(out - ref)))
    assert err < 5e-2, f"max abs err vs reference: {err}"

    print("KERNEL_OK")
</pallas_src>

<mosaic_0001>
module attributes {stable_mosaic.version = 11 : i64} {
  func.func @_mlp_kernel(%arg0: memref<2x512xf32, #tpu.memory_space<vmem>>, %arg1: memref<512x1024xf32, #tpu.memory_space<vmem>>, %arg2: memref<1x1024xf32, #tpu.memory_space<vmem>>, %arg3: memref<1024x2400xf32, #tpu.memory_space<vmem>>, %arg4: memref<1x2400xf32, #tpu.memory_space<vmem>>, %arg5: memref<2x2400xf32, #tpu.memory_space<vmem>>) attributes {dimension_semantics = [], scalar_prefetch = 0 : i64, scratch_operands = 0 : i64, tpu.core_type = #tpu.core_type<tc>} {
    %c0 = arith.constant 0 : index
    %c0_0 = arith.constant 0 : index
    %0 = vector.load %arg0[%c0, %c0_0] : memref<2x512xf32, #tpu.memory_space<vmem>>, vector<2x512xf32>
    %c0_1 = arith.constant 0 : index
    %c0_2 = arith.constant 0 : index
    %1 = vector.load %arg1[%c0_1, %c0_2] : memref<512x1024xf32, #tpu.memory_space<vmem>>, vector<512x1024xf32>
    %cst = arith.constant dense<0.000000e+00> : vector<2x1024xf32>
    %2 = tpu.matmul %0, %1, %cst {dimension_numbers = #tpu.dot_dimension_numbers<[1], [0], [0], [1], [0, 0, 1, 1], [], []>} : vector<2x512xf32>, vector<512x1024xf32>, vector<2x1024xf32> -> vector<2x1024xf32>
    %c0_3 = arith.constant 0 : index
    %c0_4 = arith.constant 0 : index
    %3 = vector.load %arg2[%c0_3, %c0_4] : memref<1x1024xf32, #tpu.memory_space<vmem>>, vector<1x1024xf32>
    %4 = vector.broadcast %3 : vector<1x1024xf32> to vector<2x1024xf32>
    %5 = arith.addf %2, %4 : vector<2x1024xf32>
    %cst_5 = arith.constant 0.000000e+00 : f32
    %6 = vector.broadcast %cst_5 : f32 to vector<2x1024xf32>
    %7 = arith.maximumf %5, %6 : vector<2x1024xf32>
    %c0_6 = arith.constant 0 : index
    %c0_7 = arith.constant 0 : index
    %8 = vector.load %arg3[%c0_6, %c0_7] : memref<1024x2400xf32, #tpu.memory_space<vmem>>, vector<1024x2400xf32>
    %cst_8 = arith.constant dense<0.000000e+00> : vector<2x2400xf32>
    %9 = tpu.matmul %7, %8, %cst_8 {dimension_numbers = #tpu.dot_dimension_numbers<[1], [0], [0], [1], [0, 0, 1, 1], [], []>} : vector<2x1024xf32>, vector<1024x2400xf32>, vector<2x2400xf32> -> vector<2x2400xf32>
    %c0_9 = arith.constant 0 : index
    %c0_10 = arith.constant 0 : index
    %10 = vector.load %arg4[%c0_9, %c0_10] : memref<1x2400xf32, #tpu.memory_space<vmem>>, vector<1x2400xf32>
    %11 = vector.broadcast %10 : vector<1x2400xf32> to vector<2x2400xf32>
    %12 = arith.addf %9, %11 : vector<2x2400xf32>
    %cst_11 = arith.constant 0.000000e+00 : f32
    %13 = vector.broadcast %cst_11 : f32 to vector<2x2400xf32>
    %14 = arith.maximumf %12, %13 : vector<2x2400xf32>
    %c0_12 = arith.constant 0 : index
    %c0_13 = arith.constant 0 : index
    %15 = vector.load %arg5[%c0_12, %c0_13] : memref<2x2400xf32, #tpu.memory_space<vmem>>, vector<2x2400xf32>
    tpu.vector_store %arg5[%c0_12, %c0_13], %14 {strides = array<i32>} : memref<2x2400xf32, #tpu.memory_space<vmem>>, vector<2x2400xf32>,
    return
  }
}

</mosaic_0001>

<bundles_post_ra>
// kernel: tpu_custom_call.1
= control target key start
LH: loop header
LB: loop body
LE: loop exit
PB: predicated region body
PF: predicated region fallthrough
CT: control target
= control target key end

     0   :  { %s16002_s0 = inlined_call_operand.vmem [shape: f32[2,512], index: 0, kind: input, shape index: {}]   ;;  %s16003_s1 = inlined_call_operand.vmem [shape: f32[512,1024], index: 1, kind: input, shape index: {}]   ;;  %s16004_s2 = inlined_call_operand.vmem [shape: f32[1,1024], index: 2, kind: input, shape index: {}]   ;;  %s16005_s3 = inlined_call_operand.vmem [shape: f32[1024,2400], index: 3, kind: input, shape index: {}]   ;;  %s16006_s4 = inlined_call_operand.vmem [shape: f32[1,2400], index: 4, kind: input, shape index: {}]   ;;  %s16007_s5 = inlined_call_operand.hbm [shape: f32[2,2400], index: 5, kind: output, shape index: {}]  }
   0x1   :  { %v143_v0 = vld [vmem:[%s16003_s1 + $0x3c8] sm:$0xff]  ;;  %v142_v2 = vld [vmem:[%s16003_s1 + $0x3c0] sm:$0xff] }
   0x2   :  { %v399_v1 = vld [vmem:[%s16003_s1 + $0xbc8] sm:$0xff]  ;;  %598 = vmatprep.subr.mxu0 %v143_v0  ;;  %v398_v3 = vld [vmem:[%s16003_s1 + $0xbc0] sm:$0xff] }
   0x3   :  { %669 = vmatprep.subr.mxu1 %v399_v1  ;;  %v135_v4 = vld [vmem:[%s16003_s1 + $0x388] sm:$0xff]  ;;  %599 = vmatpush1.msra.mxu0 %v142_v2  ;;  %v134_v6 = vld [vmem:[%s16003_s1 + $0x380] sm:$0xff] }
   0x4   :  { %v391_v5 = vld [vmem:[%s16003_s1 + $0xb88] sm:$0xff]  ;;  %670 = vmatpush1.msra.mxu1 %v398_v3  ;;  %v390_v7 = vld [vmem:[%s16003_s1 + $0xb80] sm:$0xff]  ;;  %600 = vmatprep.subr.mxu0 %v135_v4 }
   0x5   :  { %v127_v8 = vld [vmem:[%s16003_s1 + $0x348] sm:$0xff]  ;;  %671 = vmatprep.subr.mxu1 %v391_v5  ;;  %v126_v10 = vld [vmem:[%s16003_s1 + $0x340] sm:$0xff]  ;;  %601 = vmatpush1.msra.mxu0 %v134_v6 }
   0x6   :  { %v383_v9 = vld [vmem:[%s16003_s1 + $0xb48] sm:$0xff]  ;;  %v382_v11 = vld [vmem:[%s16003_s1 + $0xb40] sm:$0xff]  ;;  %672 = vmatpush1.msra.mxu1 %v390_v7  ;;  %602 = vmatprep.subr.mxu0 %v127_v8 }
   0x7   :  { %v119_v12 = vld [vmem:[%s16003_s1 + $0x308] sm:$0xff]  ;;  %673 = vmatprep.subr.mxu1 %v383_v9  ;;  %v118_v14 = vld [vmem:[%s16003_s1 + $0x300] sm:$0xff]  ;;  %603 = vmatpush1.msra.mxu0 %v126_v10 }
   0x8   :  { %v375_v13 = vld [vmem:[%s16003_s1 + $0xb08] sm:$0xff]  ;;  %v374_v15 = vld [vmem:[%s16003_s1 + $0xb00] sm:$0xff]  ;;  %674 = vmatpush1.msra.mxu1 %v382_v11  ;;  %604 = vmatprep.subr.mxu0 %v119_v12 }
   0x9   :  { %v111_v16 = vld [vmem:[%s16003_s1 + $0x2c8] sm:$0xff]  ;;  %675 = vmatprep.subr.mxu1 %v375_v13  ;;  %v110_v18 = vld [vmem:[%s16003_s1 + $0x2c0] sm:$0xff]  ;;  %605 = vmatpush1.msra.mxu0 %v118_v14 }
   0xa   :  { %v367_v17 = vld [vmem:[%s16003_s1 + $0xac8] sm:$0xff]  ;;  %v366_v19 = vld [vmem:[%s16003_s1 + $0xac0] sm:$0xff]  ;;  %676 = vmatpush1.msra.mxu1 %v374_v15  ;;  %606 = vmatprep.subr.mxu0 %v111_v16 }
   0xb   :  { %v103_v20 = vld [vmem:[%s16003_s1 + $0x288] sm:$0xff]  ;;  %677 = vmatprep.subr.mxu1 %v367_v17  ;;  %v102_v22 = vld [vmem:[%s16003_s1 + $0x280] sm:$0xff]  ;;  %607 = vmatpush1.msra.mxu0 %v110_v18 }
   0xc   :  { %v359_v21 = vld [vmem:[%s16003_s1 + $0xa88] sm:$0xff]  ;;  %v358_v23 = vld [vmem:[%s16003_s1 + $0xa80] sm:$0xff]  ;;  %678 = vmatpush1.msra.mxu1 %v366_v19  ;;  %608 = vmatprep.subr.mxu0 %v103_v20 }
   0xd   :  { %v95_v24 = vld [vmem:[%s16003_s1 + $0x248] sm:$0xff]  ;;  %679 = vmatprep.subr.mxu1 %v359_v21  ;;  %v94_v26 = vld [vmem:[%s16003_s1 + $0x240] sm:$0xff]  ;;  %609 = vmatpush1.msra.mxu0 %v102_v22 }
   0xe   :  { %v351_v25 = vld [vmem:[%s16003_s1 + $0xa48] sm:$0xff]  ;;  %v350_v27 = vld [vmem:[%s16003_s1 + $0xa40] sm:$0xff]  ;;  %680 = vmatpush1.msra.mxu1 %v358_v23  ;;  %610 = vmatprep.subr.mxu0 %v95_v24 }
   0xf   :  { %v87_v28 = vld [vmem:[%s16003_s1 + $0x208] sm:$0xff]  ;;  %681 = vmatprep.subr.mxu1 %v351_v25  ;;  %v86_v30 = vld [vmem:[%s16003_s1 + $0x200] sm:$0xff]  ;;  %611 = vmatpush1.msra.mxu0 %v94_v26 }
  0x10   :  { %v343_v29 = vld [vmem:[%s16003_s1 + $0xa08] sm:$0xff]  ;;  %v342_v31 = vld [vmem:[%s16003_s1 + $0xa00] sm:$0xff]  ;;  %682 = vmatpush1.msra.mxu1 %v350_v27  ;;  %612 = vmatprep.subr.mxu0 %v87_v28 }
  0x11   :  { %v79_v32 = vld [vmem:[%s16003_s1 + $0x1c8] sm:$0xff]  ;;  %683 = vmatprep.subr.mxu1 %v343_v29  ;;  %v78_v34 = vld [vmem:[%s16003_s1 + $0x1c0] sm:$0xff]  ;;  %613 = vmatpush1.msra.mxu0 %v86_v30  ;;  %v536_v30 = vlaneseq }
  0x12   :  { %v335_v33 = vld [vmem:[%s16003_s1 + $0x9c8] sm:$0xff]  ;;  %v334_v35 = vld [vmem:[%s16003_s1 + $0x9c0] sm:$0xff]  ;;  %684 = vmatpush1.msra.mxu1 %v342_v31  ;;  %614 = vmatprep.subr.mxu0 %v79_v32  ;;  %v6862_v31 = vmov 1983009808  }
  0x13   :  { %v71_v36 = vld [vmem:[%s16003_s1 + $0x188] sm:$0xff]  ;;  %685 = vmatprep.subr.mxu1 %v335_v33  ;;  %v70_v38 = vld [vmem:[%s16003_s1 + $0x180] sm:$0xff]  ;;  %615 = vmatpush1.msra.mxu0 %v78_v34  ;;  %v579_v32 = vunpack.c.l.s4 %v6862_v31  ;;  %v368_v31 = vld [vmem:[%s16003_s1 + $0xad0] sm:$0xff] }
  0x14   :  { %v327_v37 = vld [vmem:[%s16003_s1 + $0x988] sm:$0xff]  ;;  %v326_v39 = vld [vmem:[%s16003_s1 + $0x980] sm:$0xff]  ;;  %686 = vmatpush1.msra.mxu1 %v334_v35  ;;  %616 = vmatprep.subr.mxu0 %v71_v36 }
  0x15   :  { %v63_v40 = vld [vmem:[%s16003_s1 + $0x148] sm:$0xff]  ;;  %687 = vmatprep.subr.mxu1 %v327_v37  ;;  %v62_v42 = vld [vmem:[%s16003_s1 + $0x140] sm:$0xff]  ;;  %617 = vmatpush1.msra.mxu0 %v70_v38 }
  0x16   :  { %v319_v41 = vld [vmem:[%s16003_s1 + $0x948] sm:$0xff]  ;;  %v318_v43 = vld [vmem:[%s16003_s1 + $0x940] sm:$0xff]  ;;  %688 = vmatpush1.msra.mxu1 %v326_v39  ;;  %618 = vmatprep.subr.mxu0 %v63_v40 }
  0x17   :  { %v55_v44 = vld [vmem:[%s16003_s1 + $0x108] sm:$0xff]  ;;  %689 = vmatprep.subr.mxu1 %v319_v41  ;;  %v54_v46 = vld [vmem:[%s16003_s1 + $0x100] sm:$0xff]  ;;  %619 = vmatpush1.msra.mxu0 %v62_v42  ;;  %v7200_v41 = vshrl.u32 %v536_v30, 7  ;;  %v580_v42 = vunpack.c.0.s8 %v579_v32  ;;  %v112_v30 = vld [vmem:[%s16003_s1 + $0x2d0] sm:$0xff] }
  0x18   :  { %v311_v45 = vld [vmem:[%s16003_s1 + $0x908] sm:$0xff]  ;;  %v310_v47 = vld [vmem:[%s16003_s1 + $0x900] sm:$0xff]  ;;  %690 = vmatpush1.msra.mxu1 %v318_v43  ;;  %620 = vmatprep.subr.mxu0 %v55_v44  ;;  %v105_v32 = vld [vmem:[%s16003_s1 + $0x298] sm:$0xff] }
  0x19   :  { %v47_v48 = vld [vmem:[%s16003_s1 + $0xc8] sm:$0xff]  ;;  %691 = vmatprep.subr.mxu1 %v311_v45  ;;  %v46_v50 = vld [vmem:[%s16003_s1 + $0xc0] sm:$0xff]  ;;  %621 = vmatpush1.msra.mxu0 %v54_v46 }
  0x1a   :  { %v303_v49 = vld [vmem:[%s16003_s1 + $0x8c8] sm:$0xff]  ;;  %v302_v51 = vld [vmem:[%s16003_s1 + $0x8c0] sm:$0xff]  ;;  %692 = vmatpush1.msra.mxu1 %v310_v47  ;;  %622 = vmatprep.subr.mxu0 %v47_v48 }
  0x1b   :  { %v39_v52 = vld [vmem:[%s16003_s1 + $0x88] sm:$0xff]  ;;  %693 = vmatprep.subr.mxu1 %v303_v49  ;;  %v38_v54 = vld [vmem:[%s16003_s1 + $0x80] sm:$0xff]  ;;  %623 = vmatpush1.msra.mxu0 %v46_v50 }
  0x1c   :  { %v295_v53 = vld [vmem:[%s16003_s1 + $0x888] sm:$0xff]  ;;  %v294_v55 = vld [vmem:[%s16003_s1 + $0x880] sm:$0xff]  ;;  %694 = vmatpush1.msra.mxu1 %v302_v51  ;;  %624 = vmatprep.subr.mxu0 %v39_v52  ;;  %v7230_v52 = vsub.s32 %v580_v42, %v7200_v41  ;;  %v345_v42 = vld [vmem:[%s16003_s1 + $0xa18] sm:$0xff] }
  0x1d   :  { %v31_v56 = vld [vmem:[%s16003_s1 + $0x48] sm:$0xff]  ;;  %695 = vmatprep.subr.mxu1 %v295_v53  ;;  %v30_v58 = vld [vmem:[%s16003_s1 + $0x40] sm:$0xff]  ;;  %625 = vmatpush1.msra.mxu0 %v38_v54 }
  0x1e   :  { %v287_v57 = vld [vmem:[%s16003_s1 + $0x848] sm:$0xff]  ;;  %v286_v59 = vld [vmem:[%s16003_s1 + $0x840] sm:$0xff]  ;;  %696 = vmatpush1.msra.mxu1 %v294_v55  ;;  %626 = vmatprep.subr.mxu0 %v31_v56 }
  0x1f   :  { %v23_v60 = vld [vmem:[%s16003_s1 + $0x8] sm:$0xff]  ;;  %697 = vmatprep.subr.mxu1 %v287_v57  ;;  %v22_v62 = vld [vmem:[%s16003_s1] sm:$0xff]  ;;  %627 = vmatpush1.msra.mxu0 %v30_v58 }
  0x20   :  { %v279_v61 = vld [vmem:[%s16003_s1 + $0x808] sm:$0xff]  ;;  %v278_v63 = vld [vmem:[%s16003_s1 + $0x800] sm:$0xff]  ;;  %698 = vmatpush1.msra.mxu1 %v286_v59  ;;  %628 = vmatprep.subr.mxu0 %v23_v60 }
  0x21   :  { %v271_v0 = vld [vmem:[%s16003_s1 + $0x7c8] sm:$0xff]  ;;  %699 = vmatprep.subr.mxu1 %v279_v61  ;;  %v270_v2 = vld [vmem:[%s16003_s1 + $0x7c0] sm:$0xff]  ;;  %629 = vmatpush1.msra.mxu0 %v22_v62 }
  0x22   :  { %v527_v1 = vld [vmem:[%s16003_s1 + $0xfc8] sm:$0xff]  ;;  %v526_v3 = vld [vmem:[%s16003_s1 + $0xfc0] sm:$0xff]  ;;  %700 = vmatpush1.msra.mxu1 %v278_v63  ;;  %630 = vmatprep.subr.mxu0 %v271_v0 }
  0x23   :  { %v263_v4 = vld [vmem:[%s16003_s1 + $0x788] sm:$0xff]  ;;  %701 = vmatprep.subr.mxu1 %v527_v1  ;;  %v262_v6 = vld [vmem:[%s16003_s1 + $0x780] sm:$0xff]  ;;  %631 = vmatpush2.msra.mxu0 %v270_v2 }
  0x24   :  { %v519_v5 = vld [vmem:[%s16003_s1 + $0xf88] sm:$0xff]  ;;  %v518_v7 = vld [vmem:[%s16003_s1 + $0xf80] sm:$0xff]  ;;  %702 = vmatpush2.msra.mxu1 %v526_v3  ;;  %632 = vmatprep.subr.mxu0 %v263_v4 }
  0x25   :  { %v255_v8 = vld [vmem:[%s16003_s1 + $0x748] sm:$0xff]  ;;  %703 = vmatprep.subr.mxu1 %v519_v5  ;;  %v254_v10 = vld [vmem:[%s16003_s1 + $0x740] sm:$0xff]  ;;  %633 = vmatpush2.msra.mxu0 %v262_v6 }
  0x26   :  { %v511_v9 = vld [vmem:[%s16003_s1 + $0xf48] sm:$0xff]  ;;  %v510_v11 = vld [vmem:[%s16003_s1 + $0xf40] sm:$0xff]  ;;  %704 = vmatpush2.msra.mxu1 %v518_v7  ;;  %634 = vmatprep.subr.mxu0 %v255_v8 }
  0x27   :  { %v247_v12 = vld [vmem:[%s16003_s1 + $0x708] sm:$0xff]  ;;  %705 = vmatprep.subr.mxu1 %v511_v9  ;;  %v246_v14 = vld [vmem:[%s16003_s1 + $0x700] sm:$0xff]  ;;  %635 = vmatpush2.msra.mxu0 %v254_v10 }
  0x28   :  { %v503_v13 = vld [vmem:[%s16003_s1 + $0xf08] sm:$0xff]  ;;  %v502_v15 = vld [vmem:[%s16003_s1 + $0xf00] sm:$0xff]  ;;  %706 = vmatpush2.msra.mxu1 %v510_v11  ;;  %636 = vmatprep.subr.mxu0 %v247_v12  ;;  %v145_v12 = vld [vmem:[%s16003_s1 + $0x3d8] sm:$0xff] }
  0x29   :  { %v239_v16 = vld [vmem:[%s16003_s1 + $0x6c8] sm:$0xff]  ;;  %707 = vmatprep.subr.mxu1 %v503_v13  ;;  %v238_v18 = vld [vmem:[%s16003_s1 + $0x6c0] sm:$0xff]  ;;  %637 = vmatpush2.msra.mxu0 %v246_v14  ;;  %v401_v13 = vld [vmem:[%s16003_s1 + $0xbd8] sm:$0xff] }
  0x2a   :  { %v495_v17 = vld [vmem:[%s16003_s1 + $0xec8] sm:$0xff]  ;;  %v494_v19 = vld [vmem:[%s16003_s1 + $0xec0] sm:$0xff]  ;;  %708 = vmatpush2.msra.mxu1 %v502_v15  ;;  %638 = vmatprep.subr.mxu0 %v239_v16  ;;  %v144_v14 = vld [vmem:[%s16003_s1 + $0x3d0] sm:$0xff] }
  0x2b   :  { %v231_v20 = vld [vmem:[%s16003_s1 + $0x688] sm:$0xff]  ;;  %709 = vmatprep.subr.mxu1 %v495_v17  ;;  %v230_v22 = vld [vmem:[%s16003_s1 + $0x680] sm:$0xff]  ;;  %639 = vmatpush2.msra.mxu0 %v238_v18  ;;  %v400_v15 = vld [vmem:[%s16003_s1 + $0xbd0] sm:$0xff] }
  0x2c   :  { %v487_v21 = vld [vmem:[%s16003_s1 + $0xe88] sm:$0xff]  ;;  %v486_v23 = vld [vmem:[%s16003_s1 + $0xe80] sm:$0xff]  ;;  %710 = vmatpush2.msra.mxu1 %v494_v19  ;;  %640 = vmatprep.subr.mxu0 %v231_v20  ;;  %v137_v16 = vld [vmem:[%s16003_s1 + $0x398] sm:$0xff] }
  0x2d   :  { %v223_v24 = vld [vmem:[%s16003_s1 + $0x648] sm:$0xff]  ;;  %711 = vmatprep.subr.mxu1 %v487_v21  ;;  %v222_v26 = vld [vmem:[%s16003_s1 + $0x640] sm:$0xff]  ;;  %641 = vmatpush2.msra.mxu0 %v230_v22  ;;  %v393_v17 = vld [vmem:[%s16003_s1 + $0xb98] sm:$0xff] }
  0x2e   :  { %v479_v25 = vld [vmem:[%s16003_s1 + $0xe48] sm:$0xff]  ;;  %v478_v27 = vld [vmem:[%s16003_s1 + $0xe40] sm:$0xff]  ;;  %712 = vmatpush2.msra.mxu1 %v486_v23  ;;  %642 = vmatprep.subr.mxu0 %v223_v24  ;;  %v136_v18 = vld [vmem:[%s16003_s1 + $0x390] sm:$0xff] }
  0x2f   :  { %v215_v28 = vld [vmem:[%s16003_s1 + $0x608] sm:$0xff]  ;;  %713 = vmatprep.subr.mxu1 %v479_v25  ;;  %v214_v33 = vld [vmem:[%s16003_s1 + $0x600] sm:$0xff]  ;;  %643 = vmatpush2.msra.mxu0 %v222_v26  ;;  %v392_v19 = vld [vmem:[%s16003_s1 + $0xb90] sm:$0xff] }
  0x30   :  { %v471_v29 = vld [vmem:[%s16003_s1 + $0xe08] sm:$0xff]  ;;  %v470_v34 = vld [vmem:[%s16003_s1 + $0xe00] sm:$0xff]  ;;  %714 = vmatpush2.msra.mxu1 %v478_v27  ;;  %644 = vmatprep.subr.mxu0 %v215_v28  ;;  %v129_v20 = vld [vmem:[%s16003_s1 + $0x358] sm:$0xff] }
  0x31   :  { %v207_v35 = vld [vmem:[%s16003_s1 + $0x5c8] sm:$0xff]  ;;  %715 = vmatprep.subr.mxu1 %v471_v29  ;;  %v206_v37 = vld [vmem:[%s16003_s1 + $0x5c0] sm:$0xff]  ;;  %645 = vmatpush2.msra.mxu0 %v214_v33  ;;  %v385_v21 = vld [vmem:[%s16003_s1 + $0xb58] sm:$0xff] }
  0x32   :  { %v463_v36 = vld [vmem:[%s16003_s1 + $0xdc8] sm:$0xff]  ;;  %v462_v38 = vld [vmem:[%s16003_s1 + $0xdc0] sm:$0xff]  ;;  %716 = vmatpush2.msra.mxu1 %v470_v34  ;;  %646 = vmatprep.subr.mxu0 %v207_v35  ;;  %v128_v22 = vld [vmem:[%s16003_s1 + $0x350] sm:$0xff] }
  0x33   :  { %v199_v39 = vld [vmem:[%s16003_s1 + $0x588] sm:$0xff]  ;;  %717 = vmatprep.subr.mxu1 %v463_v36  ;;  %v198_v43 = vld [vmem:[%s16003_s1 + $0x580] sm:$0xff]  ;;  %647 = vmatpush2.msra.mxu0 %v206_v37  ;;  %v384_v23 = vld [vmem:[%s16003_s1 + $0xb50] sm:$0xff] }
  0x34   :  { %v455_v40 = vld [vmem:[%s16003_s1 + $0xd88] sm:$0xff]  ;;  %v454_v44 = vld [vmem:[%s16003_s1 + $0xd80] sm:$0xff]  ;;  %718 = vmatpush2.msra.mxu1 %v462_v38  ;;  %648 = vmatprep.subr.mxu0 %v199_v39  ;;  %v121_v24 = vld [vmem:[%s16003_s1 + $0x318] sm:$0xff] }
  0x35   :  { %v191_v45 = vld [vmem:[%s16003_s1 + $0x548] sm:$0xff]  ;;  %719 = vmatprep.subr.mxu1 %v455_v40  ;;  %v190_v47 = vld [vmem:[%s16003_s1 + $0x540] sm:$0xff]  ;;  %649 = vmatpush2.msra.mxu0 %v198_v43  ;;  %v377_v25 = vld [vmem:[%s16003_s1 + $0xb18] sm:$0xff] }
  0x36   :  { %v447_v46 = vld [vmem:[%s16003_s1 + $0xd48] sm:$0xff]  ;;  %v446_v48 = vld [vmem:[%s16003_s1 + $0xd40] sm:$0xff]  ;;  %720 = vmatpush2.msra.mxu1 %v454_v44  ;;  %650 = vmatprep.subr.mxu0 %v191_v45  ;;  %v120_v26 = vld [vmem:[%s16003_s1 + $0x310] sm:$0xff] }
  0x37   :  { %v21_v49 = vld [vmem:[%s16002_s0] sm:$0xff]  ;;  %v183_v50 = vld [vmem:[%s16003_s1 + $0x508] sm:$0xff]  ;;  %721 = vmatprep.subr.mxu1 %v447_v46  ;;  %651 = vmatpush2.msra.mxu0 %v190_v47  ;;  %v376_v27 = vld [vmem:[%s16003_s1 + $0xb10] sm:$0xff] }
  0x38   :  { %v439_v51 = vld [vmem:[%s16003_s1 + $0xd08] sm:$0xff]  ;;  %v182_v53 = vld [vmem:[%s16003_s1 + $0x500] sm:$0xff]  ;;  %722 = vmatpush2.msra.mxu1 %v446_v48  ;;  %v577_v57 = vcombine.high %v21_v49, %v21_v49  ;;  %652 = vmatprep.subr.mxu0 %v183_v50  ;;  %v7257_v62 = vrot.slane %v21_v49, %v7230_v52  ;;  %v113_v28 = vld [vmem:[%s16003_s1 + $0x2d8] sm:$0xff] }
  0x39   :  { %v438_v54 = vld [vmem:[%s16003_s1 + $0xd00] sm:$0xff]  ;;  %v175_v55 = vld [vmem:[%s16003_s1 + $0x4c8] sm:$0xff]  ;;  %723 = vmatprep.subr.mxu1 %v439_v51  ;;  %653 = vmatpush2.msra.mxu0 %v182_v53  ;;  %v369_v29 = vld [vmem:[%s16003_s1 + $0xad8] sm:$0xff] }
  0x3a   :  { %v431_v56 = vld [vmem:[%s16003_s1 + $0xcc8] sm:$0xff]  ;;  %v174_v58 = vld [vmem:[%s16003_s1 + $0x4c0] sm:$0xff]  ;;  %724 = vmatpush2.msra.mxu1 %v438_v54  ;;  %654 = vmatprep.subr.mxu0 %v175_v55  ;;  %v7272_v3 = vrot.slane %v577_v57, %v7230_v52  ;;  %v7288_v8 = vcombine.high %v7257_v62, %v7257_v62  ;;  %v361_v33 = vld [vmem:[%s16003_s1 + $0xa98] sm:$0xff] }
  0x3b   :  { %v430_v59 = vld [vmem:[%s16003_s1 + $0xcc0] sm:$0xff]  ;;  %v167_v60 = vld [vmem:[%s16003_s1 + $0x488] sm:$0xff]  ;;  %725 = vmatprep.subr.mxu1 %v431_v56  ;;  %655 = vmatpush2.msra.mxu0 %v174_v58  ;;  %v104_v34 = vld [vmem:[%s16003_s1 + $0x290] sm:$0xff] }
  0x3c   :  { %v423_v61 = vld [vmem:[%s16003_s1 + $0xc88] sm:$0xff]  ;;  %v166_v63 = vld [vmem:[%s16003_s1 + $0x480] sm:$0xff]  ;;  %726 = vmatpush2.msra.mxu1 %v430_v59  ;;  %656 = vmatprep.subr.mxu0 %v167_v60  ;;  %v7298_v11 = vcombine.high %v7272_v3, %v7272_v3  ;;  %v360_v35 = vld [vmem:[%s16003_s1 + $0xa90] sm:$0xff] }
  0x3d   :  { %v422_v0 = vld [vmem:[%s16003_s1 + $0xc80] sm:$0xff]  ;;  %v159_v1 = vld [vmem:[%s16003_s1 + $0x448] sm:$0xff]  ;;  %727 = vmatprep.subr.mxu1 %v423_v61  ;;  %657 = vmatpush2.msra.mxu0 %v166_v63  ;;  %v97_v36 = vld [vmem:[%s16003_s1 + $0x258] sm:$0xff] }
  0x3e   :  { %v415_v2 = vld [vmem:[%s16003_s1 + $0xc48] sm:$0xff]  ;;  %v158_v4 = vld [vmem:[%s16003_s1 + $0x440] sm:$0xff]  ;;  %728 = vmatpush2.msra.mxu1 %v422_v0  ;;  %658 = vmatprep.subr.mxu0 %v159_v1  ;;  %v353_v37 = vld [vmem:[%s16003_s1 + $0xa58] sm:$0xff] }
  0x3f   :  { %v414_v5 = vld [vmem:[%s16003_s1 + $0xc40] sm:$0xff]  ;;  %v151_v6 = vld [vmem:[%s16003_s1 + $0x408] sm:$0xff]  ;;  %729 = vmatprep.subr.mxu1 %v415_v2  ;;  %659 = vmatpush2.msra.mxu0 %v158_v4  ;;  %v96_v38 = vld [vmem:[%s16003_s1 + $0x250] sm:$0xff] }
  0x40   :  { %v407_v7 = vld [vmem:[%s16003_s1 + $0xc08] sm:$0xff]  ;;  %v150_v9 = vld [vmem:[%s16003_s1 + $0x400] sm:$0xff]  ;;  %730 = vmatpush2.msra.mxu1 %v414_v5  ;;  %660 = vmatprep.subr.mxu0 %v151_v6  ;;  %v352_v39 = vld [vmem:[%s16003_s1 + $0xa50] sm:$0xff] }
  0x41   :  { %v406_v10 = vld [vmem:[%s16003_s1 + $0xc00] sm:$0xff]  ;;  %731 = vmatprep.subr.mxu1 %v407_v7  ;;  %661 = vmatpush2.msra.mxu0 %v150_v9  ;;  %v89_v40 = vld [vmem:[%s16003_s1 + $0x218] sm:$0xff]  ;;  %v88_v43 = vld [vmem:[%s16003_s1 + $0x210] sm:$0xff] }
  0x42   :  { %662 = vmatprep.mubr.f32.mxu0 %v7288_v8  ;;  %732 = vmatpush2.msra.mxu1 %v406_v10  ;;  %v344_v44 = vld [vmem:[%s16003_s1 + $0xa10] sm:$0xff]  ;;  %v81_v45 = vld [vmem:[%s16003_s1 + $0x1d8] sm:$0xff] }
  0x43   :  { %663 = vmatmul.mubr.f32.vlgmr.msra.gmra.mxu0 %v7257_v62  ;;  %733 = vmatprep.mubr.f32.mxu1 %v7298_v11  ;;  %v337_v46 = vld [vmem:[%s16003_s1 + $0x9d8] sm:$0xff]  ;;  %v80_v47 = vld [vmem:[%s16003_s1 + $0x1d0] sm:$0xff] }
  0x44   :  { %740 = vmatprep.subr.mxu0 %v145_v12  ;;  %811 = vmatprep.subr.mxu1 %v401_v13  ;;  %v336_v48 = vld [vmem:[%s16003_s1 + $0x9d0] sm:$0xff]  ;;  %v73_v49 = vld [vmem:[%s16003_s1 + $0x198] sm:$0xff] }
  0x45   :  { %734 = vmatmul.mubr.f32.vlgmr.msra.gmra.mxu1 %v7272_v3  ;;  %741 = vmatpush1.msra.mxu0 %v144_v14  ;;  %v329_v50 = vld [vmem:[%s16003_s1 + $0x998] sm:$0xff]  ;;  %v72_v51 = vld [vmem:[%s16003_s1 + $0x190] sm:$0xff] }
  0x46   :  { %812 = vmatpush1.msra.mxu1 %v400_v15  ;;  %742 = vmatprep.subr.mxu0 %v137_v16  ;;  %v328_v53 = vld [vmem:[%s16003_s1 + $0x990] sm:$0xff]  ;;  %v65_v54 = vld [vmem:[%s16003_s1 + $0x158] sm:$0xff] }
  0x47   :  { %813 = vmatprep.subr.mxu1 %v393_v17  ;;  %743 = vmatpush1.msra.mxu0 %v136_v18  ;;  %v321_v55 = vld [vmem:[%s16003_s1 + $0x958] sm:$0xff]  ;;  %v64_v56 = vld [vmem:[%s16003_s1 + $0x150] sm:$0xff] }
  0x48   :  { %814 = vmatpush1.msra.mxu1 %v392_v19  ;;  %744 = vmatprep.subr.mxu0 %v129_v20  ;;  %v320_v57 = vld [vmem:[%s16003_s1 + $0x950] sm:$0xff]  ;;  %v57_v58 = vld [vmem:[%s16003_s1 + $0x118] sm:$0xff] }
  0x49   :  { %815 = vmatprep.subr.mxu1 %v385_v21  ;;  %745 = vmatpush1.msra.mxu0 %v128_v22  ;;  %v313_v59 = vld [vmem:[%s16003_s1 + $0x918] sm:$0xff]  ;;  %v56_v60 = vld [vmem:[%s16003_s1 + $0x110] sm:$0xff] }
  0x4a   :  { %816 = vmatpush1.msra.mxu1 %v384_v23  ;;  %746 = vmatprep.subr.mxu0 %v121_v24  ;;  %v312_v61 = vld [vmem:[%s16003_s1 + $0x910] sm:$0xff]  ;;  %v49_v63 = vld [vmem:[%s16003_s1 + $0xd8] sm:$0xff] }
  0x4b   :  { %817 = vmatprep.subr.mxu1 %v377_v25  ;;  %747 = vmatpush1.msra.mxu0 %v120_v26  ;;  %v305_v0 = vld [vmem:[%s16003_s1 + $0x8d8] sm:$0xff]  ;;  %v48_v1 = vld [vmem:[%s16003_s1 + $0xd0] sm:$0xff] }
  0x4c   :  { %818 = vmatpush1.msra.mxu1 %v376_v27  ;;  %748 = vmatprep.subr.mxu0 %v113_v28  ;;  %v304_v2 = vld [vmem:[%s16003_s1 + $0x8d0] sm:$0xff]  ;;  %v41_v4 = vld [vmem:[%s16003_s1 + $0x98] sm:$0xff] }
  0x4d   :  { %819 = vmatprep.subr.mxu1 %v369_v29  ;;  %749 = vmatpush1.msra.mxu0 %v112_v30  ;;  %v297_v5 = vld [vmem:[%s16003_s1 + $0x898] sm:$0xff]  ;;  %v40_v6 = vld [vmem:[%s16003_s1 + $0x90] sm:$0xff] }
  0x4e   :  { %820 = vmatpush1.msra.mxu1 %v368_v31  ;;  %750 = vmatprep.subr.mxu0 %v105_v32  ;;  %v296_v7 = vld [vmem:[%s16003_s1 + $0x890] sm:$0xff]  ;;  %v33_v9 = vld [vmem:[%s16003_s1 + $0x58] sm:$0xff] }
  0x4f   :  { %821 = vmatprep.subr.mxu1 %v361_v33  ;;  %751 = vmatpush1.msra.mxu0 %v104_v34  ;;  %v289_v10 = vld [vmem:[%s16003_s1 + $0x858] sm:$0xff]  ;;  %v32_v12 = vld [vmem:[%s16003_s1 + $0x50] sm:$0xff] }
  0x50   :  { %822 = vmatpush1.msra.mxu1 %v360_v35  ;;  %752 = vmatprep.subr.mxu0 %v97_v36  ;;  %v288_v13 = vld [vmem:[%s16003_s1 + $0x850] sm:$0xff]  ;;  %v25_v14 = vld [vmem:[%s16003_s1 + $0x18] sm:$0xff] }
  0x51   :  { %823 = vmatprep.subr.mxu1 %v353_v37  ;;  %753 = vmatpush1.msra.mxu0 %v96_v38  ;;  %v281_v15 = vld [vmem:[%s16003_s1 + $0x818] sm:$0xff]  ;;  %v24_v16 = vld [vmem:[%s16003_s1 + $0x10] sm:$0xff] }
  0x52   :  { %824 = vmatpush1.msra.mxu1 %v352_v39  ;;  %754 = vmatprep.subr.mxu0 %v89_v40  ;;  %v280_v17 = vld [vmem:[%s16003_s1 + $0x810] sm:$0xff]  ;;  %v273_v18 = vld [vmem:[%s16003_s1 + $0x7d8] sm:$0xff] }
  0x53   :  { %825 = vmatprep.subr.mxu1 %v345_v42  ;;  %755 = vmatpush1.msra.mxu0 %v88_v43  ;;  %v529_v19 = vld [vmem:[%s16003_s1 + $0xfd8] sm:$0xff]  ;;  %v272_v20 = vld [vmem:[%s16003_s1 + $0x7d0] sm:$0xff] }
  0x54   :  { %826 = vmatpush1.msra.mxu1 %v344_v44  ;;  %756 = vmatprep.subr.mxu0 %v81_v45  ;;  %v528_v21 = vld [vmem:[%s16003_s1 + $0xfd0] sm:$0xff]  ;;  %v265_v22 = vld [vmem:[%s16003_s1 + $0x798] sm:$0xff] }
  0x55   :  { %827 = vmatprep.subr.mxu1 %v337_v46  ;;  %757 = vmatpush1.msra.mxu0 %v80_v47  ;;  %v521_v23 = vld [vmem:[%s16003_s1 + $0xf98] sm:$0xff]  ;;  %v264_v24 = vld [vmem:[%s16003_s1 + $0x790] sm:$0xff] }
  0x56   :  { %828 = vmatpush1.msra.mxu1 %v336_v48  ;;  %758 = vmatprep.subr.mxu0 %v73_v49  ;;  %v520_v25 = vld [vmem:[%s16003_s1 + $0xf90] sm:$0xff]  ;;  %v257_v26 = vld [vmem:[%s16003_s1 + $0x758] sm:$0xff] }
  0x57   :  { %829 = vmatprep.subr.mxu1 %v329_v50  ;;  %759 = vmatpush1.msra.mxu0 %v72_v51  ;;  %v513_v27 = vld [vmem:[%s16003_s1 + $0xf58] sm:$0xff]  ;;  %v256_v28 = vld [vmem:[%s16003_s1 + $0x750] sm:$0xff] }
  0x58   :  { %830 = vmatpush1.msra.mxu1 %v328_v53  ;;  %760 = vmatprep.subr.mxu0 %v65_v54  ;;  %v512_v29 = vld [vmem:[%s16003_s1 + $0xf50] sm:$0xff]  ;;  %v249_v30 = vld [vmem:[%s16003_s1 + $0x718] sm:$0xff] }
  0x59   :  { %831 = vmatprep.subr.mxu1 %v321_v55  ;;  %761 = vmatpush1.msra.mxu0 %v64_v56  ;;  %v505_v31 = vld [vmem:[%s16003_s1 + $0xf18] sm:$0xff]  ;;  %v248_v32 = vld [vmem:[%s16003_s1 + $0x710] sm:$0xff] }
  0x5a   :  { %832 = vmatpush1.msra.mxu1 %v320_v57  ;;  %762 = vmatprep.subr.mxu0 %v57_v58  ;;  %v504_v33 = vld [vmem:[%s16003_s1 + $0xf10] sm:$0xff]  ;;  %v241_v34 = vld [vmem:[%s16003_s1 + $0x6d8] sm:$0xff] }
  0x5b   :  { %833 = vmatprep.subr.mxu1 %v313_v59  ;;  %763 = vmatpush1.msra.mxu0 %v56_v60  ;;  %v497_v35 = vld [vmem:[%s16003_s1 + $0xed8] sm:$0xff]  ;;  %v240_v36 = vld [vmem:[%s16003_s1 + $0x6d0] sm:$0xff] }
  0x5c   :  { %834 = vmatpush1.msra.mxu1 %v312_v61  ;;  %764 = vmatprep.subr.mxu0 %v49_v63  ;;  %v496_v37 = vld [vmem:[%s16003_s1 + $0xed0] sm:$0xff]  ;;  %v233_v38 = vld [vmem:[%s16003_s1 + $0x698] sm:$0xff] }
  0x5d   :  { %835 = vmatprep.subr.mxu1 %v305_v0  ;;  %765 = vmatpush1.msra.mxu0 %v48_v1  ;;  %v489_v39 = vld [vmem:[%s16003_s1 + $0xe98] sm:$0xff]  ;;  %v232_v40 = vld [vmem:[%s16003_s1 + $0x690] sm:$0xff] }
  0x5e   :  { %836 = vmatpush1.msra.mxu1 %v304_v2  ;;  %766 = vmatprep.subr.mxu0 %v41_v4  ;;  %v488_v42 = vld [vmem:[%s16003_s1 + $0xe90] sm:$0xff]  ;;  %v225_v43 = vld [vmem:[%s16003_s1 + $0x658] sm:$0xff] }
  0x5f   :  { %837 = vmatprep.subr.mxu1 %v297_v5  ;;  %767 = vmatpush1.msra.mxu0 %v40_v6  ;;  %v481_v44 = vld [vmem:[%s16003_s1 + $0xe58] sm:$0xff]  ;;  %v224_v45 = vld [vmem:[%s16003_s1 + $0x650] sm:$0xff] }
  0x60   :  { %838 = vmatpush1.msra.mxu1 %v296_v7  ;;  %768 = vmatprep.subr.mxu0 %v33_v9  ;;  %v480_v46 = vld [vmem:[%s16003_s1 + $0xe50] sm:$0xff]  ;;  %v217_v47 = vld [vmem:[%s16003_s1 + $0x618] sm:$0xff] }
  0x61   :  { %839 = vmatprep.subr.mxu1 %v289_v10  ;;  %769 = vmatpush1.msra.mxu0 %v32_v12  ;;  %v473_v48 = vld [vmem:[%s16003_s1 + $0xe18] sm:$0xff]  ;;  %v216_v49 = vld [vmem:[%s16003_s1 + $0x610] sm:$0xff] }
  0x62   :  { %840 = vmatpush1.msra.mxu1 %v288_v13  ;;  %770 = vmatprep.subr.mxu0 %v25_v14  ;;  %v472_v50 = vld [vmem:[%s16003_s1 + $0xe10] sm:$0xff]  ;;  %v209_v51 = vld [vmem:[%s16003_s1 + $0x5d8] sm:$0xff] }
  0x63   :  { %841 = vmatprep.subr.mxu1 %v281_v15  ;;  %771 = vmatpush1.msra.mxu0 %v24_v16  ;;  %v465_v53 = vld [vmem:[%s16003_s1 + $0xdd8] sm:$0xff]  ;;  %v208_v54 = vld [vmem:[%s16003_s1 + $0x5d0] sm:$0xff] }
  0x64   :  { %842 = vmatpush1.msra.mxu1 %v280_v17  ;;  %772 = vmatprep.subr.mxu0 %v273_v18  ;;  %v464_v55 = vld [vmem:[%s16003_s1 + $0xdd0] sm:$0xff]  ;;  %v201_v56 = vld [vmem:[%s16003_s1 + $0x598] sm:$0xff] }
  0x65   :  { %843 = vmatprep.subr.mxu1 %v529_v19  ;;  %773 = vmatpush2.msra.mxu0 %v272_v20  ;;  %v457_v57 = vld [vmem:[%s16003_s1 + $0xd98] sm:$0xff]  ;;  %v200_v58 = vld [vmem:[%s16003_s1 + $0x590] sm:$0xff] }
  0x66   :  { %844 = vmatpush2.msra.mxu1 %v528_v21  ;;  %774 = vmatprep.subr.mxu0 %v265_v22  ;;  %v456_v59 = vld [vmem:[%s16003_s1 + $0xd90] sm:$0xff]  ;;  %v193_v60 = vld [vmem:[%s16003_s1 + $0x558] sm:$0xff] }
  0x67   :  { %845 = vmatprep.subr.mxu1 %v521_v23  ;;  %775 = vmatpush2.msra.mxu0 %v264_v24  ;;  %v449_v61 = vld [vmem:[%s16003_s1 + $0xd58] sm:$0xff]  ;;  %v192_v63 = vld [vmem:[%s16003_s1 + $0x550] sm:$0xff]  ;;  %v147_v24 = vld [vmem:[%s16003_s1 + $0x3e8] sm:$0xff] }
  0x68   :  { %846 = vmatpush2.msra.mxu1 %v520_v25  ;;  %776 = vmatprep.subr.mxu0 %v257_v26  ;;  %v448_v0 = vld [vmem:[%s16003_s1 + $0xd50] sm:$0xff]  ;;  %v185_v1 = vld [vmem:[%s16003_s1 + $0x518] sm:$0xff]  ;;  %v403_v25 = vld [vmem:[%s16003_s1 + $0xbe8] sm:$0xff] }
  0x69   :  { %847 = vmatprep.subr.mxu1 %v513_v27  ;;  %777 = vmatpush2.msra.mxu0 %v256_v28  ;;  %v441_v2 = vld [vmem:[%s16003_s1 + $0xd18] sm:$0xff]  ;;  %v184_v4 = vld [vmem:[%s16003_s1 + $0x510] sm:$0xff]  ;;  %v146_v26 = vld [vmem:[%s16003_s1 + $0x3e0] sm:$0xff] }
  0x6a   :  { %848 = vmatpush2.msra.mxu1 %v512_v29  ;;  %778 = vmatprep.subr.mxu0 %v249_v30  ;;  %v440_v5 = vld [vmem:[%s16003_s1 + $0xd10] sm:$0xff]  ;;  %v177_v6 = vld [vmem:[%s16003_s1 + $0x4d8] sm:$0xff]  ;;  %v402_v27 = vld [vmem:[%s16003_s1 + $0xbe0] sm:$0xff] }
  0x6b   :  { %849 = vmatprep.subr.mxu1 %v505_v31  ;;  %779 = vmatpush2.msra.mxu0 %v248_v32  ;;  %v433_v7 = vld [vmem:[%s16003_s1 + $0xcd8] sm:$0xff]  ;;  %v176_v9 = vld [vmem:[%s16003_s1 + $0x4d0] sm:$0xff]  ;;  %v139_v28 = vld [vmem:[%s16003_s1 + $0x3a8] sm:$0xff] }
  0x6c   :  { %850 = vmatpush2.msra.mxu1 %v504_v33  ;;  %780 = vmatprep.subr.mxu0 %v241_v34  ;;  %v432_v10 = vld [vmem:[%s16003_s1 + $0xcd0] sm:$0xff]  ;;  %v169_v12 = vld [vmem:[%s16003_s1 + $0x498] sm:$0xff]  ;;  %v395_v29 = vld [vmem:[%s16003_s1 + $0xba8] sm:$0xff] }
  0x6d   :  { %851 = vmatprep.subr.mxu1 %v497_v35  ;;  %781 = vmatpush2.msra.mxu0 %v240_v36  ;;  %v425_v13 = vld [vmem:[%s16003_s1 + $0xc98] sm:$0xff]  ;;  %v168_v14 = vld [vmem:[%s16003_s1 + $0x490] sm:$0xff]  ;;  %v138_v30 = vld [vmem:[%s16003_s1 + $0x3a0] sm:$0xff] }
  0x6e   :  { %852 = vmatpush2.msra.mxu1 %v496_v37  ;;  %782 = vmatprep.subr.mxu0 %v233_v38  ;;  %v424_v15 = vld [vmem:[%s16003_s1 + $0xc90] sm:$0xff]  ;;  %v161_v16 = vld [vmem:[%s16003_s1 + $0x458] sm:$0xff]  ;;  %v394_v31 = vld [vmem:[%s16003_s1 + $0xba0] sm:$0xff] }
  0x6f   :  { %853 = vmatprep.subr.mxu1 %v489_v39  ;;  %783 = vmatpush2.msra.mxu0 %v232_v40  ;;  %v417_v17 = vld [vmem:[%s16003_s1 + $0xc58] sm:$0xff]  ;;  %v160_v18 = vld [vmem:[%s16003_s1 + $0x450] sm:$0xff]  ;;  %v131_v32 = vld [vmem:[%s16003_s1 + $0x368] sm:$0xff] }
  0x70   :  { %854 = vmatpush2.msra.mxu1 %v488_v42  ;;  %784 = vmatprep.subr.mxu0 %v225_v43  ;;  %v416_v19 = vld [vmem:[%s16003_s1 + $0xc50] sm:$0xff]  ;;  %v153_v20 = vld [vmem:[%s16003_s1 + $0x418] sm:$0xff]  ;;  %v387_v33 = vld [vmem:[%s16003_s1 + $0xb68] sm:$0xff] }
  0x71   :  { %855 = vmatprep.subr.mxu1 %v481_v44  ;;  %785 = vmatpush2.msra.mxu0 %v224_v45  ;;  %v409_v21 = vld [vmem:[%s16003_s1 + $0xc18] sm:$0xff]  ;;  %v152_v22 = vld [vmem:[%s16003_s1 + $0x410] sm:$0xff]  ;;  %v130_v34 = vld [vmem:[%s16003_s1 + $0x360] sm:$0xff] }
  0x72   :  { %856 = vmatpush2.msra.mxu1 %v480_v46  ;;  %786 = vmatprep.subr.mxu0 %v217_v47  ;;  %v408_v23 = vld [vmem:[%s16003_s1 + $0xc10] sm:$0xff]  ;;  %v386_v35 = vld [vmem:[%s16003_s1 + $0xb60] sm:$0xff]  ;;  %v123_v36 = vld [vmem:[%s16003_s1 + $0x328] sm:$0xff] }
  0x73   :  { %857 = vmatprep.subr.mxu1 %v473_v48  ;;  %787 = vmatpush2.msra.mxu0 %v216_v49  ;;  %v379_v37 = vld [vmem:[%s16003_s1 + $0xb28] sm:$0xff]  ;;  %v122_v38 = vld [vmem:[%s16003_s1 + $0x320] sm:$0xff] }
  0x74   :  { %858 = vmatpush2.msra.mxu1 %v472_v50  ;;  %788 = vmatprep.subr.mxu0 %v209_v51  ;;  %v378_v39 = vld [vmem:[%s16003_s1 + $0xb20] sm:$0xff]  ;;  %v115_v40 = vld [vmem:[%s16003_s1 + $0x2e8] sm:$0xff] }
  0x75   :  { %859 = vmatprep.subr.mxu1 %v465_v53  ;;  %789 = vmatpush2.msra.mxu0 %v208_v54  ;;  %v371_v42 = vld [vmem:[%s16003_s1 + $0xae8] sm:$0xff]  ;;  %v114_v43 = vld [vmem:[%s16003_s1 + $0x2e0] sm:$0xff] }
  0x76   :  { %860 = vmatpush2.msra.mxu1 %v464_v55  ;;  %790 = vmatprep.subr.mxu0 %v201_v56  ;;  %v370_v44 = vld [vmem:[%s16003_s1 + $0xae0] sm:$0xff]  ;;  %v107_v45 = vld [vmem:[%s16003_s1 + $0x2a8] sm:$0xff] }
  0x77   :  { %861 = vmatprep.subr.mxu1 %v457_v57  ;;  %791 = vmatpush2.msra.mxu0 %v200_v58  ;;  %v363_v46 = vld [vmem:[%s16003_s1 + $0xaa8] sm:$0xff]  ;;  %v106_v47 = vld [vmem:[%s16003_s1 + $0x2a0] sm:$0xff] }
  0x78   :  { %862 = vmatpush2.msra.mxu1 %v456_v59  ;;  %792 = vmatprep.subr.mxu0 %v193_v60  ;;  %v362_v48 = vld [vmem:[%s16003_s1 + $0xaa0] sm:$0xff]  ;;  %v99_v49 = vld [vmem:[%s16003_s1 + $0x268] sm:$0xff] }
  0x79   :  { %863 = vmatprep.subr.mxu1 %v449_v61  ;;  %793 = vmatpush2.msra.mxu0 %v192_v63  ;;  %v355_v50 = vld [vmem:[%s16003_s1 + $0xa68] sm:$0xff]  ;;  %v98_v51 = vld [vmem:[%s16003_s1 + $0x260] sm:$0xff] }
  0x7a   :  { %864 = vmatpush2.msra.mxu1 %v448_v0  ;;  %794 = vmatprep.subr.mxu0 %v185_v1  ;;  %v354_v53 = vld [vmem:[%s16003_s1 + $0xa60] sm:$0xff]  ;;  %v91_v54 = vld [vmem:[%s16003_s1 + $0x228] sm:$0xff] }
  0x7b   :  { %865 = vmatprep.subr.mxu1 %v441_v2  ;;  %795 = vmatpush2.msra.mxu0 %v184_v4  ;;  %v347_v55 = vld [vmem:[%s16003_s1 + $0xa28] sm:$0xff]  ;;  %v90_v56 = vld [vmem:[%s16003_s1 + $0x220] sm:$0xff] }
  0x7c   :  { %866 = vmatpush2.msra.mxu1 %v440_v5  ;;  %796 = vmatprep.subr.mxu0 %v177_v6  ;;  %v346_v57 = vld [vmem:[%s16003_s1 + $0xa20] sm:$0xff]  ;;  %v83_v58 = vld [vmem:[%s16003_s1 + $0x1e8] sm:$0xff] }
  0x7d   :  { %867 = vmatprep.subr.mxu1 %v433_v7  ;;  %797 = vmatpush2.msra.mxu0 %v176_v9  ;;  %v339_v59 = vld [vmem:[%s16003_s1 + $0x9e8] sm:$0xff]  ;;  %v82_v60 = vld [vmem:[%s16003_s1 + $0x1e0] sm:$0xff] }
  0x7e   :  { %868 = vmatpush2.msra.mxu1 %v432_v10  ;;  %798 = vmatprep.subr.mxu0 %v169_v12  ;;  %v338_v61 = vld [vmem:[%s16003_s1 + $0x9e0] sm:$0xff]  ;;  %v75_v63 = vld [vmem:[%s16003_s1 + $0x1a8] sm:$0xff] }
  0x7f   :  { %869 = vmatprep.subr.mxu1 %v425_v13  ;;  %799 = vmatpush2.msra.mxu0 %v168_v14  ;;  %v331_v0 = vld [vmem:[%s16003_s1 + $0x9a8] sm:$0xff]  ;;  %v74_v1 = vld [vmem:[%s16003_s1 + $0x1a0] sm:$0xff] }
  0x80   :  { %870 = vmatpush2.msra.mxu1 %v424_v15  ;;  %800 = vmatprep.subr.mxu0 %v161_v16  ;;  %v330_v2 = vld [vmem:[%s16003_s1 + $0x9a0] sm:$0xff]  ;;  %v67_v4 = vld [vmem:[%s16003_s1 + $0x168] sm:$0xff] }
  0x81   :  { %871 = vmatprep.subr.mxu1 %v417_v17  ;;  %801 = vmatpush2.msra.mxu0 %v160_v18  ;;  %v323_v5 = vld [vmem:[%s16003_s1 + $0x968] sm:$0xff]  ;;  %v66_v6 = vld [vmem:[%s16003_s1 + $0x160] sm:$0xff] }
  0x82   :  { %872 = vmatpush2.msra.mxu1 %v416_v19  ;;  %802 = vmatprep.subr.mxu0 %v153_v20  ;;  %v322_v7 = vld [vmem:[%s16003_s1 + $0x960] sm:$0xff]  ;;  %v59_v9 = vld [vmem:[%s16003_s1 + $0x128] sm:$0xff] }
  0x83   :  { %873 = vmatprep.subr.mxu1 %v409_v21  ;;  %803 = vmatpush2.msra.mxu0 %v152_v22  ;;  %v315_v10 = vld [vmem:[%s16003_s1 + $0x928] sm:$0xff]  ;;  %v58_v12 = vld [vmem:[%s16003_s1 + $0x120] sm:$0xff] }
  0x84   :  { %804 = vmatprep.mubr.f32.mxu0 %v7288_v8  ;;  %874 = vmatpush2.msra.mxu1 %v408_v23  ;;  %v314_v13 = vld [vmem:[%s16003_s1 + $0x920] sm:$0xff]  ;;  %v51_v14 = vld [vmem:[%s16003_s1 + $0xe8] sm:$0xff] }
  0x85   :  { %805 = vmatmul.mubr.f32.vlgmr.msra.gmra.mxu0 %v7257_v62  ;;  %875 = vmatprep.mubr.f32.mxu1 %v7298_v11  ;;  %v307_v15 = vld [vmem:[%s16003_s1 + $0x8e8] sm:$0xff]  ;;  %v50_v16 = vld [vmem:[%s16003_s1 + $0xe0] sm:$0xff] }
  0x86   :  { %882 = vmatprep.subr.mxu0 %v147_v24  ;;  %953 = vmatprep.subr.mxu1 %v403_v25  ;;  %v306_v17 = vld [vmem:[%s16003_s1 + $0x8e0] sm:$0xff]  ;;  %v43_v18 = vld [vmem:[%s16003_s1 + $0xa8] sm:$0xff] }
  0x87   :  { %876 = vmatmul.mubr.f32.vlgmr.msra.gmra.mxu1 %v7272_v3  ;;  %883 = vmatpush1.msra.mxu0 %v146_v26  ;;  %v299_v19 = vld [vmem:[%s16003_s1 + $0x8a8] sm:$0xff]  ;;  %v42_v20 = vld [vmem:[%s16003_s1 + $0xa0] sm:$0xff] }
  0x88   :  { %954 = vmatpush1.msra.mxu1 %v402_v27  ;;  %884 = vmatprep.subr.mxu0 %v139_v28  ;;  %v298_v21 = vld [vmem:[%s16003_s1 + $0x8a0] sm:$0xff]  ;;  %v35_v22 = vld [vmem:[%s16003_s1 + $0x68] sm:$0xff] }
  0x89   :  { %955 = vmatprep.subr.mxu1 %v395_v29  ;;  %885 = vmatpush1.msra.mxu0 %v138_v30  ;;  %v291_v23 = vld [vmem:[%s16003_s1 + $0x868] sm:$0xff]  ;;  %v34_v24 = vld [vmem:[%s16003_s1 + $0x60] sm:$0xff] }
  0x8a   :  { %956 = vmatpush1.msra.mxu1 %v394_v31  ;;  %886 = vmatprep.subr.mxu0 %v131_v32  ;;  %v290_v25 = vld [vmem:[%s16003_s1 + $0x860] sm:$0xff]  ;;  %v27_v26 = vld [vmem:[%s16003_s1 + $0x28] sm:$0xff] }
  0x8b   :  { %957 = vmatprep.subr.mxu1 %v387_v33  ;;  %887 = vmatpush1.msra.mxu0 %v130_v34  ;;  %v283_v27 = vld [vmem:[%s16003_s1 + $0x828] sm:$0xff]  ;;  %v26_v28 = vld [vmem:[%s16003_s1 + $0x20] sm:$0xff] }
  0x8c   :  { %958 = vmatpush1.msra.mxu1 %v386_v35  ;;  %888 = vmatprep.subr.mxu0 %v123_v36  ;;  %v282_v29 = vld [vmem:[%s16003_s1 + $0x820] sm:$0xff]  ;;  %v275_v30 = vld [vmem:[%s16003_s1 + $0x7e8] sm:$0xff] }
  0x8d   :  { %959 = vmatprep.subr.mxu1 %v379_v37  ;;  %889 = vmatpush1.msra.mxu0 %v122_v38  ;;  %v531_v31 = vld [vmem:[%s16003_s1 + $0xfe8] sm:$0xff]  ;;  %v274_v32 = vld [vmem:[%s16003_s1 + $0x7e0] sm:$0xff] }
  0x8e   :  { %960 = vmatpush1.msra.mxu1 %v378_v39  ;;  %890 = vmatprep.subr.mxu0 %v115_v40  ;;  %v530_v33 = vld [vmem:[%s16003_s1 + $0xfe0] sm:$0xff]  ;;  %v267_v34 = vld [vmem:[%s16003_s1 + $0x7a8] sm:$0xff] }
  0x8f   :  { %961 = vmatprep.subr.mxu1 %v371_v42  ;;  %891 = vmatpush1.msra.mxu0 %v114_v43  ;;  %v523_v35 = vld [vmem:[%s16003_s1 + $0xfa8] sm:$0xff]  ;;  %v266_v36 = vld [vmem:[%s16003_s1 + $0x7a0] sm:$0xff] }
  0x90   :  { %962 = vmatpush1.msra.mxu1 %v370_v44  ;;  %892 = vmatprep.subr.mxu0 %v107_v45  ;;  %v522_v37 = vld [vmem:[%s16003_s1 + $0xfa0] sm:$0xff]  ;;  %v259_v38 = vld [vmem:[%s16003_s1 + $0x768] sm:$0xff] }
  0x91   :  { %963 = vmatprep.subr.mxu1 %v363_v46  ;;  %893 = vmatpush1.msra.mxu0 %v106_v47  ;;  %v515_v39 = vld [vmem:[%s16003_s1 + $0xf68] sm:$0xff]  ;;  %v258_v40 = vld [vmem:[%s16003_s1 + $0x760] sm:$0xff] }
  0x92   :  { %964 = vmatpush1.msra.mxu1 %v362_v48  ;;  %894 = vmatprep.subr.mxu0 %v99_v49  ;;  %v514_v42 = vld [vmem:[%s16003_s1 + $0xf60] sm:$0xff]  ;;  %v251_v43 = vld [vmem:[%s16003_s1 + $0x728] sm:$0xff] }
  0x93   :  { %965 = vmatprep.subr.mxu1 %v355_v50  ;;  %895 = vmatpush1.msra.mxu0 %v98_v51  ;;  %v507_v44 = vld [vmem:[%s16003_s1 + $0xf28] sm:$0xff]  ;;  %v250_v45 = vld [vmem:[%s16003_s1 + $0x720] sm:$0xff] }
  0x94   :  { %966 = vmatpush1.msra.mxu1 %v354_v53  ;;  %896 = vmatprep.subr.mxu0 %v91_v54  ;;  %v506_v46 = vld [vmem:[%s16003_s1 + $0xf20] sm:$0xff]  ;;  %v243_v47 = vld [vmem:[%s16003_s1 + $0x6e8] sm:$0xff] }
  0x95   :  { %967 = vmatprep.subr.mxu1 %v347_v55  ;;  %897 = vmatpush1.msra.mxu0 %v90_v56  ;;  %v499_v48 = vld [vmem:[%s16003_s1 + $0xee8] sm:$0xff]  ;;  %v242_v49 = vld [vmem:[%s16003_s1 + $0x6e0] sm:$0xff] }
  0x96   :  { %968 = vmatpush1.msra.mxu1 %v346_v57  ;;  %898 = vmatprep.subr.mxu0 %v83_v58  ;;  %v498_v50 = vld [vmem:[%s16003_s1 + $0xee0] sm:$0xff]  ;;  %v235_v51 = vld [vmem:[%s16003_s1 + $0x6a8] sm:$0xff] }
  0x97   :  { %969 = vmatprep.subr.mxu1 %v339_v59  ;;  %899 = vmatpush1.msra.mxu0 %v82_v60  ;;  %v491_v53 = vld [vmem:[%s16003_s1 + $0xea8] sm:$0xff]  ;;  %v234_v54 = vld [vmem:[%s16003_s1 + $0x6a0] sm:$0xff] }
  0x98   :  { %970 = vmatpush1.msra.mxu1 %v338_v61  ;;  %900 = vmatprep.subr.mxu0 %v75_v63  ;;  %v490_v55 = vld [vmem:[%s16003_s1 + $0xea0] sm:$0xff]  ;;  %v227_v56 = vld [vmem:[%s16003_s1 + $0x668] sm:$0xff] }
  0x99   :  { %971 = vmatprep.subr.mxu1 %v331_v0  ;;  %901 = vmatpush1.msra.mxu0 %v74_v1  ;;  %v483_v57 = vld [vmem:[%s16003_s1 + $0xe68] sm:$0xff]  ;;  %v226_v58 = vld [vmem:[%s16003_s1 + $0x660] sm:$0xff] }
  0x9a   :  { %972 = vmatpush1.msra.mxu1 %v330_v2  ;;  %902 = vmatprep.subr.mxu0 %v67_v4  ;;  %v482_v59 = vld [vmem:[%s16003_s1 + $0xe60] sm:$0xff]  ;;  %v219_v60 = vld [vmem:[%s16003_s1 + $0x628] sm:$0xff] }
  0x9b   :  { %973 = vmatprep.subr.mxu1 %v323_v5  ;;  %903 = vmatpush1.msra.mxu0 %v66_v6  ;;  %v475_v61 = vld [vmem:[%s16003_s1 + $0xe28] sm:$0xff]  ;;  %v218_v63 = vld [vmem:[%s16003_s1 + $0x620] sm:$0xff] }
  0x9c   :  { %974 = vmatpush1.msra.mxu1 %v322_v7  ;;  %904 = vmatprep.subr.mxu0 %v59_v9  ;;  %v474_v0 = vld [vmem:[%s16003_s1 + $0xe20] sm:$0xff]  ;;  %v211_v1 = vld [vmem:[%s16003_s1 + $0x5e8] sm:$0xff] }
  0x9d   :  { %975 = vmatprep.subr.mxu1 %v315_v10  ;;  %905 = vmatpush1.msra.mxu0 %v58_v12  ;;  %v467_v2 = vld [vmem:[%s16003_s1 + $0xde8] sm:$0xff]  ;;  %v210_v4 = vld [vmem:[%s16003_s1 + $0x5e0] sm:$0xff] }
  0x9e   :  { %976 = vmatpush1.msra.mxu1 %v314_v13  ;;  %906 = vmatprep.subr.mxu0 %v51_v14  ;;  %v466_v5 = vld [vmem:[%s16003_s1 + $0xde0] sm:$0xff]  ;;  %v203_v6 = vld [vmem:[%s16003_s1 + $0x5a8] sm:$0xff] }
  0x9f   :  { %977 = vmatprep.subr.mxu1 %v307_v15  ;;  %907 = vmatpush1.msra.mxu0 %v50_v16  ;;  %v459_v7 = vld [vmem:[%s16003_s1 + $0xda8] sm:$0xff]  ;;  %v202_v9 = vld [vmem:[%s16003_s1 + $0x5a0] sm:$0xff] }
  0xa0   :  { %978 = vmatpush1.msra.mxu1 %v306_v17  ;;  %908 = vmatprep.subr.mxu0 %v43_v18  ;;  %v458_v10 = vld [vmem:[%s16003_s1 + $0xda0] sm:$0xff]  ;;  %v195_v12 = vld [vmem:[%s16003_s1 + $0x568] sm:$0xff] }
  0xa1   :  { %979 = vmatprep.subr.mxu1 %v299_v19  ;;  %909 = vmatpush1.msra.mxu0 %v42_v20  ;;  %v451_v13 = vld [vmem:[%s16003_s1 + $0xd68] sm:$0xff]  ;;  %v194_v14 = vld [vmem:[%s16003_s1 + $0x560] sm:$0xff] }
  0xa2   :  { %980 = vmatpush1.msra.mxu1 %v298_v21  ;;  %910 = vmatprep.subr.mxu0 %v35_v22  ;;  %v450_v15 = vld [vmem:[%s16003_s1 + $0xd60] sm:$0xff]  ;;  %v187_v16 = vld [vmem:[%s16003_s1 + $0x528] sm:$0xff] }
  0xa3   :  { %981 = vmatprep.subr.mxu1 %v291_v23  ;;  %911 = vmatpush1.msra.mxu0 %v34_v24  ;;  %v443_v17 = vld [vmem:[%s16003_s1 + $0xd28] sm:$0xff]  ;;  %v186_v18 = vld [vmem:[%s16003_s1 + $0x520] sm:$0xff] }
  0xa4   :  { %982 = vmatpush1.msra.mxu1 %v290_v25  ;;  %912 = vmatprep.subr.mxu0 %v27_v26  ;;  %v442_v19 = vld [vmem:[%s16003_s1 + $0xd20] sm:$0xff]  ;;  %v179_v20 = vld [vmem:[%s16003_s1 + $0x4e8] sm:$0xff] }
  0xa5   :  { %983 = vmatprep.subr.mxu1 %v283_v27  ;;  %913 = vmatpush1.msra.mxu0 %v26_v28  ;;  %v435_v21 = vld [vmem:[%s16003_s1 + $0xce8] sm:$0xff]  ;;  %v178_v22 = vld [vmem:[%s16003_s1 + $0x4e0] sm:$0xff] }
  0xa6   :  { %984 = vmatpush1.msra.mxu1 %v282_v29  ;;  %914 = vmatprep.subr.mxu0 %v275_v30  ;;  %v434_v23 = vld [vmem:[%s16003_s1 + $0xce0] sm:$0xff]  ;;  %v171_v24 = vld [vmem:[%s16003_s1 + $0x4a8] sm:$0xff] }
  0xa7   :  { %985 = vmatprep.subr.mxu1 %v531_v31  ;;  %915 = vmatpush2.msra.mxu0 %v274_v32  ;;  %v427_v25 = vld [vmem:[%s16003_s1 + $0xca8] sm:$0xff]  ;;  %v170_v26 = vld [vmem:[%s16003_s1 + $0x4a0] sm:$0xff] }
  0xa8   :  { %986 = vmatpush2.msra.mxu1 %v530_v33  ;;  %916 = vmatprep.subr.mxu0 %v267_v34  ;;  %v426_v27 = vld [vmem:[%s16003_s1 + $0xca0] sm:$0xff]  ;;  %v163_v28 = vld [vmem:[%s16003_s1 + $0x468] sm:$0xff] }
  0xa9   :  { %987 = vmatprep.subr.mxu1 %v523_v35  ;;  %917 = vmatpush2.msra.mxu0 %v266_v36  ;;  %v419_v29 = vld [vmem:[%s16003_s1 + $0xc68] sm:$0xff]  ;;  %v162_v30 = vld [vmem:[%s16003_s1 + $0x460] sm:$0xff]  ;;  %v149_v36 = vld [vmem:[%s16003_s1 + $0x3f8] sm:$0xff] }
  0xaa   :  { %988 = vmatpush2.msra.mxu1 %v522_v37  ;;  %918 = vmatprep.subr.mxu0 %v259_v38  ;;  %v418_v31 = vld [vmem:[%s16003_s1 + $0xc60] sm:$0xff]  ;;  %v155_v32 = vld [vmem:[%s16003_s1 + $0x428] sm:$0xff]  ;;  %v405_v37 = vld [vmem:[%s16003_s1 + $0xbf8] sm:$0xff] }
  0xab   :  { %989 = vmatprep.subr.mxu1 %v515_v39  ;;  %919 = vmatpush2.msra.mxu0 %v258_v40  ;;  %v411_v33 = vld [vmem:[%s16003_s1 + $0xc28] sm:$0xff]  ;;  %v154_v34 = vld [vmem:[%s16003_s1 + $0x420] sm:$0xff]  ;;  %v148_v38 = vld [vmem:[%s16003_s1 + $0x3f0] sm:$0xff] }
  0xac   :  { %990 = vmatpush2.msra.mxu1 %v514_v42  ;;  %920 = vmatprep.subr.mxu0 %v251_v43  ;;  %v410_v35 = vld [vmem:[%s16003_s1 + $0xc20] sm:$0xff]  ;;  %v404_v39 = vld [vmem:[%s16003_s1 + $0xbf0] sm:$0xff]  ;;  %v141_v40 = vld [vmem:[%s16003_s1 + $0x3b8] sm:$0xff] }
  0xad   :  { %991 = vmatprep.subr.mxu1 %v507_v44  ;;  %921 = vmatpush2.msra.mxu0 %v250_v45  ;;  %v397_v42 = vld [vmem:[%s16003_s1 + $0xbb8] sm:$0xff]  ;;  %v140_v43 = vld [vmem:[%s16003_s1 + $0x3b0] sm:$0xff] }
  0xae   :  { %992 = vmatpush2.msra.mxu1 %v506_v46  ;;  %922 = vmatprep.subr.mxu0 %v243_v47  ;;  %v396_v44 = vld [vmem:[%s16003_s1 + $0xbb0] sm:$0xff]  ;;  %v133_v45 = vld [vmem:[%s16003_s1 + $0x378] sm:$0xff] }
  0xaf   :  { %993 = vmatprep.subr.mxu1 %v499_v48  ;;  %923 = vmatpush2.msra.mxu0 %v242_v49  ;;  %v389_v46 = vld [vmem:[%s16003_s1 + $0xb78] sm:$0xff]  ;;  %v132_v47 = vld [vmem:[%s16003_s1 + $0x370] sm:$0xff] }
  0xb0   :  { %994 = vmatpush2.msra.mxu1 %v498_v50  ;;  %924 = vmatprep.subr.mxu0 %v235_v51  ;;  %v388_v48 = vld [vmem:[%s16003_s1 + $0xb70] sm:$0xff]  ;;  %v125_v49 = vld [vmem:[%s16003_s1 + $0x338] sm:$0xff] }
  0xb1   :  { %995 = vmatprep.subr.mxu1 %v491_v53  ;;  %925 = vmatpush2.msra.mxu0 %v234_v54  ;;  %v381_v50 = vld [vmem:[%s16003_s1 + $0xb38] sm:$0xff]  ;;  %v124_v51 = vld [vmem:[%s16003_s1 + $0x330] sm:$0xff] }
  0xb2   :  { %996 = vmatpush2.msra.mxu1 %v490_v55  ;;  %926 = vmatprep.subr.mxu0 %v227_v56  ;;  %v380_v53 = vld [vmem:[%s16003_s1 + $0xb30] sm:$0xff]  ;;  %v117_v54 = vld [vmem:[%s16003_s1 + $0x2f8] sm:$0xff] }
  0xb3   :  { %997 = vmatprep.subr.mxu1 %v483_v57  ;;  %927 = vmatpush2.msra.mxu0 %v226_v58  ;;  %v373_v55 = vld [vmem:[%s16003_s1 + $0xaf8] sm:$0xff]  ;;  %v116_v56 = vld [vmem:[%s16003_s1 + $0x2f0] sm:$0xff] }
  0xb4   :  { %998 = vmatpush2.msra.mxu1 %v482_v59  ;;  %928 = vmatprep.subr.mxu0 %v219_v60  ;;  %v372_v57 = vld [vmem:[%s16003_s1 + $0xaf0] sm:$0xff]  ;;  %v109_v58 = vld [vmem:[%s16003_s1 + $0x2b8] sm:$0xff] }
  0xb5   :  { %999 = vmatprep.subr.mxu1 %v475_v61  ;;  %929 = vmatpush2.msra.mxu0 %v218_v63  ;;  %v365_v59 = vld [vmem:[%s16003_s1 + $0xab8] sm:$0xff]  ;;  %v108_v60 = vld [vmem:[%s16003_s1 + $0x2b0] sm:$0xff] }
  0xb6   :  { %1000 = vmatpush2.msra.mxu1 %v474_v0  ;;  %930 = vmatprep.subr.mxu0 %v211_v1  ;;  %v364_v61 = vld [vmem:[%s16003_s1 + $0xab0] sm:$0xff]  ;;  %v101_v63 = vld [vmem:[%s16003_s1 + $0x278] sm:$0xff] }
  0xb7   :  { %1001 = vmatprep.subr.mxu1 %v467_v2  ;;  %931 = vmatpush2.msra.mxu0 %v210_v4  ;;  %v357_v0 = vld [vmem:[%s16003_s1 + $0xa78] sm:$0xff]  ;;  %v100_v1 = vld [vmem:[%s16003_s1 + $0x270] sm:$0xff] }
  0xb8   :  { %1002 = vmatpush2.msra.mxu1 %v466_v5  ;;  %932 = vmatprep.subr.mxu0 %v203_v6  ;;  %v356_v2 = vld [vmem:[%s16003_s1 + $0xa70] sm:$0xff]  ;;  %v93_v4 = vld [vmem:[%s16003_s1 + $0x238] sm:$0xff] }
  0xb9   :  { %1003 = vmatprep.subr.mxu1 %v459_v7  ;;  %933 = vmatpush2.msra.mxu0 %v202_v9  ;;  %v349_v5 = vld [vmem:[%s16003_s1 + $0xa38] sm:$0xff]  ;;  %v92_v6 = vld [vmem:[%s16003_s1 + $0x230] sm:$0xff] }
  0xba   :  { %1004 = vmatpush2.msra.mxu1 %v458_v10  ;;  %934 = vmatprep.subr.mxu0 %v195_v12  ;;  %v348_v7 = vld [vmem:[%s16003_s1 + $0xa30] sm:$0xff]  ;;  %v85_v9 = vld [vmem:[%s16003_s1 + $0x1f8] sm:$0xff] }
  0xbb   :  { %1005 = vmatprep.subr.mxu1 %v451_v13  ;;  %935 = vmatpush2.msra.mxu0 %v194_v14  ;;  %v341_v10 = vld [vmem:[%s16003_s1 + $0x9f8] sm:$0xff]  ;;  %v84_v12 = vld [vmem:[%s16003_s1 + $0x1f0] sm:$0xff] }
  0xbc   :  { %1006 = vmatpush2.msra.mxu1 %v450_v15  ;;  %936 = vmatprep.subr.mxu0 %v187_v16  ;;  %v340_v13 = vld [vmem:[%s16003_s1 + $0x9f0] sm:$0xff]  ;;  %v77_v14 = vld [vmem:[%s16003_s1 + $0x1b8] sm:$0xff] }
  0xbd   :  { %1007 = vmatprep.subr.mxu1 %v443_v17  ;;  %937 = vmatpush2.msra.mxu0 %v186_v18  ;;  %v333_v15 = vld [vmem:[%s16003_s1 + $0x9b8] sm:$0xff]  ;;  %v76_v16 = vld [vmem:[%s16003_s1 + $0x1b0] sm:$0xff] }
  0xbe   :  { %1008 = vmatpush2.msra.mxu1 %v442_v19  ;;  %938 = vmatprep.subr.mxu0 %v179_v20  ;;  %v332_v17 = vld [vmem:[%s16003_s1 + $0x9b0] sm:$0xff]  ;;  %v69_v18 = vld [vmem:[%s16003_s1 + $0x178] sm:$0xff] }
  0xbf   :  { %1009 = vmatprep.subr.mxu1 %v435_v21  ;;  %939 = vmatpush2.msra.mxu0 %v178_v22  ;;  %v325_v19 = vld [vmem:[%s16003_s1 + $0x978] sm:$0xff]  ;;  %v68_v20 = vld [vmem:[%s16003_s1 + $0x170] sm:$0xff] }
  0xc0   :  { %1010 = vmatpush2.msra.mxu1 %v434_v23  ;;  %940 = vmatprep.subr.mxu0 %v171_v24  ;;  %v324_v21 = vld [vmem:[%s16003_s1 + $0x970] sm:$0xff]  ;;  %v61_v22 = vld [vmem:[%s16003_s1 + $0x138] sm:$0xff] }
  0xc1   :  { %1011 = vmatprep.subr.mxu1 %v427_v25  ;;  %941 = vmatpush2.msra.mxu0 %v170_v26  ;;  %v317_v23 = vld [vmem:[%s16003_s1 + $0x938] sm:$0xff]  ;;  %v60_v24 = vld [vmem:[%s16003_s1 + $0x130] sm:$0xff] }
  0xc2   :  { %1012 = vmatpush2.msra.mxu1 %v426_v27  ;;  %942 = vmatprep.subr.mxu0 %v163_v28  ;;  %v316_v25 = vld [vmem:[%s16003_s1 + $0x930] sm:$0xff]  ;;  %v53_v26 = vld [vmem:[%s16003_s1 + $0xf8] sm:$0xff] }
  0xc3   :  { %1013 = vmatprep.subr.mxu1 %v419_v29  ;;  %943 = vmatpush2.msra.mxu0 %v162_v30  ;;  %v309_v27 = vld [vmem:[%s16003_s1 + $0x8f8] sm:$0xff] }
  0xc4   :  { %1014 = vmatpush2.msra.mxu1 %v418_v31  ;;  %944 = vmatprep.subr.mxu0 %v155_v32 }
  0xc5   :  { %1015 = vmatprep.subr.mxu1 %v411_v33  ;;  %945 = vmatpush2.msra.mxu0 %v154_v34 }
  0xc6   :  { %946 = vmatprep.mubr.f32.mxu0 %v7288_v8  ;;  %1016 = vmatpush2.msra.mxu1 %v410_v35 }
  0xc7   :  { %947 = vmatmul.mubr.f32.vlgmr.msra.gmra.mxu0 %v7257_v62  ;;  %1017 = vmatprep.mubr.f32.mxu1 %v7298_v11 }
  0xc8   :  { %1024 = vmatprep.subr.mxu0 %v149_v36  ;;  %1095 = vmatprep.subr.mxu1 %v405_v37 }
  0xc9   :  { %1018 = vmatmul.mubr.f32.vlgmr.msra.gmra.mxu1 %v7272_v3  ;;  %1025 = vmatpush1.msra.mxu0 %v148_v38 }
  0xca   :  { %1096 = vmatpush1.msra.mxu1 %v404_v39  ;;  %1026 = vmatprep.subr.mxu0 %v141_v40 }
  0xcb   :  { %1097 = vmatprep.subr.mxu1 %v397_v42  ;;  %1027 = vmatpush1.msra.mxu0 %v140_v43 }
  0xcc   :  { %1098 = vmatpush1.msra.mxu1 %v396_v44  ;;  %1028 = vmatprep.subr.mxu0 %v133_v45 }
  0xcd   :  { %1099 = vmatprep.subr.mxu1 %v389_v46  ;;  %1029 = vmatpush1.msra.mxu0 %v132_v47 }
  0xce   :  { %1100 = vmatpush1.msra.mxu1 %v388_v48  ;;  %1030 = vmatprep.subr.mxu0 %v125_v49 }
  0xcf   :  { %1101 = vmatprep.subr.mxu1 %v381_v50  ;;  %1031 = vmatpush1.msra.mxu0 %v124_v51 }
  0xd0   :  { %1102 = vmatpush1.msra.mxu1 %v380_v53  ;;  %1032 = vmatprep.subr.mxu0 %v117_v54 }
  0xd1   :  { %1103 = vmatprep.subr.mxu1 %v373_v55  ;;  %1033 = vmatpush1.msra.mxu0 %v116_v56 }
  0xd2   :  { %1104 = vmatpush1.msra.mxu1 %v372_v57  ;;  %1034 = vmatprep.subr.mxu0 %v109_v58 }
  0xd3   :  { %1105 = vmatprep.subr.mxu1 %v365_v59  ;;  %1035 = vmatpush1.msra.mxu0 %v108_v60 }
  0xd4   :  { %1106 = vmatpush1.msra.mxu1 %v364_v61  ;;  %1036 = vmatprep.subr.mxu0 %v101_v63 }
  0xd5   :  { %1107 = vmatprep.subr.mxu1 %v357_v0  ;;  %1037 = vmatpush1.msra.mxu0 %v100_v1 }
  0xd6   :  { %1108 = vmatpush1.msra.mxu1 %v356_v2  ;;  %1038 = vmatprep.subr.mxu0 %v93_v4 }
  0xd7   :  { %1109 = vmatprep.subr.mxu1 %v349_v5  ;;  %1039 = vmatpush1.msra.mxu0 %v92_v6 }
  0xd8   :  { %1110 = vmatpush1.msra.mxu1 %v348_v7  ;;  %1040 = vmatprep.subr.mxu0 %v85_v9 }
  0xd9   :  { %1111 = vmatprep.subr.mxu1 %v341_v10  ;;  %1041 = vmatpush1.msra.mxu0 %v84_v12 }
  0xda   :  { %1112 = vmatpush1.msra.mxu1 %v340_v13  ;;  %1042 = vmatprep.subr.mxu0 %v77_v14 }
  0xdb   :  { %1113 = vmatprep.subr.mxu1 %v333_v15  ;;  %1043 = vmatpush1.msra.mxu0 %v76_v16 }
  0xdc   :  { %1114 = vmatpush1.msra.mxu1 %v332_v17  ;;  %1044 = vmatprep.subr.mxu0 %v69_v18 }
  0xdd   :  { %1115 = vmatprep.subr.mxu1 %v325_v19  ;;  %1045 = vmatpush1.msra.mxu0 %v68_v20 }
  0xde   :  { %1116 = vmatpush1.msra.mxu1 %v324_v21 }
  0xdf   :  { %10 = vsyncpa [#allocation3], 0  ;;  %1046 = vmatprep.subr.mxu0 %v61_v22  ;;  %1117 = vmatprep.subr.mxu1 %v317_v23  ;;  %v52_v28 = vld [vmem:[%s16003_s1 + $0xf0] sm:$0xff]  ;;  %v45_v30 = vld [vmem:[%s16003_s1 + $0xb8] sm:$0xff]  ;;  %vm6674_vm0 = vcmask 1041408   ;;  %vm6675_vm1 = vcmask 1043458  }
  0xe0   :  { %v308_v29 = vld [vmem:[%s16003_s1 + $0x8f0] sm:$0xff]  ;;  %1047 = vmatpush1.msra.mxu0 %v60_v24  ;;  %1118 = vmatpush1.msra.mxu1 %v316_v25  ;;  %v301_v31 = vld [vmem:[%s16003_s1 + $0x8b8] sm:$0xff]  ;;  %vm6676_vm2 = vmor %vm6675_vm1, %vm6674_vm0  ;;  %vm6677_vm3 = vcmask 783364  }
  0xe1   :  { %1048 = vmatprep.subr.mxu0 %v53_v26  ;;  %1119 = vmatprep.subr.mxu1 %v309_v27  ;;  %v44_v32 = vld [vmem:[%s16003_s1 + $0xb0] sm:$0xff]  ;;  %v37_v34 = vld [vmem:[%s16003_s1 + $0x78] sm:$0xff]  ;;  %vm6678_vm4 = vmor %vm6677_vm3, %vm6676_vm2 }
  0xe2   :  { %v300_v33 = vld [vmem:[%s16003_s1 + $0x8b0] sm:$0xff]  ;;  %1049 = vmatpush1.msra.mxu0 %v52_v28  ;;  %1120 = vmatpush1.msra.mxu1 %v308_v29  ;;  %v293_v35 = vld [vmem:[%s16003_s1 + $0x878] sm:$0xff] }
  0xe3   :  { %1050 = vmatprep.subr.mxu0 %v45_v30  ;;  %1121 = vmatprep.subr.mxu1 %v301_v31  ;;  %v36_v36 = vld [vmem:[%s16003_s1 + $0x70] sm:$0xff]  ;;  %v29_v38 = vld [vmem:[%s16003_s1 + $0x38] sm:$0xff]  ;;  %v8411_v30 = vsub.s32 0, %v7200_v41 }
  0xe4   :  { %v292_v37 = vld [vmem:[%s16003_s1 + $0x870] sm:$0xff]  ;;  %1051 = vmatpush1.msra.mxu0 %v44_v32  ;;  %1122 = vmatpush1.msra.mxu1 %v300_v33  ;;  %v285_v39 = vld [vmem:[%s16003_s1 + $0x838] sm:$0xff]  ;;  %v8422_v33 = vld [vmem:[%s16004_s2] sm:$0xff] }
  0xe5   :  { %1052 = vmatprep.subr.mxu0 %v37_v34  ;;  %1123 = vmatprep.subr.mxu1 %v293_v35  ;;  %v28_v40 = vld [vmem:[%s16003_s1 + $0x30] sm:$0xff]  ;;  %v277_v43 = vld [vmem:[%s16003_s1 + $0x7f8] sm:$0xff] }
  0xe6   :  { %v284_v42 = vld [vmem:[%s16003_s1 + $0x830] sm:$0xff]  ;;  %1053 = vmatpush1.msra.mxu0 %v36_v36  ;;  %1124 = vmatpush1.msra.mxu1 %v292_v37  ;;  %v533_v44 = vld [vmem:[%s16003_s1 + $0xff8] sm:$0xff]  ;;  %v8431_v36 = vsub.s32 1, %v7200_v41 }
  0xe7   :  { %1054 = vmatprep.subr.mxu0 %v29_v38  ;;  %1125 = vmatprep.subr.mxu1 %v285_v39  ;;  %v276_v45 = vld [vmem:[%s16003_s1 + $0x7f0] sm:$0xff]  ;;  %v269_v47 = vld [vmem:[%s16003_s1 + $0x7b8] sm:$0xff] }
  0xe8   :  { %v532_v46 = vld [vmem:[%s16003_s1 + $0xff0] sm:$0xff]  ;;  %1055 = vmatpush1.msra.mxu0 %v28_v40  ;;  %1126 = vmatpush1.msra.mxu1 %v284_v42  ;;  %v525_v48 = vld [vmem:[%s16003_s1 + $0xfb8] sm:$0xff]  ;;  %v539_v42 = vrot.slane %v8422_v33, %v8411_v30 }
  0xe9   :  { %1056 = vmatprep.subr.mxu0 %v277_v43  ;;  %1127 = vmatprep.subr.mxu1 %v533_v44  ;;  %v268_v49 = vld [vmem:[%s16003_s1 + $0x7b0] sm:$0xff]  ;;  %v261_v51 = vld [vmem:[%s16003_s1 + $0x778] sm:$0xff] }
  0xea   :  { %v524_v50 = vld [vmem:[%s16003_s1 + $0xfb0] sm:$0xff]  ;;  %1057 = vmatpush2.msra.mxu0 %v276_v45  ;;  %1128 = vmatpush2.msra.mxu1 %v532_v46  ;;  %v517_v53 = vld [vmem:[%s16003_s1 + $0xf78] sm:$0xff] }
  0xeb   :  { %1058 = vmatprep.subr.mxu0 %v269_v47  ;;  %1129 = vmatprep.subr.mxu1 %v525_v48  ;;  %v260_v54 = vld [vmem:[%s16003_s1 + $0x770] sm:$0xff]  ;;  %v253_v56 = vld [vmem:[%s16003_s1 + $0x738] sm:$0xff]  ;;  %v543_v47 = vrot.slane %v8422_v33, %v8431_v36 }
  0xec   :  { %v516_v55 = vld [vmem:[%s16003_s1 + $0xf70] sm:$0xff]  ;;  %1059 = vmatpush2.msra.mxu0 %v268_v49  ;;  %1130 = vmatpush2.msra.mxu1 %v524_v50  ;;  %v509_v57 = vld [vmem:[%s16003_s1 + $0xf38] sm:$0xff] }
  0xed   :  { %1060 = vmatprep.subr.mxu0 %v261_v51  ;;  %1131 = vmatprep.subr.mxu1 %v517_v53  ;;  %v252_v58 = vld [vmem:[%s16003_s1 + $0x730] sm:$0xff]  ;;  %v245_v60 = vld [vmem:[%s16003_s1 + $0x6f8] sm:$0xff] }
  0xee   :  { %v508_v59 = vld [vmem:[%s16003_s1 + $0xf30] sm:$0xff]  ;;  %1061 = vmatpush2.msra.mxu0 %v260_v54  ;;  %1132 = vmatpush2.msra.mxu1 %v516_v55  ;;  %v501_v61 = vld [vmem:[%s16003_s1 + $0xef8] sm:$0xff] }
  0xef   :  { %1062 = vmatprep.subr.mxu0 %v253_v56  ;;  %1133 = vmatprep.subr.mxu1 %v509_v57  ;;  %v244_v63 = vld [vmem:[%s16003_s1 + $0x6f0] sm:$0xff]  ;;  %v237_v1 = vld [vmem:[%s16003_s1 + $0x6b8] sm:$0xff] }
  0xf0   :  { %v500_v0 = vld [vmem:[%s16003_s1 + $0xef0] sm:$0xff]  ;;  %1063 = vmatpush2.msra.mxu0 %v252_v58  ;;  %1134 = vmatpush2.msra.mxu1 %v508_v59  ;;  %v493_v2 = vld [vmem:[%s16003_s1 + $0xeb8] sm:$0xff] }
  0xf1   :  { %1064 = vmatprep.subr.mxu0 %v245_v60  ;;  %1135 = vmatprep.subr.mxu1 %v501_v61  ;;  %v236_v4 = vld [vmem:[%s16003_s1 + $0x6b0] sm:$0xff]  ;;  %v229_v6 = vld [vmem:[%s16003_s1 + $0x678] sm:$0xff] }
  0xf2   :  { %v492_v5 = vld [vmem:[%s16003_s1 + $0xeb0] sm:$0xff]  ;;  %1065 = vmatpush2.msra.mxu0 %v244_v63  ;;  %1136 = vmatpush2.msra.mxu1 %v500_v0  ;;  %v485_v7 = vld [vmem:[%s16003_s1 + $0xe78] sm:$0xff] }
  0xf3   :  { %1066 = vmatprep.subr.mxu0 %v237_v1  ;;  %1137 = vmatprep.subr.mxu1 %v493_v2  ;;  %v228_v9 = vld [vmem:[%s16003_s1 + $0x670] sm:$0xff]  ;;  %v221_v12 = vld [vmem:[%s16003_s1 + $0x638] sm:$0xff]  ;;  %v1459_v2 = vld [vmem:[%s16005_s3 + $0x8e8] sm:$0xff] }
  0xf4   :  { %v484_v10 = vld [vmem:[%s16003_s1 + $0xe70] sm:$0xff]  ;;  %1067 = vmatpush2.msra.mxu0 %v236_v4  ;;  %1138 = vmatpush2.msra.mxu1 %v492_v5  ;;  %v477_v13 = vld [vmem:[%s16003_s1 + $0xe38] sm:$0xff]  ;;  %v2067_v5 = vld [vmem:[%s16005_s3 + $0x1be8] sm:$0xff] }
  0xf5   :  { %1068 = vmatprep.subr.mxu0 %v229_v6  ;;  %1139 = vmatprep.subr.mxu1 %v485_v7  ;;  %v220_v14 = vld [vmem:[%s16003_s1 + $0x630] sm:$0xff]  ;;  %v213_v16 = vld [vmem:[%s16003_s1 + $0x5f8] sm:$0xff] }
  0xf6   :  { %v476_v15 = vld [vmem:[%s16003_s1 + $0xe30] sm:$0xff]  ;;  %1069 = vmatpush2.msra.mxu0 %v228_v9  ;;  %1140 = vmatpush2.msra.mxu1 %v484_v10  ;;  %v469_v17 = vld [vmem:[%s16003_s1 + $0xdf8] sm:$0xff]  ;;  %v2030_v9 = vld [vmem:[%s16005_s3 + $0x1ac0] sm:$0xff] }
  0xf7   :  { %1070 = vmatprep.subr.mxu0 %v221_v12  ;;  %1141 = vmatprep.subr.mxu1 %v477_v13  ;;  %v212_v18 = vld [vmem:[%s16003_s1 + $0x5f0] sm:$0xff]  ;;  %v205_v20 = vld [vmem:[%s16003_s1 + $0x5b8] sm:$0xff]  ;;  %v1403_v10 = vld [vmem:[%s16005_s3 + $0x728] sm:$0xff] }
  0xf8   :  { %v468_v19 = vld [vmem:[%s16003_s1 + $0xdf0] sm:$0xff]  ;;  %1071 = vmatpush2.msra.mxu0 %v220_v14  ;;  %1142 = vmatpush2.msra.mxu1 %v476_v15  ;;  %v461_v21 = vld [vmem:[%s16003_s1 + $0xdb8] sm:$0xff]  ;;  %v1402_v13 = vld [vmem:[%s16005_s3 + $0x720] sm:$0xff] }
  0xf9   :  { %1072 = vmatprep.subr.mxu0 %v213_v16  ;;  %1143 = vmatprep.subr.mxu1 %v469_v17  ;;  %v204_v22 = vld [vmem:[%s16003_s1 + $0x5b0] sm:$0xff]  ;;  %v197_v24 = vld [vmem:[%s16003_s1 + $0x578] sm:$0xff]  ;;  %v2011_v14 = vld [vmem:[%s16005_s3 + $0x1a28] sm:$0xff] }
  0xfa   :  { %v460_v23 = vld [vmem:[%s16003_s1 + $0xdb0] sm:$0xff]  ;;  %1073 = vmatpush2.msra.mxu0 %v212_v18  ;;  %1144 = vmatpush2.msra.mxu1 %v468_v19  ;;  %v453_v25 = vld [vmem:[%s16003_s1 + $0xd78] sm:$0xff]  ;;  %v2010_v16 = vld [vmem:[%s16005_s3 + $0x1a20] sm:$0xff] }
  0xfb   :  { %1074 = vmatprep.subr.mxu0 %v205_v20  ;;  %1145 = vmatprep.subr.mxu1 %v461_v21  ;;  %v196_v26 = vld [vmem:[%s16003_s1 + $0x570] sm:$0xff]  ;;  %v189_v28 = vld [vmem:[%s16003_s1 + $0x538] sm:$0xff]  ;;  %v1383_v17 = vld [vmem:[%s16005_s3 + $0x688] sm:$0xff] }
  0xfc   :  { %v452_v27 = vld [vmem:[%s16003_s1 + $0xd70] sm:$0xff]  ;;  %1075 = vmatpush2.msra.mxu0 %v204_v22  ;;  %1146 = vmatpush2.msra.mxu1 %v460_v23  ;;  %v445_v29 = vld [vmem:[%s16003_s1 + $0xd38] sm:$0xff]  ;;  %v1991_v20 = vld [vmem:[%s16005_s3 + $0x1988] sm:$0xff] }
  0xfd   :  { %1076 = vmatprep.subr.mxu0 %v197_v24  ;;  %1147 = vmatprep.subr.mxu1 %v453_v25  ;;  %v188_v31 = vld [vmem:[%s16003_s1 + $0x530] sm:$0xff]  ;;  %v181_v34 = vld [vmem:[%s16003_s1 + $0x4f8] sm:$0xff]  ;;  %v1346_v23 = vld [vmem:[%s16005_s3 + $0x560] sm:$0xff] }
  0xfe   :  { %v444_v32 = vld [vmem:[%s16003_s1 + $0xd30] sm:$0xff]  ;;  %1077 = vmatpush2.msra.mxu0 %v196_v26  ;;  %1148 = vmatpush2.msra.mxu1 %v452_v27  ;;  %v437_v35 = vld [vmem:[%s16003_s1 + $0xcf8] sm:$0xff]  ;;  %v1954_v26 = vld [vmem:[%s16005_s3 + $0x1860] sm:$0xff] }
  0xff   :  { %1078 = vmatprep.subr.mxu0 %v189_v28  ;;  %1149 = vmatprep.subr.mxu1 %v445_v29  ;;  %v180_v37 = vld [vmem:[%s16003_s1 + $0x4f0] sm:$0xff]  ;;  %v173_v39 = vld [vmem:[%s16003_s1 + $0x4b8] sm:$0xff]  ;;  %v1327_v27 = vld [vmem:[%s16005_s3 + $0x4c8] sm:$0xff] }
 0x100   :  { %v436_v38 = vld [vmem:[%s16003_s1 + $0xcf0] sm:$0xff]  ;;  %1079 = vmatpush2.msra.mxu0 %v188_v31  ;;  %1150 = vmatpush2.msra.mxu1 %v444_v32  ;;  %v429_v40 = vld [vmem:[%s16003_s1 + $0xcb8] sm:$0xff]  ;;  %v1326_v29 = vld [vmem:[%s16005_s3 + $0x4c0] sm:$0xff] }
 0x101   :  { %1080 = vmatprep.subr.mxu0 %v181_v34  ;;  %1151 = vmatprep.subr.mxu1 %v437_v35  ;;  %v172_v43 = vld [vmem:[%s16003_s1 + $0x4b0] sm:$0xff]  ;;  %v165_v45 = vld [vmem:[%s16003_s1 + $0x478] sm:$0xff]  ;;  %v1935_v31 = vld [vmem:[%s16005_s3 + $0x17c8] sm:$0xff] }
 0x102   :  { %v428_v44 = vld [vmem:[%s16003_s1 + $0xcb0] sm:$0xff]  ;;  %1081 = vmatpush2.msra.mxu0 %v180_v37  ;;  %1152 = vmatpush2.msra.mxu1 %v436_v38  ;;  %v421_v46 = vld [vmem:[%s16003_s1 + $0xc78] sm:$0xff]  ;;  %v1934_v34 = vld [vmem:[%s16005_s3 + $0x17c0] sm:$0xff] }
 0x103   :  { %1082 = vmatprep.subr.mxu0 %v173_v39  ;;  %1153 = vmatprep.subr.mxu1 %v429_v40  ;;  %v164_v48 = vld [vmem:[%s16003_s1 + $0x470] sm:$0xff]  ;;  %v664_v50 = vpop.f32.mrf.mxu0  ;;  %v157_v51 = vld [vmem:[%s16003_s1 + $0x438] sm:$0xff]  ;;  %v1307_v35 = vld [vmem:[%s16005_s3 + $0x428] sm:$0xff] }
 0x104   :  { %v420_v49 = vld [vmem:[%s16003_s1 + $0xc70] sm:$0xff]  ;;  %1083 = vmatpush2.msra.mxu0 %v172_v43  ;;  %1154 = vmatpush2.msra.mxu1 %v428_v44  ;;  %v413_v53 = vld [vmem:[%s16003_s1 + $0xc38] sm:$0xff]  ;;  %v665_v54 = vadd.f32 %v664_v50, %v539_v42  ;;  %v1915_v39 = vld [vmem:[%s16005_s3 + $0x1728] sm:$0xff] }
 0x105   :  { %1084 = vmatprep.subr.mxu0 %v165_v45  ;;  %1155 = vmatprep.subr.mxu1 %v421_v46  ;;  %v156_v55 = vld [vmem:[%s16003_s1 + $0x430] sm:$0xff]  ;;  %v735_v56 = vpop.f32.mrf.mxu1  ;;  %v666_v57 = vpop.f32.mrf.mxu0  ;;  %v1421_v7 = vld [vmem:[%s16005_s3 + $0x7b8] sm:$0xff]  ;;  %v1270_v43 = vld [vmem:[%s16005_s3 + $0x300] sm:$0xff] }
 0x106   :  { %1085 = vmatpush2.msra.mxu0 %v164_v48  ;;  %1156 = vmatpush2.msra.mxu1 %v420_v49  ;;  %v412_v58 = vld [vmem:[%s16003_s1 + $0xc30] sm:$0xff]  ;;  %v8479_v59 = vadd.f32 %v735_v56, %v665_v54  ;;  %v667_v60 = vadd.f32 %v666_v57, %v543_v47  ;;  %v2029_v12 = vld [vmem:[%s16005_s3 + $0x1ab8] sm:$0xff]  ;;  %v1878_v46 = vld [vmem:[%s16005_s3 + $0x1600] sm:$0xff] }
 0x107   :  { %1086 = vmatprep.subr.mxu0 %v157_v51  ;;  %1157 = vmatprep.subr.mxu1 %v413_v53  ;;  %v737_v61 = vpop.f32.mrf.mxu1  ;;  %v1460_v63 = vld [vmem:[%s16005_s3 + $0x8f0] sm:$0xff]  ;;  %v1365_v19 = vld [vmem:[%s16005_s3 + $0x5f8] sm:$0xff]  ;;  %v1251_v47 = vld [vmem:[%s16005_s3 + $0x268] sm:$0xff] }
 0x108   :  { %1087 = vmatpush2.msra.mxu0 %v156_v55  ;;  %1088 = vmatprep.mubr.f32.mxu0 %v7288_v8  ;;  %v738_v0 = vadd.f32 %v737_v61, %v667_v60  ;;  %v2068_v1 = vld [vmem:[%s16005_s3 + $0x1bf0] sm:$0xff]  ;;  %v1441_v8 = vld [vmem:[%s16005_s3 + $0x858] sm:$0xff]  ;;  %v1250_v49 = vld [vmem:[%s16005_s3 + $0x260] sm:$0xff] }
 0x109   :  { %1158 = vmatpush2.msra.mxu1 %v412_v58  ;;  %1159 = vmatprep.mubr.f32.mxu1 %v7298_v11  ;;  %v1440_v11 = vld [vmem:[%s16005_s3 + $0x850] sm:$0xff]  ;;  %v1973_v22 = vld [vmem:[%s16005_s3 + $0x18f8] sm:$0xff]  ;;  %v1859_v50 = vld [vmem:[%s16005_s3 + $0x1568] sm:$0xff] }
 0x10a   :  { %1089 = vmatmul.mubr.f32.vlgmr.msra.gmra.mxu0 %v7257_v62  ;;  %1160 = vmatmul.mubr.f32.vlgmr.msra.gmra.mxu1 %v7272_v3  ;;  %v8497_v4 = vmax.f32 %v738_v0, 0.0  ;;  %v2049_v62 = vld [vmem:[%s16005_s3 + $0x1b58] sm:$0xff]  ;;  %v1422_v3 = vld [vmem:[%s16005_s3 + $0x7c0] sm:$0xff]  ;;  %v2048_v6 = vld [vmem:[%s16005_s3 + $0x1b50] sm:$0xff] }
 0x10b   :  { %3707 = vmatprep.subr.mxu0 %v1460_v63  ;;  %3778 = vmatprep.subr.mxu1 %v2068_v1  ;;  %v1384_v15 = vld [vmem:[%s16005_s3 + $0x690] sm:$0xff]  ;;  %v1345_v25 = vld [vmem:[%s16005_s3 + $0x558] sm:$0xff]  ;;  %v1858_v53 = vld [vmem:[%s16005_s3 + $0x1560] sm:$0xff] }
 0x10c   :  { %3708 = vmatpush1.msra.mxu0 %v1459_v2  ;;  %3771 = vmatprep.mubr.f32.mxu0 %v8497_v4  ;;  %v1992_v18 = vld [vmem:[%s16005_s3 + $0x1990] sm:$0xff]  ;;  %v1953_v28 = vld [vmem:[%s16005_s3 + $0x1858] sm:$0xff]  ;;  %v1231_v54 = vld [vmem:[%s16005_s3 + $0x1c8] sm:$0xff] }
 0x10d   :  { %3709 = vmatprep.subr.mxu0 %v1441_v8  ;;  %3779 = vmatpush1.msra.mxu1 %v2067_v5  ;;  %v1364_v21 = vld [vmem:[%s16005_s3 + $0x5f0] sm:$0xff]  ;;  %v1289_v38 = vld [vmem:[%s16005_s3 + $0x398] sm:$0xff]  ;;  %v1839_v57 = vld [vmem:[%s16005_s3 + $0x14c8] sm:$0xff] }
 0x10e   :  { %3710 = vmatpush1.msra.mxu0 %v1440_v11  ;;  %3780 = vmatprep.subr.mxu1 %v2049_v62  ;;  %v1972_v24 = vld [vmem:[%s16005_s3 + $0x18f0] sm:$0xff]  ;;  %v1897_v42 = vld [vmem:[%s16005_s3 + $0x1698] sm:$0xff]  ;;  %v1194_v61 = vld [vmem:[%s16005_s3 + $0xa0] sm:$0xff] }
 0x10f   :  { %3711 = vmatprep.subr.mxu0 %v1422_v3  ;;  %3781 = vmatpush1.msra.mxu1 %v2048_v6  ;;  %v1308_v32 = vld [vmem:[%s16005_s3 + $0x430] sm:$0xff]  ;;  %v1269_v45 = vld [vmem:[%s16005_s3 + $0x2f8] sm:$0xff]  ;;  %v1802_v1 = vld [vmem:[%s16005_s3 + $0x13a0] sm:$0xff] }
 0x110   :  { %3712 = vmatpush1.msra.mxu0 %v1421_v7  ;;  %3782 = vmatprep.subr.mxu1 %v2030_v9  ;;  %v1916_v37 = vld [vmem:[%s16005_s3 + $0x1730] sm:$0xff]  ;;  %v1877_v48 = vld [vmem:[%s16005_s3 + $0x15f8] sm:$0xff]  ;;  %v1175_v2 = vld [vmem:[%s16005_s3 + $0x8] sm:$0xff] }
 0x111   :  { %3713 = vmatprep.subr.mxu0 %v1403_v10  ;;  %3783 = vmatpush1.msra.mxu1 %v2029_v12  ;;  %v1288_v40 = vld [vmem:[%s16005_s3 + $0x390] sm:$0xff]  ;;  %v1213_v56 = vld [vmem:[%s16005_s3 + $0x138] sm:$0xff]  ;;  %v1174_v5 = vld [vmem:[%s16005_s3] sm:$0xff] }
 0x112   :  { %3714 = vmatpush1.msra.mxu0 %v1402_v13  ;;  %3784 = vmatprep.subr.mxu1 %v2011_v14  ;;  %v1896_v44 = vld [vmem:[%s16005_s3 + $0x1690] sm:$0xff]  ;;  %v1821_v60 = vld [vmem:[%s16005_s3 + $0x1438] sm:$0xff]  ;;  %v1783_v11 = vld [vmem:[%s16005_s3 + $0x1308] sm:$0xff] }
 0x113   :  { %3715 = vmatprep.subr.mxu0 %v1384_v15  ;;  %3785 = vmatpush1.msra.mxu1 %v2010_v16  ;;  %v1232_v51 = vld [vmem:[%s16005_s3 + $0x1d0] sm:$0xff]  ;;  %v1193_v0 = vld [vmem:[%s16005_s3 + $0x98] sm:$0xff]  ;;  %v1782_v3 = vld [vmem:[%s16005_s3 + $0x1300] sm:$0xff] }
 0x114   :  { %3716 = vmatpush1.msra.mxu0 %v1383_v17  ;;  %3786 = vmatprep.subr.mxu1 %v1992_v18  ;;  %v1840_v55 = vld [vmem:[%s16005_s3 + $0x14d0] sm:$0xff]  ;;  %v1801_v8 = vld [vmem:[%s16005_s3 + $0x1398] sm:$0xff]  ;;  %v1763_v6 = vld [vmem:[%s16005_s3 + $0x1268] sm:$0xff] }
 0x115   :  { %3717 = vmatprep.subr.mxu0 %v1365_v19  ;;  %3787 = vmatpush1.msra.mxu1 %v1991_v20  ;;  %v1212_v58 = vld [vmem:[%s16005_s3 + $0x130] sm:$0xff]  ;;  %v1745_v9 = vld [vmem:[%s16005_s3 + $0x11d8] sm:$0xff]  ;;  %v2371_v10 = vld [vmem:[%s16005_s3 + $0x2568] sm:$0xff] }
 0x116   :  { %3718 = vmatpush1.msra.mxu0 %v1364_v21  ;;  %3788 = vmatprep.subr.mxu1 %v1973_v22  ;;  %v1820_v63 = vld [vmem:[%s16005_s3 + $0x1430] sm:$0xff]  ;;  %v2353_v13 = vld [vmem:[%s16005_s3 + $0x24d8] sm:$0xff]  ;;  %v1726_v14 = vld [vmem:[%s16005_s3 + $0x1140] sm:$0xff] }
 0x117   :  { %3719 = vmatprep.subr.mxu0 %v1346_v23  ;;  %3789 = vmatpush1.msra.mxu1 %v1972_v24  ;;  %v1764_v62 = vld [vmem:[%s16005_s3 + $0x1270] sm:$0xff]  ;;  %v1725_v16 = vld [vmem:[%s16005_s3 + $0x1138] sm:$0xff]  ;;  %v2334_v17 = vld [vmem:[%s16005_s3 + $0x2440] sm:$0xff] }
 0x118   :  { %3720 = vmatpush1.msra.mxu0 %v1345_v25  ;;  %3790 = vmatprep.subr.mxu1 %v1954_v26  ;;  %v2372_v7 = vld [vmem:[%s16005_s3 + $0x2570] sm:$0xff]  ;;  %v1707_v18 = vld [vmem:[%s16005_s3 + $0x10a8] sm:$0xff]  ;;  %v2333_v19 = vld [vmem:[%s16005_s3 + $0x2438] sm:$0xff] }
 0x119   :  { %3721 = vmatprep.subr.mxu0 %v1327_v27  ;;  %3791 = vmatpush1.msra.mxu1 %v1953_v28  ;;  %v1744_v12 = vld [vmem:[%s16005_s3 + $0x11d0] sm:$0xff]  ;;  %v1706_v20 = vld [vmem:[%s16005_s3 + $0x10a0] sm:$0xff]  ;;  %v2315_v21 = vld [vmem:[%s16005_s3 + $0x23a8] sm:$0xff] }
 0x11a   :  { %3722 = vmatpush1.msra.mxu0 %v1326_v29  ;;  %3792 = vmatprep.subr.mxu1 %v1935_v31  ;;  %v2352_v15 = vld [vmem:[%s16005_s3 + $0x24d0] sm:$0xff]  ;;  %v2314_v23 = vld [vmem:[%s16005_s3 + $0x23a0] sm:$0xff]  ;;  %v1687_v24 = vld [vmem:[%s16005_s3 + $0x1008] sm:$0xff] }
 0x11b   :  { %3723 = vmatprep.subr.mxu0 %v1308_v32  ;;  %3793 = vmatpush1.msra.mxu1 %v1934_v34  ;;  %v1688_v22 = vld [vmem:[%s16005_s3 + $0x1010] sm:$0xff]  ;;  %v1669_v26 = vld [vmem:[%s16005_s3 + $0xf78] sm:$0xff]  ;;  %v2295_v27 = vld [vmem:[%s16005_s3 + $0x2308] sm:$0xff] }
 0x11c   :  { %3724 = vmatpush1.msra.mxu0 %v1307_v35  ;;  %3794 = vmatprep.subr.mxu1 %v1916_v37  ;;  %v2296_v25 = vld [vmem:[%s16005_s3 + $0x2310] sm:$0xff]  ;;  %v2277_v29 = vld [vmem:[%s16005_s3 + $0x2278] sm:$0xff]  ;;  %v1650_v31 = vld [vmem:[%s16005_s3 + $0xee0] sm:$0xff] }
 0x11d   :  { %3725 = vmatprep.subr.mxu0 %v1289_v38  ;;  %3795 = vmatpush1.msra.mxu1 %v1915_v39  ;;  %v1668_v28 = vld [vmem:[%s16005_s3 + $0xf70] sm:$0xff]  ;;  %v1649_v34 = vld [vmem:[%s16005_s3 + $0xed8] sm:$0xff]  ;;  %v2258_v35 = vld [vmem:[%s16005_s3 + $0x21e0] sm:$0xff] }
 0x11e   :  { %3726 = vmatpush1.msra.mxu0 %v1288_v40  ;;  %3796 = vmatprep.subr.mxu1 %v1897_v42  ;;  %v2276_v32 = vld [vmem:[%s16005_s3 + $0x2270] sm:$0xff]  ;;  %v1631_v37 = vld [vmem:[%s16005_s3 + $0xe48] sm:$0xff]  ;;  %v2257_v38 = vld [vmem:[%s16005_s3 + $0x21d8] sm:$0xff] }
 0x11f   :  { %3727 = vmatprep.subr.mxu0 %v1270_v43  ;;  %3797 = vmatpush1.msra.mxu1 %v1896_v44  ;;  %v1630_v39 = vld [vmem:[%s16005_s3 + $0xe40] sm:$0xff]  ;;  %v2239_v40 = vld [vmem:[%s16005_s3 + $0x2148] sm:$0xff]  ;;  %v1612_v42 = vld [vmem:[%s16005_s3 + $0xdb0] sm:$0xff] }
 0x120   :  { %3728 = vmatpush1.msra.mxu0 %v1269_v45  ;;  %3798 = vmatprep.subr.mxu1 %v1878_v46  ;;  %v2238_v43 = vld [vmem:[%s16005_s3 + $0x2140] sm:$0xff]  ;;  %v1611_v44 = vld [vmem:[%s16005_s3 + $0xda8] sm:$0xff]  ;;  %v2220_v45 = vld [vmem:[%s16005_s3 + $0x20b0] sm:$0xff] }
 0x121   :  { %3729 = vmatprep.subr.mxu0 %v1251_v47  ;;  %3799 = vmatpush1.msra.mxu1 %v1877_v48  ;;  %v1593_v46 = vld [vmem:[%s16005_s3 + $0xd18] sm:$0xff]  ;;  %v2219_v47 = vld [vmem:[%s16005_s3 + $0x20a8] sm:$0xff]  ;;  %v1592_v48 = vld [vmem:[%s16005_s3 + $0xd10] sm:$0xff] }
 0x122   :  { %3730 = vmatpush1.msra.mxu0 %v1250_v49  ;;  %3800 = vmatprep.subr.mxu1 %v1859_v50  ;;  %v2201_v49 = vld [vmem:[%s16005_s3 + $0x2018] sm:$0xff]  ;;  %v1574_v50 = vld [vmem:[%s16005_s3 + $0xc80] sm:$0xff] }
 0x123   :  { %3731 = vmatprep.subr.mxu0 %v1232_v51  ;;  %3801 = vmatpush1.msra.mxu1 %v1858_v53  ;;  %v2200_v51 = vld [vmem:[%s16005_s3 + $0x2010] sm:$0xff]  ;;  %v1573_v53 = vld [vmem:[%s16005_s3 + $0xc78] sm:$0xff] }
 0x124   :  { %3732 = vmatpush1.msra.mxu0 %v1231_v54  ;;  %3802 = vmatprep.subr.mxu1 %v1840_v55  ;;  %v2182_v54 = vld [vmem:[%s16005_s3 + $0x1f80] sm:$0xff]  ;;  %v1555_v55 = vld [vmem:[%s16005_s3 + $0xbe8] sm:$0xff] }
 0x125   :  { %3733 = vmatprep.subr.mxu0 %v1213_v56  ;;  %3803 = vmatpush1.msra.mxu1 %v1839_v57  ;;  %v2181_v56 = vld [vmem:[%s16005_s3 + $0x1f78] sm:$0xff]  ;;  %v8816_v57 = vsub.s32 2, %v7200_v41 }
 0x126   :  { %3734 = vmatpush1.msra.mxu0 %v1212_v58  ;;  %3804 = vmatprep.subr.mxu1 %v1821_v60  ;;  %v1554_v58 = vld [vmem:[%s16005_s3 + $0xbe0] sm:$0xff]  ;;  %v2163_v60 = vld [vmem:[%s16005_s3 + $0x1ee8] sm:$0xff] }
 0x127   :  { %3735 = vmatprep.subr.mxu0 %v1194_v61  ;;  %3805 = vmatpush1.msra.mxu1 %v1820_v63  ;;  %v1536_v61 = vld [vmem:[%s16005_s3 + $0xb50] sm:$0xff]  ;;  %v2162_v63 = vld [vmem:[%s16005_s3 + $0x1ee0] sm:$0xff] }
 0x128   :  { %3736 = vmatpush1.msra.mxu0 %v1193_v0  ;;  %3806 = vmatprep.subr.mxu1 %v1802_v1  ;;  %v8831_v0 = vsub.s32 3, %v7200_v41  ;;  %v1535_v1 = vld [vmem:[%s16005_s3 + $0xb48] sm:$0xff] }
 0x129   :  { %3737 = vmatprep.subr.mxu0 %v1175_v2  ;;  %3807 = vmatpush1.msra.mxu1 %v1801_v8  ;;  %v2144_v2 = vld [vmem:[%s16005_s3 + $0x1e50] sm:$0xff]  ;;  %v1517_v8 = vld [vmem:[%s16005_s3 + $0xab8] sm:$0xff] }
 0x12a   :  { %3738 = vmatpush1.msra.mxu0 %v1174_v5  ;;  %3808 = vmatprep.subr.mxu1 %v1783_v11  ;;  %v547_v5 = vrot.slane %v8422_v33, %v8816_v57  ;;  %v2143_v11 = vld [vmem:[%s16005_s3 + $0x1e48] sm:$0xff] }
 0x12b   :  { %3739 = vmatprep.subr.mxu0 %v1764_v62  ;;  %3809 = vmatpush1.msra.mxu1 %v1782_v3  ;;  %v1516_v62 = vld [vmem:[%s16005_s3 + $0xab0] sm:$0xff]  ;;  %v2125_v3 = vld [vmem:[%s16005_s3 + $0x1db8] sm:$0xff] }
 0x12c   :  { %3740 = vmatpush2.msra.mxu0 %v1763_v6  ;;  %3810 = vmatprep.subr.mxu1 %v2372_v7  ;;  %v1498_v6 = vld [vmem:[%s16005_s3 + $0xa20] sm:$0xff]  ;;  %v551_v7 = vrot.slane %v8422_v33, %v8831_v0  ;;  %v1479_v33 = vld [vmem:[%s16005_s3 + $0x988] sm:$0xff] }
 0x12d   :  { %3741 = vmatprep.subr.mxu0 %v1745_v9  ;;  %3811 = vmatpush2.msra.mxu1 %v2371_v10  ;;  %v2124_v9 = vld [vmem:[%s16005_s3 + $0x1db0] sm:$0xff]  ;;  %v1497_v10 = vld [vmem:[%s16005_s3 + $0xa18] sm:$0xff] }
 0x12e   :  { %3742 = vmatpush2.msra.mxu0 %v1744_v12  ;;  %3812 = vmatprep.subr.mxu1 %v2353_v13  ;;  %v2106_v13 = vld [vmem:[%s16005_s3 + $0x1d20] sm:$0xff] }
 0x12f   :  { %3743 = vmatprep.subr.mxu0 %v1726_v14  ;;  %3813 = vmatpush2.msra.mxu1 %v2352_v15  ;;  %v2105_v15 = vld [vmem:[%s16005_s3 + $0x1d18] sm:$0xff] }
 0x130   :  { %3744 = vmatpush2.msra.mxu0 %v1725_v16  ;;  %3814 = vmatprep.subr.mxu1 %v2334_v17  ;;  %v1478_v16 = vld [vmem:[%s16005_s3 + $0x980] sm:$0xff] }
 0x131   :  { %3745 = vmatprep.subr.mxu0 %v1707_v18  ;;  %3815 = vmatpush2.msra.mxu1 %v2333_v19  ;;  %v2087_v19 = vld [vmem:[%s16005_s3 + $0x1c88] sm:$0xff] }
 0x132   :  { %3746 = vmatpush2.msra.mxu0 %v1706_v20  ;;  %3816 = vmatprep.subr.mxu1 %v2315_v21  ;;  %v2086_v21 = vld [vmem:[%s16005_s3 + $0x1c80] sm:$0xff] }
 0x133   :  { %3747 = vmatprep.subr.mxu0 %v1688_v22  ;;  %3817 = vmatpush2.msra.mxu1 %v2314_v23  ;;  %v8883_v22 = vmax.f32 %v8479_v59, 0.0  ;;  %v2675_v59 = vld [vmem:[%s16005_s3 + $0x2ee8] sm:$0xff] }
 0x134   :  { %3748 = vmatpush2.msra.mxu0 %v1687_v24  ;;  %3818 = vmatprep.subr.mxu1 %v2296_v25  ;;  %v2676_v25 = vld [vmem:[%s16005_s3 + $0x2ef0] sm:$0xff] }
 0x135   :  { %3749 = vmatprep.subr.mxu0 %v1669_v26  ;;  %3819 = vmatpush2.msra.mxu1 %v2295_v27  ;;  %v3284_v26 = vld [vmem:[%s16005_s3 + $0x41f0] sm:$0xff] }
 0x136   :  { %3750 = vmatpush2.msra.mxu0 %v1668_v28  ;;  %3820 = vmatprep.subr.mxu1 %v2277_v29  ;;  %v2657_v28 = vld [vmem:[%s16005_s3 + $0x2e58] sm:$0xff] }
 0x137   :  { %3751 = vmatprep.subr.mxu0 %v1650_v31  ;;  %3821 = vmatpush2.msra.mxu1 %v2276_v32  ;;  %v2656_v31 = vld [vmem:[%s16005_s3 + $0x2e50] sm:$0xff] }
 0x138   :  { %3752 = vmatpush2.msra.mxu0 %v1649_v34  ;;  %3822 = vmatprep.subr.mxu1 %v2258_v35  ;;  %v2638_v34 = vld [vmem:[%s16005_s3 + $0x2dc0] sm:$0xff]  ;;  %v3283_v35 = vld [vmem:[%s16005_s3 + $0x41e8] sm:$0xff] }
 0x139   :  { %3753 = vmatprep.subr.mxu0 %v1631_v37  ;;  %3823 = vmatpush2.msra.mxu1 %v2257_v38  ;;  %v2637_v37 = vld [vmem:[%s16005_s3 + $0x2db8] sm:$0xff] }
 0x13a   :  { %3754 = vmatpush2.msra.mxu0 %v1630_v39  ;;  %3824 = vmatprep.subr.mxu1 %v2239_v40  ;;  %v3265_v38 = vld [vmem:[%s16005_s3 + $0x4158] sm:$0xff]  ;;  %v2619_v39 = vld [vmem:[%s16005_s3 + $0x2d28] sm:$0xff]  ;;  %v3264_v40 = vld [vmem:[%s16005_s3 + $0x4150] sm:$0xff] }
 0x13b   :  { %3755 = vmatprep.subr.mxu0 %v1612_v42  ;;  %3825 = vmatpush2.msra.mxu1 %v2238_v43  ;;  %v2618_v42 = vld [vmem:[%s16005_s3 + $0x2d20] sm:$0xff] }
 0x13c   :  { %3756 = vmatpush2.msra.mxu0 %v1611_v44  ;;  %3826 = vmatprep.subr.mxu1 %v2220_v45  ;;  %v3246_v43 = vld [vmem:[%s16005_s3 + $0x40c0] sm:$0xff]  ;;  %v2600_v44 = vld [vmem:[%s16005_s3 + $0x2c90] sm:$0xff]  ;;  %v3245_v45 = vld [vmem:[%s16005_s3 + $0x40b8] sm:$0xff] }
 0x13d   :  { %3757 = vmatprep.subr.mxu0 %v1593_v46  ;;  %3827 = vmatpush2.msra.mxu1 %v2219_v47  ;;  %v2599_v46 = vld [vmem:[%s16005_s3 + $0x2c88] sm:$0xff] }
 0x13e   :  { %3758 = vmatpush2.msra.mxu0 %v1592_v48  ;;  %3828 = vmatprep.subr.mxu1 %v2201_v49  ;;  %v3227_v47 = vld [vmem:[%s16005_s3 + $0x4028] sm:$0xff]  ;;  %v2581_v48 = vld [vmem:[%s16005_s3 + $0x2bf8] sm:$0xff]  ;;  %v3226_v49 = vld [vmem:[%s16005_s3 + $0x4020] sm:$0xff] }
 0x13f   :  { %3759 = vmatprep.subr.mxu0 %v1574_v50  ;;  %3829 = vmatpush2.msra.mxu1 %v2200_v51  ;;  %v2580_v50 = vld [vmem:[%s16005_s3 + $0x2bf0] sm:$0xff] }
 0x140   :  { %3760 = vmatpush2.msra.mxu0 %v1573_v53  ;;  %3830 = vmatprep.subr.mxu1 %v2182_v54  ;;  %v3208_v51 = vld [vmem:[%s16005_s3 + $0x3f90] sm:$0xff]  ;;  %v2562_v53 = vld [vmem:[%s16005_s3 + $0x2b60] sm:$0xff]  ;;  %v3207_v54 = vld [vmem:[%s16005_s3 + $0x3f88] sm:$0xff] }
 0x141   :  { %3761 = vmatprep.subr.mxu0 %v1555_v55  ;;  %3831 = vmatpush2.msra.mxu1 %v2181_v56  ;;  %v2561_v55 = vld [vmem:[%s16005_s3 + $0x2b58] sm:$0xff] }
 0x142   :  { %3762 = vmatpush2.msra.mxu0 %v1554_v58  ;;  %3832 = vmatprep.subr.mxu1 %v2163_v60  ;;  %v3189_v56 = vld [vmem:[%s16005_s3 + $0x3ef8] sm:$0xff]  ;;  %v2543_v58 = vld [vmem:[%s16005_s3 + $0x2ac8] sm:$0xff]  ;;  %v3188_v60 = vld [vmem:[%s16005_s3 + $0x3ef0] sm:$0xff] }
 0x143   :  { %3763 = vmatprep.subr.mxu0 %v1536_v61  ;;  %3833 = vmatpush2.msra.mxu1 %v2162_v63  ;;  %v2542_v61 = vld [vmem:[%s16005_s3 + $0x2ac0] sm:$0xff] }
 0x144   :  { %3764 = vmatpush2.msra.mxu0 %v1535_v1  ;;  %3834 = vmatprep.subr.mxu1 %v2144_v2  ;;  %v3170_v63 = vld [vmem:[%s16005_s3 + $0x3e60] sm:$0xff]  ;;  %v2524_v1 = vld [vmem:[%s16005_s3 + $0x2a30] sm:$0xff]  ;;  %v3169_v2 = vld [vmem:[%s16005_s3 + $0x3e58] sm:$0xff] }
 0x145   :  { %3765 = vmatprep.subr.mxu0 %v1517_v8  ;;  %v806_v12 = vpop.f32.mrf.mxu0  ;;  %3835 = vmatpush2.msra.mxu1 %v2143_v11  ;;  %v2523_v8 = vld [vmem:[%s16005_s3 + $0x2a28] sm:$0xff]  ;;  %v2505_v11 = vld [vmem:[%s16005_s3 + $0x2998] sm:$0xff] }
 0x146   :  { %3766 = vmatpush2.msra.mxu0 %v1516_v62  ;;  %v807_v14 = vadd.f32 %v806_v12, %v547_v5  ;;  %3836 = vmatprep.subr.mxu1 %v2125_v3  ;;  %v3151_v5 = vld [vmem:[%s16005_s3 + $0x3dc8] sm:$0xff]  ;;  %v3150_v62 = vld [vmem:[%s16005_s3 + $0x3dc0] sm:$0xff]  ;;  %v2504_v3 = vld [vmem:[%s16005_s3 + $0x2990] sm:$0xff] }
 0x147   :  { %3767 = vmatprep.subr.mxu0 %v1498_v6  ;;  %v877_v17 = vpop.f32.mrf.mxu1  ;;  %v808_v18 = vpop.f32.mrf.mxu0  ;;  %3837 = vmatpush2.msra.mxu1 %v2124_v9  ;;  %v3132_v6 = vld [vmem:[%s16005_s3 + $0x3d30] sm:$0xff]  ;;  %v3131_v9 = vld [vmem:[%s16005_s3 + $0x3d28] sm:$0xff]  ;;  %v3113_v12 = vld [vmem:[%s16005_s3 + $0x3c98] sm:$0xff] }
 0x148   :  { %3768 = vmatpush2.msra.mxu0 %v1497_v10  ;;  %v809_v20 = vadd.f32 %v808_v18, %v551_v7  ;;  %3838 = vmatprep.subr.mxu1 %v2106_v13  ;;  %v878_v23 = vadd.f32 %v877_v17, %v807_v14  ;;  %v2486_v7 = vld [vmem:[%s16005_s3 + $0x2900] sm:$0xff]  ;;  %v2485_v10 = vld [vmem:[%s16005_s3 + $0x28f8] sm:$0xff]  ;;  %v2467_v13 = vld [vmem:[%s16005_s3 + $0x2868] sm:$0xff] }
 0x149   :  { %3769 = vmatprep.subr.mxu0 %v1479_v33  ;;  %v879_v24 = vpop.f32.mrf.mxu1  ;;  %3839 = vmatpush2.msra.mxu1 %v2105_v15  ;;  %v3112_v33 = vld [vmem:[%s16005_s3 + $0x3c90] sm:$0xff]  ;;  %v2466_v14 = vld [vmem:[%s16005_s3 + $0x2860] sm:$0xff]  ;;  %v3093_v17 = vld [vmem:[%s16005_s3 + $0x3bf8] sm:$0xff] }
 0x14a   :  { %3770 = vmatpush2.msra.mxu0 %v1478_v16  ;;  %v880_v27 = vadd.f32 %v879_v24, %v809_v20  ;;  %3840 = vmatprep.subr.mxu1 %v2087_v19  ;;  %v8903_v32 = vmax.f32 %v878_v23, 0.0  ;;  %v3094_v15 = vld [vmem:[%s16005_s3 + $0x3c00] sm:$0xff]  ;;  %v2448_v16 = vld [vmem:[%s16005_s3 + $0x27d0] sm:$0xff]  ;;  %v2447_v18 = vld [vmem:[%s16005_s3 + $0x27c8] sm:$0xff] }
 0x14b   :  { %3772 = vmatmul.mubr.f32.vlgmr.msra.gmra.mxu0 %v8883_v22  ;;  %3841 = vmatpush2.msra.mxu1 %v2086_v21  ;;  %v3075_v19 = vld [vmem:[%s16005_s3 + $0x3b68] sm:$0xff]  ;;  %v2429_v20 = vld [vmem:[%s16005_s3 + $0x2738] sm:$0xff]  ;;  %v3074_v21 = vld [vmem:[%s16005_s3 + $0x3b60] sm:$0xff] }
 0x14c   :  { %v8898_v29 = vmax.f32 %v880_v27, 0.0  ;;  %3849 = vmatprep.subr.mxu0 %v2676_v25  ;;  %3920 = vmatprep.subr.mxu1 %v3284_v26  ;;  %v2428_v23 = vld [vmem:[%s16005_s3 + $0x2730] sm:$0xff]  ;;  %v2410_v25 = vld [vmem:[%s16005_s3 + $0x26a0] sm:$0xff]  ;;  %v3055_v26 = vld [vmem:[%s16005_s3 + $0x3ac8] sm:$0xff] }
 0x14d   :  { %3850 = vmatpush1.msra.mxu0 %v2675_v59  ;;  %v3056_v24 = vld [vmem:[%s16005_s3 + $0x3ad0] sm:$0xff]  ;;  %v2409_v27 = vld [vmem:[%s16005_s3 + $0x2698] sm:$0xff] }
 0x14e   :  { %3842 = vmatprep.mubr.f32.mxu1 %v8898_v29  ;;  %3851 = vmatprep.subr.mxu0 %v2657_v28  ;;  %v3037_v59 = vld [vmem:[%s16005_s3 + $0x3a38] sm:$0xff]  ;;  %v2391_v28 = vld [vmem:[%s16005_s3 + $0x2608] sm:$0xff] }
 0x14f   :  { %3843 = vmatmul.mubr.f32.vlgmr.msra.gmra.mxu1 %v8903_v32  ;;  %3852 = vmatpush1.msra.mxu0 %v2656_v31  ;;  %v3036_v31 = vld [vmem:[%s16005_s3 + $0x3a30] sm:$0xff] }
 0x150   :  { %3853 = vmatprep.subr.mxu0 %v2638_v34  ;;  %3921 = vmatpush1.msra.mxu1 %v3283_v35  ;;  %v2390_v34 = vld [vmem:[%s16005_s3 + $0x2600] sm:$0xff] }
 0x151   :  { %3854 = vmatpush1.msra.mxu0 %v2637_v37  ;;  %3922 = vmatprep.subr.mxu1 %v3265_v38  ;;  %v3018_v35 = vld [vmem:[%s16005_s3 + $0x39a0] sm:$0xff]  ;;  %v2980_v37 = vld [vmem:[%s16005_s3 + $0x3870] sm:$0xff]  ;;  %v3017_v38 = vld [vmem:[%s16005_s3 + $0x3998] sm:$0xff] }
 0x152   :  { %3855 = vmatprep.subr.mxu0 %v2619_v39  ;;  %3923 = vmatpush1.msra.mxu1 %v3264_v40  ;;  %v2979_v39 = vld [vmem:[%s16005_s3 + $0x3868] sm:$0xff] }
 0x153   :  { %3856 = vmatpush1.msra.mxu0 %v2618_v42  ;;  %3924 = vmatprep.subr.mxu1 %v3246_v43  ;;  %v2999_v40 = vld [vmem:[%s16005_s3 + $0x3908] sm:$0xff]  ;;  %v2961_v42 = vld [vmem:[%s16005_s3 + $0x37d8] sm:$0xff]  ;;  %v2998_v43 = vld [vmem:[%s16005_s3 + $0x3900] sm:$0xff] }
 0x154   :  { %3857 = vmatprep.subr.mxu0 %v2600_v44  ;;  %3925 = vmatpush1.msra.mxu1 %v3245_v45  ;;  %v2960_v44 = vld [vmem:[%s16005_s3 + $0x37d0] sm:$0xff] }
 0x155   :  { %3858 = vmatpush1.msra.mxu0 %v2599_v46  ;;  %3926 = vmatprep.subr.mxu1 %v3227_v47  ;;  %v3588_v45 = vld [vmem:[%s16005_s3 + $0x4b70] sm:$0xff]  ;;  %v2942_v46 = vld [vmem:[%s16005_s3 + $0x3740] sm:$0xff]  ;;  %v3587_v47 = vld [vmem:[%s16005_s3 + $0x4b68] sm:$0xff] }
 0x156   :  { %3859 = vmatprep.subr.mxu0 %v2581_v48  ;;  %3927 = vmatpush1.msra.mxu1 %v3226_v49  ;;  %v2941_v48 = vld [vmem:[%s16005_s3 + $0x3738] sm:$0xff] }
 0x157   :  { %3860 = vmatpush1.msra.mxu0 %v2580_v50  ;;  %3928 = vmatprep.subr.mxu1 %v3208_v51  ;;  %v3569_v49 = vld [vmem:[%s16005_s3 + $0x4ad8] sm:$0xff]  ;;  %v2923_v50 = vld [vmem:[%s16005_s3 + $0x36a8] sm:$0xff]  ;;  %v3568_v51 = vld [vmem:[%s16005_s3 + $0x4ad0] sm:$0xff] }
 0x158   :  { %3861 = vmatprep.subr.mxu0 %v2562_v53  ;;  %3929 = vmatpush1.msra.mxu1 %v3207_v54  ;;  %v2922_v53 = vld [vmem:[%s16005_s3 + $0x36a0] sm:$0xff] }
 0x159   :  { %3862 = vmatpush1.msra.mxu0 %v2561_v55  ;;  %3930 = vmatprep.subr.mxu1 %v3189_v56  ;;  %v3550_v54 = vld [vmem:[%s16005_s3 + $0x4a40] sm:$0xff]  ;;  %v2904_v55 = vld [vmem:[%s16005_s3 + $0x3610] sm:$0xff]  ;;  %v3549_v56 = vld [vmem:[%s16005_s3 + $0x4a38] sm:$0xff] }
 0x15a   :  { %3863 = vmatprep.subr.mxu0 %v2543_v58  ;;  %3931 = vmatpush1.msra.mxu1 %v3188_v60  ;;  %v2903_v58 = vld [vmem:[%s16005_s3 + $0x3608] sm:$0xff] }
 0x15b   :  { %3864 = vmatpush1.msra.mxu0 %v2542_v61  ;;  %3932 = vmatprep.subr.mxu1 %v3170_v63  ;;  %v3531_v60 = vld [vmem:[%s16005_s3 + $0x49a8] sm:$0xff]  ;;  %v2885_v61 = vld [vmem:[%s16005_s3 + $0x3578] sm:$0xff]  ;;  %v3530_v63 = vld [vmem:[%s16005_s3 + $0x49a0] sm:$0xff] }
 0x15c   :  { %3865 = vmatprep.subr.mxu0 %v2524_v1  ;;  %3933 = vmatpush1.msra.mxu1 %v3169_v2  ;;  %v2884_v1 = vld [vmem:[%s16005_s3 + $0x3570] sm:$0xff] }
 0x15d   :  { %3866 = vmatpush1.msra.mxu0 %v2523_v8  ;;  %3934 = vmatprep.subr.mxu1 %v3151_v5  ;;  %v3512_v2 = vld [vmem:[%s16005_s3 + $0x4910] sm:$0xff]  ;;  %v2866_v8 = vld [vmem:[%s16005_s3 + $0x34e0] sm:$0xff]  ;;  %v3511_v5 = vld [vmem:[%s16005_s3 + $0x4908] sm:$0xff] }
 0x15e   :  { %3867 = vmatprep.subr.mxu0 %v2505_v11  ;;  %3935 = vmatpush1.msra.mxu1 %v3150_v62  ;;  %v2865_v11 = vld [vmem:[%s16005_s3 + $0x34d8] sm:$0xff] }
 0x15f   :  { %3868 = vmatpush1.msra.mxu0 %v2504_v3  ;;  %3936 = vmatprep.subr.mxu1 %v3132_v6  ;;  %v3493_v62 = vld [vmem:[%s16005_s3 + $0x4878] sm:$0xff]  ;;  %v2847_v3 = vld [vmem:[%s16005_s3 + $0x3448] sm:$0xff]  ;;  %v3492_v6 = vld [vmem:[%s16005_s3 + $0x4870] sm:$0xff] }
 0x160   :  { %3869 = vmatprep.subr.mxu0 %v2486_v7  ;;  %3937 = vmatpush1.msra.mxu1 %v3131_v9  ;;  %v2846_v7 = vld [vmem:[%s16005_s3 + $0x3440] sm:$0xff] }
 0x161   :  { %3870 = vmatpush1.msra.mxu0 %v2485_v10  ;;  %3938 = vmatprep.subr.mxu1 %v3113_v12  ;;  %v3474_v9 = vld [vmem:[%s16005_s3 + $0x47e0] sm:$0xff]  ;;  %v2828_v10 = vld [vmem:[%s16005_s3 + $0x33b0] sm:$0xff]  ;;  %v3473_v12 = vld [vmem:[%s16005_s3 + $0x47d8] sm:$0xff] }
 0x162   :  { %3871 = vmatprep.subr.mxu0 %v2467_v13  ;;  %3939 = vmatpush1.msra.mxu1 %v3112_v33  ;;  %v2827_v13 = vld [vmem:[%s16005_s3 + $0x33a8] sm:$0xff] }
 0x163   :  { %3872 = vmatpush1.msra.mxu0 %v2466_v14  ;;  %3940 = vmatprep.subr.mxu1 %v3094_v15  ;;  %v3455_v33 = vld [vmem:[%s16005_s3 + $0x4748] sm:$0xff]  ;;  %v2809_v14 = vld [vmem:[%s16005_s3 + $0x3318] sm:$0xff]  ;;  %v3454_v15 = vld [vmem:[%s16005_s3 + $0x4740] sm:$0xff] }
 0x164   :  { %3873 = vmatprep.subr.mxu0 %v2448_v16  ;;  %3941 = vmatpush1.msra.mxu1 %v3093_v17  ;;  %v2808_v16 = vld [vmem:[%s16005_s3 + $0x3310] sm:$0xff] }
 0x165   :  { %3874 = vmatpush1.msra.mxu0 %v2447_v18  ;;  %3942 = vmatprep.subr.mxu1 %v3075_v19  ;;  %v3436_v17 = vld [vmem:[%s16005_s3 + $0x46b0] sm:$0xff]  ;;  %v2790_v18 = vld [vmem:[%s16005_s3 + $0x3280] sm:$0xff]  ;;  %v3435_v19 = vld [vmem:[%s16005_s3 + $0x46a8] sm:$0xff] }
 0x166   :  { %3875 = vmatprep.subr.mxu0 %v2429_v20  ;;  %3943 = vmatpush1.msra.mxu1 %v3074_v21  ;;  %v2789_v20 = vld [vmem:[%s16005_s3 + $0x3278] sm:$0xff] }
 0x167   :  { %3876 = vmatpush1.msra.mxu0 %v2428_v23  ;;  %3944 = vmatprep.subr.mxu1 %v3056_v24  ;;  %v3417_v21 = vld [vmem:[%s16005_s3 + $0x4618] sm:$0xff]  ;;  %v2771_v23 = vld [vmem:[%s16005_s3 + $0x31e8] sm:$0xff]  ;;  %v3416_v24 = vld [vmem:[%s16005_s3 + $0x4610] sm:$0xff] }
 0x168   :  { %3877 = vmatprep.subr.mxu0 %v2410_v25  ;;  %3945 = vmatpush1.msra.mxu1 %v3055_v26  ;;  %v9214_v25 = vsub.s32 4, %v7200_v41  ;;  %v2770_v26 = vld [vmem:[%s16005_s3 + $0x31e0] sm:$0xff] }
 0x169   :  { %3878 = vmatpush1.msra.mxu0 %v2409_v27  ;;  %3946 = vmatprep.subr.mxu1 %v3037_v59  ;;  %v3398_v27 = vld [vmem:[%s16005_s3 + $0x4580] sm:$0xff]  ;;  %v2752_v59 = vld [vmem:[%s16005_s3 + $0x3150] sm:$0xff] }
 0x16a   :  { %3879 = vmatprep.subr.mxu0 %v2391_v28  ;;  %3947 = vmatpush1.msra.mxu1 %v3036_v31  ;;  %v3397_v28 = vld [vmem:[%s16005_s3 + $0x4578] sm:$0xff]  ;;  %v9229_v31 = vsub.s32 5, %v7200_v41 }
 0x16b   :  { %3880 = vmatpush1.msra.mxu0 %v2390_v34  ;;  %3948 = vmatprep.subr.mxu1 %v3018_v35  ;;  %v2751_v34 = vld [vmem:[%s16005_s3 + $0x3148] sm:$0xff] }
 0x16c   :  { %3881 = vmatprep.subr.mxu0 %v2980_v37  ;;  %3949 = vmatpush1.msra.mxu1 %v3017_v38  ;;  %v3379_v35 = vld [vmem:[%s16005_s3 + $0x44e8] sm:$0xff]  ;;  %v2733_v37 = vld [vmem:[%s16005_s3 + $0x30b8] sm:$0xff]  ;;  %v3378_v38 = vld [vmem:[%s16005_s3 + $0x44e0] sm:$0xff] }
 0x16d   :  { %3882 = vmatpush2.msra.mxu0 %v2979_v39  ;;  %3950 = vmatprep.subr.mxu1 %v2999_v40  ;;  %v9246_v39 = vld [vmem:[%s16004_s2] sm:$0xff] }
 0x16e   :  { %3883 = vmatprep.subr.mxu0 %v2961_v42  ;;  %3951 = vmatpush1.msra.mxu1 %v2998_v43  ;;  %v555_v40 = vrot.slane %v9246_v39, %v9214_v25  ;;  %v2732_v42 = vld [vmem:[%s16005_s3 + $0x30b0] sm:$0xff] }
 0x16f   :  { %3884 = vmatpush2.msra.mxu0 %v2960_v44  ;;  %3952 = vmatprep.subr.mxu1 %v3588_v45  ;;  %v3360_v43 = vld [vmem:[%s16005_s3 + $0x4450] sm:$0xff]  ;;  %v2714_v44 = vld [vmem:[%s16005_s3 + $0x3020] sm:$0xff]  ;;  %v3359_v45 = vld [vmem:[%s16005_s3 + $0x4448] sm:$0xff] }
 0x170   :  { %3885 = vmatprep.subr.mxu0 %v2942_v46  ;;  %3953 = vmatpush2.msra.mxu1 %v3587_v47  ;;  %v559_v46 = vrot.slane %v9246_v39, %v9229_v31  ;;  %v2713_v47 = vld [vmem:[%s16005_s3 + $0x3018] sm:$0xff] }
 0x171   :  { %3886 = vmatpush2.msra.mxu0 %v2941_v48  ;;  %3954 = vmatprep.subr.mxu1 %v3569_v49  ;;  %v3341_v48 = vld [vmem:[%s16005_s3 + $0x43b8] sm:$0xff] }
 0x172   :  { %3887 = vmatprep.subr.mxu0 %v2923_v50  ;;  %3955 = vmatpush2.msra.mxu1 %v3568_v51  ;;  %v2695_v50 = vld [vmem:[%s16005_s3 + $0x2f88] sm:$0xff]  ;;  %v3340_v51 = vld [vmem:[%s16005_s3 + $0x43b0] sm:$0xff] }
 0x173   :  { %3888 = vmatpush2.msra.mxu0 %v2922_v53  ;;  %3956 = vmatprep.subr.mxu1 %v3550_v54  ;;  %v2694_v54 = vld [vmem:[%s16005_s3 + $0x2f80] sm:$0xff] }
 0x174   :  { %3889 = vmatprep.subr.mxu0 %v2904_v55  ;;  %3957 = vmatpush2.msra.mxu1 %v3549_v56  ;;  %v3322_v55 = vld [vmem:[%s16005_s3 + $0x4320] sm:$0xff] }
 0x175   :  { %3890 = vmatpush2.msra.mxu0 %v2903_v58  ;;  %3958 = vmatprep.subr.mxu1 %v3531_v60  ;;  %v1462_v60 = vld [vmem:[%s16005_s3 + $0x900] sm:$0xff] }
 0x176   :  { %3891 = vmatprep.subr.mxu0 %v2885_v61  ;;  %3959 = vmatpush2.msra.mxu1 %v3530_v63  ;;  %v3321_v61 = vld [vmem:[%s16005_s3 + $0x4318] sm:$0xff] }
 0x177   :  { %3892 = vmatpush2.msra.mxu0 %v2884_v1  ;;  %3960 = vmatprep.subr.mxu1 %v3512_v2  ;;  %v3303_v1 = vld [vmem:[%s16005_s3 + $0x4288] sm:$0xff] }
 0x178   :  { %3893 = vmatprep.subr.mxu0 %v2866_v8  ;;  %3961 = vmatpush2.msra.mxu1 %v3511_v5  ;;  %v3302_v5 = vld [vmem:[%s16005_s3 + $0x4280] sm:$0xff] }
 0x179   :  { %3894 = vmatpush2.msra.mxu0 %v2865_v11  ;;  %3962 = vmatprep.subr.mxu1 %v3493_v62  ;;  %v2070_v62 = vld [vmem:[%s16005_s3 + $0x1c00] sm:$0xff] }
 0x17a   :  { %3895 = vmatprep.subr.mxu0 %v2847_v3  ;;  %3963 = vmatpush2.msra.mxu1 %v3492_v6 }
 0x17b   :  { %3896 = vmatpush2.msra.mxu0 %v2846_v7  ;;  %3964 = vmatprep.subr.mxu1 %v3474_v9  ;;  %v1461_v7 = vld [vmem:[%s16005_s3 + $0x8f8] sm:$0xff]  ;;  %v1443_v9 = vld [vmem:[%s16005_s3 + $0x868] sm:$0xff] }
 0x17c   :  { %3897 = vmatprep.subr.mxu0 %v2828_v10  ;;  %3965 = vmatpush2.msra.mxu1 %v3473_v12  ;;  %v1442_v10 = vld [vmem:[%s16005_s3 + $0x860] sm:$0xff]  ;;  %v1424_v12 = vld [vmem:[%s16005_s3 + $0x7d0] sm:$0xff] }
 0x17d   :  { %3898 = vmatpush2.msra.mxu0 %v2827_v13  ;;  %3966 = vmatprep.subr.mxu1 %v3455_v33  ;;  %v1423_v13 = vld [vmem:[%s16005_s3 + $0x7c8] sm:$0xff]  ;;  %v1405_v33 = vld [vmem:[%s16005_s3 + $0x738] sm:$0xff] }
 0x17e   :  { %3899 = vmatprep.subr.mxu0 %v2809_v14  ;;  %3967 = vmatpush2.msra.mxu1 %v3454_v15  ;;  %v1404_v14 = vld [vmem:[%s16005_s3 + $0x730] sm:$0xff]  ;;  %v1386_v15 = vld [vmem:[%s16005_s3 + $0x6a0] sm:$0xff] }
 0x17f   :  { %3900 = vmatpush2.msra.mxu0 %v2808_v16  ;;  %3968 = vmatprep.subr.mxu1 %v3436_v17  ;;  %v1385_v16 = vld [vmem:[%s16005_s3 + $0x698] sm:$0xff]  ;;  %v1367_v17 = vld [vmem:[%s16005_s3 + $0x608] sm:$0xff] }
 0x180   :  { %3901 = vmatprep.subr.mxu0 %v2790_v18  ;;  %3969 = vmatpush2.msra.mxu1 %v3435_v19  ;;  %v1366_v18 = vld [vmem:[%s16005_s3 + $0x600] sm:$0xff]  ;;  %v1348_v19 = vld [vmem:[%s16005_s3 + $0x570] sm:$0xff] }
 0x181   :  { %3902 = vmatpush2.msra.mxu0 %v2789_v20  ;;  %3970 = vmatprep.subr.mxu1 %v3417_v21  ;;  %v1347_v20 = vld [vmem:[%s16005_s3 + $0x568] sm:$0xff]  ;;  %v1329_v21 = vld [vmem:[%s16005_s3 + $0x4d8] sm:$0xff] }
 0x182   :  { %3903 = vmatprep.subr.mxu0 %v2771_v23  ;;  %3971 = vmatpush2.msra.mxu1 %v3416_v24  ;;  %v1328_v23 = vld [vmem:[%s16005_s3 + $0x4d0] sm:$0xff]  ;;  %v1310_v24 = vld [vmem:[%s16005_s3 + $0x440] sm:$0xff] }
 0x183   :  { %3904 = vmatpush2.msra.mxu0 %v2770_v26  ;;  %3972 = vmatprep.subr.mxu1 %v3398_v27  ;;  %v1309_v26 = vld [vmem:[%s16005_s3 + $0x438] sm:$0xff]  ;;  %v1291_v27 = vld [vmem:[%s16005_s3 + $0x3a8] sm:$0xff] }
 0x184   :  { %3905 = vmatprep.subr.mxu0 %v2752_v59  ;;  %3973 = vmatpush2.msra.mxu1 %v3397_v28  ;;  %v1290_v59 = vld [vmem:[%s16005_s3 + $0x3a0] sm:$0xff]  ;;  %v1272_v28 = vld [vmem:[%s16005_s3 + $0x310] sm:$0xff] }
 0x185   :  { %3906 = vmatpush2.msra.mxu0 %v2751_v34  ;;  %3974 = vmatprep.subr.mxu1 %v3379_v35  ;;  %v1271_v34 = vld [vmem:[%s16005_s3 + $0x308] sm:$0xff]  ;;  %v1253_v35 = vld [vmem:[%s16005_s3 + $0x278] sm:$0xff] }
 0x186   :  { %3907 = vmatprep.subr.mxu0 %v2733_v37  ;;  %3975 = vmatpush2.msra.mxu1 %v3378_v38  ;;  %v1252_v37 = vld [vmem:[%s16005_s3 + $0x270] sm:$0xff]  ;;  %v1234_v38 = vld [vmem:[%s16005_s3 + $0x1e0] sm:$0xff] }
 0x187   :  { %v948_v49 = vpop.f32.mrf.mxu0  ;;  %3908 = vmatpush2.msra.mxu0 %v2732_v42  ;;  %3976 = vmatprep.subr.mxu1 %v3360_v43  ;;  %v1215_v42 = vld [vmem:[%s16005_s3 + $0x148] sm:$0xff]  ;;  %v1214_v43 = vld [vmem:[%s16005_s3 + $0x140] sm:$0xff] }
 0x188   :  { %v949_v53 = vadd.f32 %v948_v49, %v555_v40  ;;  %3909 = vmatprep.subr.mxu0 %v2714_v44  ;;  %3977 = vmatpush2.msra.mxu1 %v3359_v45  ;;  %v1233_v40 = vld [vmem:[%s16005_s3 + $0x1d8] sm:$0xff]  ;;  %v1196_v44 = vld [vmem:[%s16005_s3 + $0xb0] sm:$0xff]  ;;  %v1195_v45 = vld [vmem:[%s16005_s3 + $0xa8] sm:$0xff] }
 0x189   :  { %v1019_v56 = vpop.f32.mrf.mxu1  ;;  %v950_v58 = vpop.f32.mrf.mxu0  ;;  %3910 = vmatpush2.msra.mxu0 %v2713_v47  ;;  %3978 = vmatprep.subr.mxu1 %v3341_v48  ;;  %v1176_v47 = vld [vmem:[%s16005_s3 + $0x10] sm:$0xff]  ;;  %v1766_v48 = vld [vmem:[%s16005_s3 + $0x1280] sm:$0xff]  ;;  %v1765_v49 = vld [vmem:[%s16005_s3 + $0x1278] sm:$0xff] }
 0x18a   :  { %v951_v63 = vadd.f32 %v950_v58, %v559_v46  ;;  %3911 = vmatprep.subr.mxu0 %v2695_v50  ;;  %3979 = vmatpush2.msra.mxu1 %v3340_v51  ;;  %v1020_v2 = vadd.f32 %v1019_v56, %v949_v53  ;;  %v1177_v46 = vld [vmem:[%s16005_s3 + $0x18] sm:$0xff]  ;;  %v1747_v50 = vld [vmem:[%s16005_s3 + $0x11e8] sm:$0xff]  ;;  %v1746_v51 = vld [vmem:[%s16005_s3 + $0x11e0] sm:$0xff] }
 0x18b   :  { %v1021_v8 = vpop.f32.mrf.mxu1  ;;  %3912 = vmatpush2.msra.mxu0 %v2694_v54  ;;  %3980 = vmatprep.subr.mxu1 %v3322_v55  ;;  %v1728_v53 = vld [vmem:[%s16005_s3 + $0x1150] sm:$0xff]  ;;  %v1727_v54 = vld [vmem:[%s16005_s3 + $0x1148] sm:$0xff]  ;;  %v1709_v55 = vld [vmem:[%s16005_s3 + $0x10b8] sm:$0xff] }
 0x18c   :  { %v1022_v11 = vadd.f32 %v1021_v8, %v951_v63  ;;  %3991 = vmatprep.subr.mxu0 %v1462_v60  ;;  %3981 = vmatpush2.msra.mxu1 %v3321_v61  ;;  %v9299_v6 = vmax.f32 %v1020_v2, 0.0  ;;  %v1708_v56 = vld [vmem:[%s16005_s3 + $0x10b0] sm:$0xff]  ;;  %v1690_v58 = vld [vmem:[%s16005_s3 + $0x1020] sm:$0xff]  ;;  %v1689_v60 = vld [vmem:[%s16005_s3 + $0x1018] sm:$0xff] }
 0x18d   :  { %3982 = vmatprep.subr.mxu1 %v3303_v1  ;;  %v1671_v61 = vld [vmem:[%s16005_s3 + $0xf88] sm:$0xff]  ;;  %v1670_v63 = vld [vmem:[%s16005_s3 + $0xf80] sm:$0xff]  ;;  %v1652_v1 = vld [vmem:[%s16005_s3 + $0xef0] sm:$0xff] }
 0x18e   :  { %v9297_v3 = vmax.f32 %v1022_v11, 0.0  ;;  %3983 = vmatpush2.msra.mxu1 %v3302_v5  ;;  %v1651_v2 = vld [vmem:[%s16005_s3 + $0xee8] sm:$0xff]  ;;  %v1633_v8 = vld [vmem:[%s16005_s3 + $0xe58] sm:$0xff]  ;;  %v1632_v5 = vld [vmem:[%s16005_s3 + $0xe50] sm:$0xff] }
 0x18f   :  { %4062 = vmatprep.subr.mxu1 %v2070_v62  ;;  %v1614_v11 = vld [vmem:[%s16005_s3 + $0xdc0] sm:$0xff]  ;;  %v1613_v62 = vld [vmem:[%s16005_s3 + $0xdb8] sm:$0xff] }
 0x190   :  { %3913 = vmatprep.mubr.f32.mxu0 %v9297_v3 }
 0x191   :  { %3914 = vmatmul.mubr.f32.vlgmr.msra.gmra.mxu0 %v9299_v6 }
 0x192   :  { %3992 = vmatpush1.msra.mxu0 %v1461_v7  ;;  %4055 = vmatprep.mubr.f32.mxu0 %v8497_v4  ;;  %v1595_v7 = vld [vmem:[%s16005_s3 + $0xd28] sm:$0xff] }
 0x193   :  { %3993 = vmatprep.subr.mxu0 %v1443_v9  ;;  %v1594_v9 = vld [vmem:[%s16005_s3 + $0xd20] sm:$0xff] }
 0x194   :  { %3994 = vmatpush1.msra.mxu0 %v1442_v10  ;;  %v1576_v10 = vld [vmem:[%s16005_s3 + $0xc90] sm:$0xff] }
 0x195   :  { %3995 = vmatprep.subr.mxu0 %v1424_v12  ;;  %v1575_v12 = vld [vmem:[%s16005_s3 + $0xc88] sm:$0xff] }
 0x196   :  { %3996 = vmatpush1.msra.mxu0 %v1423_v13  ;;  %v9464_v13 = vsub.s32 6, %v7200_v41 }
 0x197   :  { %3997 = vmatprep.subr.mxu0 %v1405_v33  ;;  %v1557_v33 = vld [vmem:[%s16005_s3 + $0xbf8] sm:$0xff] }
 0x198   :  { %3998 = vmatpush1.msra.mxu0 %v1404_v14  ;;  %v1556_v14 = vld [vmem:[%s16005_s3 + $0xbf0] sm:$0xff] }
 0x199   :  { %3999 = vmatprep.subr.mxu0 %v1386_v15  ;;  %v9473_v15 = vsub.s32 7, %v7200_v41 }
 0x19a   :  { %4000 = vmatpush1.msra.mxu0 %v1385_v16  ;;  %v1538_v16 = vld [vmem:[%s16005_s3 + $0xb60] sm:$0xff] }
 0x19b   :  { %4001 = vmatprep.subr.mxu0 %v1367_v17  ;;  %v563_v17 = vrot.slane %v9246_v39, %v9464_v13  ;;  %v567_v41 = vrot.slane %v9246_v39, %v9473_v15  ;;  %v1481_v39 = vld [vmem:[%s16005_s3 + $0x998] sm:$0xff] }
 0x19c   :  { %4002 = vmatpush1.msra.mxu0 %v1366_v18  ;;  %v1537_v18 = vld [vmem:[%s16005_s3 + $0xb58] sm:$0xff] }
 0x19d   :  { %4003 = vmatprep.subr.mxu0 %v1348_v19  ;;  %v1519_v19 = vld [vmem:[%s16005_s3 + $0xac8] sm:$0xff] }
 0x19e   :  { %4004 = vmatpush1.msra.mxu0 %v1347_v20  ;;  %v1518_v20 = vld [vmem:[%s16005_s3 + $0xac0] sm:$0xff] }
 0x19f   :  { %4005 = vmatprep.subr.mxu0 %v1329_v21 }
 0x1a0   :  { %4006 = vmatpush1.msra.mxu0 %v1328_v23 }
 0x1a1   :  { %4007 = vmatprep.subr.mxu0 %v1310_v24  ;;  %v1500_v24 = vld [vmem:[%s16005_s3 + $0xa30] sm:$0xff] }
 0x1a2   :  { %4008 = vmatpush1.msra.mxu0 %v1309_v26 }
 0x1a3   :  { %4009 = vmatprep.subr.mxu0 %v1291_v27  ;;  %v1499_v27 = vld [vmem:[%s16005_s3 + $0xa28] sm:$0xff] }
 0x1a4   :  { %4010 = vmatpush1.msra.mxu0 %v1290_v59 }
 0x1a5   :  { %4011 = vmatprep.subr.mxu0 %v1272_v28 }
 0x1a6   :  { %4012 = vmatpush1.msra.mxu0 %v1271_v34  ;;  %v1480_v34 = vld [vmem:[%s16005_s3 + $0x990] sm:$0xff] }
 0x1a7   :  { %4013 = vmatprep.subr.mxu0 %v1253_v35 }
 0x1a8   :  { %4014 = vmatpush1.msra.mxu0 %v1252_v37 }
 0x1a9   :  { %4015 = vmatprep.subr.mxu0 %v1234_v38  ;;  %v2678_v38 = vld [vmem:[%s16005_s3 + $0x2f00] sm:$0xff] }
 0x1aa   :  { %4016 = vmatpush1.msra.mxu0 %v1233_v40 }
 0x1ab   :  { %4017 = vmatprep.subr.mxu0 %v1215_v42  ;;  %v2677_v42 = vld [vmem:[%s16005_s3 + $0x2ef8] sm:$0xff] }
 0x1ac   :  { %4018 = vmatpush1.msra.mxu0 %v1214_v43  ;;  %v2659_v43 = vld [vmem:[%s16005_s3 + $0x2e68] sm:$0xff] }
 0x1ad   :  { %4019 = vmatprep.subr.mxu0 %v1196_v44 }
 0x1ae   :  { %4020 = vmatpush1.msra.mxu0 %v1195_v45  ;;  %v2658_v45 = vld [vmem:[%s16005_s3 + $0x2e60] sm:$0xff] }
 0x1af   :  { %4021 = vmatprep.subr.mxu0 %v1177_v46 }
 0x1b0   :  { %4022 = vmatpush1.msra.mxu0 %v1176_v47  ;;  %v2069_v47 = vld [vmem:[%s16005_s3 + $0x1bf8] sm:$0xff] }
 0x1b1   :  { %4023 = vmatprep.subr.mxu0 %v1766_v48  ;;  %v2051_v48 = vld [vmem:[%s16005_s3 + $0x1b68] sm:$0xff] }
 0x1b2   :  { %4024 = vmatpush2.msra.mxu0 %v1765_v49  ;;  %v2640_v49 = vld [vmem:[%s16005_s3 + $0x2dd0] sm:$0xff] }
 0x1b3   :  { %4025 = vmatprep.subr.mxu0 %v1747_v50  ;;  %v2050_v50 = vld [vmem:[%s16005_s3 + $0x1b60] sm:$0xff] }
 0x1b4   :  { %4026 = vmatpush2.msra.mxu0 %v1746_v51  ;;  %v2639_v51 = vld [vmem:[%s16005_s3 + $0x2dc8] sm:$0xff] }
 0x1b5   :  { %4027 = vmatprep.subr.mxu0 %v1728_v53  ;;  %v2032_v53 = vld [vmem:[%s16005_s3 + $0x1ad0] sm:$0xff] }
 0x1b6   :  { %4028 = vmatpush2.msra.mxu0 %v1727_v54  ;;  %v2621_v54 = vld [vmem:[%s16005_s3 + $0x2d38] sm:$0xff] }
 0x1b7   :  { %4029 = vmatprep.subr.mxu0 %v1709_v55  ;;  %v2031_v55 = vld [vmem:[%s16005_s3 + $0x1ac8] sm:$0xff] }
 0x1b8   :  { %4030 = vmatpush2.msra.mxu0 %v1708_v56  ;;  %v2620_v56 = vld [vmem:[%s16005_s3 + $0x2d30] sm:$0xff] }
 0x1b9   :  { %4031 = vmatprep.subr.mxu0 %v1690_v58  ;;  %v2013_v58 = vld [vmem:[%s16005_s3 + $0x1a38] sm:$0xff] }
 0x1ba   :  { %4032 = vmatpush2.msra.mxu0 %v1689_v60  ;;  %v2602_v60 = vld [vmem:[%s16005_s3 + $0x2ca0] sm:$0xff] }
 0x1bb   :  { %4033 = vmatprep.subr.mxu0 %v1671_v61  ;;  %v2012_v61 = vld [vmem:[%s16005_s3 + $0x1a30] sm:$0xff] }
 0x1bc   :  { %4034 = vmatpush2.msra.mxu0 %v1670_v63  ;;  %v2601_v63 = vld [vmem:[%s16005_s3 + $0x2c98] sm:$0xff] }
 0x1bd   :  { %4035 = vmatprep.subr.mxu0 %v1652_v1  ;;  %v1994_v1 = vld [vmem:[%s16005_s3 + $0x19a0] sm:$0xff] }
 0x1be   :  { %4036 = vmatpush2.msra.mxu0 %v1651_v2  ;;  %v2583_v2 = vld [vmem:[%s16005_s3 + $0x2c08] sm:$0xff] }
 0x1bf   :  { %4037 = vmatprep.subr.mxu0 %v1633_v8  ;;  %v1993_v8 = vld [vmem:[%s16005_s3 + $0x1998] sm:$0xff] }
 0x1c0   :  { %4038 = vmatpush2.msra.mxu0 %v1632_v5  ;;  %v2582_v5 = vld [vmem:[%s16005_s3 + $0x2c00] sm:$0xff] }
 0x1c1   :  { %4039 = vmatprep.subr.mxu0 %v1614_v11  ;;  %v1975_v11 = vld [vmem:[%s16005_s3 + $0x1908] sm:$0xff] }
 0x1c2   :  { %4040 = vmatpush2.msra.mxu0 %v1613_v62  ;;  %v2564_v62 = vld [vmem:[%s16005_s3 + $0x2b70] sm:$0xff] }
 0x1c3   :  { %4041 = vmatprep.subr.mxu0 %v1595_v7  ;;  %v1974_v7 = vld [vmem:[%s16005_s3 + $0x1900] sm:$0xff] }
 0x1c4   :  { %4042 = vmatpush2.msra.mxu0 %v1594_v9  ;;  %v2563_v9 = vld [vmem:[%s16005_s3 + $0x2b68] sm:$0xff] }
 0x1c5   :  { %4043 = vmatprep.subr.mxu0 %v1576_v10  ;;  %v1956_v10 = vld [vmem:[%s16005_s3 + $0x1870] sm:$0xff] }
 0x1c6   :  { %4044 = vmatpush2.msra.mxu0 %v1575_v12  ;;  %v2545_v12 = vld [vmem:[%s16005_s3 + $0x2ad8] sm:$0xff] }
 0x1c7   :  { %4045 = vmatprep.subr.mxu0 %v1557_v33  ;;  %v1955_v33 = vld [vmem:[%s16005_s3 + $0x1868] sm:$0xff] }
 0x1c8   :  { %4046 = vmatpush2.msra.mxu0 %v1556_v14  ;;  %v2544_v14 = vld [vmem:[%s16005_s3 + $0x2ad0] sm:$0xff] }
 0x1c9   :  { %4047 = vmatprep.subr.mxu0 %v1538_v16  ;;  %v1937_v16 = vld [vmem:[%s16005_s3 + $0x17d8] sm:$0xff] }
 0x1ca   :  { %v1090_v21 = vpop.f32.mrf.mxu0  ;;  %v1161_v23 = vpop.f32.mrf.mxu1  ;;  %4048 = vmatpush2.msra.mxu0 %v1537_v18  ;;  %v1936_v18 = vld [vmem:[%s16005_s3 + $0x17d0] sm:$0xff] }
 0x1cb   :  { %v1091_v26 = vadd.f32 %v1090_v21, %v563_v17  ;;  %4049 = vmatprep.subr.mxu0 %v1519_v19  ;;  %v2526_v17 = vld [vmem:[%s16005_s3 + $0x2a40] sm:$0xff]  ;;  %v2525_v19 = vld [vmem:[%s16005_s3 + $0x2a38] sm:$0xff] }
 0x1cc   :  { %v1092_v59 = vpop.f32.mrf.mxu0  ;;  %4050 = vmatpush2.msra.mxu0 %v1518_v20  ;;  %v1163_v37 = vpop.f32.mrf.mxu1  ;;  %v2507_v20 = vld [vmem:[%s16005_s3 + $0x29a8] sm:$0xff]  ;;  %v1917_v21 = vld [vmem:[%s16005_s3 + $0x1738] sm:$0xff] }
 0x1cd   :  { %v1093_v28 = vadd.f32 %v1092_v59, %v567_v41  ;;  %4051 = vmatprep.subr.mxu0 %v1500_v24  ;;  %v1162_v35 = vadd.f32 %v1161_v23, %v1091_v26  ;;  %v1918_v41 = vld [vmem:[%s16005_s3 + $0x1740] sm:$0xff]  ;;  %v1899_v24 = vld [vmem:[%s16005_s3 + $0x16a8] sm:$0xff]  ;;  %v2488_v26 = vld [vmem:[%s16005_s3 + $0x2910] sm:$0xff] }
 0x1ce   :  { %4052 = vmatpush2.msra.mxu0 %v1499_v27  ;;  %v2506_v23 = vld [vmem:[%s16005_s3 + $0x29a0] sm:$0xff]  ;;  %v2487_v59 = vld [vmem:[%s16005_s3 + $0x2908] sm:$0xff] }
 0x1cf   :  { %v1164_v40 = vadd.f32 %v1163_v37, %v1093_v28  ;;  %4053 = vmatprep.subr.mxu0 %v1481_v39  ;;  %v9518_v46 = vmax.f32 %v1162_v35, 0.0  ;;  %v1898_v27 = vld [vmem:[%s16005_s3 + $0x16a0] sm:$0xff]  ;;  %v1880_v39 = vld [vmem:[%s16005_s3 + $0x1610] sm:$0xff]  ;;  %v2469_v28 = vld [vmem:[%s16005_s3 + $0x2878] sm:$0xff] }
 0x1d0   :  { %4054 = vmatpush2.msra.mxu0 %v1480_v34  ;;  %v1879_v34 = vld [vmem:[%s16005_s3 + $0x1608] sm:$0xff]  ;;  %v2468_v35 = vld [vmem:[%s16005_s3 + $0x2870] sm:$0xff]  ;;  %v1861_v37 = vld [vmem:[%s16005_s3 + $0x1578] sm:$0xff] }
 0x1d1   :  { %v9512_v44 = vmax.f32 %v1164_v40, 0.0  ;;  %4056 = vmatmul.mubr.f32.vlgmr.msra.gmra.mxu0 %v8883_v22  ;;  %4133 = vmatprep.subr.mxu0 %v2678_v38  ;;  %v2450_v38 = vld [vmem:[%s16005_s3 + $0x27e0] sm:$0xff]  ;;  %v1860_v40 = vld [vmem:[%s16005_s3 + $0x1570] sm:$0xff] }
 0x1d2   :  { %4134 = vmatpush1.msra.mxu0 %v2677_v42  ;;  %4197 = vmatprep.mubr.f32.mxu0 %v9297_v3  ;;  %v2449_v42 = vld [vmem:[%s16005_s3 + $0x27d8] sm:$0xff] }
 0x1d3   :  { %3984 = vmatprep.mubr.f32.mxu1 %v9512_v44  ;;  %4135 = vmatprep.subr.mxu0 %v2659_v43  ;;  %v1842_v43 = vld [vmem:[%s16005_s3 + $0x14e0] sm:$0xff] }
 0x1d4   :  { %3985 = vmatmul.mubr.f32.vlgmr.msra.gmra.mxu1 %v9518_v46  ;;  %4136 = vmatpush1.msra.mxu0 %v2658_v45  ;;  %v2431_v45 = vld [vmem:[%s16005_s3 + $0x2748] sm:$0xff] }
 0x1d5   :  { %4063 = vmatpush1.msra.mxu1 %v2069_v47  ;;  %4126 = vmatprep.mubr.f32.mxu1 %v8898_v29  ;;  %v1841_v47 = vld [vmem:[%s16005_s3 + $0x14d8] sm:$0xff] }
 0x1d6   :  { %4064 = vmatprep.subr.mxu1 %v2051_v48  ;;  %4137 = vmatprep.subr.mxu0 %v2640_v49  ;;  %v2430_v48 = vld [vmem:[%s16005_s3 + $0x2740] sm:$0xff]  ;;  %v1823_v49 = vld [vmem:[%s16005_s3 + $0x1448] sm:$0xff] }
 0x1d7   :  { %4065 = vmatpush1.msra.mxu1 %v2050_v50  ;;  %4138 = vmatpush1.msra.mxu0 %v2639_v51  ;;  %v2412_v50 = vld [vmem:[%s16005_s3 + $0x26b0] sm:$0xff]  ;;  %v1822_v51 = vld [vmem:[%s16005_s3 + $0x1440] sm:$0xff] }
 0x1d8   :  { %4066 = vmatprep.subr.mxu1 %v2032_v53  ;;  %4139 = vmatprep.subr.mxu0 %v2621_v54  ;;  %v2411_v53 = vld [vmem:[%s16005_s3 + $0x26a8] sm:$0xff]  ;;  %v1804_v54 = vld [vmem:[%s16005_s3 + $0x13b0] sm:$0xff] }
 0x1d9   :  { %4067 = vmatpush1.msra.mxu1 %v2031_v55  ;;  %4140 = vmatpush1.msra.mxu0 %v2620_v56  ;;  %v2393_v55 = vld [vmem:[%s16005_s3 + $0x2618] sm:$0xff]  ;;  %v1803_v56 = vld [vmem:[%s16005_s3 + $0x13a8] sm:$0xff] }
 0x1da   :  { %4068 = vmatprep.subr.mxu1 %v2013_v58  ;;  %4141 = vmatprep.subr.mxu0 %v2602_v60  ;;  %v2392_v58 = vld [vmem:[%s16005_s3 + $0x2610] sm:$0xff]  ;;  %v1785_v60 = vld [vmem:[%s16005_s3 + $0x1318] sm:$0xff] }
 0x1db   :  { %4069 = vmatpush1.msra.mxu1 %v2012_v61  ;;  %4142 = vmatpush1.msra.mxu0 %v2601_v63  ;;  %v2982_v61 = vld [vmem:[%s16005_s3 + $0x3880] sm:$0xff]  ;;  %v1784_v63 = vld [vmem:[%s16005_s3 + $0x1310] sm:$0xff] }
 0x1dc   :  { %4070 = vmatprep.subr.mxu1 %v1994_v1  ;;  %4143 = vmatprep.subr.mxu0 %v2583_v2  ;;  %v2981_v1 = vld [vmem:[%s16005_s3 + $0x3878] sm:$0xff]  ;;  %v2374_v2 = vld [vmem:[%s16005_s3 + $0x2580] sm:$0xff] }
 0x1dd   :  { %4071 = vmatpush1.msra.mxu1 %v1993_v8  ;;  %4144 = vmatpush1.msra.mxu0 %v2582_v5  ;;  %v2963_v8 = vld [vmem:[%s16005_s3 + $0x37e8] sm:$0xff]  ;;  %v2373_v5 = vld [vmem:[%s16005_s3 + $0x2578] sm:$0xff] }
 0x1de   :  { %4072 = vmatprep.subr.mxu1 %v1975_v11  ;;  %4145 = vmatprep.subr.mxu0 %v2564_v62  ;;  %v2962_v11 = vld [vmem:[%s16005_s3 + $0x37e0] sm:$0xff]  ;;  %v2355_v62 = vld [vmem:[%s16005_s3 + $0x24e8] sm:$0xff] }
 0x1df   :  { %4073 = vmatpush1.msra.mxu1 %v1974_v7  ;;  %4146 = vmatpush1.msra.mxu0 %v2563_v9  ;;  %v2944_v7 = vld [vmem:[%s16005_s3 + $0x3750] sm:$0xff]  ;;  %v2354_v9 = vld [vmem:[%s16005_s3 + $0x24e0] sm:$0xff] }
 0x1e0   :  { %4074 = vmatprep.subr.mxu1 %v1956_v10  ;;  %4147 = vmatprep.subr.mxu0 %v2545_v12  ;;  %v2943_v10 = vld [vmem:[%s16005_s3 + $0x3748] sm:$0xff]  ;;  %v2336_v12 = vld [vmem:[%s16005_s3 + $0x2450] sm:$0xff] }
 0x1e1   :  { %4075 = vmatpush1.msra.mxu1 %v1955_v33  ;;  %4148 = vmatpush1.msra.mxu0 %v2544_v14  ;;  %v2925_v33 = vld [vmem:[%s16005_s3 + $0x36b8] sm:$0xff]  ;;  %v2335_v14 = vld [vmem:[%s16005_s3 + $0x2448] sm:$0xff] }
 0x1e2   :  { %4076 = vmatprep.subr.mxu1 %v1937_v16  ;;  %4149 = vmatprep.subr.mxu0 %v2526_v17  ;;  %v2924_v16 = vld [vmem:[%s16005_s3 + $0x36b0] sm:$0xff]  ;;  %v2317_v17 = vld [vmem:[%s16005_s3 + $0x23b8] sm:$0xff] }
 0x1e3   :  { %4077 = vmatpush1.msra.mxu1 %v1936_v18  ;;  %4150 = vmatpush1.msra.mxu0 %v2525_v19  ;;  %v2906_v18 = vld [vmem:[%s16005_s3 + $0x3620] sm:$0xff]  ;;  %v2316_v19 = vld [vmem:[%s16005_s3 + $0x23b0] sm:$0xff] }
 0x1e4   :  { %4078 = vmatprep.subr.mxu1 %v1918_v41  ;;  %4151 = vmatprep.subr.mxu0 %v2507_v20  ;;  %v2905_v41 = vld [vmem:[%s16005_s3 + $0x3618] sm:$0xff]  ;;  %v2298_v20 = vld [vmem:[%s16005_s3 + $0x2320] sm:$0xff] }
 0x1e5   :  { %4079 = vmatpush1.msra.mxu1 %v1917_v21  ;;  %4152 = vmatpush1.msra.mxu0 %v2506_v23  ;;  %v2887_v21 = vld [vmem:[%s16005_s3 + $0x3588] sm:$0xff]  ;;  %v2297_v23 = vld [vmem:[%s16005_s3 + $0x2318] sm:$0xff] }
 0x1e6   :  { %4080 = vmatprep.subr.mxu1 %v1899_v24  ;;  %4153 = vmatprep.subr.mxu0 %v2488_v26  ;;  %v2886_v24 = vld [vmem:[%s16005_s3 + $0x3580] sm:$0xff]  ;;  %v2279_v26 = vld [vmem:[%s16005_s3 + $0x2288] sm:$0xff] }
 0x1e7   :  { %4081 = vmatpush1.msra.mxu1 %v1898_v27  ;;  %4154 = vmatpush1.msra.mxu0 %v2487_v59  ;;  %v2868_v27 = vld [vmem:[%s16005_s3 + $0x34f0] sm:$0xff]  ;;  %v2278_v59 = vld [vmem:[%s16005_s3 + $0x2280] sm:$0xff] }
 0x1e8   :  { %4082 = vmatprep.subr.mxu1 %v1880_v39  ;;  %4155 = vmatprep.subr.mxu0 %v2469_v28  ;;  %v2867_v39 = vld [vmem:[%s16005_s3 + $0x34e8] sm:$0xff]  ;;  %v2260_v28 = vld [vmem:[%s16005_s3 + $0x21f0] sm:$0xff] }
 0x1e9   :  { %4083 = vmatpush1.msra.mxu1 %v1879_v34  ;;  %4156 = vmatpush1.msra.mxu0 %v2468_v35  ;;  %v2849_v34 = vld [vmem:[%s16005_s3 + $0x3458] sm:$0xff]  ;;  %v2259_v35 = vld [vmem:[%s16005_s3 + $0x21e8] sm:$0xff] }
 0x1ea   :  { %4084 = vmatprep.subr.mxu1 %v1861_v37  ;;  %4157 = vmatprep.subr.mxu0 %v2450_v38  ;;  %v2848_v37 = vld [vmem:[%s16005_s3 + $0x3450] sm:$0xff]  ;;  %v2241_v38 = vld [vmem:[%s16005_s3 + $0x2158] sm:$0xff] }
 0x1eb   :  { %4085 = vmatpush1.msra.mxu1 %v1860_v40  ;;  %4158 = vmatpush1.msra.mxu0 %v2449_v42  ;;  %v2830_v40 = vld [vmem:[%s16005_s3 + $0x33c0] sm:$0xff]  ;;  %v2240_v42 = vld [vmem:[%s16005_s3 + $0x2150] sm:$0xff] }
 0x1ec   :  { %4086 = vmatprep.subr.mxu1 %v1842_v43  ;;  %4159 = vmatprep.subr.mxu0 %v2431_v45  ;;  %v2829_v43 = vld [vmem:[%s16005_s3 + $0x33b8] sm:$0xff]  ;;  %v2222_v45 = vld [vmem:[%s16005_s3 + $0x20c0] sm:$0xff] }
 0x1ed   :  { %4087 = vmatpush1.msra.mxu1 %v1841_v47  ;;  %4160 = vmatpush1.msra.mxu0 %v2430_v48  ;;  %v2811_v47 = vld [vmem:[%s16005_s3 + $0x3328] sm:$0xff]  ;;  %v2221_v48 = vld [vmem:[%s16005_s3 + $0x20b8] sm:$0xff] }
 0x1ee   :  { %4088 = vmatprep.subr.mxu1 %v1823_v49  ;;  %4161 = vmatprep.subr.mxu0 %v2412_v50  ;;  %v2810_v49 = vld [vmem:[%s16005_s3 + $0x3320] sm:$0xff]  ;;  %v2203_v50 = vld [vmem:[%s16005_s3 + $0x2028] sm:$0xff] }
 0x1ef   :  { %4089 = vmatpush1.msra.mxu1 %v1822_v51  ;;  %4162 = vmatpush1.msra.mxu0 %v2411_v53  ;;  %v2792_v51 = vld [vmem:[%s16005_s3 + $0x3290] sm:$0xff]  ;;  %v2202_v53 = vld [vmem:[%s16005_s3 + $0x2020] sm:$0xff] }
 0x1f0   :  { %4090 = vmatprep.subr.mxu1 %v1804_v54  ;;  %4163 = vmatprep.subr.mxu0 %v2393_v55  ;;  %v2791_v54 = vld [vmem:[%s16005_s3 + $0x3288] sm:$0xff]  ;;  %v2184_v55 = vld [vmem:[%s16005_s3 + $0x1f90] sm:$0xff] }
 0x1f1   :  { %4091 = vmatpush1.msra.mxu1 %v1803_v56  ;;  %4164 = vmatpush1.msra.mxu0 %v2392_v58  ;;  %v2773_v56 = vld [vmem:[%s16005_s3 + $0x31f8] sm:$0xff]  ;;  %v2183_v58 = vld [vmem:[%s16005_s3 + $0x1f88] sm:$0xff] }
 0x1f2   :  { %4092 = vmatprep.subr.mxu1 %v1785_v60  ;;  %4165 = vmatprep.subr.mxu0 %v2982_v61  ;;  %v2772_v60 = vld [vmem:[%s16005_s3 + $0x31f0] sm:$0xff]  ;;  %v2165_v61 = vld [vmem:[%s16005_s3 + $0x1ef8] sm:$0xff] }
 0x1f3   :  { %4093 = vmatpush1.msra.mxu1 %v1784_v63  ;;  %4166 = vmatpush2.msra.mxu0 %v2981_v1  ;;  %v2754_v63 = vld [vmem:[%s16005_s3 + $0x3160] sm:$0xff]  ;;  %v2164_v1 = vld [vmem:[%s16005_s3 + $0x1ef0] sm:$0xff] }
 0x1f4   :  { %4094 = vmatprep.subr.mxu1 %v2374_v2  ;;  %4167 = vmatprep.subr.mxu0 %v2963_v8  ;;  %v2753_v2 = vld [vmem:[%s16005_s3 + $0x3158] sm:$0xff]  ;;  %v2146_v8 = vld [vmem:[%s16005_s3 + $0x1e60] sm:$0xff] }
 0x1f5   :  { %4095 = vmatpush2.msra.mxu1 %v2373_v5  ;;  %4168 = vmatpush2.msra.mxu0 %v2962_v11  ;;  %v2735_v5 = vld [vmem:[%s16005_s3 + $0x30c8] sm:$0xff]  ;;  %v2145_v11 = vld [vmem:[%s16005_s3 + $0x1e58] sm:$0xff] }
 0x1f6   :  { %4096 = vmatprep.subr.mxu1 %v2355_v62  ;;  %4169 = vmatprep.subr.mxu0 %v2944_v7  ;;  %v2734_v62 = vld [vmem:[%s16005_s3 + $0x30c0] sm:$0xff]  ;;  %v2127_v7 = vld [vmem:[%s16005_s3 + $0x1dc8] sm:$0xff] }
 0x1f7   :  { %4097 = vmatpush2.msra.mxu1 %v2354_v9  ;;  %4170 = vmatpush2.msra.mxu0 %v2943_v10  ;;  %v2716_v9 = vld [vmem:[%s16005_s3 + $0x3030] sm:$0xff]  ;;  %v2126_v10 = vld [vmem:[%s16005_s3 + $0x1dc0] sm:$0xff] }
 0x1f8   :  { %4098 = vmatprep.subr.mxu1 %v2336_v12  ;;  %4171 = vmatprep.subr.mxu0 %v2925_v33  ;;  %v2715_v12 = vld [vmem:[%s16005_s3 + $0x3028] sm:$0xff]  ;;  %v2108_v33 = vld [vmem:[%s16005_s3 + $0x1d30] sm:$0xff] }
 0x1f9   :  { %4099 = vmatpush2.msra.mxu1 %v2335_v14  ;;  %4172 = vmatpush2.msra.mxu0 %v2924_v16  ;;  %v2697_v14 = vld [vmem:[%s16005_s3 + $0x2f98] sm:$0xff]  ;;  %v2107_v16 = vld [vmem:[%s16005_s3 + $0x1d28] sm:$0xff] }
 0x1fa   :  { %4100 = vmatprep.subr.mxu1 %v2317_v17  ;;  %4173 = vmatprep.subr.mxu0 %v2906_v18  ;;  %v2696_v17 = vld [vmem:[%s16005_s3 + $0x2f90] sm:$0xff]  ;;  %v2089_v18 = vld [vmem:[%s16005_s3 + $0x1c98] sm:$0xff] }
 0x1fb   :  { %4101 = vmatpush2.msra.mxu1 %v2316_v19  ;;  %4174 = vmatpush2.msra.mxu0 %v2905_v41  ;;  %v2088_v19 = vld [vmem:[%s16005_s3 + $0x1c90] sm:$0xff] }
 0x1fc   :  { %4102 = vmatprep.subr.mxu1 %v2298_v20  ;;  %4175 = vmatprep.subr.mxu0 %v2887_v21  ;;  %v1464_v41 = vld [vmem:[%s16005_s3 + $0x910] sm:$0xff]  ;;  %v3286_v20 = vld [vmem:[%s16005_s3 + $0x4200] sm:$0xff]  ;;  %v3285_v21 = vld [vmem:[%s16005_s3 + $0x41f8] sm:$0xff] }
 0x1fd   :  { %4103 = vmatpush2.msra.mxu1 %v2297_v23  ;;  %4176 = vmatpush2.msra.mxu0 %v2886_v24  ;;  %v1463_v23 = vld [vmem:[%s16005_s3 + $0x908] sm:$0xff] }
 0x1fe   :  { %4104 = vmatprep.subr.mxu1 %v2279_v26  ;;  %4177 = vmatprep.subr.mxu0 %v2868_v27  ;;  %v3267_v24 = vld [vmem:[%s16005_s3 + $0x4168] sm:$0xff]  ;;  %v1445_v26 = vld [vmem:[%s16005_s3 + $0x878] sm:$0xff]  ;;  %v3266_v27 = vld [vmem:[%s16005_s3 + $0x4160] sm:$0xff] }
 0x1ff   :  { %4105 = vmatpush2.msra.mxu1 %v2278_v59  ;;  %4178 = vmatpush2.msra.mxu0 %v2867_v39  ;;  %v1444_v59 = vld [vmem:[%s16005_s3 + $0x870] sm:$0xff] }
 0x200   :  { %4106 = vmatprep.subr.mxu1 %v2260_v28  ;;  %4179 = vmatprep.subr.mxu0 %v2849_v34  ;;  %v3248_v39 = vld [vmem:[%s16005_s3 + $0x40d0] sm:$0xff]  ;;  %v1426_v28 = vld [vmem:[%s16005_s3 + $0x7e0] sm:$0xff]  ;;  %v3247_v34 = vld [vmem:[%s16005_s3 + $0x40c8] sm:$0xff] }
 0x201   :  { %4107 = vmatpush2.msra.mxu1 %v2259_v35  ;;  %4180 = vmatpush2.msra.mxu0 %v2848_v37  ;;  %v1425_v35 = vld [vmem:[%s16005_s3 + $0x7d8] sm:$0xff] }
 0x202   :  { %4108 = vmatprep.subr.mxu1 %v2241_v38  ;;  %4181 = vmatprep.subr.mxu0 %v2830_v40  ;;  %v3229_v37 = vld [vmem:[%s16005_s3 + $0x4038] sm:$0xff]  ;;  %v1407_v38 = vld [vmem:[%s16005_s3 + $0x748] sm:$0xff]  ;;  %v3228_v40 = vld [vmem:[%s16005_s3 + $0x4030] sm:$0xff] }
 0x203   :  { %4109 = vmatpush2.msra.mxu1 %v2240_v42  ;;  %4182 = vmatpush2.msra.mxu0 %v2829_v43  ;;  %v1406_v42 = vld [vmem:[%s16005_s3 + $0x740] sm:$0xff] }
 0x204   :  { %4110 = vmatprep.subr.mxu1 %v2222_v45  ;;  %4183 = vmatprep.subr.mxu0 %v2811_v47  ;;  %v3210_v43 = vld [vmem:[%s16005_s3 + $0x3fa0] sm:$0xff]  ;;  %v1388_v45 = vld [vmem:[%s16005_s3 + $0x6b0] sm:$0xff]  ;;  %v3209_v47 = vld [vmem:[%s16005_s3 + $0x3f98] sm:$0xff] }
 0x205   :  { %4111 = vmatpush2.msra.mxu1 %v2221_v48  ;;  %4184 = vmatpush2.msra.mxu0 %v2810_v49  ;;  %v1387_v48 = vld [vmem:[%s16005_s3 + $0x6a8] sm:$0xff] }
 0x206   :  { %4112 = vmatprep.subr.mxu1 %v2203_v50  ;;  %4185 = vmatprep.subr.mxu0 %v2792_v51  ;;  %v3191_v49 = vld [vmem:[%s16005_s3 + $0x3f08] sm:$0xff]  ;;  %v1369_v50 = vld [vmem:[%s16005_s3 + $0x618] sm:$0xff]  ;;  %v3190_v51 = vld [vmem:[%s16005_s3 + $0x3f00] sm:$0xff] }
 0x207   :  { %4113 = vmatpush2.msra.mxu1 %v2202_v53  ;;  %4186 = vmatpush2.msra.mxu0 %v2791_v54  ;;  %v1368_v53 = vld [vmem:[%s16005_s3 + $0x610] sm:$0xff] }
 0x208   :  { %4114 = vmatprep.subr.mxu1 %v2184_v55  ;;  %4187 = vmatprep.subr.mxu0 %v2773_v56  ;;  %v3172_v54 = vld [vmem:[%s16005_s3 + $0x3e70] sm:$0xff]  ;;  %v1350_v55 = vld [vmem:[%s16005_s3 + $0x580] sm:$0xff]  ;;  %v3171_v56 = vld [vmem:[%s16005_s3 + $0x3e68] sm:$0xff] }
 0x209   :  { %4115 = vmatpush2.msra.mxu1 %v2183_v58  ;;  %4188 = vmatpush2.msra.mxu0 %v2772_v60  ;;  %v1349_v58 = vld [vmem:[%s16005_s3 + $0x578] sm:$0xff] }
 0x20a   :  { %4116 = vmatprep.subr.mxu1 %v2165_v61  ;;  %4189 = vmatprep.subr.mxu0 %v2754_v63  ;;  %v3153_v60 = vld [vmem:[%s16005_s3 + $0x3dd8] sm:$0xff]  ;;  %v1331_v61 = vld [vmem:[%s16005_s3 + $0x4e8] sm:$0xff]  ;;  %v3152_v63 = vld [vmem:[%s16005_s3 + $0x3dd0] sm:$0xff] }
 0x20b   :  { %4117 = vmatpush2.msra.mxu1 %v2164_v1  ;;  %4190 = vmatpush2.msra.mxu0 %v2753_v2  ;;  %v1330_v1 = vld [vmem:[%s16005_s3 + $0x4e0] sm:$0xff] }
 0x20c   :  { %4118 = vmatprep.subr.mxu1 %v2146_v8  ;;  %4191 = vmatprep.subr.mxu0 %v2735_v5  ;;  %v3134_v2 = vld [vmem:[%s16005_s3 + $0x3d40] sm:$0xff]  ;;  %v1312_v8 = vld [vmem:[%s16005_s3 + $0x450] sm:$0xff]  ;;  %v3133_v5 = vld [vmem:[%s16005_s3 + $0x3d38] sm:$0xff] }
 0x20d   :  { %4119 = vmatpush2.msra.mxu1 %v2145_v11  ;;  %4192 = vmatpush2.msra.mxu0 %v2734_v62  ;;  %v1311_v11 = vld [vmem:[%s16005_s3 + $0x448] sm:$0xff] }
 0x20e   :  { %4120 = vmatprep.subr.mxu1 %v2127_v7  ;;  %4193 = vmatprep.subr.mxu0 %v2716_v9  ;;  %v3115_v62 = vld [vmem:[%s16005_s3 + $0x3ca8] sm:$0xff]  ;;  %v1293_v7 = vld [vmem:[%s16005_s3 + $0x3b8] sm:$0xff]  ;;  %v3114_v9 = vld [vmem:[%s16005_s3 + $0x3ca0] sm:$0xff] }
 0x20f   :  { %4121 = vmatpush2.msra.mxu1 %v2126_v10  ;;  %4194 = vmatpush2.msra.mxu0 %v2715_v12  ;;  %v1292_v10 = vld [vmem:[%s16005_s3 + $0x3b0] sm:$0xff] }
 0x210   :  { %4122 = vmatprep.subr.mxu1 %v2108_v33  ;;  %4195 = vmatprep.subr.mxu0 %v2697_v14  ;;  %v3096_v12 = vld [vmem:[%s16005_s3 + $0x3c10] sm:$0xff]  ;;  %v1274_v33 = vld [vmem:[%s16005_s3 + $0x320] sm:$0xff]  ;;  %v3095_v14 = vld [vmem:[%s16005_s3 + $0x3c08] sm:$0xff] }
 0x211   :  { %4123 = vmatpush2.msra.mxu1 %v2107_v16  ;;  %4196 = vmatpush2.msra.mxu0 %v2696_v17  ;;  %v1273_v16 = vld [vmem:[%s16005_s3 + $0x318] sm:$0xff] }
 0x212   :  { %4124 = vmatprep.subr.mxu1 %v2089_v18  ;;  %4198 = vmatmul.mubr.f32.vlgmr.msra.gmra.mxu0 %v9299_v6  ;;  %v3077_v17 = vld [vmem:[%s16005_s3 + $0x3b78] sm:$0xff]  ;;  %v1255_v18 = vld [vmem:[%s16005_s3 + $0x288] sm:$0xff] }
 0x213   :  { %4125 = vmatpush2.msra.mxu1 %v2088_v19  ;;  %4275 = vmatprep.subr.mxu0 %v1464_v41  ;;  %v3076_v19 = vld [vmem:[%s16005_s3 + $0x3b70] sm:$0xff]  ;;  %v1254_v41 = vld [vmem:[%s16005_s3 + $0x280] sm:$0xff] }
 0x214   :  { %4127 = vmatmul.mubr.f32.vlgmr.msra.gmra.mxu1 %v8903_v32  ;;  %4204 = vmatprep.subr.mxu1 %v3286_v20  ;;  %v3058_v20 = vld [vmem:[%s16005_s3 + $0x3ae0] sm:$0xff] }
 0x215   :  { %4205 = vmatpush1.msra.mxu1 %v3285_v21  ;;  %4268 = vmatprep.mubr.f32.mxu1 %v9512_v44  ;;  %v1236_v21 = vld [vmem:[%s16005_s3 + $0x1f0] sm:$0xff] }
 0x216   :  { %4276 = vmatpush1.msra.mxu0 %v1463_v23  ;;  %4339 = vmatprep.mubr.f32.mxu0 %v8497_v4  ;;  %v3057_v23 = vld [vmem:[%s16005_s3 + $0x3ad8] sm:$0xff] }
 0x217   :  { %4206 = vmatprep.subr.mxu1 %v3267_v24  ;;  %4277 = vmatprep.subr.mxu0 %v1445_v26  ;;  %v1235_v24 = vld [vmem:[%s16005_s3 + $0x1e8] sm:$0xff] }
 0x218   :  { %4207 = vmatpush1.msra.mxu1 %v3266_v27  ;;  %4278 = vmatpush1.msra.mxu0 %v1444_v59  ;;  %v3039_v26 = vld [vmem:[%s16005_s3 + $0x3a48] sm:$0xff]  ;;  %v1217_v27 = vld [vmem:[%s16005_s3 + $0x158] sm:$0xff]  ;;  %v3038_v59 = vld [vmem:[%s16005_s3 + $0x3a40] sm:$0xff] }
 0x219   :  { %4208 = vmatprep.subr.mxu1 %v3248_v39  ;;  %4279 = vmatprep.subr.mxu0 %v1426_v28  ;;  %v1216_v39 = vld [vmem:[%s16005_s3 + $0x150] sm:$0xff] }
 0x21a   :  { %4209 = vmatpush1.msra.mxu1 %v3247_v34  ;;  %4280 = vmatpush1.msra.mxu0 %v1425_v35  ;;  %v3020_v28 = vld [vmem:[%s16005_s3 + $0x39b0] sm:$0xff]  ;;  %v1198_v34 = vld [vmem:[%s16005_s3 + $0xc0] sm:$0xff]  ;;  %v3019_v35 = vld [vmem:[%s16005_s3 + $0x39a8] sm:$0xff] }
 0x21b   :  { %4210 = vmatprep.subr.mxu1 %v3229_v37  ;;  %4281 = vmatprep.subr.mxu0 %v1407_v38  ;;  %v1197_v37 = vld [vmem:[%s16005_s3 + $0xb8] sm:$0xff] }
 0x21c   :  { %4211 = vmatpush1.msra.mxu1 %v3228_v40  ;;  %4282 = vmatpush1.msra.mxu0 %v1406_v42  ;;  %v3001_v38 = vld [vmem:[%s16005_s3 + $0x3918] sm:$0xff]  ;;  %v1179_v40 = vld [vmem:[%s16005_s3 + $0x28] sm:$0xff]  ;;  %v3000_v42 = vld [vmem:[%s16005_s3 + $0x3910] sm:$0xff] }
 0x21d   :  { %4212 = vmatprep.subr.mxu1 %v3210_v43  ;;  %4283 = vmatprep.subr.mxu0 %v1388_v45  ;;  %v1178_v43 = vld [vmem:[%s16005_s3 + $0x20] sm:$0xff] }
 0x21e   :  { %4213 = vmatpush1.msra.mxu1 %v3209_v47  ;;  %4284 = vmatpush1.msra.mxu0 %v1387_v48  ;;  %v3590_v45 = vld [vmem:[%s16005_s3 + $0x4b80] sm:$0xff]  ;;  %v1768_v47 = vld [vmem:[%s16005_s3 + $0x1290] sm:$0xff]  ;;  %v3589_v48 = vld [vmem:[%s16005_s3 + $0x4b78] sm:$0xff] }
 0x21f   :  { %4214 = vmatprep.subr.mxu1 %v3191_v49  ;;  %4285 = vmatprep.subr.mxu0 %v1369_v50  ;;  %v1767_v49 = vld [vmem:[%s16005_s3 + $0x1288] sm:$0xff] }
 0x220   :  { %4215 = vmatpush1.msra.mxu1 %v3190_v51  ;;  %4286 = vmatpush1.msra.mxu0 %v1368_v53  ;;  %v3571_v50 = vld [vmem:[%s16005_s3 + $0x4ae8] sm:$0xff]  ;;  %v1749_v51 = vld [vmem:[%s16005_s3 + $0x11f8] sm:$0xff]  ;;  %v3570_v53 = vld [vmem:[%s16005_s3 + $0x4ae0] sm:$0xff] }
 0x221   :  { %4216 = vmatprep.subr.mxu1 %v3172_v54  ;;  %4287 = vmatprep.subr.mxu0 %v1350_v55  ;;  %v1748_v54 = vld [vmem:[%s16005_s3 + $0x11f0] sm:$0xff] }
 0x222   :  { %4217 = vmatpush1.msra.mxu1 %v3171_v56  ;;  %4288 = vmatpush1.msra.mxu0 %v1349_v58  ;;  %v3552_v55 = vld [vmem:[%s16005_s3 + $0x4a50] sm:$0xff]  ;;  %v1730_v56 = vld [vmem:[%s16005_s3 + $0x1160] sm:$0xff]  ;;  %v3551_v58 = vld [vmem:[%s16005_s3 + $0x4a48] sm:$0xff] }
 0x223   :  { %4218 = vmatprep.subr.mxu1 %v3153_v60  ;;  %4289 = vmatprep.subr.mxu0 %v1331_v61  ;;  %v1729_v60 = vld [vmem:[%s16005_s3 + $0x1158] sm:$0xff] }
 0x224   :  { %4219 = vmatpush1.msra.mxu1 %v3152_v63  ;;  %4290 = vmatpush1.msra.mxu0 %v1330_v1  ;;  %v3533_v61 = vld [vmem:[%s16005_s3 + $0x49b8] sm:$0xff]  ;;  %v1711_v63 = vld [vmem:[%s16005_s3 + $0x10c8] sm:$0xff]  ;;  %v3532_v1 = vld [vmem:[%s16005_s3 + $0x49b0] sm:$0xff] }
 0x225   :  { %4220 = vmatprep.subr.mxu1 %v3134_v2  ;;  %4291 = vmatprep.subr.mxu0 %v1312_v8  ;;  %v1710_v2 = vld [vmem:[%s16005_s3 + $0x10c0] sm:$0xff] }
 0x226   :  { %4221 = vmatpush1.msra.mxu1 %v3133_v5  ;;  %4292 = vmatpush1.msra.mxu0 %v1311_v11  ;;  %v3514_v8 = vld [vmem:[%s16005_s3 + $0x4920] sm:$0xff]  ;;  %v1692_v5 = vld [vmem:[%s16005_s3 + $0x1030] sm:$0xff]  ;;  %v3513_v11 = vld [vmem:[%s16005_s3 + $0x4918] sm:$0xff] }
 0x227   :  { %4222 = vmatprep.subr.mxu1 %v3115_v62  ;;  %4293 = vmatprep.subr.mxu0 %v1293_v7  ;;  %v1691_v62 = vld [vmem:[%s16005_s3 + $0x1028] sm:$0xff] }
 0x228   :  { %4223 = vmatpush1.msra.mxu1 %v3114_v9  ;;  %4294 = vmatpush1.msra.mxu0 %v1292_v10  ;;  %v3495_v7 = vld [vmem:[%s16005_s3 + $0x4888] sm:$0xff]  ;;  %v1673_v9 = vld [vmem:[%s16005_s3 + $0xf98] sm:$0xff]  ;;  %v3494_v10 = vld [vmem:[%s16005_s3 + $0x4880] sm:$0xff] }
 0x229   :  { %4224 = vmatprep.subr.mxu1 %v3096_v12  ;;  %4295 = vmatprep.subr.mxu0 %v1274_v33  ;;  %v1672_v12 = vld [vmem:[%s16005_s3 + $0xf90] sm:$0xff] }
 0x22a   :  { %4225 = vmatpush1.msra.mxu1 %v3095_v14  ;;  %4296 = vmatpush1.msra.mxu0 %v1273_v16  ;;  %v3476_v33 = vld [vmem:[%s16005_s3 + $0x47f0] sm:$0xff]  ;;  %v1654_v14 = vld [vmem:[%s16005_s3 + $0xf00] sm:$0xff]  ;;  %v3475_v16 = vld [vmem:[%s16005_s3 + $0x47e8] sm:$0xff] }
 0x22b   :  { %4226 = vmatprep.subr.mxu1 %v3077_v17  ;;  %4297 = vmatprep.subr.mxu0 %v1255_v18  ;;  %v1653_v17 = vld [vmem:[%s16005_s3 + $0xef8] sm:$0xff] }
 0x22c   :  { %4227 = vmatpush1.msra.mxu1 %v3076_v19  ;;  %4298 = vmatpush1.msra.mxu0 %v1254_v41  ;;  %v3457_v18 = vld [vmem:[%s16005_s3 + $0x4758] sm:$0xff]  ;;  %v1635_v19 = vld [vmem:[%s16005_s3 + $0xe68] sm:$0xff]  ;;  %v3456_v41 = vld [vmem:[%s16005_s3 + $0x4750] sm:$0xff] }
 0x22d   :  { %4228 = vmatprep.subr.mxu1 %v3058_v20  ;;  %4299 = vmatprep.subr.mxu0 %v1236_v21  ;;  %v1634_v20 = vld [vmem:[%s16005_s3 + $0xe60] sm:$0xff] }
 0x22e   :  { %4229 = vmatpush1.msra.mxu1 %v3057_v23  ;;  %4300 = vmatpush1.msra.mxu0 %v1235_v24  ;;  %v3438_v21 = vld [vmem:[%s16005_s3 + $0x46c0] sm:$0xff]  ;;  %v1616_v23 = vld [vmem:[%s16005_s3 + $0xdd0] sm:$0xff]  ;;  %v3437_v24 = vld [vmem:[%s16005_s3 + $0x46b8] sm:$0xff] }
 0x22f   :  { %4230 = vmatprep.subr.mxu1 %v3039_v26  ;;  %4301 = vmatprep.subr.mxu0 %v1217_v27  ;;  %v1615_v26 = vld [vmem:[%s16005_s3 + $0xdc8] sm:$0xff] }
 0x230   :  { %4231 = vmatpush1.msra.mxu1 %v3038_v59  ;;  %4302 = vmatpush1.msra.mxu0 %v1216_v39  ;;  %v3419_v27 = vld [vmem:[%s16005_s3 + $0x4628] sm:$0xff]  ;;  %v1597_v59 = vld [vmem:[%s16005_s3 + $0xd38] sm:$0xff]  ;;  %v3418_v39 = vld [vmem:[%s16005_s3 + $0x4620] sm:$0xff] }
 0x231   :  { %4232 = vmatprep.subr.mxu1 %v3020_v28  ;;  %4303 = vmatprep.subr.mxu0 %v1198_v34  ;;  %v1596_v28 = vld [vmem:[%s16005_s3 + $0xd30] sm:$0xff] }
 0x232   :  { %4233 = vmatpush1.msra.mxu1 %v3019_v35  ;;  %4304 = vmatpush1.msra.mxu0 %v1197_v37  ;;  %v3400_v34 = vld [vmem:[%s16005_s3 + $0x4590] sm:$0xff]  ;;  %v1578_v35 = vld [vmem:[%s16005_s3 + $0xca0] sm:$0xff]  ;;  %v3399_v37 = vld [vmem:[%s16005_s3 + $0x4588] sm:$0xff] }
 0x233   :  { %4234 = vmatprep.subr.mxu1 %v3001_v38  ;;  %4305 = vmatprep.subr.mxu0 %v1179_v40  ;;  %v1577_v38 = vld [vmem:[%s16005_s3 + $0xc98] sm:$0xff] }
 0x234   :  { %4235 = vmatpush1.msra.mxu1 %v3000_v42  ;;  %4306 = vmatpush1.msra.mxu0 %v1178_v43  ;;  %v3381_v40 = vld [vmem:[%s16005_s3 + $0x44f8] sm:$0xff]  ;;  %v1559_v42 = vld [vmem:[%s16005_s3 + $0xc08] sm:$0xff]  ;;  %v3380_v43 = vld [vmem:[%s16005_s3 + $0x44f0] sm:$0xff] }
 0x235   :  { %4236 = vmatprep.subr.mxu1 %v3590_v45  ;;  %4307 = vmatprep.subr.mxu0 %v1768_v47  ;;  %v1558_v45 = vld [vmem:[%s16005_s3 + $0xc00] sm:$0xff] }
 0x236   :  { %4237 = vmatpush2.msra.mxu1 %v3589_v48  ;;  %4308 = vmatpush2.msra.mxu0 %v1767_v49  ;;  %v3362_v47 = vld [vmem:[%s16005_s3 + $0x4460] sm:$0xff]  ;;  %v1540_v48 = vld [vmem:[%s16005_s3 + $0xb70] sm:$0xff]  ;;  %v3361_v49 = vld [vmem:[%s16005_s3 + $0x4458] sm:$0xff] }
 0x237   :  { %4238 = vmatprep.subr.mxu1 %v3571_v50  ;;  %4309 = vmatprep.subr.mxu0 %v1749_v51  ;;  %v1539_v50 = vld [vmem:[%s16005_s3 + $0xb68] sm:$0xff] }
 0x238   :  { %4239 = vmatpush2.msra.mxu1 %v3570_v53  ;;  %4310 = vmatpush2.msra.mxu0 %v1748_v54  ;;  %v3343_v51 = vld [vmem:[%s16005_s3 + $0x43c8] sm:$0xff]  ;;  %v1521_v53 = vld [vmem:[%s16005_s3 + $0xad8] sm:$0xff]  ;;  %v3342_v54 = vld [vmem:[%s16005_s3 + $0x43c0] sm:$0xff] }
 0x239   :  { %4240 = vmatprep.subr.mxu1 %v3552_v55  ;;  %4311 = vmatprep.subr.mxu0 %v1730_v56  ;;  %v1520_v55 = vld [vmem:[%s16005_s3 + $0xad0] sm:$0xff] }
 0x23a   :  { %4241 = vmatpush2.msra.mxu1 %v3551_v58  ;;  %4312 = vmatpush2.msra.mxu0 %v1729_v60  ;;  %v3324_v56 = vld [vmem:[%s16005_s3 + $0x4330] sm:$0xff]  ;;  %v1502_v58 = vld [vmem:[%s16005_s3 + $0xa40] sm:$0xff]  ;;  %v3323_v60 = vld [vmem:[%s16005_s3 + $0x4328] sm:$0xff] }
 0x23b   :  { %4242 = vmatprep.subr.mxu1 %v3533_v61  ;;  %4313 = vmatprep.subr.mxu0 %v1711_v63  ;;  %v1501_v61 = vld [vmem:[%s16005_s3 + $0xa38] sm:$0xff] }
 0x23c   :  { %4243 = vmatpush2.msra.mxu1 %v3532_v1  ;;  %4314 = vmatpush2.msra.mxu0 %v1710_v2  ;;  %v3305_v63 = vld [vmem:[%s16005_s3 + $0x4298] sm:$0xff]  ;;  %v1483_v1 = vld [vmem:[%s16005_s3 + $0x9a8] sm:$0xff]  ;;  %v3304_v2 = vld [vmem:[%s16005_s3 + $0x4290] sm:$0xff] }
 0x23d   :  { %4244 = vmatprep.subr.mxu1 %v3514_v8  ;;  %4315 = vmatprep.subr.mxu0 %v1692_v5  ;;  %v1482_v8 = vld [vmem:[%s16005_s3 + $0x9a0] sm:$0xff]  ;;  %v2072_v5 = vld [vmem:[%s16005_s3 + $0x1c10] sm:$0xff] }
 0x23e   :  { %4245 = vmatpush2.msra.mxu1 %v3513_v11  ;;  %4316 = vmatpush2.msra.mxu0 %v1691_v62  ;;  %v2680_v11 = vld [vmem:[%s16005_s3 + $0x2f10] sm:$0xff]  ;;  %v2071_v62 = vld [vmem:[%s16005_s3 + $0x1c08] sm:$0xff] }
 0x23f   :  { %4246 = vmatprep.subr.mxu1 %v3495_v7  ;;  %4317 = vmatprep.subr.mxu0 %v1673_v9  ;;  %v2679_v7 = vld [vmem:[%s16005_s3 + $0x2f08] sm:$0xff]  ;;  %v2053_v9 = vld [vmem:[%s16005_s3 + $0x1b78] sm:$0xff] }
 0x240   :  { %4247 = vmatpush2.msra.mxu1 %v3494_v10  ;;  %4318 = vmatpush2.msra.mxu0 %v1672_v12  ;;  %v2661_v10 = vld [vmem:[%s16005_s3 + $0x2e78] sm:$0xff]  ;;  %v2052_v12 = vld [vmem:[%s16005_s3 + $0x1b70] sm:$0xff] }
 0x241   :  { %4248 = vmatprep.subr.mxu1 %v3476_v33  ;;  %4319 = vmatprep.subr.mxu0 %v1654_v14  ;;  %v2660_v33 = vld [vmem:[%s16005_s3 + $0x2e70] sm:$0xff]  ;;  %v2034_v14 = vld [vmem:[%s16005_s3 + $0x1ae0] sm:$0xff] }
 0x242   :  { %4249 = vmatpush2.msra.mxu1 %v3475_v16  ;;  %4320 = vmatpush2.msra.mxu0 %v1653_v17  ;;  %v2642_v16 = vld [vmem:[%s16005_s3 + $0x2de0] sm:$0xff]  ;;  %v2033_v17 = vld [vmem:[%s16005_s3 + $0x1ad8] sm:$0xff] }
 0x243   :  { %4250 = vmatprep.subr.mxu1 %v3457_v18  ;;  %4321 = vmatprep.subr.mxu0 %v1635_v19  ;;  %v2641_v18 = vld [vmem:[%s16005_s3 + $0x2dd8] sm:$0xff]  ;;  %v2015_v19 = vld [vmem:[%s16005_s3 + $0x1a48] sm:$0xff] }
 0x244   :  { %4251 = vmatpush2.msra.mxu1 %v3456_v41  ;;  %4322 = vmatpush2.msra.mxu0 %v1634_v20  ;;  %v2623_v41 = vld [vmem:[%s16005_s3 + $0x2d48] sm:$0xff]  ;;  %v2014_v20 = vld [vmem:[%s16005_s3 + $0x1a40] sm:$0xff] }
 0x245   :  { %4252 = vmatprep.subr.mxu1 %v3438_v21  ;;  %4323 = vmatprep.subr.mxu0 %v1616_v23  ;;  %v2622_v21 = vld [vmem:[%s16005_s3 + $0x2d40] sm:$0xff]  ;;  %v1996_v23 = vld [vmem:[%s16005_s3 + $0x19b0] sm:$0xff] }
 0x246   :  { %4253 = vmatpush2.msra.mxu1 %v3437_v24  ;;  %4324 = vmatpush2.msra.mxu0 %v1615_v26  ;;  %v2604_v24 = vld [vmem:[%s16005_s3 + $0x2cb0] sm:$0xff]  ;;  %v1995_v26 = vld [vmem:[%s16005_s3 + $0x19a8] sm:$0xff] }
 0x247   :  { %4254 = vmatprep.subr.mxu1 %v3419_v27  ;;  %4325 = vmatprep.subr.mxu0 %v1597_v59  ;;  %v2603_v27 = vld [vmem:[%s16005_s3 + $0x2ca8] sm:$0xff]  ;;  %v1977_v59 = vld [vmem:[%s16005_s3 + $0x1918] sm:$0xff] }
 0x248   :  { %4255 = vmatpush2.msra.mxu1 %v3418_v39  ;;  %4326 = vmatpush2.msra.mxu0 %v1596_v28  ;;  %v2585_v39 = vld [vmem:[%s16005_s3 + $0x2c18] sm:$0xff]  ;;  %v1976_v28 = vld [vmem:[%s16005_s3 + $0x1910] sm:$0xff] }
 0x249   :  { %4256 = vmatprep.subr.mxu1 %v3400_v34  ;;  %4327 = vmatprep.subr.mxu0 %v1578_v35  ;;  %v2584_v34 = vld [vmem:[%s16005_s3 + $0x2c10] sm:$0xff]  ;;  %v1958_v35 = vld [vmem:[%s16005_s3 + $0x1880] sm:$0xff] }
 0x24a   :  { %4257 = vmatpush2.msra.mxu1 %v3399_v37  ;;  %4328 = vmatpush2.msra.mxu0 %v1577_v38  ;;  %v2566_v37 = vld [vmem:[%s16005_s3 + $0x2b80] sm:$0xff]  ;;  %v1957_v38 = vld [vmem:[%s16005_s3 + $0x1878] sm:$0xff] }
 0x24b   :  { %4258 = vmatprep.subr.mxu1 %v3381_v40  ;;  %4329 = vmatprep.subr.mxu0 %v1559_v42  ;;  %v2565_v40 = vld [vmem:[%s16005_s3 + $0x2b78] sm:$0xff]  ;;  %v1939_v42 = vld [vmem:[%s16005_s3 + $0x17e8] sm:$0xff] }
 0x24c   :  { %4259 = vmatpush2.msra.mxu1 %v3380_v43  ;;  %4330 = vmatpush2.msra.mxu0 %v1558_v45  ;;  %v2547_v43 = vld [vmem:[%s16005_s3 + $0x2ae8] sm:$0xff]  ;;  %v1938_v45 = vld [vmem:[%s16005_s3 + $0x17e0] sm:$0xff] }
 0x24d   :  { %4260 = vmatprep.subr.mxu1 %v3362_v47  ;;  %4331 = vmatprep.subr.mxu0 %v1540_v48  ;;  %v2546_v47 = vld [vmem:[%s16005_s3 + $0x2ae0] sm:$0xff]  ;;  %v1920_v48 = vld [vmem:[%s16005_s3 + $0x1750] sm:$0xff] }
 0x24e   :  { %4261 = vmatpush2.msra.mxu1 %v3361_v49  ;;  %4332 = vmatpush2.msra.mxu0 %v1539_v50  ;;  %v2528_v49 = vld [vmem:[%s16005_s3 + $0x2a50] sm:$0xff]  ;;  %v1919_v50 = vld [vmem:[%s16005_s3 + $0x1748] sm:$0xff] }
 0x24f   :  { %4262 = vmatprep.subr.mxu1 %v3343_v51  ;;  %4333 = vmatprep.subr.mxu0 %v1521_v53  ;;  %v2527_v51 = vld [vmem:[%s16005_s3 + $0x2a48] sm:$0xff]  ;;  %v1901_v53 = vld [vmem:[%s16005_s3 + $0x16b8] sm:$0xff] }
 0x250   :  { %4263 = vmatpush2.msra.mxu1 %v3342_v54  ;;  %4334 = vmatpush2.msra.mxu0 %v1520_v55  ;;  %v2509_v54 = vld [vmem:[%s16005_s3 + $0x29b8] sm:$0xff]  ;;  %v1900_v55 = vld [vmem:[%s16005_s3 + $0x16b0] sm:$0xff] }
 0x251   :  { %4264 = vmatprep.subr.mxu1 %v3324_v56  ;;  %4335 = vmatprep.subr.mxu0 %v1502_v58  ;;  %v2508_v56 = vld [vmem:[%s16005_s3 + $0x29b0] sm:$0xff]  ;;  %v1882_v58 = vld [vmem:[%s16005_s3 + $0x1620] sm:$0xff] }
 0x252   :  { %4265 = vmatpush2.msra.mxu1 %v3323_v60  ;;  %4336 = vmatpush2.msra.mxu0 %v1501_v61  ;;  %v2490_v60 = vld [vmem:[%s16005_s3 + $0x2920] sm:$0xff]  ;;  %v1881_v61 = vld [vmem:[%s16005_s3 + $0x1618] sm:$0xff] }
 0x253   :  { %4266 = vmatprep.subr.mxu1 %v3305_v63  ;;  %4337 = vmatprep.subr.mxu0 %v1483_v1  ;;  %v2489_v63 = vld [vmem:[%s16005_s3 + $0x2918] sm:$0xff]  ;;  %v1863_v1 = vld [vmem:[%s16005_s3 + $0x1588] sm:$0xff] }
 0x254   :  { %4267 = vmatpush2.msra.mxu1 %v3304_v2  ;;  %4338 = vmatpush2.msra.mxu0 %v1482_v8  ;;  %v2471_v2 = vld [vmem:[%s16005_s3 + $0x2888] sm:$0xff]  ;;  %v1862_v8 = vld [vmem:[%s16005_s3 + $0x1580] sm:$0xff] }
 0x255   :  { %4269 = vmatmul.mubr.f32.vlgmr.msra.gmra.mxu1 %v9518_v46  ;;  %4340 = vmatmul.mubr.f32.vlgmr.msra.gmra.mxu0 %v8883_v22 }
 0x256   :  { %4346 = vmatprep.subr.mxu1 %v2072_v5  ;;  %4417 = vmatprep.subr.mxu0 %v2680_v11  ;;  %v2470_v5 = vld [vmem:[%s16005_s3 + $0x2880] sm:$0xff]  ;;  %v1844_v11 = vld [vmem:[%s16005_s3 + $0x14f0] sm:$0xff] }
 0x257   :  { %4347 = vmatpush1.msra.mxu1 %v2071_v62  ;;  %4410 = vmatprep.mubr.f32.mxu1 %v8898_v29  ;;  %v2452_v62 = vld [vmem:[%s16005_s3 + $0x27f0] sm:$0xff] }
 0x258   :  { %4418 = vmatpush1.msra.mxu0 %v2679_v7  ;;  %4481 = vmatprep.mubr.f32.mxu0 %v9297_v3  ;;  %v1843_v7 = vld [vmem:[%s16005_s3 + $0x14e8] sm:$0xff] }
 0x259   :  { %4348 = vmatprep.subr.mxu1 %v2053_v9  ;;  %4419 = vmatprep.subr.mxu0 %v2661_v10  ;;  %v2451_v9 = vld [vmem:[%s16005_s3 + $0x27e8] sm:$0xff]  ;;  %v1825_v10 = vld [vmem:[%s16005_s3 + $0x1458] sm:$0xff] }
 0x25a   :  { %4349 = vmatpush1.msra.mxu1 %v2052_v12  ;;  %4420 = vmatpush1.msra.mxu0 %v2660_v33  ;;  %v2433_v12 = vld [vmem:[%s16005_s3 + $0x2758] sm:$0xff]  ;;  %v1824_v33 = vld [vmem:[%s16005_s3 + $0x1450] sm:$0xff] }
 0x25b   :  { %4350 = vmatprep.subr.mxu1 %v2034_v14  ;;  %4421 = vmatprep.subr.mxu0 %v2642_v16  ;;  %v2432_v14 = vld [vmem:[%s16005_s3 + $0x2750] sm:$0xff]  ;;  %v1806_v16 = vld [vmem:[%s16005_s3 + $0x13c0] sm:$0xff] }
 0x25c   :  { %4351 = vmatpush1.msra.mxu1 %v2033_v17  ;;  %4422 = vmatpush1.msra.mxu0 %v2641_v18  ;;  %v2414_v17 = vld [vmem:[%s16005_s3 + $0x26c0] sm:$0xff]  ;;  %v1805_v18 = vld [vmem:[%s16005_s3 + $0x13b8] sm:$0xff] }
 0x25d   :  { %4352 = vmatprep.subr.mxu1 %v2015_v19  ;;  %4423 = vmatprep.subr.mxu0 %v2623_v41  ;;  %v2413_v19 = vld [vmem:[%s16005_s3 + $0x26b8] sm:$0xff]  ;;  %v1787_v41 = vld [vmem:[%s16005_s3 + $0x1328] sm:$0xff] }
 0x25e   :  { %4353 = vmatpush1.msra.mxu1 %v2014_v20  ;;  %4424 = vmatpush1.msra.mxu0 %v2622_v21  ;;  %v2395_v20 = vld [vmem:[%s16005_s3 + $0x2628] sm:$0xff]  ;;  %v1786_v21 = vld [vmem:[%s16005_s3 + $0x1320] sm:$0xff] }
 0x25f   :  { %4354 = vmatprep.subr.mxu1 %v1996_v23  ;;  %4425 = vmatprep.subr.mxu0 %v2604_v24  ;;  %v2394_v23 = vld [vmem:[%s16005_s3 + $0x2620] sm:$0xff]  ;;  %v2376_v24 = vld [vmem:[%s16005_s3 + $0x2590] sm:$0xff] }
 0x260   :  { %4355 = vmatpush1.msra.mxu1 %v1995_v26  ;;  %4426 = vmatpush1.msra.mxu0 %v2603_v27  ;;  %v2984_v26 = vld [vmem:[%s16005_s3 + $0x3890] sm:$0xff]  ;;  %v2375_v27 = vld [vmem:[%s16005_s3 + $0x2588] sm:$0xff] }
 0x261   :  { %4356 = vmatprep.subr.mxu1 %v1977_v59  ;;  %4427 = vmatprep.subr.mxu0 %v2585_v39  ;;  %v2983_v59 = vld [vmem:[%s16005_s3 + $0x3888] sm:$0xff]  ;;  %v2357_v39 = vld [vmem:[%s16005_s3 + $0x24f8] sm:$0xff] }
 0x262   :  { %4357 = vmatpush1.msra.mxu1 %v1976_v28  ;;  %4428 = vmatpush1.msra.mxu0 %v2584_v34  ;;  %v2965_v28 = vld [vmem:[%s16005_s3 + $0x37f8] sm:$0xff]  ;;  %v2356_v34 = vld [vmem:[%s16005_s3 + $0x24f0] sm:$0xff] }
 0x263   :  { %4358 = vmatprep.subr.mxu1 %v1958_v35  ;;  %4429 = vmatprep.subr.mxu0 %v2566_v37  ;;  %v2964_v35 = vld [vmem:[%s16005_s3 + $0x37f0] sm:$0xff]  ;;  %v2338_v37 = vld [vmem:[%s16005_s3 + $0x2460] sm:$0xff] }
 0x264   :  { %4359 = vmatpush1.msra.mxu1 %v1957_v38  ;;  %4430 = vmatpush1.msra.mxu0 %v2565_v40  ;;  %v2946_v38 = vld [vmem:[%s16005_s3 + $0x3760] sm:$0xff]  ;;  %v2337_v40 = vld [vmem:[%s16005_s3 + $0x2458] sm:$0xff] }
 0x265   :  { %4360 = vmatprep.subr.mxu1 %v1939_v42  ;;  %4431 = vmatprep.subr.mxu0 %v2547_v43  ;;  %v2945_v42 = vld [vmem:[%s16005_s3 + $0x3758] sm:$0xff]  ;;  %v2319_v43 = vld [vmem:[%s16005_s3 + $0x23c8] sm:$0xff] }
 0x266   :  { %4361 = vmatpush1.msra.mxu1 %v1938_v45  ;;  %4432 = vmatpush1.msra.mxu0 %v2546_v47  ;;  %v2927_v45 = vld [vmem:[%s16005_s3 + $0x36c8] sm:$0xff]  ;;  %v2318_v47 = vld [vmem:[%s16005_s3 + $0x23c0] sm:$0xff] }
 0x267   :  { %4362 = vmatprep.subr.mxu1 %v1920_v48  ;;  %4433 = vmatprep.subr.mxu0 %v2528_v49  ;;  %v2926_v48 = vld [vmem:[%s16005_s3 + $0x36c0] sm:$0xff]  ;;  %v2300_v49 = vld [vmem:[%s16005_s3 + $0x2330] sm:$0xff] }
 0x268   :  { %4363 = vmatpush1.msra.mxu1 %v1919_v50  ;;  %4434 = vmatpush1.msra.mxu0 %v2527_v51  ;;  %v2908_v50 = vld [vmem:[%s16005_s3 + $0x3630] sm:$0xff]  ;;  %v2299_v51 = vld [vmem:[%s16005_s3 + $0x2328] sm:$0xff] }
 0x269   :  { %4364 = vmatprep.subr.mxu1 %v1901_v53  ;;  %4435 = vmatprep.subr.mxu0 %v2509_v54  ;;  %v2907_v53 = vld [vmem:[%s16005_s3 + $0x3628] sm:$0xff]  ;;  %v2281_v54 = vld [vmem:[%s16005_s3 + $0x2298] sm:$0xff] }
 0x26a   :  { %4365 = vmatpush1.msra.mxu1 %v1900_v55  ;;  %4436 = vmatpush1.msra.mxu0 %v2508_v56  ;;  %v2889_v55 = vld [vmem:[%s16005_s3 + $0x3598] sm:$0xff]  ;;  %v2280_v56 = vld [vmem:[%s16005_s3 + $0x2290] sm:$0xff] }
 0x26b   :  { %4366 = vmatprep.subr.mxu1 %v1882_v58  ;;  %4437 = vmatprep.subr.mxu0 %v2490_v60  ;;  %v2888_v58 = vld [vmem:[%s16005_s3 + $0x3590] sm:$0xff]  ;;  %v2262_v60 = vld [vmem:[%s16005_s3 + $0x2200] sm:$0xff] }
 0x26c   :  { %4367 = vmatpush1.msra.mxu1 %v1881_v61  ;;  %4438 = vmatpush1.msra.mxu0 %v2489_v63  ;;  %v2870_v61 = vld [vmem:[%s16005_s3 + $0x3500] sm:$0xff]  ;;  %v2261_v63 = vld [vmem:[%s16005_s3 + $0x21f8] sm:$0xff] }
 0x26d   :  { %4368 = vmatprep.subr.mxu1 %v1863_v1  ;;  %4439 = vmatprep.subr.mxu0 %v2471_v2  ;;  %v2869_v1 = vld [vmem:[%s16005_s3 + $0x34f8] sm:$0xff]  ;;  %v2243_v2 = vld [vmem:[%s16005_s3 + $0x2168] sm:$0xff] }
 0x26e   :  { %4369 = vmatpush1.msra.mxu1 %v1862_v8  ;;  %4440 = vmatpush1.msra.mxu0 %v2470_v5  ;;  %v2851_v8 = vld [vmem:[%s16005_s3 + $0x3468] sm:$0xff]  ;;  %v2242_v5 = vld [vmem:[%s16005_s3 + $0x2160] sm:$0xff] }
 0x26f   :  { %4370 = vmatprep.subr.mxu1 %v1844_v11  ;;  %4441 = vmatprep.subr.mxu0 %v2452_v62  ;;  %v2850_v11 = vld [vmem:[%s16005_s3 + $0x3460] sm:$0xff]  ;;  %v2224_v62 = vld [vmem:[%s16005_s3 + $0x20d0] sm:$0xff] }
 0x270   :  { %4371 = vmatpush1.msra.mxu1 %v1843_v7  ;;  %4442 = vmatpush1.msra.mxu0 %v2451_v9  ;;  %v2832_v7 = vld [vmem:[%s16005_s3 + $0x33d0] sm:$0xff]  ;;  %v2223_v9 = vld [vmem:[%s16005_s3 + $0x20c8] sm:$0xff] }
 0x271   :  { %4372 = vmatprep.subr.mxu1 %v1825_v10  ;;  %4443 = vmatprep.subr.mxu0 %v2433_v12  ;;  %v2831_v10 = vld [vmem:[%s16005_s3 + $0x33c8] sm:$0xff]  ;;  %v2205_v12 = vld [vmem:[%s16005_s3 + $0x2038] sm:$0xff] }
 0x272   :  { %4373 = vmatpush1.msra.mxu1 %v1824_v33  ;;  %4444 = vmatpush1.msra.mxu0 %v2432_v14  ;;  %v2813_v33 = vld [vmem:[%s16005_s3 + $0x3338] sm:$0xff]  ;;  %v2204_v14 = vld [vmem:[%s16005_s3 + $0x2030] sm:$0xff] }
 0x273   :  { %4374 = vmatprep.subr.mxu1 %v1806_v16  ;;  %4445 = vmatprep.subr.mxu0 %v2414_v17  ;;  %v2812_v16 = vld [vmem:[%s16005_s3 + $0x3330] sm:$0xff]  ;;  %v2186_v17 = vld [vmem:[%s16005_s3 + $0x1fa0] sm:$0xff] }
 0x274   :  { %4375 = vmatpush1.msra.mxu1 %v1805_v18  ;;  %4446 = vmatpush1.msra.mxu0 %v2413_v19  ;;  %v2794_v18 = vld [vmem:[%s16005_s3 + $0x32a0] sm:$0xff]  ;;  %v2185_v19 = vld [vmem:[%s16005_s3 + $0x1f98] sm:$0xff] }
 0x275   :  { %4376 = vmatprep.subr.mxu1 %v1787_v41  ;;  %4447 = vmatprep.subr.mxu0 %v2395_v20  ;;  %v2793_v41 = vld [vmem:[%s16005_s3 + $0x3298] sm:$0xff]  ;;  %v2167_v20 = vld [vmem:[%s16005_s3 + $0x1f08] sm:$0xff] }
 0x276   :  { %4377 = vmatpush1.msra.mxu1 %v1786_v21  ;;  %4448 = vmatpush1.msra.mxu0 %v2394_v23  ;;  %v2775_v21 = vld [vmem:[%s16005_s3 + $0x3208] sm:$0xff]  ;;  %v2166_v23 = vld [vmem:[%s16005_s3 + $0x1f00] sm:$0xff] }
 0x277   :  { %4378 = vmatprep.subr.mxu1 %v2376_v24  ;;  %4449 = vmatprep.subr.mxu0 %v2984_v26  ;;  %v2774_v24 = vld [vmem:[%s16005_s3 + $0x3200] sm:$0xff]  ;;  %v2148_v26 = vld [vmem:[%s16005_s3 + $0x1e70] sm:$0xff] }
 0x278   :  { %4379 = vmatpush2.msra.mxu1 %v2375_v27  ;;  %4450 = vmatpush2.msra.mxu0 %v2983_v59  ;;  %v2756_v27 = vld [vmem:[%s16005_s3 + $0x3170] sm:$0xff]  ;;  %v2147_v59 = vld [vmem:[%s16005_s3 + $0x1e68] sm:$0xff] }
 0x279   :  { %4380 = vmatprep.subr.mxu1 %v2357_v39  ;;  %4451 = vmatprep.subr.mxu0 %v2965_v28  ;;  %v2755_v39 = vld [vmem:[%s16005_s3 + $0x3168] sm:$0xff]  ;;  %v2129_v28 = vld [vmem:[%s16005_s3 + $0x1dd8] sm:$0xff] }
 0x27a   :  { %4381 = vmatpush2.msra.mxu1 %v2356_v34  ;;  %4452 = vmatpush2.msra.mxu0 %v2964_v35  ;;  %v2737_v34 = vld [vmem:[%s16005_s3 + $0x30d8] sm:$0xff]  ;;  %v2128_v35 = vld [vmem:[%s16005_s3 + $0x1dd0] sm:$0xff] }
 0x27b   :  { %4382 = vmatprep.subr.mxu1 %v2338_v37  ;;  %4453 = vmatprep.subr.mxu0 %v2946_v38  ;;  %v2736_v37 = vld [vmem:[%s16005_s3 + $0x30d0] sm:$0xff]  ;;  %v2110_v38 = vld [vmem:[%s16005_s3 + $0x1d40] sm:$0xff] }
 0x27c   :  { %4383 = vmatpush2.msra.mxu1 %v2337_v40  ;;  %4454 = vmatpush2.msra.mxu0 %v2945_v42  ;;  %v2718_v40 = vld [vmem:[%s16005_s3 + $0x3040] sm:$0xff]  ;;  %v2109_v42 = vld [vmem:[%s16005_s3 + $0x1d38] sm:$0xff] }
 0x27d   :  { %4384 = vmatprep.subr.mxu1 %v2319_v43  ;;  %4455 = vmatprep.subr.mxu0 %v2927_v45  ;;  %v2717_v43 = vld [vmem:[%s16005_s3 + $0x3038] sm:$0xff]  ;;  %v2091_v45 = vld [vmem:[%s16005_s3 + $0x1ca8] sm:$0xff] }
 0x27e   :  { %4385 = vmatpush2.msra.mxu1 %v2318_v47  ;;  %4456 = vmatpush2.msra.mxu0 %v2926_v48  ;;  %v2699_v47 = vld [vmem:[%s16005_s3 + $0x2fa8] sm:$0xff]  ;;  %v2090_v48 = vld [vmem:[%s16005_s3 + $0x1ca0] sm:$0xff] }
 0x27f   :  { %4386 = vmatprep.subr.mxu1 %v2300_v49  ;;  %4457 = vmatprep.subr.mxu0 %v2908_v50  ;;  %v2698_v49 = vld [vmem:[%s16005_s3 + $0x2fa0] sm:$0xff]  ;;  %v3288_v50 = vld [vmem:[%s16005_s3 + $0x4210] sm:$0xff] }
 0x280   :  { %4387 = vmatpush2.msra.mxu1 %v2299_v51  ;;  %4458 = vmatpush2.msra.mxu0 %v2907_v53  ;;  %v1466_v51 = vld [vmem:[%s16005_s3 + $0x920] sm:$0xff]  ;;  %v3287_v53 = vld [vmem:[%s16005_s3 + $0x4208] sm:$0xff] }
 0x281   :  { %4388 = vmatprep.subr.mxu1 %v2281_v54  ;;  %4459 = vmatprep.subr.mxu0 %v2889_v55  ;;  %v1465_v54 = vld [vmem:[%s16005_s3 + $0x918] sm:$0xff] }
 0x282   :  { %4389 = vmatpush2.msra.mxu1 %v2280_v56  ;;  %4460 = vmatpush2.msra.mxu0 %v2888_v58  ;;  %v3269_v55 = vld [vmem:[%s16005_s3 + $0x4178] sm:$0xff]  ;;  %v1447_v56 = vld [vmem:[%s16005_s3 + $0x888] sm:$0xff]  ;;  %v3268_v58 = vld [vmem:[%s16005_s3 + $0x4170] sm:$0xff] }
 0x283   :  { %4390 = vmatprep.subr.mxu1 %v2262_v60  ;;  %4461 = vmatprep.subr.mxu0 %v2870_v61  ;;  %v1446_v60 = vld [vmem:[%s16005_s3 + $0x880] sm:$0xff] }
 0x284   :  { %4391 = vmatpush2.msra.mxu1 %v2261_v63  ;;  %4462 = vmatpush2.msra.mxu0 %v2869_v1  ;;  %v3250_v61 = vld [vmem:[%s16005_s3 + $0x40e0] sm:$0xff]  ;;  %v1428_v63 = vld [vmem:[%s16005_s3 + $0x7f0] sm:$0xff]  ;;  %v3249_v1 = vld [vmem:[%s16005_s3 + $0x40d8] sm:$0xff] }
 0x285   :  { %4392 = vmatprep.subr.mxu1 %v2243_v2  ;;  %4463 = vmatprep.subr.mxu0 %v2851_v8  ;;  %v1427_v2 = vld [vmem:[%s16005_s3 + $0x7e8] sm:$0xff] }
 0x286   :  { %4393 = vmatpush2.msra.mxu1 %v2242_v5  ;;  %4464 = vmatpush2.msra.mxu0 %v2850_v11  ;;  %v3231_v8 = vld [vmem:[%s16005_s3 + $0x4048] sm:$0xff]  ;;  %v1409_v5 = vld [vmem:[%s16005_s3 + $0x758] sm:$0xff]  ;;  %v3230_v11 = vld [vmem:[%s16005_s3 + $0x4040] sm:$0xff] }
 0x287   :  { %4394 = vmatprep.subr.mxu1 %v2224_v62  ;;  %4465 = vmatprep.subr.mxu0 %v2832_v7  ;;  %v1408_v62 = vld [vmem:[%s16005_s3 + $0x750] sm:$0xff] }
 0x288   :  { %4395 = vmatpush2.msra.mxu1 %v2223_v9  ;;  %4466 = vmatpush2.msra.mxu0 %v2831_v10  ;;  %v3212_v7 = vld [vmem:[%s16005_s3 + $0x3fb0] sm:$0xff]  ;;  %v1390_v9 = vld [vmem:[%s16005_s3 + $0x6c0] sm:$0xff]  ;;  %v3211_v10 = vld [vmem:[%s16005_s3 + $0x3fa8] sm:$0xff] }
 0x289   :  { %4396 = vmatprep.subr.mxu1 %v2205_v12  ;;  %4467 = vmatprep.subr.mxu0 %v2813_v33  ;;  %v1389_v12 = vld [vmem:[%s16005_s3 + $0x6b8] sm:$0xff] }
 0x28a   :  { %4397 = vmatpush2.msra.mxu1 %v2204_v14  ;;  %4468 = vmatpush2.msra.mxu0 %v2812_v16  ;;  %v3193_v33 = vld [vmem:[%s16005_s3 + $0x3f18] sm:$0xff]  ;;  %v1371_v14 = vld [vmem:[%s16005_s3 + $0x628] sm:$0xff]  ;;  %v3192_v16 = vld [vmem:[%s16005_s3 + $0x3f10] sm:$0xff] }
 0x28b   :  { %4398 = vmatprep.subr.mxu1 %v2186_v17  ;;  %4469 = vmatprep.subr.mxu0 %v2794_v18  ;;  %v1370_v17 = vld [vmem:[%s16005_s3 + $0x620] sm:$0xff] }
 0x28c   :  { %4399 = vmatpush2.msra.mxu1 %v2185_v19  ;;  %4470 = vmatpush2.msra.mxu0 %v2793_v41  ;;  %v3174_v18 = vld [vmem:[%s16005_s3 + $0x3e80] sm:$0xff]  ;;  %v1352_v19 = vld [vmem:[%s16005_s3 + $0x590] sm:$0xff]  ;;  %v3173_v41 = vld [vmem:[%s16005_s3 + $0x3e78] sm:$0xff] }
 0x28d   :  { %4400 = vmatprep.subr.mxu1 %v2167_v20  ;;  %4471 = vmatprep.subr.mxu0 %v2775_v21  ;;  %v1351_v20 = vld [vmem:[%s16005_s3 + $0x588] sm:$0xff] }
 0x28e   :  { %4401 = vmatpush2.msra.mxu1 %v2166_v23  ;;  %4472 = vmatpush2.msra.mxu0 %v2774_v24  ;;  %v3155_v21 = vld [vmem:[%s16005_s3 + $0x3de8] sm:$0xff]  ;;  %v1333_v23 = vld [vmem:[%s16005_s3 + $0x4f8] sm:$0xff]  ;;  %v3154_v24 = vld [vmem:[%s16005_s3 + $0x3de0] sm:$0xff] }
 0x28f   :  { %4402 = vmatprep.subr.mxu1 %v2148_v26  ;;  %4473 = vmatprep.subr.mxu0 %v2756_v27  ;;  %v1332_v26 = vld [vmem:[%s16005_s3 + $0x4f0] sm:$0xff] }
 0x290   :  { %4403 = vmatpush2.msra.mxu1 %v2147_v59  ;;  %4474 = vmatpush2.msra.mxu0 %v2755_v39  ;;  %v3136_v27 = vld [vmem:[%s16005_s3 + $0x3d50] sm:$0xff]  ;;  %v1314_v59 = vld [vmem:[%s16005_s3 + $0x460] sm:$0xff]  ;;  %v3135_v39 = vld [vmem:[%s16005_s3 + $0x3d48] sm:$0xff] }
 0x291   :  { %4404 = vmatprep.subr.mxu1 %v2129_v28  ;;  %4475 = vmatprep.subr.mxu0 %v2737_v34  ;;  %v1313_v28 = vld [vmem:[%s16005_s3 + $0x458] sm:$0xff] }
 0x292   :  { %4405 = vmatpush2.msra.mxu1 %v2128_v35  ;;  %4476 = vmatpush2.msra.mxu0 %v2736_v37  ;;  %v3117_v34 = vld [vmem:[%s16005_s3 + $0x3cb8] sm:$0xff]  ;;  %v1295_v35 = vld [vmem:[%s16005_s3 + $0x3c8] sm:$0xff]  ;;  %v3116_v37 = vld [vmem:[%s16005_s3 + $0x3cb0] sm:$0xff] }
 0x293   :  { %4406 = vmatprep.subr.mxu1 %v2110_v38  ;;  %4477 = vmatprep.subr.mxu0 %v2718_v40  ;;  %v1294_v38 = vld [vmem:[%s16005_s3 + $0x3c0] sm:$0xff] }
 0x294   :  { %4407 = vmatpush2.msra.mxu1 %v2109_v42  ;;  %4478 = vmatpush2.msra.mxu0 %v2717_v43  ;;  %v3098_v40 = vld [vmem:[%s16005_s3 + $0x3c20] sm:$0xff]  ;;  %v1276_v42 = vld [vmem:[%s16005_s3 + $0x330] sm:$0xff]  ;;  %v3097_v43 = vld [vmem:[%s16005_s3 + $0x3c18] sm:$0xff] }
 0x295   :  { %4408 = vmatprep.subr.mxu1 %v2091_v45  ;;  %4479 = vmatprep.subr.mxu0 %v2699_v47  ;;  %v1275_v45 = vld [vmem:[%s16005_s3 + $0x328] sm:$0xff] }
 0x296   :  { %4409 = vmatpush2.msra.mxu1 %v2090_v48  ;;  %4480 = vmatpush2.msra.mxu0 %v2698_v49  ;;  %v3079_v47 = vld [vmem:[%s16005_s3 + $0x3b88] sm:$0xff]  ;;  %v1257_v48 = vld [vmem:[%s16005_s3 + $0x298] sm:$0xff]  ;;  %v3078_v49 = vld [vmem:[%s16005_s3 + $0x3b80] sm:$0xff] }
 0x297   :  { %4411 = vmatmul.mubr.f32.vlgmr.msra.gmra.mxu1 %v8903_v32  ;;  %4482 = vmatmul.mubr.f32.vlgmr.msra.gmra.mxu0 %v9299_v6 }
 0x298   :  { %4488 = vmatprep.subr.mxu1 %v3288_v50  ;;  %4559 = vmatprep.subr.mxu0 %v1466_v51  ;;  %v1256_v50 = vld [vmem:[%s16005_s3 + $0x290] sm:$0xff] }
 0x299   :  { %4489 = vmatpush1.msra.mxu1 %v3287_v53  ;;  %4552 = vmatprep.mubr.f32.mxu1 %v9512_v44  ;;  %v3060_v51 = vld [vmem:[%s16005_s3 + $0x3af0] sm:$0xff]  ;;  %v1238_v53 = vld [vmem:[%s16005_s3 + $0x200] sm:$0xff] }
 0x29a   :  { %4560 = vmatpush1.msra.mxu0 %v1465_v54  ;;  %4623 = vmatprep.mubr.f32.mxu0 %v8497_v4  ;;  %v3059_v54 = vld [vmem:[%s16005_s3 + $0x3ae8] sm:$0xff] }
 0x29b   :  { %4490 = vmatprep.subr.mxu1 %v3269_v55  ;;  %4561 = vmatprep.subr.mxu0 %v1447_v56  ;;  %v1237_v55 = vld [vmem:[%s16005_s3 + $0x1f8] sm:$0xff] }
 0x29c   :  { %4491 = vmatpush1.msra.mxu1 %v3268_v58  ;;  %4562 = vmatpush1.msra.mxu0 %v1446_v60  ;;  %v3041_v56 = vld [vmem:[%s16005_s3 + $0x3a58] sm:$0xff]  ;;  %v1219_v58 = vld [vmem:[%s16005_s3 + $0x168] sm:$0xff]  ;;  %v3040_v60 = vld [vmem:[%s16005_s3 + $0x3a50] sm:$0xff] }
 0x29d   :  { %4492 = vmatprep.subr.mxu1 %v3250_v61  ;;  %4563 = vmatprep.subr.mxu0 %v1428_v63  ;;  %v1218_v61 = vld [vmem:[%s16005_s3 + $0x160] sm:$0xff] }
 0x29e   :  { %4493 = vmatpush1.msra.mxu1 %v3249_v1  ;;  %4564 = vmatpush1.msra.mxu0 %v1427_v2  ;;  %v3022_v63 = vld [vmem:[%s16005_s3 + $0x39c0] sm:$0xff]  ;;  %v1200_v1 = vld [vmem:[%s16005_s3 + $0xd0] sm:$0xff]  ;;  %v3021_v2 = vld [vmem:[%s16005_s3 + $0x39b8] sm:$0xff] }
 0x29f   :  { %4494 = vmatprep.subr.mxu1 %v3231_v8  ;;  %4565 = vmatprep.subr.mxu0 %v1409_v5  ;;  %v1199_v8 = vld [vmem:[%s16005_s3 + $0xc8] sm:$0xff] }
 0x2a0   :  { %4495 = vmatpush1.msra.mxu1 %v3230_v11  ;;  %4566 = vmatpush1.msra.mxu0 %v1408_v62  ;;  %v3003_v5 = vld [vmem:[%s16005_s3 + $0x3928] sm:$0xff]  ;;  %v1181_v11 = vld [vmem:[%s16005_s3 + $0x38] sm:$0xff]  ;;  %v3002_v62 = vld [vmem:[%s16005_s3 + $0x3920] sm:$0xff] }
 0x2a1   :  { %4496 = vmatprep.subr.mxu1 %v3212_v7  ;;  %4567 = vmatprep.subr.mxu0 %v1390_v9  ;;  %v1180_v7 = vld [vmem:[%s16005_s3 + $0x30] sm:$0xff] }
 0x2a2   :  { %4497 = vmatpush1.msra.mxu1 %v3211_v10  ;;  %4568 = vmatpush1.msra.mxu0 %v1389_v12  ;;  %v3592_v9 = vld [vmem:[%s16005_s3 + $0x4b90] sm:$0xff]  ;;  %v1770_v10 = vld [vmem:[%s16005_s3 + $0x12a0] sm:$0xff]  ;;  %v3591_v12 = vld [vmem:[%s16005_s3 + $0x4b88] sm:$0xff] }
 0x2a3   :  { %4498 = vmatprep.subr.mxu1 %v3193_v33  ;;  %4569 = vmatprep.subr.mxu0 %v1371_v14  ;;  %v1769_v33 = vld [vmem:[%s16005_s3 + $0x1298] sm:$0xff] }
 0x2a4   :  { %4499 = vmatpush1.msra.mxu1 %v3192_v16  ;;  %4570 = vmatpush1.msra.mxu0 %v1370_v17  ;;  %v3573_v14 = vld [vmem:[%s16005_s3 + $0x4af8] sm:$0xff]  ;;  %v1751_v16 = vld [vmem:[%s16005_s3 + $0x1208] sm:$0xff]  ;;  %v3572_v17 = vld [vmem:[%s16005_s3 + $0x4af0] sm:$0xff] }
 0x2a5   :  { %4500 = vmatprep.subr.mxu1 %v3174_v18  ;;  %4571 = vmatprep.subr.mxu0 %v1352_v19  ;;  %v1750_v18 = vld [vmem:[%s16005_s3 + $0x1200] sm:$0xff] }
 0x2a6   :  { %4501 = vmatpush1.msra.mxu1 %v3173_v41  ;;  %4572 = vmatpush1.msra.mxu0 %v1351_v20  ;;  %v3554_v19 = vld [vmem:[%s16005_s3 + $0x4a60] sm:$0xff]  ;;  %v1732_v41 = vld [vmem:[%s16005_s3 + $0x1170] sm:$0xff]  ;;  %v3553_v20 = vld [vmem:[%s16005_s3 + $0x4a58] sm:$0xff] }
 0x2a7   :  { %4502 = vmatprep.subr.mxu1 %v3155_v21  ;;  %4573 = vmatprep.subr.mxu0 %v1333_v23  ;;  %v1731_v21 = vld [vmem:[%s16005_s3 + $0x1168] sm:$0xff] }
 0x2a8   :  { %4503 = vmatpush1.msra.mxu1 %v3154_v24  ;;  %4574 = vmatpush1.msra.mxu0 %v1332_v26  ;;  %v3535_v23 = vld [vmem:[%s16005_s3 + $0x49c8] sm:$0xff]  ;;  %v1713_v24 = vld [vmem:[%s16005_s3 + $0x10d8] sm:$0xff]  ;;  %v3534_v26 = vld [vmem:[%s16005_s3 + $0x49c0] sm:$0xff] }
 0x2a9   :  { %4504 = vmatprep.subr.mxu1 %v3136_v27  ;;  %4575 = vmatprep.subr.mxu0 %v1314_v59  ;;  %v1712_v27 = vld [vmem:[%s16005_s3 + $0x10d0] sm:$0xff] }
 0x2aa   :  { %4505 = vmatpush1.msra.mxu1 %v3135_v39  ;;  %4576 = vmatpush1.msra.mxu0 %v1313_v28  ;;  %v3516_v59 = vld [vmem:[%s16005_s3 + $0x4930] sm:$0xff]  ;;  %v1694_v39 = vld [vmem:[%s16005_s3 + $0x1040] sm:$0xff]  ;;  %v3515_v28 = vld [vmem:[%s16005_s3 + $0x4928] sm:$0xff] }
 0x2ab   :  { %4506 = vmatprep.subr.mxu1 %v3117_v34  ;;  %4577 = vmatprep.subr.mxu0 %v1295_v35  ;;  %v1693_v34 = vld [vmem:[%s16005_s3 + $0x1038] sm:$0xff] }
 0x2ac   :  { %4507 = vmatpush1.msra.mxu1 %v3116_v37  ;;  %4578 = vmatpush1.msra.mxu0 %v1294_v38  ;;  %v3497_v35 = vld [vmem:[%s16005_s3 + $0x4898] sm:$0xff]  ;;  %v1675_v37 = vld [vmem:[%s16005_s3 + $0xfa8] sm:$0xff]  ;;  %v3496_v38 = vld [vmem:[%s16005_s3 + $0x4890] sm:$0xff] }
 0x2ad   :  { %4508 = vmatprep.subr.mxu1 %v3098_v40  ;;  %4579 = vmatprep.subr.mxu0 %v1276_v42  ;;  %v1674_v40 = vld [vmem:[%s16005_s3 + $0xfa0] sm:$0xff] }
 0x2ae   :  { %4509 = vmatpush1.msra.mxu1 %v3097_v43  ;;  %4580 = vmatpush1.msra.mxu0 %v1275_v45  ;;  %v3478_v42 = vld [vmem:[%s16005_s3 + $0x4800] sm:$0xff]  ;;  %v1656_v43 = vld [vmem:[%s16005_s3 + $0xf10] sm:$0xff]  ;;  %v3477_v45 = vld [vmem:[%s16005_s3 + $0x47f8] sm:$0xff] }
 0x2af   :  { %4510 = vmatprep.subr.mxu1 %v3079_v47  ;;  %4581 = vmatprep.subr.mxu0 %v1257_v48  ;;  %v1655_v47 = vld [vmem:[%s16005_s3 + $0xf08] sm:$0xff] }
 0x2b0   :  { %4511 = vmatpush1.msra.mxu1 %v3078_v49  ;;  %4582 = vmatpush1.msra.mxu0 %v1256_v50  ;;  %v3459_v48 = vld [vmem:[%s16005_s3 + $0x4768] sm:$0xff]  ;;  %v1637_v49 = vld [vmem:[%s16005_s3 + $0xe78] sm:$0xff]  ;;  %v3458_v50 = vld [vmem:[%s16005_s3 + $0x4760] sm:$0xff] }
 0x2b1   :  { %4512 = vmatprep.subr.mxu1 %v3060_v51  ;;  %4583 = vmatprep.subr.mxu0 %v1238_v53  ;;  %v1636_v51 = vld [vmem:[%s16005_s3 + $0xe70] sm:$0xff] }
 0x2b2   :  { %4513 = vmatpush1.msra.mxu1 %v3059_v54  ;;  %4584 = vmatpush1.msra.mxu0 %v1237_v55  ;;  %v3440_v53 = vld [vmem:[%s16005_s3 + $0x46d0] sm:$0xff]  ;;  %v1618_v54 = vld [vmem:[%s16005_s3 + $0xde0] sm:$0xff]  ;;  %v3439_v55 = vld [vmem:[%s16005_s3 + $0x46c8] sm:$0xff] }
 0x2b3   :  { %4514 = vmatprep.subr.mxu1 %v3041_v56  ;;  %4585 = vmatprep.subr.mxu0 %v1219_v58  ;;  %v1617_v56 = vld [vmem:[%s16005_s3 + $0xdd8] sm:$0xff] }
 0x2b4   :  { %4515 = vmatpush1.msra.mxu1 %v3040_v60  ;;  %4586 = vmatpush1.msra.mxu0 %v1218_v61  ;;  %v3421_v58 = vld [vmem:[%s16005_s3 + $0x4638] sm:$0xff]  ;;  %v1599_v60 = vld [vmem:[%s16005_s3 + $0xd48] sm:$0xff]  ;;  %v3420_v61 = vld [vmem:[%s16005_s3 + $0x4630] sm:$0xff] }
 0x2b5   :  { %4516 = vmatprep.subr.mxu1 %v3022_v63  ;;  %4587 = vmatprep.subr.mxu0 %v1200_v1  ;;  %v1598_v63 = vld [vmem:[%s16005_s3 + $0xd40] sm:$0xff] }
 0x2b6   :  { %4517 = vmatpush1.msra.mxu1 %v3021_v2  ;;  %4588 = vmatpush1.msra.mxu0 %v1199_v8  ;;  %v3402_v1 = vld [vmem:[%s16005_s3 + $0x45a0] sm:$0xff]  ;;  %v1580_v2 = vld [vmem:[%s16005_s3 + $0xcb0] sm:$0xff]  ;;  %v3401_v8 = vld [vmem:[%s16005_s3 + $0x4598] sm:$0xff] }
 0x2b7   :  { %4518 = vmatprep.subr.mxu1 %v3003_v5  ;;  %4589 = vmatprep.subr.mxu0 %v1181_v11  ;;  %v1579_v5 = vld [vmem:[%s16005_s3 + $0xca8] sm:$0xff] }
 0x2b8   :  { %4519 = vmatpush1.msra.mxu1 %v3002_v62  ;;  %4590 = vmatpush1.msra.mxu0 %v1180_v7  ;;  %v3383_v11 = vld [vmem:[%s16005_s3 + $0x4508] sm:$0xff]  ;;  %v1561_v62 = vld [vmem:[%s16005_s3 + $0xc18] sm:$0xff]  ;;  %v3382_v7 = vld [vmem:[%s16005_s3 + $0x4500] sm:$0xff] }
 0x2b9   :  { %4520 = vmatprep.subr.mxu1 %v3592_v9  ;;  %4591 = vmatprep.subr.mxu0 %v1770_v10  ;;  %v1560_v9 = vld [vmem:[%s16005_s3 + $0xc10] sm:$0xff] }
 0x2ba   :  { %4521 = vmatpush2.msra.mxu1 %v3591_v12  ;;  %4592 = vmatpush2.msra.mxu0 %v1769_v33  ;;  %v3364_v10 = vld [vmem:[%s16005_s3 + $0x4470] sm:$0xff]  ;;  %v1542_v12 = vld [vmem:[%s16005_s3 + $0xb80] sm:$0xff]  ;;  %v3363_v33 = vld [vmem:[%s16005_s3 + $0x4468] sm:$0xff] }
 0x2bb   :  { %4522 = vmatprep.subr.mxu1 %v3573_v14  ;;  %4593 = vmatprep.subr.mxu0 %v1751_v16  ;;  %v1541_v14 = vld [vmem:[%s16005_s3 + $0xb78] sm:$0xff] }
 0x2bc   :  { %4523 = vmatpush2.msra.mxu1 %v3572_v17  ;;  %4594 = vmatpush2.msra.mxu0 %v1750_v18  ;;  %v3345_v16 = vld [vmem:[%s16005_s3 + $0x43d8] sm:$0xff]  ;;  %v1523_v17 = vld [vmem:[%s16005_s3 + $0xae8] sm:$0xff]  ;;  %v3344_v18 = vld [vmem:[%s16005_s3 + $0x43d0] sm:$0xff] }
 0x2bd   :  { %4524 = vmatprep.subr.mxu1 %v3554_v19  ;;  %4595 = vmatprep.subr.mxu0 %v1732_v41  ;;  %v1522_v19 = vld [vmem:[%s16005_s3 + $0xae0] sm:$0xff] }
 0x2be   :  { %4525 = vmatpush2.msra.mxu1 %v3553_v20  ;;  %4596 = vmatpush2.msra.mxu0 %v1731_v21  ;;  %v3326_v41 = vld [vmem:[%s16005_s3 + $0x4340] sm:$0xff]  ;;  %v1504_v20 = vld [vmem:[%s16005_s3 + $0xa50] sm:$0xff]  ;;  %v3325_v21 = vld [vmem:[%s16005_s3 + $0x4338] sm:$0xff] }
 0x2bf   :  { %4526 = vmatprep.subr.mxu1 %v3535_v23  ;;  %4597 = vmatprep.subr.mxu0 %v1713_v24  ;;  %v1503_v23 = vld [vmem:[%s16005_s3 + $0xa48] sm:$0xff] }
 0x2c0   :  { %4527 = vmatpush2.msra.mxu1 %v3534_v26  ;;  %4598 = vmatpush2.msra.mxu0 %v1712_v27  ;;  %v3307_v24 = vld [vmem:[%s16005_s3 + $0x42a8] sm:$0xff]  ;;  %v1485_v26 = vld [vmem:[%s16005_s3 + $0x9b8] sm:$0xff]  ;;  %v3306_v27 = vld [vmem:[%s16005_s3 + $0x42a0] sm:$0xff] }
 0x2c1   :  { %4528 = vmatprep.subr.mxu1 %v3516_v59  ;;  %4599 = vmatprep.subr.mxu0 %v1694_v39  ;;  %v1484_v59 = vld [vmem:[%s16005_s3 + $0x9b0] sm:$0xff]  ;;  %v2074_v39 = vld [vmem:[%s16005_s3 + $0x1c20] sm:$0xff] }
 0x2c2   :  { %4529 = vmatpush2.msra.mxu1 %v3515_v28  ;;  %4600 = vmatpush2.msra.mxu0 %v1693_v34  ;;  %v2682_v28 = vld [vmem:[%s16005_s3 + $0x2f20] sm:$0xff]  ;;  %v2073_v34 = vld [vmem:[%s16005_s3 + $0x1c18] sm:$0xff] }
 0x2c3   :  { %4530 = vmatprep.subr.mxu1 %v3497_v35  ;;  %4601 = vmatprep.subr.mxu0 %v1675_v37  ;;  %v2681_v35 = vld [vmem:[%s16005_s3 + $0x2f18] sm:$0xff]  ;;  %v2055_v37 = vld [vmem:[%s16005_s3 + $0x1b88] sm:$0xff] }
 0x2c4   :  { %4531 = vmatpush2.msra.mxu1 %v3496_v38  ;;  %4602 = vmatpush2.msra.mxu0 %v1674_v40  ;;  %v2663_v38 = vld [vmem:[%s16005_s3 + $0x2e88] sm:$0xff]  ;;  %v2054_v40 = vld [vmem:[%s16005_s3 + $0x1b80] sm:$0xff] }
 0x2c5   :  { %4532 = vmatprep.subr.mxu1 %v3478_v42  ;;  %4603 = vmatprep.subr.mxu0 %v1656_v43  ;;  %v2662_v42 = vld [vmem:[%s16005_s3 + $0x2e80] sm:$0xff]  ;;  %v2036_v43 = vld [vmem:[%s16005_s3 + $0x1af0] sm:$0xff] }
 0x2c6   :  { %4533 = vmatpush2.msra.mxu1 %v3477_v45  ;;  %4604 = vmatpush2.msra.mxu0 %v1655_v47  ;;  %v2644_v45 = vld [vmem:[%s16005_s3 + $0x2df0] sm:$0xff]  ;;  %v2035_v47 = vld [vmem:[%s16005_s3 + $0x1ae8] sm:$0xff] }
 0x2c7   :  { %4534 = vmatprep.subr.mxu1 %v3459_v48  ;;  %4605 = vmatprep.subr.mxu0 %v1637_v49  ;;  %v2643_v48 = vld [vmem:[%s16005_s3 + $0x2de8] sm:$0xff]  ;;  %v2017_v49 = vld [vmem:[%s16005_s3 + $0x1a58] sm:$0xff] }
 0x2c8   :  { %4535 = vmatpush2.msra.mxu1 %v3458_v50  ;;  %4606 = vmatpush2.msra.mxu0 %v1636_v51  ;;  %v2625_v50 = vld [vmem:[%s16005_s3 + $0x2d58] sm:$0xff]  ;;  %v2016_v51 = vld [vmem:[%s16005_s3 + $0x1a50] sm:$0xff] }
 0x2c9   :  { %4536 = vmatprep.subr.mxu1 %v3440_v53  ;;  %4607 = vmatprep.subr.mxu0 %v1618_v54  ;;  %v2624_v53 = vld [vmem:[%s16005_s3 + $0x2d50] sm:$0xff]  ;;  %v1998_v54 = vld [vmem:[%s16005_s3 + $0x19c0] sm:$0xff] }
 0x2ca   :  { %4537 = vmatpush2.msra.mxu1 %v3439_v55  ;;  %4608 = vmatpush2.msra.mxu0 %v1617_v56  ;;  %v2606_v55 = vld [vmem:[%s16005_s3 + $0x2cc0] sm:$0xff]  ;;  %v1997_v56 = vld [vmem:[%s16005_s3 + $0x19b8] sm:$0xff] }
 0x2cb   :  { %4538 = vmatprep.subr.mxu1 %v3421_v58  ;;  %4609 = vmatprep.subr.mxu0 %v1599_v60  ;;  %v2605_v58 = vld [vmem:[%s16005_s3 + $0x2cb8] sm:$0xff]  ;;  %v1979_v60 = vld [vmem:[%s16005_s3 + $0x1928] sm:$0xff] }
 0x2cc   :  { %4539 = vmatpush2.msra.mxu1 %v3420_v61  ;;  %4610 = vmatpush2.msra.mxu0 %v1598_v63  ;;  %v2587_v61 = vld [vmem:[%s16005_s3 + $0x2c28] sm:$0xff]  ;;  %v1978_v63 = vld [vmem:[%s16005_s3 + $0x1920] sm:$0xff] }
 0x2cd   :  { %4540 = vmatprep.subr.mxu1 %v3402_v1  ;;  %4611 = vmatprep.subr.mxu0 %v1580_v2  ;;  %v2586_v1 = vld [vmem:[%s16005_s3 + $0x2c20] sm:$0xff]  ;;  %v1960_v2 = vld [vmem:[%s16005_s3 + $0x1890] sm:$0xff] }
 0x2ce   :  { %4541 = vmatpush2.msra.mxu1 %v3401_v8  ;;  %4612 = vmatpush2.msra.mxu0 %v1579_v5  ;;  %v2568_v8 = vld [vmem:[%s16005_s3 + $0x2b90] sm:$0xff]  ;;  %v1959_v5 = vld [vmem:[%s16005_s3 + $0x1888] sm:$0xff] }
 0x2cf   :  { %4542 = vmatprep.subr.mxu1 %v3383_v11  ;;  %4613 = vmatprep.subr.mxu0 %v1561_v62  ;;  %v2567_v11 = vld [vmem:[%s16005_s3 + $0x2b88] sm:$0xff]  ;;  %v1941_v62 = vld [vmem:[%s16005_s3 + $0x17f8] sm:$0xff] }
 0x2d0   :  { %4543 = vmatpush2.msra.mxu1 %v3382_v7  ;;  %4614 = vmatpush2.msra.mxu0 %v1560_v9  ;;  %v2549_v7 = vld [vmem:[%s16005_s3 + $0x2af8] sm:$0xff]  ;;  %v1940_v9 = vld [vmem:[%s16005_s3 + $0x17f0] sm:$0xff] }
 0x2d1   :  { %4544 = vmatprep.subr.mxu1 %v3364_v10  ;;  %4615 = vmatprep.subr.mxu0 %v1542_v12  ;;  %v2548_v10 = vld [vmem:[%s16005_s3 + $0x2af0] sm:$0xff]  ;;  %v1922_v12 = vld [vmem:[%s16005_s3 + $0x1760] sm:$0xff] }
 0x2d2   :  { %4545 = vmatpush2.msra.mxu1 %v3363_v33  ;;  %4616 = vmatpush2.msra.mxu0 %v1541_v14  ;;  %v2530_v33 = vld [vmem:[%s16005_s3 + $0x2a60] sm:$0xff]  ;;  %v1921_v14 = vld [vmem:[%s16005_s3 + $0x1758] sm:$0xff] }
 0x2d3   :  { %4546 = vmatprep.subr.mxu1 %v3345_v16  ;;  %4617 = vmatprep.subr.mxu0 %v1523_v17  ;;  %v2529_v16 = vld [vmem:[%s16005_s3 + $0x2a58] sm:$0xff]  ;;  %v1903_v17 = vld [vmem:[%s16005_s3 + $0x16c8] sm:$0xff] }
 0x2d4   :  { %4547 = vmatpush2.msra.mxu1 %v3344_v18  ;;  %4618 = vmatpush2.msra.mxu0 %v1522_v19  ;;  %v2511_v18 = vld [vmem:[%s16005_s3 + $0x29c8] sm:$0xff]  ;;  %v1902_v19 = vld [vmem:[%s16005_s3 + $0x16c0] sm:$0xff] }
 0x2d5   :  { %4548 = vmatprep.subr.mxu1 %v3326_v41  ;;  %4619 = vmatprep.subr.mxu0 %v1504_v20  ;;  %v2510_v41 = vld [vmem:[%s16005_s3 + $0x29c0] sm:$0xff]  ;;  %v1884_v20 = vld [vmem:[%s16005_s3 + $0x1630] sm:$0xff] }
 0x2d6   :  { %4549 = vmatpush2.msra.mxu1 %v3325_v21  ;;  %4620 = vmatpush2.msra.mxu0 %v1503_v23  ;;  %v2492_v21 = vld [vmem:[%s16005_s3 + $0x2930] sm:$0xff]  ;;  %v1883_v23 = vld [vmem:[%s16005_s3 + $0x1628] sm:$0xff] }
 0x2d7   :  { %4550 = vmatprep.subr.mxu1 %v3307_v24  ;;  %4621 = vmatprep.subr.mxu0 %v1485_v26  ;;  %v2491_v24 = vld [vmem:[%s16005_s3 + $0x2928] sm:$0xff]  ;;  %v1865_v26 = vld [vmem:[%s16005_s3 + $0x1598] sm:$0xff] }
 0x2d8   :  { %4551 = vmatpush2.msra.mxu1 %v3306_v27  ;;  %4622 = vmatpush2.msra.mxu0 %v1484_v59  ;;  %v2473_v27 = vld [vmem:[%s16005_s3 + $0x2898] sm:$0xff]  ;;  %v1864_v59 = vld [vmem:[%s16005_s3 + $0x1590] sm:$0xff] }
 0x2d9   :  { %4553 = vmatmul.mubr.f32.vlgmr.msra.gmra.mxu1 %v9518_v46  ;;  %4624 = vmatmul.mubr.f32.vlgmr.msra.gmra.mxu0 %v8883_v22 }
 0x2da   :  { %4630 = vmatprep.subr.mxu1 %v2074_v39  ;;  %4701 = vmatprep.subr.mxu0 %v2682_v28  ;;  %v2472_v39 = vld [vmem:[%s16005_s3 + $0x2890] sm:$0xff]  ;;  %v1846_v28 = vld [vmem:[%s16005_s3 + $0x1500] sm:$0xff] }
 0x2db   :  { %4631 = vmatpush1.msra.mxu1 %v2073_v34  ;;  %4694 = vmatprep.mubr.f32.mxu1 %v8898_v29  ;;  %v2454_v34 = vld [vmem:[%s16005_s3 + $0x2800] sm:$0xff] }
 0x2dc   :  { %4702 = vmatpush1.msra.mxu0 %v2681_v35  ;;  %4765 = vmatprep.mubr.f32.mxu0 %v9297_v3  ;;  %v1845_v35 = vld [vmem:[%s16005_s3 + $0x14f8] sm:$0xff] }
 0x2dd   :  { %4632 = vmatprep.subr.mxu1 %v2055_v37  ;;  %4703 = vmatprep.subr.mxu0 %v2663_v38  ;;  %v2453_v37 = vld [vmem:[%s16005_s3 + $0x27f8] sm:$0xff]  ;;  %v1827_v38 = vld [vmem:[%s16005_s3 + $0x1468] sm:$0xff] }
 0x2de   :  { %4633 = vmatpush1.msra.mxu1 %v2054_v40  ;;  %4704 = vmatpush1.msra.mxu0 %v2662_v42  ;;  %v2435_v40 = vld [vmem:[%s16005_s3 + $0x2768] sm:$0xff]  ;;  %v1826_v42 = vld [vmem:[%s16005_s3 + $0x1460] sm:$0xff] }
 0x2df   :  { %4634 = vmatprep.subr.mxu1 %v2036_v43  ;;  %4705 = vmatprep.subr.mxu0 %v2644_v45  ;;  %v2434_v43 = vld [vmem:[%s16005_s3 + $0x2760] sm:$0xff]  ;;  %v1808_v45 = vld [vmem:[%s16005_s3 + $0x13d0] sm:$0xff] }
 0x2e0   :  { %4635 = vmatpush1.msra.mxu1 %v2035_v47  ;;  %4706 = vmatpush1.msra.mxu0 %v2643_v48  ;;  %v2416_v47 = vld [vmem:[%s16005_s3 + $0x26d0] sm:$0xff]  ;;  %v1807_v48 = vld [vmem:[%s16005_s3 + $0x13c8] sm:$0xff] }
 0x2e1   :  { %4636 = vmatprep.subr.mxu1 %v2017_v49  ;;  %4707 = vmatprep.subr.mxu0 %v2625_v50  ;;  %v2415_v49 = vld [vmem:[%s16005_s3 + $0x26c8] sm:$0xff]  ;;  %v1789_v50 = vld [vmem:[%s16005_s3 + $0x1338] sm:$0xff] }
 0x2e2   :  { %4637 = vmatpush1.msra.mxu1 %v2016_v51  ;;  %4708 = vmatpush1.msra.mxu0 %v2624_v53  ;;  %v2397_v51 = vld [vmem:[%s16005_s3 + $0x2638] sm:$0xff]  ;;  %v1788_v53 = vld [vmem:[%s16005_s3 + $0x1330] sm:$0xff] }
 0x2e3   :  { %4638 = vmatprep.subr.mxu1 %v1998_v54  ;;  %4709 = vmatprep.subr.mxu0 %v2606_v55  ;;  %v2396_v54 = vld [vmem:[%s16005_s3 + $0x2630] sm:$0xff]  ;;  %v2378_v55 = vld [vmem:[%s16005_s3 + $0x25a0] sm:$0xff] }
 0x2e4   :  { %4639 = vmatpush1.msra.mxu1 %v1997_v56  ;;  %4710 = vmatpush1.msra.mxu0 %v2605_v58  ;;  %v2986_v56 = vld [vmem:[%s16005_s3 + $0x38a0] sm:$0xff]  ;;  %v2377_v58 = vld [vmem:[%s16005_s3 + $0x2598] sm:$0xff] }
 0x2e5   :  { %4640 = vmatprep.subr.mxu1 %v1979_v60  ;;  %4711 = vmatprep.subr.mxu0 %v2587_v61  ;;  %v2985_v60 = vld [vmem:[%s16005_s3 + $0x3898] sm:$0xff]  ;;  %v2359_v61 = vld [vmem:[%s16005_s3 + $0x2508] sm:$0xff] }
 0x2e6   :  { %4641 = vmatpush1.msra.mxu1 %v1978_v63  ;;  %4712 = vmatpush1.msra.mxu0 %v2586_v1  ;;  %v2967_v63 = vld [vmem:[%s16005_s3 + $0x3808] sm:$0xff]  ;;  %v2358_v1 = vld [vmem:[%s16005_s3 + $0x2500] sm:$0xff] }
 0x2e7   :  { %4642 = vmatprep.subr.mxu1 %v1960_v2  ;;  %4713 = vmatprep.subr.mxu0 %v2568_v8  ;;  %v2966_v2 = vld [vmem:[%s16005_s3 + $0x3800] sm:$0xff]  ;;  %v2340_v8 = vld [vmem:[%s16005_s3 + $0x2470] sm:$0xff] }
 0x2e8   :  { %4643 = vmatpush1.msra.mxu1 %v1959_v5  ;;  %4714 = vmatpush1.msra.mxu0 %v2567_v11  ;;  %v2948_v5 = vld [vmem:[%s16005_s3 + $0x3770] sm:$0xff]  ;;  %v11283_v11 = vpop.f32.mrf.mxu0 }
 0x2e9   :  { %4644 = vmatprep.subr.mxu1 %v1941_v62  ;;  %4715 = vmatprep.subr.mxu0 %v2549_v7  ;;  %v2339_v62 = vld [vmem:[%s16005_s3 + $0x2468] sm:$0xff] }
 0x2ea   :  { %4645 = vmatpush1.msra.mxu1 %v1940_v9  ;;  %4716 = vmatpush1.msra.mxu0 %v2548_v10  ;;  %v2947_v7 = vld [vmem:[%s16005_s3 + $0x3768] sm:$0xff]  ;;  %v2321_v9 = vld [vmem:[%s16005_s3 + $0x23d8] sm:$0xff] }
 0x2eb   :  { %4646 = vmatprep.subr.mxu1 %v1922_v12  ;;  %4717 = vmatprep.subr.mxu0 %v2530_v33  ;;  %v2929_v10 = vld [vmem:[%s16005_s3 + $0x36d8] sm:$0xff]  ;;  %v11297_v12 = vpop.f32.mrf.mxu1  ;;  %v2320_v33 = vld [vmem:[%s16005_s3 + $0x23d0] sm:$0xff] }
 0x2ec   :  { %4647 = vmatpush1.msra.mxu1 %v1921_v14  ;;  %4718 = vmatpush1.msra.mxu0 %v2529_v16  ;;  %v2928_v14 = vld [vmem:[%s16005_s3 + $0x36d0] sm:$0xff]  ;;  %v2302_v16 = vld [vmem:[%s16005_s3 + $0x2340] sm:$0xff] }
 0x2ed   :  { %4648 = vmatprep.subr.mxu1 %v1903_v17  ;;  %4719 = vmatprep.subr.mxu0 %v2511_v18  ;;  %v2910_v17 = vld [vmem:[%s16005_s3 + $0x3640] sm:$0xff]  ;;  %v3775_v18 = vpop.f32.mrf.mxu0 }
 0x2ee   :  { %4649 = vmatpush1.msra.mxu1 %v1902_v19  ;;  %4720 = vmatpush1.msra.mxu0 %v2510_v41  ;;  %v2301_v19 = vld [vmem:[%s16005_s3 + $0x2338] sm:$0xff] }
 0x2ef   :  { %4650 = vmatprep.subr.mxu1 %v1884_v20  ;;  %4721 = vmatprep.subr.mxu0 %v2492_v21  ;;  %v2909_v41 = vld [vmem:[%s16005_s3 + $0x3638] sm:$0xff]  ;;  %v2283_v20 = vld [vmem:[%s16005_s3 + $0x22a8] sm:$0xff] }
 0x2f0   :  { %4651 = vmatpush1.msra.mxu1 %v1883_v23  ;;  %4722 = vmatpush1.msra.mxu0 %v2491_v24  ;;  %v2891_v21 = vld [vmem:[%s16005_s3 + $0x35a8] sm:$0xff]  ;;  %v3846_v23 = vpop.f32.mrf.mxu1  ;;  %v11323_v24 = vpop.f32.mrf.mxu0 }
 0x2f1   :  { %4652 = vmatprep.subr.mxu1 %v1865_v26  ;;  %4723 = vmatprep.subr.mxu0 %v2473_v27  ;;  %v2282_v26 = vld [vmem:[%s16005_s3 + $0x22a0] sm:$0xff] }
 0x2f2   :  { %4653 = vmatpush1.msra.mxu1 %v1864_v59  ;;  %4724 = vmatpush1.msra.mxu0 %v2472_v39  ;;  %v2890_v27 = vld [vmem:[%s16005_s3 + $0x35a0] sm:$0xff]  ;;  %v2264_v59 = vld [vmem:[%s16005_s3 + $0x2210] sm:$0xff] }
 0x2f3   :  { %4654 = vmatprep.subr.mxu1 %v1846_v28  ;;  %4725 = vmatprep.subr.mxu0 %v2454_v34  ;;  %v2872_v39 = vld [vmem:[%s16005_s3 + $0x3510] sm:$0xff]  ;;  %v11337_v28 = vpop.f32.mrf.mxu1  ;;  %v2263_v34 = vld [vmem:[%s16005_s3 + $0x2208] sm:$0xff] }
 0x2f4   :  { %4655 = vmatpush1.msra.mxu1 %v1845_v35  ;;  %4726 = vmatpush1.msra.mxu0 %v2453_v37  ;;  %v2871_v35 = vld [vmem:[%s16005_s3 + $0x3508] sm:$0xff]  ;;  %v3606_v37 = vld [vmem:[%s16006_s4] sm:$0xff] }
 0x2f5   :  { %4656 = vmatprep.subr.mxu1 %v1827_v38  ;;  %4727 = vmatprep.subr.mxu0 %v2435_v40  ;;  %v2245_v38 = vld [vmem:[%s16005_s3 + $0x2178] sm:$0xff] }
 0x2f6   :  { %4657 = vmatpush1.msra.mxu1 %v1826_v42  ;;  %4728 = vmatpush1.msra.mxu0 %v2434_v43  ;;  %v2853_v40 = vld [vmem:[%s16005_s3 + $0x3478] sm:$0xff]  ;;  %v3917_v42 = vpop.f32.mrf.mxu0  ;;  %v2244_v43 = vld [vmem:[%s16005_s3 + $0x2170] sm:$0xff] }
 0x2f7   :  { %4658 = vmatprep.subr.mxu1 %v1808_v45  ;;  %4729 = vmatprep.subr.mxu0 %v2416_v47  ;;  %v2852_v45 = vld [vmem:[%s16005_s3 + $0x3470] sm:$0xff]  ;;  %v3619_v47 = vrot.slane %v3606_v37, %v8431_v36 }
 0x2f8   :  { %4659 = vmatpush1.msra.mxu1 %v1807_v48  ;;  %4730 = vmatpush1.msra.mxu0 %v2415_v49  ;;  %v2226_v48 = vld [vmem:[%s16005_s3 + $0x20e0] sm:$0xff] }
 0x2f9   :  { %4660 = vmatprep.subr.mxu1 %v1789_v50  ;;  %4731 = vmatprep.subr.mxu0 %v2397_v51  ;;  %v2834_v49 = vld [vmem:[%s16005_s3 + $0x33e0] sm:$0xff]  ;;  %v3615_v50 = vrot.slane %v3606_v37, %v8411_v30  ;;  %v4057_v51 = vpop.f32.mrf.mxu0 }
 0x2fa   :  { %4661 = vmatpush1.msra.mxu1 %v1788_v53  ;;  %4732 = vmatpush1.msra.mxu0 %v2396_v54  ;;  %v3988_v53 = vpop.f32.mrf.mxu1  ;;  %v2225_v54 = vld [vmem:[%s16005_s3 + $0x20d8] sm:$0xff] }
 0x2fb   :  { %4662 = vmatprep.subr.mxu1 %v2378_v55  ;;  %4733 = vmatprep.subr.mxu0 %v2986_v56  ;;  %v2833_v55 = vld [vmem:[%s16005_s3 + $0x33d8] sm:$0xff]  ;;  %v3623_v56 = vrot.slane %v3606_v37, %v8816_v57 }
 0x2fc   :  { %4663 = vmatpush2.msra.mxu1 %v2377_v58  ;;  %4734 = vmatpush2.msra.mxu0 %v2985_v60  ;;  %v2207_v58 = vld [vmem:[%s16005_s3 + $0x2048] sm:$0xff] }
 0x2fd   :  { %4664 = vmatprep.subr.mxu1 %v2359_v61  ;;  %4735 = vmatprep.subr.mxu0 %v2967_v63  ;;  %v2815_v60 = vld [vmem:[%s16005_s3 + $0x3348] sm:$0xff]  ;;  %v4128_v61 = vpop.f32.mrf.mxu1  ;;  %v2206_v63 = vld [vmem:[%s16005_s3 + $0x2040] sm:$0xff] }
 0x2fe   :  { %4665 = vmatpush2.msra.mxu1 %v2358_v1  ;;  %4736 = vmatpush2.msra.mxu0 %v2966_v2  ;;  %v2814_v1 = vld [vmem:[%s16005_s3 + $0x3340] sm:$0xff]  ;;  %v3776_v2 = vadd.f32 %v3775_v18, %v3619_v47 }
 0x2ff   :  { %4666 = vmatprep.subr.mxu1 %v2340_v8  ;;  %4737 = vmatprep.subr.mxu0 %v2948_v5  ;;  %v3627_v8 = vrot.slane %v3606_v37, %v8831_v0  ;;  %v2188_v5 = vld [vmem:[%s16005_s3 + $0x1fb0] sm:$0xff] }
 0x300   :  { %4667 = vmatpush2.msra.mxu1 %v2339_v62  ;;  %4738 = vmatpush2.msra.mxu0 %v2947_v7  ;;  %v2796_v62 = vld [vmem:[%s16005_s3 + $0x32b0] sm:$0xff]  ;;  %v3774_v7 = vadd.f32 %v11283_v11, %v3615_v50  ;;  %v2777_v11 = vld [vmem:[%s16005_s3 + $0x3218] sm:$0xff] }
 0x301   :  { %4668 = vmatprep.subr.mxu1 %v2321_v9  ;;  %4739 = vmatprep.subr.mxu0 %v2929_v10  ;;  %v4059_v9 = vpop.f32.mrf.mxu0  ;;  %v2187_v10 = vld [vmem:[%s16005_s3 + $0x1fa8] sm:$0xff] }
 0x302   :  { %4669 = vmatpush2.msra.mxu1 %v2320_v33  ;;  %4740 = vmatpush2.msra.mxu0 %v2928_v14  ;;  %v2795_v33 = vld [vmem:[%s16005_s3 + $0x32a8] sm:$0xff]  ;;  %v3847_v14 = vadd.f32 %v3846_v23, %v3776_v2  ;;  %v3845_v18 = vadd.f32 %v11297_v12, %v3774_v7  ;;  %v4060_v23 = vadd.f32 %v4059_v9, %v3627_v8  ;;  %v2150_v12 = vld [vmem:[%s16005_s3 + $0x1e80] sm:$0xff] }
 0x303   :  { %4670 = vmatprep.subr.mxu1 %v2302_v16  ;;  %4741 = vmatprep.subr.mxu0 %v2910_v17  ;;  %v4058_v16 = vadd.f32 %v4057_v51, %v3623_v56  ;;  %v2169_v17 = vld [vmem:[%s16005_s3 + $0x1f18] sm:$0xff]  ;;  %v2111_v51 = vld [vmem:[%s16005_s3 + $0x1d48] sm:$0xff] }
 0x304   :  { %4671 = vmatpush2.msra.mxu1 %v2301_v19  ;;  %4742 = vmatpush2.msra.mxu0 %v2909_v41  ;;  %v4130_v19 = vpop.f32.mrf.mxu1  ;;  %v2168_v41 = vld [vmem:[%s16005_s3 + $0x1f10] sm:$0xff]  ;;  %v2093_v56 = vld [vmem:[%s16005_s3 + $0x1cb8] sm:$0xff] }
 0x305   :  { %4672 = vmatprep.subr.mxu1 %v2283_v20  ;;  %4743 = vmatprep.subr.mxu0 %v2891_v21  ;;  %v2776_v20 = vld [vmem:[%s16005_s3 + $0x3210] sm:$0xff]  ;;  %v3918_v21 = vadd.f32 %v3917_v42, %v3847_v14  ;;  %v2739_v42 = vld [vmem:[%s16005_s3 + $0x30e8] sm:$0xff] }
 0x306   :  { %4673 = vmatpush2.msra.mxu1 %v2282_v26  ;;  %4744 = vmatpush2.msra.mxu0 %v2890_v27  ;;  %v4129_v26 = vadd.f32 %v4128_v61, %v4058_v16  ;;  %v2758_v27 = vld [vmem:[%s16005_s3 + $0x3180] sm:$0xff]  ;;  %v2092_v61 = vld [vmem:[%s16005_s3 + $0x1cb0] sm:$0xff]  ;;  %v1467_v14 = vld [vmem:[%s16005_s3 + $0x928] sm:$0xff] }
 0x307   :  { %4674 = vmatprep.subr.mxu1 %v2264_v59  ;;  %4745 = vmatprep.subr.mxu0 %v2872_v39  ;;  %v4199_v59 = vpop.f32.mrf.mxu0  ;;  %v2149_v39 = vld [vmem:[%s16005_s3 + $0x1e78] sm:$0xff]  ;;  %v3989_v37 = vadd.f32 %v3988_v53, %v3918_v21  ;;  %v3252_v21 = vld [vmem:[%s16005_s3 + $0x40f0] sm:$0xff] }
 0x308   :  { %4675 = vmatpush2.msra.mxu1 %v2263_v34  ;;  %4746 = vmatpush2.msra.mxu0 %v2871_v35  ;;  %v2757_v34 = vld [vmem:[%s16005_s3 + $0x3178] sm:$0xff]  ;;  %v3916_v35 = vadd.f32 %v11323_v24, %v3845_v18  ;;  %v2738_v24 = vld [vmem:[%s16005_s3 + $0x30e0] sm:$0xff]  ;;  %v4200_v47 = vadd.f32 %v4199_v59, %v4129_v26  ;;  %v3251_v26 = vld [vmem:[%s16005_s3 + $0x40e8] sm:$0xff] }
 0x309   :  { %4676 = vmatprep.subr.mxu1 %v2245_v38  ;;  %4747 = vmatprep.subr.mxu0 %v2853_v40  ;;  %v4131_v38 = vadd.f32 %v4130_v19, %v4060_v23  ;;  %v2131_v40 = vld [vmem:[%s16005_s3 + $0x1de8] sm:$0xff]  ;;  %v4201_v50 = vpop.f32.mrf.mxu0  ;;  %v3270_v18 = vld [vmem:[%s16005_s3 + $0x4180] sm:$0xff]  ;;  %v1448_v19 = vld [vmem:[%s16005_s3 + $0x890] sm:$0xff] }
 0x30a   :  { %4677 = vmatpush2.msra.mxu1 %v2244_v43  ;;  %4748 = vmatpush2.msra.mxu0 %v2852_v45  ;;  %v2130_v43 = vld [vmem:[%s16005_s3 + $0x1de0] sm:$0xff]  ;;  %v3987_v45 = vadd.f32 %v11337_v28, %v3916_v35  ;;  %v2719_v28 = vld [vmem:[%s16005_s3 + $0x3048] sm:$0xff]  ;;  %v3233_v59 = vld [vmem:[%s16005_s3 + $0x4058] sm:$0xff] }
 0x30b   :  { %4678 = vmatprep.subr.mxu1 %v2226_v48  ;;  %4749 = vmatprep.subr.mxu0 %v2834_v49  ;;  %v2112_v48 = vld [vmem:[%s16005_s3 + $0x1d50] sm:$0xff]  ;;  %v1430_v23 = vld [vmem:[%s16005_s3 + $0x800] sm:$0xff] }
 0x30c   :  { %4679 = vmatpush2.msra.mxu1 %v2225_v54  ;;  %4750 = vmatpush2.msra.mxu0 %v2833_v55  ;;  %v2720_v49 = vld [vmem:[%s16005_s3 + $0x3050] sm:$0xff]  ;;  %v6544_v54 = vmax.f32 %v3989_v37, 0.0  ;;  %v4202_v55 = vadd.f32 %v4201_v50, %v4131_v38  ;;  %v6543_v2 = vmax.f32 %v3987_v45, 0.0  ;;  %v1410_v35 = vld [vmem:[%s16005_s3 + $0x760] sm:$0xff]  ;;  %v3175_v50 = vld [vmem:[%s16005_s3 + $0x3e88] sm:$0xff] }
 0x30d   :  { %4680 = vmatprep.subr.mxu1 %v2207_v58  ;;  %4751 = vmatprep.subr.mxu0 %v2815_v60  ;;  %v2701_v58 = vld [vmem:[%s16005_s3 + $0x2fb8] sm:$0xff]  ;;  %v3214_v37 = vld [vmem:[%s16005_s3 + $0x3fc0] sm:$0xff]  ;;  %v1392_v38 = vld [vmem:[%s16005_s3 + $0x6d0] sm:$0xff] }
 0x30e   :  { %4681 = vmatpush2.msra.mxu1 %v2206_v63  ;;  %4752 = vmatpush2.msra.mxu0 %v2814_v1  ;;  %v2700_v63 = vld [vmem:[%s16005_s3 + $0x2fb0] sm:$0xff]  ;;  %v6581_v7 = vcombine.low %v6543_v2, %v6544_v54  ;;  %v3194_v45 = vld [vmem:[%s16005_s3 + $0x3f20] sm:$0xff] }
 0x30f   :  { %4682 = vmatprep.subr.mxu1 %v2188_v5  ;;  %4753 = vmatprep.subr.mxu0 %v2796_v62  ;;  %v3290_v5 = vld [vmem:[%s16005_s3 + $0x4220] sm:$0xff]  ;;  %v1468_v62 = vld [vmem:[%s16005_s3 + $0x930] sm:$0xff] }
 0x310   :  { %4683 = vmatpush2.msra.mxu1 %v2187_v10  ;;  %4754 = vmatpush2.msra.mxu0 %v2795_v33  ;;  %v3289_v10 = vld [vmem:[%s16005_s3 + $0x4218] sm:$0xff]  ;;  %v3156_v54 = vld [vmem:[%s16005_s3 + $0x3df0] sm:$0xff]  ;;  %v3118_v2 = vld [vmem:[%s16005_s3 + $0x3cc0] sm:$0xff] }
 0x311   :  { %4684 = vmatprep.subr.mxu1 %v2169_v17  ;;  %4755 = vmatprep.subr.mxu0 %v2777_v11  ;;  %v3271_v17 = vld [vmem:[%s16005_s3 + $0x4188] sm:$0xff]  ;;  %v1449_v11 = vld [vmem:[%s16005_s3 + $0x898] sm:$0xff] }
 0x312   :  { %4685 = vmatpush2.msra.mxu1 %v2168_v41  ;;  %4756 = vmatpush2.msra.mxu0 %v2776_v20  ;;  %v6589_v41 = vrot.slane %v6581_v7, %v7230_v52  ;;  %v3099_v7 = vld [vmem:[%s16005_s3 + $0x3c28] sm:$0xff] }
 0x313   :  { %4686 = vmatprep.subr.mxu1 %v2150_v12  ;;  %4757 = vmatprep.subr.mxu0 %v2758_v27  ;;  %v1429_v12 = vld [vmem:[%s16005_s3 + $0x7f8] sm:$0xff] }
 0x314   :  { %4687 = vmatpush2.msra.mxu1 %v2149_v39  ;;  %4758 = vmatpush2.msra.mxu0 %v2757_v34  ;;  %v1411_v39 = vld [vmem:[%s16005_s3 + $0x768] sm:$0xff]  ;;  %v3232_v34 = vld [vmem:[%s16005_s3 + $0x4050] sm:$0xff] }
 0x315   :  { %4688 = vmatprep.subr.mxu1 %v2131_v40  ;;  %4759 = vmatprep.subr.mxu0 %v2739_v42  ;;  %v4270_v53 = vpop.f32.mrf.mxu1  ;;  %v3213_v40 = vld [vmem:[%s16005_s3 + $0x3fb8] sm:$0xff]  ;;  %v1391_v42 = vld [vmem:[%s16005_s3 + $0x6c8] sm:$0xff] }
 0x316   :  { %4689 = vmatpush2.msra.mxu1 %v2130_v43  ;;  %4760 = vmatpush2.msra.mxu0 %v2738_v24  ;;  %v4271_v60 = vadd.f32 %v4270_v53, %v4200_v47  ;;  %v3195_v43 = vld [vmem:[%s16005_s3 + $0x3f28] sm:$0xff]  ;;  %v1373_v24 = vld [vmem:[%s16005_s3 + $0x638] sm:$0xff]  ;;  %v1372_v47 = vld [vmem:[%s16005_s3 + $0x630] sm:$0xff] }
 0x317   :  { %4690 = vmatprep.subr.mxu1 %v2112_v48  ;;  %4761 = vmatprep.subr.mxu0 %v2720_v49  ;;  %v4272_v1 = vpop.f32.mrf.mxu1  ;;  %v3176_v48 = vld [vmem:[%s16005_s3 + $0x3e90] sm:$0xff]  ;;  %v1354_v49 = vld [vmem:[%s16005_s3 + $0x5a0] sm:$0xff]  ;;  %v1335_v53 = vld [vmem:[%s16005_s3 + $0x508] sm:$0xff] }
 0x318   :  { %4691 = vmatpush2.msra.mxu1 %v2111_v51  ;;  %4762 = vmatpush2.msra.mxu0 %v2719_v28  ;;  %v4273_v8 = vadd.f32 %v4272_v1, %v4202_v55  ;;  %v6545_v9 = vmax.f32 %v4271_v60, 0.0  ;;  %v1353_v51 = vld [vmem:[%s16005_s3 + $0x598] sm:$0xff]  ;;  %v1334_v55 = vld [vmem:[%s16005_s3 + $0x500] sm:$0xff] }
 0x319   :  { %4692 = vmatprep.subr.mxu1 %v2093_v56  ;;  %4763 = vmatprep.subr.mxu0 %v2701_v58  ;;  %v3157_v28 = vld [vmem:[%s16005_s3 + $0x3df8] sm:$0xff]  ;;  %v3138_v56 = vld [vmem:[%s16005_s3 + $0x3d60] sm:$0xff]  ;;  %v1316_v58 = vld [vmem:[%s16005_s3 + $0x470] sm:$0xff] }
 0x31a   :  { %4693 = vmatpush2.msra.mxu1 %v2092_v61  ;;  %4764 = vmatpush2.msra.mxu0 %v2700_v63  ;;  %v6546_v33 = vmax.f32 %v4273_v8, 0.0  ;;  %v3137_v60 = vld [vmem:[%s16005_s3 + $0x3d58] sm:$0xff]  ;;  %v1315_v61 = vld [vmem:[%s16005_s3 + $0x468] sm:$0xff]  ;;  %v1296_v8 = vld [vmem:[%s16005_s3 + $0x3d0] sm:$0xff] }
 0x31b   :  { %4695 = vmatmul.mubr.f32.vlgmr.msra.gmra.mxu1 %v8903_v32  ;;  %4766 = vmatmul.mubr.f32.vlgmr.msra.gmra.mxu0 %v9299_v6  ;;  %v3119_v63 = vld [vmem:[%s16005_s3 + $0x3cc8] sm:$0xff]  ;;  %v1297_v1 = vld [vmem:[%s16005_s3 + $0x3d8] sm:$0xff] }
 0x31c   :  { %4772 = vmatprep.subr.mxu1 %v3290_v5  ;;  %4843 = vmatprep.subr.mxu0 %v1468_v62  ;;  %v6582_v16 = vcombine.low %v6545_v9, %v6546_v33  ;;  %v3100_v5 = vld [vmem:[%s16005_s3 + $0x3c30] sm:$0xff]  ;;  %v1278_v62 = vld [vmem:[%s16005_s3 + $0x340] sm:$0xff]  ;;  %v1277_v9 = vld [vmem:[%s16005_s3 + $0x338] sm:$0xff] }
 0x31d   :  { %4773 = vmatpush1.msra.mxu1 %v3289_v10  ;;  %4836 = vmatprep.mubr.f32.mxu1 %v9512_v44  ;;  %v3081_v10 = vld [vmem:[%s16005_s3 + $0x3b98] sm:$0xff]  ;;  %v1259_v33 = vld [vmem:[%s16005_s3 + $0x2a8] sm:$0xff] }
 0x31e   :  { %4844 = vmatpush1.msra.mxu0 %v1467_v14  ;;  %4907 = vmatprep.mubr.f32.mxu0 %v8497_v4  ;;  %v6596_v20 = vrot.slane %v6582_v16, %v7230_v52  ;;  %v3080_v14 = vld [vmem:[%s16005_s3 + $0x3b90] sm:$0xff]  ;;  %v1258_v16 = vld [vmem:[%s16005_s3 + $0x2a0] sm:$0xff] }
 0x31f   :  { %4774 = vmatprep.subr.mxu1 %v3271_v17  ;;  %4845 = vmatprep.subr.mxu0 %v1449_v11  ;;  %v3062_v17 = vld [vmem:[%s16005_s3 + $0x3b00] sm:$0xff]  ;;  %v1240_v11 = vld [vmem:[%s16005_s3 + $0x210] sm:$0xff] }
 0x320   :  { %v6597_v27 = vcombine.low %v6589_v41, %v6596_v20  ;;  %4775 = vmatpush1.msra.mxu1 %v3270_v18  ;;  %4846 = vmatpush1.msra.mxu0 %v1448_v19  ;;  %v3061_v18 = vld [vmem:[%s16005_s3 + $0x3af8] sm:$0xff]  ;;  %v1239_v19 = vld [vmem:[%s16005_s3 + $0x208] sm:$0xff] }
 0x321   :  { %4776 = vmatprep.subr.mxu1 %v3252_v21  ;;  %4847 = vmatprep.subr.mxu0 %v1430_v23  ;;  %v3043_v41 = vld [vmem:[%s16005_s3 + $0x3a68] sm:$0xff]  ;;  %v1221_v20 = vld [vmem:[%s16005_s3 + $0x178] sm:$0xff]  ;;  %v3042_v21 = vld [vmem:[%s16005_s3 + $0x3a60] sm:$0xff] }
 0x322   :  { %6670 = vst [vmem:[#allocation2] sm:$0xff] %v6597_v27  ;;  %4777 = vmatpush1.msra.mxu1 %v3251_v26  ;;  %4848 = vmatpush1.msra.mxu0 %v1429_v12  ;;  %v1220_v23 = vld [vmem:[%s16005_s3 + $0x170] sm:$0xff]  ;;  %v1202_v12 = vld [vmem:[%s16005_s3 + $0xe0] sm:$0xff]  ;;  %v3023_v27 = vld [vmem:[%s16005_s3 + $0x39c8] sm:$0xff] }
 0x323   :  { %4778 = vmatprep.subr.mxu1 %v3233_v59  ;;  %4849 = vmatprep.subr.mxu0 %v1411_v39  ;;  %v3024_v26 = vld [vmem:[%s16005_s3 + $0x39d0] sm:$0xff]  ;;  %v1201_v59 = vld [vmem:[%s16005_s3 + $0xd8] sm:$0xff] }
 0x324   :  { %4779 = vmatpush1.msra.mxu1 %v3232_v34  ;;  %4850 = vmatpush1.msra.mxu0 %v1410_v35  ;;  %v3005_v39 = vld [vmem:[%s16005_s3 + $0x3938] sm:$0xff]  ;;  %v1183_v34 = vld [vmem:[%s16005_s3 + $0x48] sm:$0xff]  ;;  %v3004_v35 = vld [vmem:[%s16005_s3 + $0x3930] sm:$0xff] }
 0x325   :  { %4780 = vmatprep.subr.mxu1 %v3214_v37  ;;  %4851 = vmatprep.subr.mxu0 %v1392_v38  ;;  %v1182_v37 = vld [vmem:[%s16005_s3 + $0x40] sm:$0xff] }
 0x326   :  { %4781 = vmatpush1.msra.mxu1 %v3213_v40  ;;  %4852 = vmatpush1.msra.mxu0 %v1391_v42  ;;  %v3594_v38 = vld [vmem:[%s16005_s3 + $0x4ba0] sm:$0xff]  ;;  %v1772_v40 = vld [vmem:[%s16005_s3 + $0x12b0] sm:$0xff]  ;;  %v3593_v42 = vld [vmem:[%s16005_s3 + $0x4b98] sm:$0xff] }
 0x327   :  { %4782 = vmatprep.subr.mxu1 %v3195_v43  ;;  %4853 = vmatprep.subr.mxu0 %v1373_v24  ;;  %v1771_v43 = vld [vmem:[%s16005_s3 + $0x12a8] sm:$0xff] }
 0x328   :  { %4783 = vmatpush1.msra.mxu1 %v3194_v45  ;;  %4854 = vmatpush1.msra.mxu0 %v1372_v47  ;;  %v3575_v24 = vld [vmem:[%s16005_s3 + $0x4b08] sm:$0xff]  ;;  %v1753_v45 = vld [vmem:[%s16005_s3 + $0x1218] sm:$0xff]  ;;  %v3574_v47 = vld [vmem:[%s16005_s3 + $0x4b00] sm:$0xff] }
 0x329   :  { %4784 = vmatprep.subr.mxu1 %v3176_v48  ;;  %4855 = vmatprep.subr.mxu0 %v1354_v49  ;;  %v1752_v48 = vld [vmem:[%s16005_s3 + $0x1210] sm:$0xff] }
 0x32a   :  { %4785 = vmatpush1.msra.mxu1 %v3175_v50  ;;  %4856 = vmatpush1.msra.mxu0 %v1353_v51  ;;  %v3556_v49 = vld [vmem:[%s16005_s3 + $0x4a70] sm:$0xff]  ;;  %v1734_v50 = vld [vmem:[%s16005_s3 + $0x1180] sm:$0xff]  ;;  %v3555_v51 = vld [vmem:[%s16005_s3 + $0x4a68] sm:$0xff] }
 0x32b   :  { %4786 = vmatprep.subr.mxu1 %v3157_v28  ;;  %4857 = vmatprep.subr.mxu0 %v1335_v53  ;;  %v1733_v28 = vld [vmem:[%s16005_s3 + $0x1178] sm:$0xff] }
 0x32c   :  { %4787 = vmatpush1.msra.mxu1 %v3156_v54  ;;  %4858 = vmatpush1.msra.mxu0 %v1334_v55  ;;  %v3537_v53 = vld [vmem:[%s16005_s3 + $0x49d8] sm:$0xff]  ;;  %v1715_v54 = vld [vmem:[%s16005_s3 + $0x10e8] sm:$0xff]  ;;  %v3536_v55 = vld [vmem:[%s16005_s3 + $0x49d0] sm:$0xff] }
 0x32d   :  { %4788 = vmatprep.subr.mxu1 %v3138_v56  ;;  %4859 = vmatprep.subr.mxu0 %v1316_v58  ;;  %v1714_v56 = vld [vmem:[%s16005_s3 + $0x10e0] sm:$0xff] }
 0x32e   :  { %4789 = vmatpush1.msra.mxu1 %v3137_v60  ;;  %4860 = vmatpush1.msra.mxu0 %v1315_v61  ;;  %v3518_v58 = vld [vmem:[%s16005_s3 + $0x4940] sm:$0xff]  ;;  %v1696_v60 = vld [vmem:[%s16005_s3 + $0x1050] sm:$0xff]  ;;  %v3517_v61 = vld [vmem:[%s16005_s3 + $0x4938] sm:$0xff] }
 0x32f   :  { %4790 = vmatprep.subr.mxu1 %v3119_v63  ;;  %4861 = vmatprep.subr.mxu0 %v1297_v1  ;;  %v1695_v63 = vld [vmem:[%s16005_s3 + $0x1048] sm:$0xff] }
 0x330   :  { %4791 = vmatpush1.msra.mxu1 %v3118_v2  ;;  %4862 = vmatpush1.msra.mxu0 %v1296_v8  ;;  %v3499_v1 = vld [vmem:[%s16005_s3 + $0x48a8] sm:$0xff]  ;;  %v1677_v2 = vld [vmem:[%s16005_s3 + $0xfb8] sm:$0xff]  ;;  %v3498_v8 = vld [vmem:[%s16005_s3 + $0x48a0] sm:$0xff] }
 0x331   :  { %4792 = vmatprep.subr.mxu1 %v3100_v5  ;;  %4863 = vmatprep.subr.mxu0 %v1278_v62  ;;  %v1676_v5 = vld [vmem:[%s16005_s3 + $0xfb0] sm:$0xff] }
 0x332   :  { %4793 = vmatpush1.msra.mxu1 %v3099_v7  ;;  %4864 = vmatpush1.msra.mxu0 %v1277_v9  ;;  %v3480_v62 = vld [vmem:[%s16005_s3 + $0x4810] sm:$0xff]  ;;  %v1658_v7 = vld [vmem:[%s16005_s3 + $0xf20] sm:$0xff]  ;;  %v3479_v9 = vld [vmem:[%s16005_s3 + $0x4808] sm:$0xff] }
 0x333   :  { %4794 = vmatprep.subr.mxu1 %v3081_v10  ;;  %4865 = vmatprep.subr.mxu0 %v1259_v33  ;;  %v1657_v10 = vld [vmem:[%s16005_s3 + $0xf18] sm:$0xff] }
 0x334   :  { %4795 = vmatpush1.msra.mxu1 %v3080_v14  ;;  %4866 = vmatpush1.msra.mxu0 %v1258_v16  ;;  %v3461_v33 = vld [vmem:[%s16005_s3 + $0x4778] sm:$0xff]  ;;  %v1639_v14 = vld [vmem:[%s16005_s3 + $0xe88] sm:$0xff]  ;;  %v3460_v16 = vld [vmem:[%s16005_s3 + $0x4770] sm:$0xff] }
 0x335   :  { %4796 = vmatprep.subr.mxu1 %v3062_v17  ;;  %4867 = vmatprep.subr.mxu0 %v1240_v11  ;;  %v1638_v17 = vld [vmem:[%s16005_s3 + $0xe80] sm:$0xff] }
 0x336   :  { %4797 = vmatpush1.msra.mxu1 %v3061_v18  ;;  %4868 = vmatpush1.msra.mxu0 %v1239_v19  ;;  %v3442_v11 = vld [vmem:[%s16005_s3 + $0x46e0] sm:$0xff]  ;;  %v1620_v18 = vld [vmem:[%s16005_s3 + $0xdf0] sm:$0xff]  ;;  %v3441_v19 = vld [vmem:[%s16005_s3 + $0x46d8] sm:$0xff] }
 0x337   :  { %4798 = vmatprep.subr.mxu1 %v3043_v41  ;;  %4869 = vmatprep.subr.mxu0 %v1221_v20  ;;  %v1619_v41 = vld [vmem:[%s16005_s3 + $0xde8] sm:$0xff] }
 0x338   :  { %4799 = vmatpush1.msra.mxu1 %v3042_v21  ;;  %4870 = vmatpush1.msra.mxu0 %v1220_v23  ;;  %v3423_v20 = vld [vmem:[%s16005_s3 + $0x4648] sm:$0xff]  ;;  %v1601_v21 = vld [vmem:[%s16005_s3 + $0xd58] sm:$0xff]  ;;  %v3422_v23 = vld [vmem:[%s16005_s3 + $0x4640] sm:$0xff] }
 0x339   :  { %4800 = vmatprep.subr.mxu1 %v3024_v26  ;;  %4871 = vmatprep.subr.mxu0 %v1202_v12  ;;  %v1600_v26 = vld [vmem:[%s16005_s3 + $0xd50] sm:$0xff] }
 0x33a   :  { %4801 = vmatpush1.msra.mxu1 %v3023_v27  ;;  %4872 = vmatpush1.msra.mxu0 %v1201_v59  ;;  %v3404_v12 = vld [vmem:[%s16005_s3 + $0x45b0] sm:$0xff]  ;;  %v1582_v27 = vld [vmem:[%s16005_s3 + $0xcc0] sm:$0xff]  ;;  %v3403_v59 = vld [vmem:[%s16005_s3 + $0x45a8] sm:$0xff] }
 0x33b   :  { %4802 = vmatprep.subr.mxu1 %v3005_v39  ;;  %4873 = vmatprep.subr.mxu0 %v1183_v34  ;;  %v1581_v39 = vld [vmem:[%s16005_s3 + $0xcb8] sm:$0xff] }
 0x33c   :  { %4803 = vmatpush1.msra.mxu1 %v3004_v35  ;;  %4874 = vmatpush1.msra.mxu0 %v1182_v37  ;;  %v3385_v34 = vld [vmem:[%s16005_s3 + $0x4518] sm:$0xff]  ;;  %v1563_v35 = vld [vmem:[%s16005_s3 + $0xc28] sm:$0xff]  ;;  %v3384_v37 = vld [vmem:[%s16005_s3 + $0x4510] sm:$0xff] }
 0x33d   :  { %4804 = vmatprep.subr.mxu1 %v3594_v38  ;;  %4875 = vmatprep.subr.mxu0 %v1772_v40  ;;  %v1562_v38 = vld [vmem:[%s16005_s3 + $0xc20] sm:$0xff] }
 0x33e   :  { %4805 = vmatpush2.msra.mxu1 %v3593_v42  ;;  %4876 = vmatpush2.msra.mxu0 %v1771_v43  ;;  %v3366_v40 = vld [vmem:[%s16005_s3 + $0x4480] sm:$0xff]  ;;  %v1544_v42 = vld [vmem:[%s16005_s3 + $0xb90] sm:$0xff]  ;;  %v3365_v43 = vld [vmem:[%s16005_s3 + $0x4478] sm:$0xff] }
 0x33f   :  { %4806 = vmatprep.subr.mxu1 %v3575_v24  ;;  %4877 = vmatprep.subr.mxu0 %v1753_v45  ;;  %v1543_v24 = vld [vmem:[%s16005_s3 + $0xb88] sm:$0xff] }
 0x340   :  { %4807 = vmatpush2.msra.mxu1 %v3574_v47  ;;  %4878 = vmatpush2.msra.mxu0 %v1752_v48  ;;  %v3347_v45 = vld [vmem:[%s16005_s3 + $0x43e8] sm:$0xff]  ;;  %v1525_v47 = vld [vmem:[%s16005_s3 + $0xaf8] sm:$0xff]  ;;  %v3346_v48 = vld [vmem:[%s16005_s3 + $0x43e0] sm:$0xff] }
 0x341   :  { %4808 = vmatprep.subr.mxu1 %v3556_v49  ;;  %4879 = vmatprep.subr.mxu0 %v1734_v50  ;;  %v1524_v49 = vld [vmem:[%s16005_s3 + $0xaf0] sm:$0xff] }
 0x342   :  { %4809 = vmatpush2.msra.mxu1 %v3555_v51  ;;  %4880 = vmatpush2.msra.mxu0 %v1733_v28  ;;  %v3328_v50 = vld [vmem:[%s16005_s3 + $0x4350] sm:$0xff]  ;;  %v1506_v51 = vld [vmem:[%s16005_s3 + $0xa60] sm:$0xff]  ;;  %v3327_v28 = vld [vmem:[%s16005_s3 + $0x4348] sm:$0xff] }
 0x343   :  { %4810 = vmatprep.subr.mxu1 %v3537_v53  ;;  %4881 = vmatprep.subr.mxu0 %v1715_v54  ;;  %v1505_v53 = vld [vmem:[%s16005_s3 + $0xa58] sm:$0xff] }
 0x344   :  { %4811 = vmatpush2.msra.mxu1 %v3536_v55  ;;  %4882 = vmatpush2.msra.mxu0 %v1714_v56  ;;  %v3309_v54 = vld [vmem:[%s16005_s3 + $0x42b8] sm:$0xff]  ;;  %v1487_v55 = vld [vmem:[%s16005_s3 + $0x9c8] sm:$0xff]  ;;  %v3308_v56 = vld [vmem:[%s16005_s3 + $0x42b0] sm:$0xff] }
 0x345   :  { %4812 = vmatprep.subr.mxu1 %v3518_v58  ;;  %4883 = vmatprep.subr.mxu0 %v1696_v60  ;;  %v1486_v58 = vld [vmem:[%s16005_s3 + $0x9c0] sm:$0xff]  ;;  %v2076_v60 = vld [vmem:[%s16005_s3 + $0x1c30] sm:$0xff] }
 0x346   :  { %4813 = vmatpush2.msra.mxu1 %v3517_v61  ;;  %4884 = vmatpush2.msra.mxu0 %v1695_v63  ;;  %v2684_v61 = vld [vmem:[%s16005_s3 + $0x2f30] sm:$0xff]  ;;  %v2075_v63 = vld [vmem:[%s16005_s3 + $0x1c28] sm:$0xff] }
 0x347   :  { %4814 = vmatprep.subr.mxu1 %v3499_v1  ;;  %4885 = vmatprep.subr.mxu0 %v1677_v2  ;;  %v2683_v1 = vld [vmem:[%s16005_s3 + $0x2f28] sm:$0xff]  ;;  %v2057_v2 = vld [vmem:[%s16005_s3 + $0x1b98] sm:$0xff] }
 0x348   :  { %4815 = vmatpush2.msra.mxu1 %v3498_v8  ;;  %4886 = vmatpush2.msra.mxu0 %v1676_v5  ;;  %v2665_v8 = vld [vmem:[%s16005_s3 + $0x2e98] sm:$0xff]  ;;  %v2056_v5 = vld [vmem:[%s16005_s3 + $0x1b90] sm:$0xff] }
 0x349   :  { %4816 = vmatprep.subr.mxu1 %v3480_v62  ;;  %4887 = vmatprep.subr.mxu0 %v1658_v7  ;;  %v2664_v62 = vld [vmem:[%s16005_s3 + $0x2e90] sm:$0xff]  ;;  %v2038_v7 = vld [vmem:[%s16005_s3 + $0x1b00] sm:$0xff] }
 0x34a   :  { %4817 = vmatpush2.msra.mxu1 %v3479_v9  ;;  %4888 = vmatpush2.msra.mxu0 %v1657_v10  ;;  %v2646_v9 = vld [vmem:[%s16005_s3 + $0x2e00] sm:$0xff]  ;;  %v2037_v10 = vld [vmem:[%s16005_s3 + $0x1af8] sm:$0xff] }
 0x34b   :  { %4818 = vmatprep.subr.mxu1 %v3461_v33  ;;  %4889 = vmatprep.subr.mxu0 %v1639_v14  ;;  %v2645_v33 = vld [vmem:[%s16005_s3 + $0x2df8] sm:$0xff]  ;;  %v2019_v14 = vld [vmem:[%s16005_s3 + $0x1a68] sm:$0xff] }
 0x34c   :  { %4819 = vmatpush2.msra.mxu1 %v3460_v16  ;;  %4890 = vmatpush2.msra.mxu0 %v1638_v17  ;;  %v2627_v16 = vld [vmem:[%s16005_s3 + $0x2d68] sm:$0xff]  ;;  %v2018_v17 = vld [vmem:[%s16005_s3 + $0x1a60] sm:$0xff] }
 0x34d   :  { %4820 = vmatprep.subr.mxu1 %v3442_v11  ;;  %4891 = vmatprep.subr.mxu0 %v1620_v18  ;;  %v2626_v11 = vld [vmem:[%s16005_s3 + $0x2d60] sm:$0xff]  ;;  %v2000_v18 = vld [vmem:[%s16005_s3 + $0x19d0] sm:$0xff] }
 0x34e   :  { %4821 = vmatpush2.msra.mxu1 %v3441_v19  ;;  %4892 = vmatpush2.msra.mxu0 %v1619_v41  ;;  %v2608_v19 = vld [vmem:[%s16005_s3 + $0x2cd0] sm:$0xff]  ;;  %v1999_v41 = vld [vmem:[%s16005_s3 + $0x19c8] sm:$0xff] }
 0x34f   :  { %4822 = vmatprep.subr.mxu1 %v3423_v20  ;;  %4893 = vmatprep.subr.mxu0 %v1601_v21  ;;  %v2607_v20 = vld [vmem:[%s16005_s3 + $0x2cc8] sm:$0xff]  ;;  %v1981_v21 = vld [vmem:[%s16005_s3 + $0x1938] sm:$0xff] }
 0x350   :  { %4823 = vmatpush2.msra.mxu1 %v3422_v23  ;;  %4894 = vmatpush2.msra.mxu0 %v1600_v26  ;;  %v2589_v23 = vld [vmem:[%s16005_s3 + $0x2c38] sm:$0xff]  ;;  %v1980_v26 = vld [vmem:[%s16005_s3 + $0x1930] sm:$0xff] }
 0x351   :  { %4824 = vmatprep.subr.mxu1 %v3404_v12  ;;  %4895 = vmatprep.subr.mxu0 %v1582_v27  ;;  %v2588_v12 = vld [vmem:[%s16005_s3 + $0x2c30] sm:$0xff]  ;;  %v1962_v27 = vld [vmem:[%s16005_s3 + $0x18a0] sm:$0xff] }
 0x352   :  { %4825 = vmatpush2.msra.mxu1 %v3403_v59  ;;  %4896 = vmatpush2.msra.mxu0 %v1581_v39  ;;  %v2570_v59 = vld [vmem:[%s16005_s3 + $0x2ba0] sm:$0xff]  ;;  %v1961_v39 = vld [vmem:[%s16005_s3 + $0x1898] sm:$0xff] }
 0x353   :  { %4826 = vmatprep.subr.mxu1 %v3385_v34  ;;  %4897 = vmatprep.subr.mxu0 %v1563_v35  ;;  %v2569_v34 = vld [vmem:[%s16005_s3 + $0x2b98] sm:$0xff]  ;;  %v1943_v35 = vld [vmem:[%s16005_s3 + $0x1808] sm:$0xff] }
 0x354   :  { %4827 = vmatpush2.msra.mxu1 %v3384_v37  ;;  %4898 = vmatpush2.msra.mxu0 %v1562_v38  ;;  %v2551_v37 = vld [vmem:[%s16005_s3 + $0x2b08] sm:$0xff]  ;;  %v1942_v38 = vld [vmem:[%s16005_s3 + $0x1800] sm:$0xff] }
 0x355   :  { %4828 = vmatprep.subr.mxu1 %v3366_v40  ;;  %4899 = vmatprep.subr.mxu0 %v1544_v42  ;;  %v2550_v40 = vld [vmem:[%s16005_s3 + $0x2b00] sm:$0xff]  ;;  %v1924_v42 = vld [vmem:[%s16005_s3 + $0x1770] sm:$0xff] }
 0x356   :  { %4829 = vmatpush2.msra.mxu1 %v3365_v43  ;;  %4900 = vmatpush2.msra.mxu0 %v1543_v24  ;;  %v2532_v43 = vld [vmem:[%s16005_s3 + $0x2a70] sm:$0xff]  ;;  %v1923_v24 = vld [vmem:[%s16005_s3 + $0x1768] sm:$0xff] }
 0x357   :  { %4830 = vmatprep.subr.mxu1 %v3347_v45  ;;  %4901 = vmatprep.subr.mxu0 %v1525_v47  ;;  %v2531_v45 = vld [vmem:[%s16005_s3 + $0x2a68] sm:$0xff]  ;;  %v1905_v47 = vld [vmem:[%s16005_s3 + $0x16d8] sm:$0xff] }
 0x358   :  { %4831 = vmatpush2.msra.mxu1 %v3346_v48  ;;  %4902 = vmatpush2.msra.mxu0 %v1524_v49  ;;  %v2513_v48 = vld [vmem:[%s16005_s3 + $0x29d8] sm:$0xff]  ;;  %v1904_v49 = vld [vmem:[%s16005_s3 + $0x16d0] sm:$0xff] }
 0x359   :  { %4832 = vmatprep.subr.mxu1 %v3328_v50  ;;  %4903 = vmatprep.subr.mxu0 %v1506_v51  ;;  %v2512_v50 = vld [vmem:[%s16005_s3 + $0x29d0] sm:$0xff]  ;;  %v1886_v51 = vld [vmem:[%s16005_s3 + $0x1640] sm:$0xff] }
 0x35a   :  { %4833 = vmatpush2.msra.mxu1 %v3327_v28  ;;  %4904 = vmatpush2.msra.mxu0 %v1505_v53  ;;  %v2494_v28 = vld [vmem:[%s16005_s3 + $0x2940] sm:$0xff]  ;;  %v1885_v53 = vld [vmem:[%s16005_s3 + $0x1638] sm:$0xff] }
 0x35b   :  { %4834 = vmatprep.subr.mxu1 %v3309_v54  ;;  %4905 = vmatprep.subr.mxu0 %v1487_v55  ;;  %v2493_v54 = vld [vmem:[%s16005_s3 + $0x2938] sm:$0xff]  ;;  %v1867_v55 = vld [vmem:[%s16005_s3 + $0x15a8] sm:$0xff] }
 0x35c   :  { %4835 = vmatpush2.msra.mxu1 %v3308_v56  ;;  %4906 = vmatpush2.msra.mxu0 %v1486_v58  ;;  %v2475_v56 = vld [vmem:[%s16005_s3 + $0x28a8] sm:$0xff]  ;;  %v1866_v58 = vld [vmem:[%s16005_s3 + $0x15a0] sm:$0xff] }
 0x35d   :  { %4837 = vmatmul.mubr.f32.vlgmr.msra.gmra.mxu1 %v9518_v46  ;;  %4908 = vmatmul.mubr.f32.vlgmr.msra.gmra.mxu0 %v8883_v22 }
 0x35e   :  { %4914 = vmatprep.subr.mxu1 %v2076_v60  ;;  %4985 = vmatprep.subr.mxu0 %v2684_v61  ;;  %v2474_v60 = vld [vmem:[%s16005_s3 + $0x28a0] sm:$0xff]  ;;  %v1848_v61 = vld [vmem:[%s16005_s3 + $0x1510] sm:$0xff] }
 0x35f   :  { %4915 = vmatpush1.msra.mxu1 %v2075_v63  ;;  %4978 = vmatprep.mubr.f32.mxu1 %v8898_v29  ;;  %v2456_v63 = vld [vmem:[%s16005_s3 + $0x2810] sm:$0xff] }
 0x360   :  { %4986 = vmatpush1.msra.mxu0 %v2683_v1  ;;  %5049 = vmatprep.mubr.f32.mxu0 %v9297_v3  ;;  %v1847_v1 = vld [vmem:[%s16005_s3 + $0x1508] sm:$0xff] }
 0x361   :  { %4916 = vmatprep.subr.mxu1 %v2057_v2  ;;  %4987 = vmatprep.subr.mxu0 %v2665_v8  ;;  %v2455_v2 = vld [vmem:[%s16005_s3 + $0x2808] sm:$0xff]  ;;  %v1829_v8 = vld [vmem:[%s16005_s3 + $0x1478] sm:$0xff] }
 0x362   :  { %4917 = vmatpush1.msra.mxu1 %v2056_v5  ;;  %4988 = vmatpush1.msra.mxu0 %v2664_v62  ;;  %v2437_v5 = vld [vmem:[%s16005_s3 + $0x2778] sm:$0xff]  ;;  %v1828_v62 = vld [vmem:[%s16005_s3 + $0x1470] sm:$0xff] }
 0x363   :  { %4918 = vmatprep.subr.mxu1 %v2038_v7  ;;  %4989 = vmatprep.subr.mxu0 %v2646_v9  ;;  %v2436_v7 = vld [vmem:[%s16005_s3 + $0x2770] sm:$0xff]  ;;  %v1810_v9 = vld [vmem:[%s16005_s3 + $0x13e0] sm:$0xff] }
 0x364   :  { %4919 = vmatpush1.msra.mxu1 %v2037_v10  ;;  %4990 = vmatpush1.msra.mxu0 %v2645_v33  ;;  %v2418_v10 = vld [vmem:[%s16005_s3 + $0x26e0] sm:$0xff]  ;;  %v1809_v33 = vld [vmem:[%s16005_s3 + $0x13d8] sm:$0xff] }
 0x365   :  { %4920 = vmatprep.subr.mxu1 %v2019_v14  ;;  %4991 = vmatprep.subr.mxu0 %v2627_v16  ;;  %v2417_v14 = vld [vmem:[%s16005_s3 + $0x26d8] sm:$0xff]  ;;  %v1791_v16 = vld [vmem:[%s16005_s3 + $0x1348] sm:$0xff] }
 0x366   :  { %4921 = vmatpush1.msra.mxu1 %v2018_v17  ;;  %4992 = vmatpush1.msra.mxu0 %v2626_v11  ;;  %v2399_v17 = vld [vmem:[%s16005_s3 + $0x2648] sm:$0xff]  ;;  %v1790_v11 = vld [vmem:[%s16005_s3 + $0x1340] sm:$0xff] }
 0x367   :  { %4922 = vmatprep.subr.mxu1 %v2000_v18  ;;  %4993 = vmatprep.subr.mxu0 %v2608_v19  ;;  %v2398_v18 = vld [vmem:[%s16005_s3 + $0x2640] sm:$0xff]  ;;  %v2380_v19 = vld [vmem:[%s16005_s3 + $0x25b0] sm:$0xff] }
 0x368   :  { %4923 = vmatpush1.msra.mxu1 %v1999_v41  ;;  %4994 = vmatpush1.msra.mxu0 %v2607_v20  ;;  %v2988_v41 = vld [vmem:[%s16005_s3 + $0x38b0] sm:$0xff]  ;;  %v2379_v20 = vld [vmem:[%s16005_s3 + $0x25a8] sm:$0xff] }
 0x369   :  { %4924 = vmatprep.subr.mxu1 %v1981_v21  ;;  %4995 = vmatprep.subr.mxu0 %v2589_v23  ;;  %v2987_v21 = vld [vmem:[%s16005_s3 + $0x38a8] sm:$0xff]  ;;  %v2361_v23 = vld [vmem:[%s16005_s3 + $0x2518] sm:$0xff] }
 0x36a   :  { %4925 = vmatpush1.msra.mxu1 %v1980_v26  ;;  %4996 = vmatpush1.msra.mxu0 %v2588_v12  ;;  %v2969_v26 = vld [vmem:[%s16005_s3 + $0x3818] sm:$0xff]  ;;  %v2360_v12 = vld [vmem:[%s16005_s3 + $0x2510] sm:$0xff] }
 0x36b   :  { %4926 = vmatprep.subr.mxu1 %v1962_v27  ;;  %4997 = vmatprep.subr.mxu0 %v2570_v59  ;;  %v2968_v27 = vld [vmem:[%s16005_s3 + $0x3810] sm:$0xff]  ;;  %v2342_v59 = vld [vmem:[%s16005_s3 + $0x2480] sm:$0xff] }
 0x36c   :  { %4927 = vmatpush1.msra.mxu1 %v1961_v39  ;;  %4998 = vmatpush1.msra.mxu0 %v2569_v34  ;;  %v2950_v39 = vld [vmem:[%s16005_s3 + $0x3780] sm:$0xff]  ;;  %v2341_v34 = vld [vmem:[%s16005_s3 + $0x2478] sm:$0xff] }
 0x36d   :  { %4928 = vmatprep.subr.mxu1 %v1943_v35  ;;  %4999 = vmatprep.subr.mxu0 %v2551_v37  ;;  %v2949_v35 = vld [vmem:[%s16005_s3 + $0x3778] sm:$0xff]  ;;  %v2323_v37 = vld [vmem:[%s16005_s3 + $0x23e8] sm:$0xff] }
 0x36e   :  { %4929 = vmatpush1.msra.mxu1 %v1942_v38  ;;  %5000 = vmatpush1.msra.mxu0 %v2550_v40  ;;  %v2931_v38 = vld [vmem:[%s16005_s3 + $0x36e8] sm:$0xff]  ;;  %v2322_v40 = vld [vmem:[%s16005_s3 + $0x23e0] sm:$0xff] }
 0x36f   :  { %4930 = vmatprep.subr.mxu1 %v1924_v42  ;;  %5001 = vmatprep.subr.mxu0 %v2532_v43  ;;  %v2930_v42 = vld [vmem:[%s16005_s3 + $0x36e0] sm:$0xff]  ;;  %v2304_v43 = vld [vmem:[%s16005_s3 + $0x2350] sm:$0xff] }
 0x370   :  { %4931 = vmatpush1.msra.mxu1 %v1923_v24  ;;  %5002 = vmatpush1.msra.mxu0 %v2531_v45  ;;  %v2912_v24 = vld [vmem:[%s16005_s3 + $0x3650] sm:$0xff]  ;;  %v2303_v45 = vld [vmem:[%s16005_s3 + $0x2348] sm:$0xff] }
 0x371   :  { %4932 = vmatprep.subr.mxu1 %v1905_v47  ;;  %5003 = vmatprep.subr.mxu0 %v2513_v48  ;;  %v2911_v47 = vld [vmem:[%s16005_s3 + $0x3648] sm:$0xff]  ;;  %v2285_v48 = vld [vmem:[%s16005_s3 + $0x22b8] sm:$0xff] }
 0x372   :  { %4933 = vmatpush1.msra.mxu1 %v1904_v49  ;;  %5004 = vmatpush1.msra.mxu0 %v2512_v50  ;;  %v2893_v49 = vld [vmem:[%s16005_s3 + $0x35b8] sm:$0xff]  ;;  %v2284_v50 = vld [vmem:[%s16005_s3 + $0x22b0] sm:$0xff] }
 0x373   :  { %4934 = vmatprep.subr.mxu1 %v1886_v51  ;;  %5005 = vmatprep.subr.mxu0 %v2494_v28  ;;  %v2892_v51 = vld [vmem:[%s16005_s3 + $0x35b0] sm:$0xff]  ;;  %v2266_v28 = vld [vmem:[%s16005_s3 + $0x2220] sm:$0xff] }
 0x374   :  { %4935 = vmatpush1.msra.mxu1 %v1885_v53  ;;  %5006 = vmatpush1.msra.mxu0 %v2493_v54  ;;  %v2874_v53 = vld [vmem:[%s16005_s3 + $0x3520] sm:$0xff]  ;;  %v2265_v54 = vld [vmem:[%s16005_s3 + $0x2218] sm:$0xff] }
 0x375   :  { %4936 = vmatprep.subr.mxu1 %v1867_v55  ;;  %5007 = vmatprep.subr.mxu0 %v2475_v56  ;;  %v2873_v55 = vld [vmem:[%s16005_s3 + $0x3518] sm:$0xff]  ;;  %v2247_v56 = vld [vmem:[%s16005_s3 + $0x2188] sm:$0xff] }
 0x376   :  { %4937 = vmatpush1.msra.mxu1 %v1866_v58  ;;  %5008 = vmatpush1.msra.mxu0 %v2474_v60  ;;  %v2855_v58 = vld [vmem:[%s16005_s3 + $0x3488] sm:$0xff]  ;;  %v2246_v60 = vld [vmem:[%s16005_s3 + $0x2180] sm:$0xff] }
 0x377   :  { %4938 = vmatprep.subr.mxu1 %v1848_v61  ;;  %5009 = vmatprep.subr.mxu0 %v2456_v63  ;;  %v2854_v61 = vld [vmem:[%s16005_s3 + $0x3480] sm:$0xff]  ;;  %v2228_v63 = vld [vmem:[%s16005_s3 + $0x20f0] sm:$0xff] }
 0x378   :  { %4939 = vmatpush1.msra.mxu1 %v1847_v1  ;;  %5010 = vmatpush1.msra.mxu0 %v2455_v2  ;;  %v2836_v1 = vld [vmem:[%s16005_s3 + $0x33f0] sm:$0xff]  ;;  %v2227_v2 = vld [vmem:[%s16005_s3 + $0x20e8] sm:$0xff] }
 0x379   :  { %4940 = vmatprep.subr.mxu1 %v1829_v8  ;;  %5011 = vmatprep.subr.mxu0 %v2437_v5  ;;  %v2835_v8 = vld [vmem:[%s16005_s3 + $0x33e8] sm:$0xff]  ;;  %v2209_v5 = vld [vmem:[%s16005_s3 + $0x2058] sm:$0xff] }
 0x37a   :  { %4941 = vmatpush1.msra.mxu1 %v1828_v62  ;;  %5012 = vmatpush1.msra.mxu0 %v2436_v7  ;;  %v2817_v62 = vld [vmem:[%s16005_s3 + $0x3358] sm:$0xff]  ;;  %v2208_v7 = vld [vmem:[%s16005_s3 + $0x2050] sm:$0xff] }
 0x37b   :  { %4942 = vmatprep.subr.mxu1 %v1810_v9  ;;  %5013 = vmatprep.subr.mxu0 %v2418_v10  ;;  %v2816_v9 = vld [vmem:[%s16005_s3 + $0x3350] sm:$0xff]  ;;  %v2190_v10 = vld [vmem:[%s16005_s3 + $0x1fc0] sm:$0xff] }
 0x37c   :  { %4943 = vmatpush1.msra.mxu1 %v1809_v33  ;;  %5014 = vmatpush1.msra.mxu0 %v2417_v14  ;;  %v2798_v33 = vld [vmem:[%s16005_s3 + $0x32c0] sm:$0xff]  ;;  %v2189_v14 = vld [vmem:[%s16005_s3 + $0x1fb8] sm:$0xff] }
 0x37d   :  { %4944 = vmatprep.subr.mxu1 %v1791_v16  ;;  %5015 = vmatprep.subr.mxu0 %v2399_v17  ;;  %v2797_v16 = vld [vmem:[%s16005_s3 + $0x32b8] sm:$0xff]  ;;  %v2171_v17 = vld [vmem:[%s16005_s3 + $0x1f28] sm:$0xff] }
 0x37e   :  { %4945 = vmatpush1.msra.mxu1 %v1790_v11  ;;  %5016 = vmatpush1.msra.mxu0 %v2398_v18  ;;  %v2779_v11 = vld [vmem:[%s16005_s3 + $0x3228] sm:$0xff]  ;;  %v2170_v18 = vld [vmem:[%s16005_s3 + $0x1f20] sm:$0xff] }
 0x37f   :  { %4946 = vmatprep.subr.mxu1 %v2380_v19  ;;  %5017 = vmatprep.subr.mxu0 %v2988_v41  ;;  %v2778_v19 = vld [vmem:[%s16005_s3 + $0x3220] sm:$0xff]  ;;  %v2152_v41 = vld [vmem:[%s16005_s3 + $0x1e90] sm:$0xff] }
 0x380   :  { %4947 = vmatpush2.msra.mxu1 %v2379_v20  ;;  %5018 = vmatpush2.msra.mxu0 %v2987_v21  ;;  %v2760_v20 = vld [vmem:[%s16005_s3 + $0x3190] sm:$0xff]  ;;  %v2151_v21 = vld [vmem:[%s16005_s3 + $0x1e88] sm:$0xff] }
 0x381   :  { %4948 = vmatprep.subr.mxu1 %v2361_v23  ;;  %5019 = vmatprep.subr.mxu0 %v2969_v26  ;;  %v2759_v23 = vld [vmem:[%s16005_s3 + $0x3188] sm:$0xff]  ;;  %v2133_v26 = vld [vmem:[%s16005_s3 + $0x1df8] sm:$0xff] }
 0x382   :  { %4949 = vmatpush2.msra.mxu1 %v2360_v12  ;;  %5020 = vmatpush2.msra.mxu0 %v2968_v27  ;;  %v2741_v12 = vld [vmem:[%s16005_s3 + $0x30f8] sm:$0xff]  ;;  %v2132_v27 = vld [vmem:[%s16005_s3 + $0x1df0] sm:$0xff] }
 0x383   :  { %4950 = vmatprep.subr.mxu1 %v2342_v59  ;;  %5021 = vmatprep.subr.mxu0 %v2950_v39  ;;  %v2740_v59 = vld [vmem:[%s16005_s3 + $0x30f0] sm:$0xff]  ;;  %v2114_v39 = vld [vmem:[%s16005_s3 + $0x1d60] sm:$0xff] }
 0x384   :  { %4951 = vmatpush2.msra.mxu1 %v2341_v34  ;;  %5022 = vmatpush2.msra.mxu0 %v2949_v35  ;;  %v2722_v34 = vld [vmem:[%s16005_s3 + $0x3060] sm:$0xff]  ;;  %v2113_v35 = vld [vmem:[%s16005_s3 + $0x1d58] sm:$0xff] }
 0x385   :  { %4952 = vmatprep.subr.mxu1 %v2323_v37  ;;  %5023 = vmatprep.subr.mxu0 %v2931_v38  ;;  %v2721_v37 = vld [vmem:[%s16005_s3 + $0x3058] sm:$0xff]  ;;  %v2095_v38 = vld [vmem:[%s16005_s3 + $0x1cc8] sm:$0xff] }
 0x386   :  { %4953 = vmatpush2.msra.mxu1 %v2322_v40  ;;  %5024 = vmatpush2.msra.mxu0 %v2930_v42  ;;  %v2703_v40 = vld [vmem:[%s16005_s3 + $0x2fc8] sm:$0xff]  ;;  %v2094_v42 = vld [vmem:[%s16005_s3 + $0x1cc0] sm:$0xff] }
 0x387   :  { %4954 = vmatprep.subr.mxu1 %v2304_v43  ;;  %5025 = vmatprep.subr.mxu0 %v2912_v24  ;;  %v2702_v43 = vld [vmem:[%s16005_s3 + $0x2fc0] sm:$0xff]  ;;  %v3292_v24 = vld [vmem:[%s16005_s3 + $0x4230] sm:$0xff] }
 0x388   :  { %4955 = vmatpush2.msra.mxu1 %v2303_v45  ;;  %5026 = vmatpush2.msra.mxu0 %v2911_v47  ;;  %v1470_v45 = vld [vmem:[%s16005_s3 + $0x940] sm:$0xff]  ;;  %v3291_v47 = vld [vmem:[%s16005_s3 + $0x4228] sm:$0xff] }
 0x389   :  { %4956 = vmatprep.subr.mxu1 %v2285_v48  ;;  %5027 = vmatprep.subr.mxu0 %v2893_v49  ;;  %v1469_v48 = vld [vmem:[%s16005_s3 + $0x938] sm:$0xff] }
 0x38a   :  { %4957 = vmatpush2.msra.mxu1 %v2284_v50  ;;  %5028 = vmatpush2.msra.mxu0 %v2892_v51  ;;  %v3273_v49 = vld [vmem:[%s16005_s3 + $0x4198] sm:$0xff]  ;;  %v1451_v50 = vld [vmem:[%s16005_s3 + $0x8a8] sm:$0xff]  ;;  %v3272_v51 = vld [vmem:[%s16005_s3 + $0x4190] sm:$0xff] }
 0x38b   :  { %4958 = vmatprep.subr.mxu1 %v2266_v28  ;;  %5029 = vmatprep.subr.mxu0 %v2874_v53  ;;  %v1450_v28 = vld [vmem:[%s16005_s3 + $0x8a0] sm:$0xff] }
 0x38c   :  { %4959 = vmatpush2.msra.mxu1 %v2265_v54  ;;  %5030 = vmatpush2.msra.mxu0 %v2873_v55  ;;  %v3254_v53 = vld [vmem:[%s16005_s3 + $0x4100] sm:$0xff]  ;;  %v1432_v54 = vld [vmem:[%s16005_s3 + $0x810] sm:$0xff]  ;;  %v3253_v55 = vld [vmem:[%s16005_s3 + $0x40f8] sm:$0xff] }
 0x38d   :  { %4960 = vmatprep.subr.mxu1 %v2247_v56  ;;  %5031 = vmatprep.subr.mxu0 %v2855_v58  ;;  %v1431_v56 = vld [vmem:[%s16005_s3 + $0x808] sm:$0xff] }
 0x38e   :  { %4961 = vmatpush2.msra.mxu1 %v2246_v60  ;;  %5032 = vmatpush2.msra.mxu0 %v2854_v61  ;;  %v3235_v58 = vld [vmem:[%s16005_s3 + $0x4068] sm:$0xff]  ;;  %v1413_v60 = vld [vmem:[%s16005_s3 + $0x778] sm:$0xff]  ;;  %v3234_v61 = vld [vmem:[%s16005_s3 + $0x4060] sm:$0xff] }
 0x38f   :  { %4962 = vmatprep.subr.mxu1 %v2228_v63  ;;  %5033 = vmatprep.subr.mxu0 %v2836_v1  ;;  %v1412_v63 = vld [vmem:[%s16005_s3 + $0x770] sm:$0xff] }
 0x390   :  { %4963 = vmatpush2.msra.mxu1 %v2227_v2  ;;  %5034 = vmatpush2.msra.mxu0 %v2835_v8  ;;  %v3216_v1 = vld [vmem:[%s16005_s3 + $0x3fd0] sm:$0xff]  ;;  %v1394_v2 = vld [vmem:[%s16005_s3 + $0x6e0] sm:$0xff]  ;;  %v3215_v8 = vld [vmem:[%s16005_s3 + $0x3fc8] sm:$0xff] }
 0x391   :  { %4964 = vmatprep.subr.mxu1 %v2209_v5  ;;  %5035 = vmatprep.subr.mxu0 %v2817_v62  ;;  %v1393_v5 = vld [vmem:[%s16005_s3 + $0x6d8] sm:$0xff] }
 0x392   :  { %4965 = vmatpush2.msra.mxu1 %v2208_v7  ;;  %5036 = vmatpush2.msra.mxu0 %v2816_v9  ;;  %v3197_v62 = vld [vmem:[%s16005_s3 + $0x3f38] sm:$0xff]  ;;  %v1375_v7 = vld [vmem:[%s16005_s3 + $0x648] sm:$0xff]  ;;  %v3196_v9 = vld [vmem:[%s16005_s3 + $0x3f30] sm:$0xff] }
 0x393   :  { %4966 = vmatprep.subr.mxu1 %v2190_v10  ;;  %5037 = vmatprep.subr.mxu0 %v2798_v33  ;;  %v1374_v10 = vld [vmem:[%s16005_s3 + $0x640] sm:$0xff] }
 0x394   :  { %4967 = vmatpush2.msra.mxu1 %v2189_v14  ;;  %5038 = vmatpush2.msra.mxu0 %v2797_v16  ;;  %v3178_v33 = vld [vmem:[%s16005_s3 + $0x3ea0] sm:$0xff]  ;;  %v1356_v14 = vld [vmem:[%s16005_s3 + $0x5b0] sm:$0xff]  ;;  %v3177_v16 = vld [vmem:[%s16005_s3 + $0x3e98] sm:$0xff] }
 0x395   :  { %4968 = vmatprep.subr.mxu1 %v2171_v17  ;;  %5039 = vmatprep.subr.mxu0 %v2779_v11  ;;  %v1355_v17 = vld [vmem:[%s16005_s3 + $0x5a8] sm:$0xff] }
 0x396   :  { %4969 = vmatpush2.msra.mxu1 %v2170_v18  ;;  %5040 = vmatpush2.msra.mxu0 %v2778_v19  ;;  %v3159_v11 = vld [vmem:[%s16005_s3 + $0x3e08] sm:$0xff]  ;;  %v1337_v18 = vld [vmem:[%s16005_s3 + $0x518] sm:$0xff]  ;;  %v3158_v19 = vld [vmem:[%s16005_s3 + $0x3e00] sm:$0xff] }
 0x397   :  { %4970 = vmatprep.subr.mxu1 %v2152_v41  ;;  %5041 = vmatprep.subr.mxu0 %v2760_v20  ;;  %v1336_v41 = vld [vmem:[%s16005_s3 + $0x510] sm:$0xff] }
 0x398   :  { %4971 = vmatpush2.msra.mxu1 %v2151_v21  ;;  %5042 = vmatpush2.msra.mxu0 %v2759_v23  ;;  %v3140_v20 = vld [vmem:[%s16005_s3 + $0x3d70] sm:$0xff]  ;;  %v1318_v21 = vld [vmem:[%s16005_s3 + $0x480] sm:$0xff]  ;;  %v3139_v23 = vld [vmem:[%s16005_s3 + $0x3d68] sm:$0xff] }
 0x399   :  { %4972 = vmatprep.subr.mxu1 %v2133_v26  ;;  %5043 = vmatprep.subr.mxu0 %v2741_v12  ;;  %v1317_v26 = vld [vmem:[%s16005_s3 + $0x478] sm:$0xff] }
 0x39a   :  { %4973 = vmatpush2.msra.mxu1 %v2132_v27  ;;  %5044 = vmatpush2.msra.mxu0 %v2740_v59  ;;  %v3121_v12 = vld [vmem:[%s16005_s3 + $0x3cd8] sm:$0xff]  ;;  %v1299_v27 = vld [vmem:[%s16005_s3 + $0x3e8] sm:$0xff]  ;;  %v3120_v59 = vld [vmem:[%s16005_s3 + $0x3cd0] sm:$0xff] }
 0x39b   :  { %4974 = vmatprep.subr.mxu1 %v2114_v39  ;;  %5045 = vmatprep.subr.mxu0 %v2722_v34  ;;  %v1298_v39 = vld [vmem:[%s16005_s3 + $0x3e0] sm:$0xff] }
 0x39c   :  { %4975 = vmatpush2.msra.mxu1 %v2113_v35  ;;  %5046 = vmatpush2.msra.mxu0 %v2721_v37  ;;  %v3102_v34 = vld [vmem:[%s16005_s3 + $0x3c40] sm:$0xff]  ;;  %v1280_v35 = vld [vmem:[%s16005_s3 + $0x350] sm:$0xff]  ;;  %v3101_v37 = vld [vmem:[%s16005_s3 + $0x3c38] sm:$0xff] }
 0x39d   :  { %4976 = vmatprep.subr.mxu1 %v2095_v38  ;;  %5047 = vmatprep.subr.mxu0 %v2703_v40  ;;  %v1279_v38 = vld [vmem:[%s16005_s3 + $0x348] sm:$0xff] }
 0x39e   :  { %4977 = vmatpush2.msra.mxu1 %v2094_v42  ;;  %5048 = vmatpush2.msra.mxu0 %v2702_v43  ;;  %v3083_v40 = vld [vmem:[%s16005_s3 + $0x3ba8] sm:$0xff]  ;;  %v1261_v42 = vld [vmem:[%s16005_s3 + $0x2b8] sm:$0xff]  ;;  %v3082_v43 = vld [vmem:[%s16005_s3 + $0x3ba0] sm:$0xff] }
 0x39f   :  { %4979 = vmatmul.mubr.f32.vlgmr.msra.gmra.mxu1 %v8903_v32  ;;  %5050 = vmatmul.mubr.f32.vlgmr.msra.gmra.mxu0 %v9299_v6 }
 0x3a0   :  { %5056 = vmatprep.subr.mxu1 %v3292_v24  ;;  %5127 = vmatprep.subr.mxu0 %v1470_v45  ;;  %v1260_v24 = vld [vmem:[%s16005_s3 + $0x2b0] sm:$0xff] }
 0x3a1   :  { %5057 = vmatpush1.msra.mxu1 %v3291_v47  ;;  %5120 = vmatprep.mubr.f32.mxu1 %v9512_v44  ;;  %v3064_v45 = vld [vmem:[%s16005_s3 + $0x3b10] sm:$0xff]  ;;  %v1242_v47 = vld [vmem:[%s16005_s3 + $0x220] sm:$0xff] }
 0x3a2   :  { %5128 = vmatpush1.msra.mxu0 %v1469_v48  ;;  %5191 = vmatprep.mubr.f32.mxu0 %v8497_v4  ;;  %v3063_v48 = vld [vmem:[%s16005_s3 + $0x3b08] sm:$0xff] }
 0x3a3   :  { %5058 = vmatprep.subr.mxu1 %v3273_v49  ;;  %5129 = vmatprep.subr.mxu0 %v1451_v50  ;;  %v1241_v49 = vld [vmem:[%s16005_s3 + $0x218] sm:$0xff] }
 0x3a4   :  { %5059 = vmatpush1.msra.mxu1 %v3272_v51  ;;  %5130 = vmatpush1.msra.mxu0 %v1450_v28  ;;  %v3045_v50 = vld [vmem:[%s16005_s3 + $0x3a78] sm:$0xff]  ;;  %v1223_v51 = vld [vmem:[%s16005_s3 + $0x188] sm:$0xff]  ;;  %v3044_v28 = vld [vmem:[%s16005_s3 + $0x3a70] sm:$0xff] }
 0x3a5   :  { %5060 = vmatprep.subr.mxu1 %v3254_v53  ;;  %5131 = vmatprep.subr.mxu0 %v1432_v54  ;;  %v1222_v53 = vld [vmem:[%s16005_s3 + $0x180] sm:$0xff] }
 0x3a6   :  { %5061 = vmatpush1.msra.mxu1 %v3253_v55  ;;  %5132 = vmatpush1.msra.mxu0 %v1431_v56  ;;  %v3026_v54 = vld [vmem:[%s16005_s3 + $0x39e0] sm:$0xff]  ;;  %v1204_v55 = vld [vmem:[%s16005_s3 + $0xf0] sm:$0xff]  ;;  %v3025_v56 = vld [vmem:[%s16005_s3 + $0x39d8] sm:$0xff] }
 0x3a7   :  { %5062 = vmatprep.subr.mxu1 %v3235_v58  ;;  %5133 = vmatprep.subr.mxu0 %v1413_v60  ;;  %v1203_v58 = vld [vmem:[%s16005_s3 + $0xe8] sm:$0xff] }
 0x3a8   :  { %5063 = vmatpush1.msra.mxu1 %v3234_v61  ;;  %5134 = vmatpush1.msra.mxu0 %v1412_v63  ;;  %v3007_v60 = vld [vmem:[%s16005_s3 + $0x3948] sm:$0xff]  ;;  %v1185_v61 = vld [vmem:[%s16005_s3 + $0x58] sm:$0xff]  ;;  %v3006_v63 = vld [vmem:[%s16005_s3 + $0x3940] sm:$0xff] }
 0x3a9   :  { %5064 = vmatprep.subr.mxu1 %v3216_v1  ;;  %5135 = vmatprep.subr.mxu0 %v1394_v2  ;;  %v1184_v1 = vld [vmem:[%s16005_s3 + $0x50] sm:$0xff] }
 0x3aa   :  { %5065 = vmatpush1.msra.mxu1 %v3215_v8  ;;  %5136 = vmatpush1.msra.mxu0 %v1393_v5  ;;  %v3596_v2 = vld [vmem:[%s16005_s3 + $0x4bb0] sm:$0xff]  ;;  %v1774_v8 = vld [vmem:[%s16005_s3 + $0x12c0] sm:$0xff]  ;;  %v3595_v5 = vld [vmem:[%s16005_s3 + $0x4ba8] sm:$0xff] }
 0x3ab   :  { %5066 = vmatprep.subr.mxu1 %v3197_v62  ;;  %5137 = vmatprep.subr.mxu0 %v1375_v7  ;;  %v1773_v62 = vld [vmem:[%s16005_s3 + $0x12b8] sm:$0xff] }
 0x3ac   :  { %5067 = vmatpush1.msra.mxu1 %v3196_v9  ;;  %5138 = vmatpush1.msra.mxu0 %v1374_v10  ;;  %v3577_v7 = vld [vmem:[%s16005_s3 + $0x4b18] sm:$0xff]  ;;  %v1755_v9 = vld [vmem:[%s16005_s3 + $0x1228] sm:$0xff]  ;;  %v3576_v10 = vld [vmem:[%s16005_s3 + $0x4b10] sm:$0xff] }
 0x3ad   :  { %5068 = vmatprep.subr.mxu1 %v3178_v33  ;;  %5139 = vmatprep.subr.mxu0 %v1356_v14  ;;  %v1754_v33 = vld [vmem:[%s16005_s3 + $0x1220] sm:$0xff] }
 0x3ae   :  { %5069 = vmatpush1.msra.mxu1 %v3177_v16  ;;  %5140 = vmatpush1.msra.mxu0 %v1355_v17  ;;  %v3558_v14 = vld [vmem:[%s16005_s3 + $0x4a80] sm:$0xff]  ;;  %v1736_v16 = vld [vmem:[%s16005_s3 + $0x1190] sm:$0xff]  ;;  %v3557_v17 = vld [vmem:[%s16005_s3 + $0x4a78] sm:$0xff] }
 0x3af   :  { %5070 = vmatprep.subr.mxu1 %v3159_v11  ;;  %5141 = vmatprep.subr.mxu0 %v1337_v18  ;;  %v1735_v11 = vld [vmem:[%s16005_s3 + $0x1188] sm:$0xff] }
 0x3b0   :  { %5071 = vmatpush1.msra.mxu1 %v3158_v19  ;;  %5142 = vmatpush1.msra.mxu0 %v1336_v41  ;;  %v3539_v18 = vld [vmem:[%s16005_s3 + $0x49e8] sm:$0xff]  ;;  %v1717_v19 = vld [vmem:[%s16005_s3 + $0x10f8] sm:$0xff]  ;;  %v3538_v41 = vld [vmem:[%s16005_s3 + $0x49e0] sm:$0xff] }
 0x3b1   :  { %5072 = vmatprep.subr.mxu1 %v3140_v20  ;;  %5143 = vmatprep.subr.mxu0 %v1318_v21  ;;  %v1716_v20 = vld [vmem:[%s16005_s3 + $0x10f0] sm:$0xff] }
 0x3b2   :  { %5073 = vmatpush1.msra.mxu1 %v3139_v23  ;;  %5144 = vmatpush1.msra.mxu0 %v1317_v26  ;;  %v3520_v21 = vld [vmem:[%s16005_s3 + $0x4950] sm:$0xff]  ;;  %v1698_v23 = vld [vmem:[%s16005_s3 + $0x1060] sm:$0xff]  ;;  %v3519_v26 = vld [vmem:[%s16005_s3 + $0x4948] sm:$0xff] }
 0x3b3   :  { %5074 = vmatprep.subr.mxu1 %v3121_v12  ;;  %5145 = vmatprep.subr.mxu0 %v1299_v27  ;;  %v1697_v12 = vld [vmem:[%s16005_s3 + $0x1058] sm:$0xff] }
 0x3b4   :  { %5075 = vmatpush1.msra.mxu1 %v3120_v59  ;;  %5146 = vmatpush1.msra.mxu0 %v1298_v39  ;;  %v3501_v27 = vld [vmem:[%s16005_s3 + $0x48b8] sm:$0xff]  ;;  %v1679_v59 = vld [vmem:[%s16005_s3 + $0xfc8] sm:$0xff]  ;;  %v3500_v39 = vld [vmem:[%s16005_s3 + $0x48b0] sm:$0xff] }
 0x3b5   :  { %5076 = vmatprep.subr.mxu1 %v3102_v34  ;;  %5147 = vmatprep.subr.mxu0 %v1280_v35  ;;  %v1678_v34 = vld [vmem:[%s16005_s3 + $0xfc0] sm:$0xff] }
 0x3b6   :  { %5077 = vmatpush1.msra.mxu1 %v3101_v37  ;;  %5148 = vmatpush1.msra.mxu0 %v1279_v38  ;;  %v3482_v35 = vld [vmem:[%s16005_s3 + $0x4820] sm:$0xff]  ;;  %v1660_v37 = vld [vmem:[%s16005_s3 + $0xf30] sm:$0xff]  ;;  %v3481_v38 = vld [vmem:[%s16005_s3 + $0x4818] sm:$0xff] }
 0x3b7   :  { %5078 = vmatprep.subr.mxu1 %v3083_v40  ;;  %5149 = vmatprep.subr.mxu0 %v1261_v42  ;;  %v1659_v40 = vld [vmem:[%s16005_s3 + $0xf28] sm:$0xff] }
 0x3b8   :  { %5079 = vmatpush1.msra.mxu1 %v3082_v43  ;;  %5150 = vmatpush1.msra.mxu0 %v1260_v24  ;;  %v3463_v42 = vld [vmem:[%s16005_s3 + $0x4788] sm:$0xff]  ;;  %v1641_v43 = vld [vmem:[%s16005_s3 + $0xe98] sm:$0xff]  ;;  %v3462_v24 = vld [vmem:[%s16005_s3 + $0x4780] sm:$0xff] }
 0x3b9   :  { %5080 = vmatprep.subr.mxu1 %v3064_v45  ;;  %5151 = vmatprep.subr.mxu0 %v1242_v47  ;;  %v1640_v45 = vld [vmem:[%s16005_s3 + $0xe90] sm:$0xff] }
 0x3ba   :  { %5081 = vmatpush1.msra.mxu1 %v3063_v48  ;;  %5152 = vmatpush1.msra.mxu0 %v1241_v49  ;;  %v3444_v47 = vld [vmem:[%s16005_s3 + $0x46f0] sm:$0xff]  ;;  %v1622_v48 = vld [vmem:[%s16005_s3 + $0xe00] sm:$0xff]  ;;  %v3443_v49 = vld [vmem:[%s16005_s3 + $0x46e8] sm:$0xff] }
 0x3bb   :  { %5082 = vmatprep.subr.mxu1 %v3045_v50  ;;  %5153 = vmatprep.subr.mxu0 %v1223_v51  ;;  %v1621_v50 = vld [vmem:[%s16005_s3 + $0xdf8] sm:$0xff] }
 0x3bc   :  { %5083 = vmatpush1.msra.mxu1 %v3044_v28  ;;  %5154 = vmatpush1.msra.mxu0 %v1222_v53  ;;  %v3425_v51 = vld [vmem:[%s16005_s3 + $0x4658] sm:$0xff]  ;;  %v1603_v28 = vld [vmem:[%s16005_s3 + $0xd68] sm:$0xff]  ;;  %v3424_v53 = vld [vmem:[%s16005_s3 + $0x4650] sm:$0xff] }
 0x3bd   :  { %5084 = vmatprep.subr.mxu1 %v3026_v54  ;;  %5155 = vmatprep.subr.mxu0 %v1204_v55  ;;  %v1602_v54 = vld [vmem:[%s16005_s3 + $0xd60] sm:$0xff] }
 0x3be   :  { %5085 = vmatpush1.msra.mxu1 %v3025_v56  ;;  %5156 = vmatpush1.msra.mxu0 %v1203_v58  ;;  %v3406_v55 = vld [vmem:[%s16005_s3 + $0x45c0] sm:$0xff]  ;;  %v1584_v56 = vld [vmem:[%s16005_s3 + $0xcd0] sm:$0xff]  ;;  %v3405_v58 = vld [vmem:[%s16005_s3 + $0x45b8] sm:$0xff] }
 0x3bf   :  { %5086 = vmatprep.subr.mxu1 %v3007_v60  ;;  %5157 = vmatprep.subr.mxu0 %v1185_v61  ;;  %v1583_v60 = vld [vmem:[%s16005_s3 + $0xcc8] sm:$0xff] }
 0x3c0   :  { %5087 = vmatpush1.msra.mxu1 %v3006_v63  ;;  %5158 = vmatpush1.msra.mxu0 %v1184_v1  ;;  %v3387_v61 = vld [vmem:[%s16005_s3 + $0x4528] sm:$0xff]  ;;  %v1565_v63 = vld [vmem:[%s16005_s3 + $0xc38] sm:$0xff]  ;;  %v3386_v1 = vld [vmem:[%s16005_s3 + $0x4520] sm:$0xff] }
 0x3c1   :  { %5088 = vmatprep.subr.mxu1 %v3596_v2  ;;  %5159 = vmatprep.subr.mxu0 %v1774_v8  ;;  %v1564_v2 = vld [vmem:[%s16005_s3 + $0xc30] sm:$0xff] }
 0x3c2   :  { %5089 = vmatpush2.msra.mxu1 %v3595_v5  ;;  %5160 = vmatpush2.msra.mxu0 %v1773_v62  ;;  %v3368_v8 = vld [vmem:[%s16005_s3 + $0x4490] sm:$0xff]  ;;  %v1546_v5 = vld [vmem:[%s16005_s3 + $0xba0] sm:$0xff]  ;;  %v3367_v62 = vld [vmem:[%s16005_s3 + $0x4488] sm:$0xff] }
 0x3c3   :  { %5090 = vmatprep.subr.mxu1 %v3577_v7  ;;  %5161 = vmatprep.subr.mxu0 %v1755_v9  ;;  %v1545_v7 = vld [vmem:[%s16005_s3 + $0xb98] sm:$0xff] }
 0x3c4   :  { %5091 = vmatpush2.msra.mxu1 %v3576_v10  ;;  %5162 = vmatpush2.msra.mxu0 %v1754_v33  ;;  %v3349_v9 = vld [vmem:[%s16005_s3 + $0x43f8] sm:$0xff]  ;;  %v1527_v10 = vld [vmem:[%s16005_s3 + $0xb08] sm:$0xff]  ;;  %v3348_v33 = vld [vmem:[%s16005_s3 + $0x43f0] sm:$0xff] }
 0x3c5   :  { %5092 = vmatprep.subr.mxu1 %v3558_v14  ;;  %5163 = vmatprep.subr.mxu0 %v1736_v16  ;;  %v1526_v14 = vld [vmem:[%s16005_s3 + $0xb00] sm:$0xff] }
 0x3c6   :  { %5093 = vmatpush2.msra.mxu1 %v3557_v17  ;;  %5164 = vmatpush2.msra.mxu0 %v1735_v11  ;;  %v3330_v16 = vld [vmem:[%s16005_s3 + $0x4360] sm:$0xff]  ;;  %v1508_v17 = vld [vmem:[%s16005_s3 + $0xa70] sm:$0xff]  ;;  %v3329_v11 = vld [vmem:[%s16005_s3 + $0x4358] sm:$0xff] }
 0x3c7   :  { %5094 = vmatprep.subr.mxu1 %v3539_v18  ;;  %5165 = vmatprep.subr.mxu0 %v1717_v19  ;;  %v1507_v18 = vld [vmem:[%s16005_s3 + $0xa68] sm:$0xff] }
 0x3c8   :  { %5095 = vmatpush2.msra.mxu1 %v3538_v41  ;;  %5166 = vmatpush2.msra.mxu0 %v1716_v20  ;;  %v3311_v19 = vld [vmem:[%s16005_s3 + $0x42c8] sm:$0xff]  ;;  %v1489_v41 = vld [vmem:[%s16005_s3 + $0x9d8] sm:$0xff]  ;;  %v3310_v20 = vld [vmem:[%s16005_s3 + $0x42c0] sm:$0xff] }
 0x3c9   :  { %5096 = vmatprep.subr.mxu1 %v3520_v21  ;;  %5167 = vmatprep.subr.mxu0 %v1698_v23  ;;  %v1488_v21 = vld [vmem:[%s16005_s3 + $0x9d0] sm:$0xff]  ;;  %v2078_v23 = vld [vmem:[%s16005_s3 + $0x1c40] sm:$0xff] }
 0x3ca   :  { %5097 = vmatpush2.msra.mxu1 %v3519_v26  ;;  %5168 = vmatpush2.msra.mxu0 %v1697_v12  ;;  %v2686_v26 = vld [vmem:[%s16005_s3 + $0x2f40] sm:$0xff]  ;;  %v2077_v12 = vld [vmem:[%s16005_s3 + $0x1c38] sm:$0xff] }
 0x3cb   :  { %5098 = vmatprep.subr.mxu1 %v3501_v27  ;;  %5169 = vmatprep.subr.mxu0 %v1679_v59  ;;  %v2685_v27 = vld [vmem:[%s16005_s3 + $0x2f38] sm:$0xff]  ;;  %v2059_v59 = vld [vmem:[%s16005_s3 + $0x1ba8] sm:$0xff] }
 0x3cc   :  { %5099 = vmatpush2.msra.mxu1 %v3500_v39  ;;  %5170 = vmatpush2.msra.mxu0 %v1678_v34  ;;  %v2667_v39 = vld [vmem:[%s16005_s3 + $0x2ea8] sm:$0xff]  ;;  %v2058_v34 = vld [vmem:[%s16005_s3 + $0x1ba0] sm:$0xff] }
 0x3cd   :  { %5100 = vmatprep.subr.mxu1 %v3482_v35  ;;  %5171 = vmatprep.subr.mxu0 %v1660_v37  ;;  %v2666_v35 = vld [vmem:[%s16005_s3 + $0x2ea0] sm:$0xff]  ;;  %v2040_v37 = vld [vmem:[%s16005_s3 + $0x1b10] sm:$0xff] }
 0x3ce   :  { %5101 = vmatpush2.msra.mxu1 %v3481_v38  ;;  %5172 = vmatpush2.msra.mxu0 %v1659_v40  ;;  %v2648_v38 = vld [vmem:[%s16005_s3 + $0x2e10] sm:$0xff]  ;;  %v2039_v40 = vld [vmem:[%s16005_s3 + $0x1b08] sm:$0xff] }
 0x3cf   :  { %5102 = vmatprep.subr.mxu1 %v3463_v42  ;;  %5173 = vmatprep.subr.mxu0 %v1641_v43  ;;  %v2647_v42 = vld [vmem:[%s16005_s3 + $0x2e08] sm:$0xff]  ;;  %v2021_v43 = vld [vmem:[%s16005_s3 + $0x1a78] sm:$0xff] }
 0x3d0   :  { %5103 = vmatpush2.msra.mxu1 %v3462_v24  ;;  %5174 = vmatpush2.msra.mxu0 %v1640_v45  ;;  %v2629_v24 = vld [vmem:[%s16005_s3 + $0x2d78] sm:$0xff]  ;;  %v2020_v45 = vld [vmem:[%s16005_s3 + $0x1a70] sm:$0xff] }
 0x3d1   :  { %5104 = vmatprep.subr.mxu1 %v3444_v47  ;;  %5175 = vmatprep.subr.mxu0 %v1622_v48  ;;  %v2628_v47 = vld [vmem:[%s16005_s3 + $0x2d70] sm:$0xff]  ;;  %v2002_v48 = vld [vmem:[%s16005_s3 + $0x19e0] sm:$0xff] }
 0x3d2   :  { %5105 = vmatpush2.msra.mxu1 %v3443_v49  ;;  %5176 = vmatpush2.msra.mxu0 %v1621_v50  ;;  %v2610_v49 = vld [vmem:[%s16005_s3 + $0x2ce0] sm:$0xff]  ;;  %v2001_v50 = vld [vmem:[%s16005_s3 + $0x19d8] sm:$0xff] }
 0x3d3   :  { %5106 = vmatprep.subr.mxu1 %v3425_v51  ;;  %5177 = vmatprep.subr.mxu0 %v1603_v28  ;;  %v2609_v51 = vld [vmem:[%s16005_s3 + $0x2cd8] sm:$0xff]  ;;  %v1983_v28 = vld [vmem:[%s16005_s3 + $0x1948] sm:$0xff] }
 0x3d4   :  { %5107 = vmatpush2.msra.mxu1 %v3424_v53  ;;  %5178 = vmatpush2.msra.mxu0 %v1602_v54  ;;  %v2591_v53 = vld [vmem:[%s16005_s3 + $0x2c48] sm:$0xff]  ;;  %v1982_v54 = vld [vmem:[%s16005_s3 + $0x1940] sm:$0xff] }
 0x3d5   :  { %5108 = vmatprep.subr.mxu1 %v3406_v55  ;;  %5179 = vmatprep.subr.mxu0 %v1584_v56  ;;  %v2590_v55 = vld [vmem:[%s16005_s3 + $0x2c40] sm:$0xff]  ;;  %v1964_v56 = vld [vmem:[%s16005_s3 + $0x18b0] sm:$0xff] }
 0x3d6   :  { %5109 = vmatpush2.msra.mxu1 %v3405_v58  ;;  %5180 = vmatpush2.msra.mxu0 %v1583_v60  ;;  %v2572_v58 = vld [vmem:[%s16005_s3 + $0x2bb0] sm:$0xff]  ;;  %v1963_v60 = vld [vmem:[%s16005_s3 + $0x18a8] sm:$0xff] }
 0x3d7   :  { %5110 = vmatprep.subr.mxu1 %v3387_v61  ;;  %5181 = vmatprep.subr.mxu0 %v1565_v63  ;;  %v2571_v61 = vld [vmem:[%s16005_s3 + $0x2ba8] sm:$0xff]  ;;  %v1945_v63 = vld [vmem:[%s16005_s3 + $0x1818] sm:$0xff] }
 0x3d8   :  { %5111 = vmatpush2.msra.mxu1 %v3386_v1  ;;  %5182 = vmatpush2.msra.mxu0 %v1564_v2  ;;  %v2553_v1 = vld [vmem:[%s16005_s3 + $0x2b18] sm:$0xff]  ;;  %v1944_v2 = vld [vmem:[%s16005_s3 + $0x1810] sm:$0xff] }
 0x3d9   :  { %5112 = vmatprep.subr.mxu1 %v3368_v8  ;;  %5183 = vmatprep.subr.mxu0 %v1546_v5  ;;  %v2552_v8 = vld [vmem:[%s16005_s3 + $0x2b10] sm:$0xff]  ;;  %v1926_v5 = vld [vmem:[%s16005_s3 + $0x1780] sm:$0xff] }
 0x3da   :  { %5113 = vmatpush2.msra.mxu1 %v3367_v62  ;;  %5184 = vmatpush2.msra.mxu0 %v1545_v7  ;;  %v2534_v62 = vld [vmem:[%s16005_s3 + $0x2a80] sm:$0xff]  ;;  %v1925_v7 = vld [vmem:[%s16005_s3 + $0x1778] sm:$0xff] }
 0x3db   :  { %5114 = vmatprep.subr.mxu1 %v3349_v9  ;;  %5185 = vmatprep.subr.mxu0 %v1527_v10  ;;  %v2533_v9 = vld [vmem:[%s16005_s3 + $0x2a78] sm:$0xff]  ;;  %v1907_v10 = vld [vmem:[%s16005_s3 + $0x16e8] sm:$0xff] }
 0x3dc   :  { %5115 = vmatpush2.msra.mxu1 %v3348_v33  ;;  %5186 = vmatpush2.msra.mxu0 %v1526_v14  ;;  %v2515_v33 = vld [vmem:[%s16005_s3 + $0x29e8] sm:$0xff]  ;;  %v1906_v14 = vld [vmem:[%s16005_s3 + $0x16e0] sm:$0xff] }
 0x3dd   :  { %5116 = vmatprep.subr.mxu1 %v3330_v16  ;;  %5187 = vmatprep.subr.mxu0 %v1508_v17  ;;  %v2514_v16 = vld [vmem:[%s16005_s3 + $0x29e0] sm:$0xff]  ;;  %v1888_v17 = vld [vmem:[%s16005_s3 + $0x1650] sm:$0xff] }
 0x3de   :  { %5117 = vmatpush2.msra.mxu1 %v3329_v11  ;;  %5188 = vmatpush2.msra.mxu0 %v1507_v18  ;;  %v2496_v11 = vld [vmem:[%s16005_s3 + $0x2950] sm:$0xff]  ;;  %v1887_v18 = vld [vmem:[%s16005_s3 + $0x1648] sm:$0xff] }
 0x3df   :  { %5118 = vmatprep.subr.mxu1 %v3311_v19  ;;  %5189 = vmatprep.subr.mxu0 %v1489_v41  ;;  %v2495_v19 = vld [vmem:[%s16005_s3 + $0x2948] sm:$0xff]  ;;  %v1869_v41 = vld [vmem:[%s16005_s3 + $0x15b8] sm:$0xff] }
 0x3e0   :  { %5119 = vmatpush2.msra.mxu1 %v3310_v20  ;;  %5190 = vmatpush2.msra.mxu0 %v1488_v21  ;;  %v2477_v20 = vld [vmem:[%s16005_s3 + $0x28b8] sm:$0xff]  ;;  %v1868_v21 = vld [vmem:[%s16005_s3 + $0x15b0] sm:$0xff] }
 0x3e1   :  { %5121 = vmatmul.mubr.f32.vlgmr.msra.gmra.mxu1 %v9518_v46  ;;  %5192 = vmatmul.mubr.f32.vlgmr.msra.gmra.mxu0 %v8883_v22 }
 0x3e2   :  { %5198 = vmatprep.subr.mxu1 %v2078_v23  ;;  %5269 = vmatprep.subr.mxu0 %v2686_v26  ;;  %v2476_v23 = vld [vmem:[%s16005_s3 + $0x28b0] sm:$0xff]  ;;  %v1850_v26 = vld [vmem:[%s16005_s3 + $0x1520] sm:$0xff] }
 0x3e3   :  { %5199 = vmatpush1.msra.mxu1 %v2077_v12  ;;  %5262 = vmatprep.mubr.f32.mxu1 %v8898_v29  ;;  %v2458_v12 = vld [vmem:[%s16005_s3 + $0x2820] sm:$0xff] }
 0x3e4   :  { %5270 = vmatpush1.msra.mxu0 %v2685_v27  ;;  %5333 = vmatprep.mubr.f32.mxu0 %v9297_v3  ;;  %v1849_v27 = vld [vmem:[%s16005_s3 + $0x1518] sm:$0xff] }
 0x3e5   :  { %5200 = vmatprep.subr.mxu1 %v2059_v59  ;;  %5271 = vmatprep.subr.mxu0 %v2667_v39  ;;  %v2457_v59 = vld [vmem:[%s16005_s3 + $0x2818] sm:$0xff]  ;;  %v1831_v39 = vld [vmem:[%s16005_s3 + $0x1488] sm:$0xff] }
 0x3e6   :  { %5201 = vmatpush1.msra.mxu1 %v2058_v34  ;;  %5272 = vmatpush1.msra.mxu0 %v2666_v35  ;;  %v2439_v34 = vld [vmem:[%s16005_s3 + $0x2788] sm:$0xff]  ;;  %v1830_v35 = vld [vmem:[%s16005_s3 + $0x1480] sm:$0xff] }
 0x3e7   :  { %5202 = vmatprep.subr.mxu1 %v2040_v37  ;;  %5273 = vmatprep.subr.mxu0 %v2648_v38  ;;  %v2438_v37 = vld [vmem:[%s16005_s3 + $0x2780] sm:$0xff]  ;;  %v1812_v38 = vld [vmem:[%s16005_s3 + $0x13f0] sm:$0xff] }
 0x3e8   :  { %5203 = vmatpush1.msra.mxu1 %v2039_v40  ;;  %5274 = vmatpush1.msra.mxu0 %v2647_v42  ;;  %v2420_v40 = vld [vmem:[%s16005_s3 + $0x26f0] sm:$0xff]  ;;  %v1811_v42 = vld [vmem:[%s16005_s3 + $0x13e8] sm:$0xff] }
 0x3e9   :  { %5204 = vmatprep.subr.mxu1 %v2021_v43  ;;  %5275 = vmatprep.subr.mxu0 %v2629_v24  ;;  %v2419_v43 = vld [vmem:[%s16005_s3 + $0x26e8] sm:$0xff]  ;;  %v1793_v24 = vld [vmem:[%s16005_s3 + $0x1358] sm:$0xff] }
 0x3ea   :  { %5205 = vmatpush1.msra.mxu1 %v2020_v45  ;;  %5276 = vmatpush1.msra.mxu0 %v2628_v47  ;;  %v2401_v45 = vld [vmem:[%s16005_s3 + $0x2658] sm:$0xff]  ;;  %v1792_v47 = vld [vmem:[%s16005_s3 + $0x1350] sm:$0xff] }
 0x3eb   :  { %5206 = vmatprep.subr.mxu1 %v2002_v48  ;;  %5277 = vmatprep.subr.mxu0 %v2610_v49  ;;  %v2400_v48 = vld [vmem:[%s16005_s3 + $0x2650] sm:$0xff]  ;;  %v2382_v49 = vld [vmem:[%s16005_s3 + $0x25c0] sm:$0xff] }
 0x3ec   :  { %5207 = vmatpush1.msra.mxu1 %v2001_v50  ;;  %5278 = vmatpush1.msra.mxu0 %v2609_v51  ;;  %v2990_v50 = vld [vmem:[%s16005_s3 + $0x38c0] sm:$0xff]  ;;  %v2381_v51 = vld [vmem:[%s16005_s3 + $0x25b8] sm:$0xff] }
 0x3ed   :  { %5208 = vmatprep.subr.mxu1 %v1983_v28  ;;  %5279 = vmatprep.subr.mxu0 %v2591_v53  ;;  %v2989_v28 = vld [vmem:[%s16005_s3 + $0x38b8] sm:$0xff]  ;;  %v2363_v53 = vld [vmem:[%s16005_s3 + $0x2528] sm:$0xff] }
 0x3ee   :  { %5209 = vmatpush1.msra.mxu1 %v1982_v54  ;;  %5280 = vmatpush1.msra.mxu0 %v2590_v55  ;;  %v2971_v54 = vld [vmem:[%s16005_s3 + $0x3828] sm:$0xff]  ;;  %v2362_v55 = vld [vmem:[%s16005_s3 + $0x2520] sm:$0xff] }
 0x3ef   :  { %5210 = vmatprep.subr.mxu1 %v1964_v56  ;;  %5281 = vmatprep.subr.mxu0 %v2572_v58  ;;  %v2970_v56 = vld [vmem:[%s16005_s3 + $0x3820] sm:$0xff]  ;;  %v2344_v58 = vld [vmem:[%s16005_s3 + $0x2490] sm:$0xff] }
 0x3f0   :  { %5211 = vmatpush1.msra.mxu1 %v1963_v60  ;;  %5282 = vmatpush1.msra.mxu0 %v2571_v61  ;;  %v2952_v60 = vld [vmem:[%s16005_s3 + $0x3790] sm:$0xff]  ;;  %v12856_v61 = vpop.f32.mrf.mxu0 }
 0x3f1   :  { %5212 = vmatprep.subr.mxu1 %v1945_v63  ;;  %5283 = vmatprep.subr.mxu0 %v2553_v1  ;;  %v2343_v63 = vld [vmem:[%s16005_s3 + $0x2488] sm:$0xff] }
 0x3f2   :  { %5213 = vmatpush1.msra.mxu1 %v1944_v2  ;;  %5284 = vmatpush1.msra.mxu0 %v2552_v8  ;;  %v2951_v1 = vld [vmem:[%s16005_s3 + $0x3788] sm:$0xff]  ;;  %v2325_v2 = vld [vmem:[%s16005_s3 + $0x23f8] sm:$0xff] }
 0x3f3   :  { %5214 = vmatprep.subr.mxu1 %v1926_v5  ;;  %5285 = vmatprep.subr.mxu0 %v2534_v62  ;;  %v2933_v8 = vld [vmem:[%s16005_s3 + $0x36f8] sm:$0xff]  ;;  %v12870_v5 = vpop.f32.mrf.mxu1  ;;  %v2324_v62 = vld [vmem:[%s16005_s3 + $0x23f0] sm:$0xff] }
 0x3f4   :  { %5215 = vmatpush1.msra.mxu1 %v1925_v7  ;;  %5286 = vmatpush1.msra.mxu0 %v2533_v9  ;;  %v2932_v7 = vld [vmem:[%s16005_s3 + $0x36f0] sm:$0xff]  ;;  %v2306_v9 = vld [vmem:[%s16005_s3 + $0x2360] sm:$0xff] }
 0x3f5   :  { %5216 = vmatprep.subr.mxu1 %v1907_v10  ;;  %5287 = vmatprep.subr.mxu0 %v2515_v33  ;;  %v2914_v10 = vld [vmem:[%s16005_s3 + $0x3660] sm:$0xff]  ;;  %v4343_v33 = vpop.f32.mrf.mxu0 }
 0x3f6   :  { %5217 = vmatpush1.msra.mxu1 %v1906_v14  ;;  %5288 = vmatpush1.msra.mxu0 %v2514_v16  ;;  %v2305_v14 = vld [vmem:[%s16005_s3 + $0x2358] sm:$0xff] }
 0x3f7   :  { %5218 = vmatprep.subr.mxu1 %v1888_v17  ;;  %5289 = vmatprep.subr.mxu0 %v2496_v11  ;;  %v2913_v16 = vld [vmem:[%s16005_s3 + $0x3658] sm:$0xff]  ;;  %v2287_v17 = vld [vmem:[%s16005_s3 + $0x22c8] sm:$0xff] }
 0x3f8   :  { %5219 = vmatpush1.msra.mxu1 %v1887_v18  ;;  %5290 = vmatpush1.msra.mxu0 %v2495_v19  ;;  %v2895_v11 = vld [vmem:[%s16005_s3 + $0x35c8] sm:$0xff]  ;;  %v12896_v18 = vpop.f32.mrf.mxu0  ;;  %v4414_v19 = vpop.f32.mrf.mxu1 }
 0x3f9   :  { %5220 = vmatprep.subr.mxu1 %v1869_v41  ;;  %5291 = vmatprep.subr.mxu0 %v2477_v20  ;;  %v2286_v41 = vld [vmem:[%s16005_s3 + $0x22c0] sm:$0xff] }
 0x3fa   :  { %5221 = vmatpush1.msra.mxu1 %v1868_v21  ;;  %5292 = vmatpush1.msra.mxu0 %v2476_v23  ;;  %v2894_v20 = vld [vmem:[%s16005_s3 + $0x35c0] sm:$0xff]  ;;  %v2268_v21 = vld [vmem:[%s16005_s3 + $0x2230] sm:$0xff] }
 0x3fb   :  { %5222 = vmatprep.subr.mxu1 %v1850_v26  ;;  %5293 = vmatprep.subr.mxu0 %v2458_v12  ;;  %v2876_v23 = vld [vmem:[%s16005_s3 + $0x3530] sm:$0xff]  ;;  %v12910_v26 = vpop.f32.mrf.mxu1  ;;  %v2267_v12 = vld [vmem:[%s16005_s3 + $0x2228] sm:$0xff] }
 0x3fc   :  { %5223 = vmatpush1.msra.mxu1 %v1849_v27  ;;  %5294 = vmatpush1.msra.mxu0 %v2457_v59  ;;  %v2875_v27 = vld [vmem:[%s16005_s3 + $0x3528] sm:$0xff]  ;;  %v6838_v59 = vld [vmem:[%s16006_s4] sm:$0xff] }
 0x3fd   :  { %5224 = vmatprep.subr.mxu1 %v1831_v39  ;;  %5295 = vmatprep.subr.mxu0 %v2439_v34  ;;  %v3635_v39 = vrot.slane %v6838_v59, %v9229_v31  ;;  %v2249_v34 = vld [vmem:[%s16005_s3 + $0x2198] sm:$0xff] }
 0x3fe   :  { %5225 = vmatpush1.msra.mxu1 %v1830_v35  ;;  %5296 = vmatpush1.msra.mxu0 %v2438_v37  ;;  %v2857_v35 = vld [vmem:[%s16005_s3 + $0x3498] sm:$0xff]  ;;  %v4485_v37 = vpop.f32.mrf.mxu0 }
 0x3ff   :  { %5226 = vmatprep.subr.mxu1 %v1812_v38  ;;  %5297 = vmatprep.subr.mxu0 %v2420_v40  ;;  %v2248_v38 = vld [vmem:[%s16005_s3 + $0x2190] sm:$0xff] }
 0x400   :  { %5227 = vmatpush1.msra.mxu1 %v1811_v42  ;;  %5298 = vmatpush1.msra.mxu0 %v2419_v43  ;;  %v2856_v40 = vld [vmem:[%s16005_s3 + $0x3490] sm:$0xff]  ;;  %v3631_v42 = vrot.slane %v6838_v59, %v9214_v25  ;;  %v2230_v43 = vld [vmem:[%s16005_s3 + $0x2100] sm:$0xff] }
 0x401   :  { %5228 = vmatprep.subr.mxu1 %v1793_v24  ;;  %5299 = vmatprep.subr.mxu0 %v2401_v45  ;;  %v2838_v24 = vld [vmem:[%s16005_s3 + $0x3400] sm:$0xff]  ;;  %v4625_v45 = vpop.f32.mrf.mxu0 }
 0x402   :  { %5229 = vmatpush1.msra.mxu1 %v1792_v47  ;;  %5300 = vmatpush1.msra.mxu0 %v2400_v48  ;;  %v4556_v47 = vpop.f32.mrf.mxu1  ;;  %v2229_v48 = vld [vmem:[%s16005_s3 + $0x20f8] sm:$0xff] }
 0x403   :  { %5230 = vmatprep.subr.mxu1 %v2382_v49  ;;  %5301 = vmatprep.subr.mxu0 %v2990_v50  ;;  %v2837_v49 = vld [vmem:[%s16005_s3 + $0x33f8] sm:$0xff]  ;;  %v4344_v50 = vadd.f32 %v4343_v33, %v3635_v39 }
 0x404   :  { %5231 = vmatpush2.msra.mxu1 %v2381_v51  ;;  %5302 = vmatpush2.msra.mxu0 %v2989_v28  ;;  %v3639_v51 = vrot.slane %v6838_v59, %v9464_v13  ;;  %v2211_v28 = vld [vmem:[%s16005_s3 + $0x2068] sm:$0xff]  ;;  %v2781_v33 = vld [vmem:[%s16005_s3 + $0x3238] sm:$0xff] }
 0x405   :  { %5232 = vmatprep.subr.mxu1 %v2363_v53  ;;  %5303 = vmatprep.subr.mxu0 %v2971_v54  ;;  %v2819_v53 = vld [vmem:[%s16005_s3 + $0x3368] sm:$0xff]  ;;  %v4696_v54 = vpop.f32.mrf.mxu1 }
 0x406   :  { %5233 = vmatpush2.msra.mxu1 %v2362_v55  ;;  %5304 = vmatpush2.msra.mxu0 %v2970_v56  ;;  %v2210_v55 = vld [vmem:[%s16005_s3 + $0x2060] sm:$0xff] }
 0x407   :  { %5234 = vmatprep.subr.mxu1 %v2344_v58  ;;  %5305 = vmatprep.subr.mxu0 %v2952_v60  ;;  %v2818_v56 = vld [vmem:[%s16005_s3 + $0x3360] sm:$0xff]  ;;  %v4342_v58 = vadd.f32 %v12856_v61, %v3631_v42  ;;  %v4415_v60 = vadd.f32 %v4414_v19, %v4344_v50  ;;  %v2191_v61 = vld [vmem:[%s16005_s3 + $0x1fc8] sm:$0xff]  ;;  %v2116_v42 = vld [vmem:[%s16005_s3 + $0x1d70] sm:$0xff] }
 0x408   :  { %5235 = vmatpush2.msra.mxu1 %v2343_v63  ;;  %5306 = vmatpush2.msra.mxu0 %v2951_v1  ;;  %v3643_v63 = vrot.slane %v6838_v59, %v9473_v15  ;;  %v2192_v1 = vld [vmem:[%s16005_s3 + $0x1fd0] sm:$0xff]  ;;  %v2097_v50 = vld [vmem:[%s16005_s3 + $0x1cd8] sm:$0xff] }
 0x409   :  { %5236 = vmatprep.subr.mxu1 %v2325_v2  ;;  %5307 = vmatprep.subr.mxu0 %v2933_v8  ;;  %v2800_v2 = vld [vmem:[%s16005_s3 + $0x32d0] sm:$0xff]  ;;  %v4627_v8 = vpop.f32.mrf.mxu0 }
 0x40a   :  { %5237 = vmatpush2.msra.mxu1 %v2324_v62  ;;  %5308 = vmatpush2.msra.mxu0 %v2932_v7  ;;  %v2799_v62 = vld [vmem:[%s16005_s3 + $0x32c8] sm:$0xff]  ;;  %v4413_v7 = vadd.f32 %v12870_v5, %v4342_v58  ;;  %v2780_v5 = vld [vmem:[%s16005_s3 + $0x3230] sm:$0xff] }
 0x40b   :  { %5238 = vmatprep.subr.mxu1 %v2306_v9  ;;  %5309 = vmatprep.subr.mxu0 %v2914_v10  ;;  %v4626_v9 = vadd.f32 %v4625_v45, %v3639_v51  ;;  %v2173_v10 = vld [vmem:[%s16005_s3 + $0x1f38] sm:$0xff]  ;;  %v2115_v45 = vld [vmem:[%s16005_s3 + $0x1d68] sm:$0xff] }
 0x40c   :  { %5239 = vmatpush2.msra.mxu1 %v2305_v14  ;;  %5310 = vmatpush2.msra.mxu0 %v2913_v16  ;;  %v4698_v14 = vpop.f32.mrf.mxu1  ;;  %v2172_v16 = vld [vmem:[%s16005_s3 + $0x1f30] sm:$0xff]  ;;  %v2705_v51 = vld [vmem:[%s16005_s3 + $0x2fd8] sm:$0xff] }
 0x40d   :  { %5240 = vmatprep.subr.mxu1 %v2287_v17  ;;  %5311 = vmatprep.subr.mxu0 %v2895_v11  ;;  %v4486_v17 = vadd.f32 %v4485_v37, %v4415_v60  ;;  %v4628_v11 = vadd.f32 %v4627_v8, %v3643_v63  ;;  %v4697_v19 = vadd.f32 %v4696_v54, %v4626_v9  ;;  %v2134_v37 = vld [vmem:[%s16005_s3 + $0x1e00] sm:$0xff]  ;;  %v2704_v54 = vld [vmem:[%s16005_s3 + $0x2fd0] sm:$0xff]  ;;  %v3293_v8 = vld [vmem:[%s16005_s3 + $0x4238] sm:$0xff] }
 0x40e   :  { %5241 = vmatpush2.msra.mxu1 %v2286_v41  ;;  %5312 = vmatpush2.msra.mxu0 %v2894_v20  ;;  %v2154_v41 = vld [vmem:[%s16005_s3 + $0x1ea0] sm:$0xff]  ;;  %v1472_v63 = vld [vmem:[%s16005_s3 + $0x950] sm:$0xff]  ;;  %v3275_v9 = vld [vmem:[%s16005_s3 + $0x41a8] sm:$0xff] }
 0x40f   :  { %5242 = vmatprep.subr.mxu1 %v2268_v21  ;;  %5313 = vmatprep.subr.mxu0 %v2876_v23  ;;  %v2762_v20 = vld [vmem:[%s16005_s3 + $0x31a0] sm:$0xff]  ;;  %v4767_v21 = vpop.f32.mrf.mxu0  ;;  %v2153_v23 = vld [vmem:[%s16005_s3 + $0x1e98] sm:$0xff]  ;;  %v4557_v59 = vadd.f32 %v4556_v47, %v4486_v17  ;;  %v4699_v39 = vadd.f32 %v4698_v14, %v4628_v11  ;;  %v1452_v14 = vld [vmem:[%s16005_s3 + $0x8b0] sm:$0xff] }
 0x410   :  { %5243 = vmatpush2.msra.mxu1 %v2267_v12  ;;  %5314 = vmatpush2.msra.mxu0 %v2875_v27  ;;  %v2761_v12 = vld [vmem:[%s16005_s3 + $0x3198] sm:$0xff]  ;;  %v4484_v27 = vadd.f32 %v12896_v18, %v4413_v7  ;;  %v2742_v18 = vld [vmem:[%s16005_s3 + $0x3100] sm:$0xff]  ;;  %v3256_v17 = vld [vmem:[%s16005_s3 + $0x4110] sm:$0xff] }
 0x411   :  { %5244 = vmatprep.subr.mxu1 %v2249_v34  ;;  %5315 = vmatprep.subr.mxu0 %v2857_v35  ;;  %v2135_v34 = vld [vmem:[%s16005_s3 + $0x1e08] sm:$0xff]  ;;  %v3294_v60 = vld [vmem:[%s16005_s3 + $0x4240] sm:$0xff] }
 0x412   :  { %5245 = vmatpush2.msra.mxu1 %v2248_v38  ;;  %5316 = vmatpush2.msra.mxu0 %v2856_v40  ;;  %v2743_v35 = vld [vmem:[%s16005_s3 + $0x3108] sm:$0xff]  ;;  %v4555_v38 = vadd.f32 %v12910_v26, %v4484_v27  ;;  %v4768_v40 = vadd.f32 %v4767_v21, %v4697_v19  ;;  %v1434_v11 = vld [vmem:[%s16005_s3 + $0x820] sm:$0xff]  ;;  %v3237_v21 = vld [vmem:[%s16005_s3 + $0x4078] sm:$0xff] }
 0x413   :  { %5246 = vmatprep.subr.mxu1 %v2230_v43  ;;  %5317 = vmatprep.subr.mxu0 %v2838_v24  ;;  %v2724_v43 = vld [vmem:[%s16005_s3 + $0x3070] sm:$0xff]  ;;  %v4769_v24 = vpop.f32.mrf.mxu0  ;;  %v2723_v26 = vld [vmem:[%s16005_s3 + $0x3068] sm:$0xff]  ;;  %v1414_v27 = vld [vmem:[%s16005_s3 + $0x780] sm:$0xff] }
 0x414   :  { %5247 = vmatpush2.msra.mxu1 %v2229_v48  ;;  %5318 = vmatpush2.msra.mxu0 %v2837_v49  ;;  %v6548_v48 = vmax.f32 %v4557_v59, 0.0  ;;  %v4770_v49 = vadd.f32 %v4769_v24, %v4699_v39  ;;  %v3255_v19 = vld [vmem:[%s16005_s3 + $0x4108] sm:$0xff]  ;;  %v3218_v59 = vld [vmem:[%s16005_s3 + $0x3fe0] sm:$0xff]  ;;  %v1396_v39 = vld [vmem:[%s16005_s3 + $0x6f0] sm:$0xff] }
 0x415   :  { %5248 = vmatprep.subr.mxu1 %v2211_v28  ;;  %5319 = vmatprep.subr.mxu0 %v2819_v53  ;;  %v2096_v53 = vld [vmem:[%s16005_s3 + $0x1cd0] sm:$0xff]  ;;  %v3179_v24 = vld [vmem:[%s16005_s3 + $0x3ea8] sm:$0xff] }
 0x416   :  { %5249 = vmatpush2.msra.mxu1 %v2210_v55  ;;  %5320 = vmatpush2.msra.mxu0 %v2818_v56  ;;  %v6547_v56 = vmax.f32 %v4555_v38, 0.0  ;;  %v3198_v38 = vld [vmem:[%s16005_s3 + $0x3f40] sm:$0xff] }
 0x417   :  { %5250 = vmatprep.subr.mxu1 %v2192_v1  ;;  %5321 = vmatprep.subr.mxu0 %v2800_v2 }
 0x418   :  { %5251 = vmatpush2.msra.mxu1 %v2191_v61  ;;  %5322 = vmatpush2.msra.mxu0 %v2799_v62  ;;  %v6598_v1 = vcombine.low %v6547_v56, %v6548_v48  ;;  %v1471_v62 = vld [vmem:[%s16005_s3 + $0x948] sm:$0xff]  ;;  %v3160_v48 = vld [vmem:[%s16005_s3 + $0x3e10] sm:$0xff]  ;;  %v3122_v56 = vld [vmem:[%s16005_s3 + $0x3ce0] sm:$0xff] }
 0x419   :  { %5252 = vmatprep.subr.mxu1 %v2173_v10  ;;  %5323 = vmatprep.subr.mxu0 %v2781_v33  ;;  %v1453_v10 = vld [vmem:[%s16005_s3 + $0x8b8] sm:$0xff]  ;;  %v3274_v33 = vld [vmem:[%s16005_s3 + $0x41a0] sm:$0xff] }
 0x41a   :  { %5253 = vmatpush2.msra.mxu1 %v2172_v16  ;;  %5324 = vmatpush2.msra.mxu0 %v2780_v5  ;;  %v6606_v16 = vrot.slane %v6598_v1, %v7230_v52  ;;  %v3103_v1 = vld [vmem:[%s16005_s3 + $0x3c48] sm:$0xff] }
 0x41b   :  { %5254 = vmatprep.subr.mxu1 %v2154_v41  ;;  %5325 = vmatprep.subr.mxu0 %v2762_v20  ;;  %v1433_v41 = vld [vmem:[%s16005_s3 + $0x818] sm:$0xff] }
 0x41c   :  { %5255 = vmatpush2.msra.mxu1 %v2153_v23  ;;  %5326 = vmatpush2.msra.mxu0 %v2761_v12  ;;  %v1415_v23 = vld [vmem:[%s16005_s3 + $0x788] sm:$0xff]  ;;  %v3236_v12 = vld [vmem:[%s16005_s3 + $0x4070] sm:$0xff] }
 0x41d   :  { %5256 = vmatprep.subr.mxu1 %v2135_v34  ;;  %5327 = vmatprep.subr.mxu0 %v2743_v35  ;;  %v4838_v47 = vpop.f32.mrf.mxu1  ;;  %v3217_v34 = vld [vmem:[%s16005_s3 + $0x3fd8] sm:$0xff]  ;;  %v1395_v35 = vld [vmem:[%s16005_s3 + $0x6e8] sm:$0xff] }
 0x41e   :  { %5257 = vmatpush2.msra.mxu1 %v2134_v37  ;;  %5328 = vmatpush2.msra.mxu0 %v2742_v18  ;;  %v4839_v28 = vadd.f32 %v4838_v47, %v4768_v40  ;;  %v3199_v37 = vld [vmem:[%s16005_s3 + $0x3f48] sm:$0xff]  ;;  %v1377_v18 = vld [vmem:[%s16005_s3 + $0x658] sm:$0xff]  ;;  %v1376_v40 = vld [vmem:[%s16005_s3 + $0x650] sm:$0xff] }
 0x41f   :  { %5258 = vmatprep.subr.mxu1 %v2116_v42  ;;  %5329 = vmatprep.subr.mxu0 %v2724_v43  ;;  %v4840_v55 = vpop.f32.mrf.mxu1  ;;  %v3180_v42 = vld [vmem:[%s16005_s3 + $0x3eb0] sm:$0xff]  ;;  %v1358_v43 = vld [vmem:[%s16005_s3 + $0x5c0] sm:$0xff]  ;;  %v1339_v47 = vld [vmem:[%s16005_s3 + $0x528] sm:$0xff] }
 0x420   :  { %5259 = vmatpush2.msra.mxu1 %v2115_v45  ;;  %5330 = vmatpush2.msra.mxu0 %v2723_v26  ;;  %v4841_v58 = vadd.f32 %v4840_v55, %v4770_v49  ;;  %v6549_v2 = vmax.f32 %v4839_v28, 0.0  ;;  %v1357_v45 = vld [vmem:[%s16005_s3 + $0x5b8] sm:$0xff]  ;;  %v1338_v49 = vld [vmem:[%s16005_s3 + $0x520] sm:$0xff] }
 0x421   :  { %5260 = vmatprep.subr.mxu1 %v2097_v50  ;;  %5331 = vmatprep.subr.mxu0 %v2705_v51  ;;  %v3161_v26 = vld [vmem:[%s16005_s3 + $0x3e18] sm:$0xff]  ;;  %v3142_v50 = vld [vmem:[%s16005_s3 + $0x3d80] sm:$0xff]  ;;  %v1320_v51 = vld [vmem:[%s16005_s3 + $0x490] sm:$0xff] }
 0x422   :  { %5261 = vmatpush2.msra.mxu1 %v2096_v53  ;;  %5332 = vmatpush2.msra.mxu0 %v2704_v54  ;;  %v6550_v61 = vmax.f32 %v4841_v58, 0.0  ;;  %v3141_v28 = vld [vmem:[%s16005_s3 + $0x3d78] sm:$0xff]  ;;  %v1319_v53 = vld [vmem:[%s16005_s3 + $0x488] sm:$0xff]  ;;  %v1300_v58 = vld [vmem:[%s16005_s3 + $0x3f0] sm:$0xff] }
 0x423   :  { %5263 = vmatmul.mubr.f32.vlgmr.msra.gmra.mxu1 %v8903_v32  ;;  %5334 = vmatmul.mubr.f32.vlgmr.msra.gmra.mxu0 %v9299_v6  ;;  %v3123_v54 = vld [vmem:[%s16005_s3 + $0x3ce8] sm:$0xff]  ;;  %v1301_v55 = vld [vmem:[%s16005_s3 + $0x3f8] sm:$0xff] }
 0x424   :  { %5340 = vmatprep.subr.mxu1 %v3294_v60  ;;  %5411 = vmatprep.subr.mxu0 %v1472_v63  ;;  %v6599_v7 = vcombine.low %v6549_v2, %v6550_v61  ;;  %v3104_v60 = vld [vmem:[%s16005_s3 + $0x3c50] sm:$0xff]  ;;  %v1282_v63 = vld [vmem:[%s16005_s3 + $0x360] sm:$0xff]  ;;  %v1281_v2 = vld [vmem:[%s16005_s3 + $0x358] sm:$0xff] }
 0x425   :  { %5341 = vmatpush1.msra.mxu1 %v3293_v8  ;;  %5404 = vmatprep.mubr.f32.mxu1 %v9512_v44  ;;  %v3085_v8 = vld [vmem:[%s16005_s3 + $0x3bb8] sm:$0xff]  ;;  %v1263_v61 = vld [vmem:[%s16005_s3 + $0x2c8] sm:$0xff] }
 0x426   :  { %5412 = vmatpush1.msra.mxu0 %v1471_v62  ;;  %5475 = vmatprep.mubr.f32.mxu0 %v8497_v4  ;;  %v6613_v5 = vrot.slane %v6599_v7, %v7230_v52  ;;  %v3084_v62 = vld [vmem:[%s16005_s3 + $0x3bb0] sm:$0xff]  ;;  %v1262_v7 = vld [vmem:[%s16005_s3 + $0x2c0] sm:$0xff] }
 0x427   :  { %5342 = vmatprep.subr.mxu1 %v3275_v9  ;;  %5413 = vmatprep.subr.mxu0 %v1453_v10  ;;  %v3066_v9 = vld [vmem:[%s16005_s3 + $0x3b20] sm:$0xff]  ;;  %v1244_v10 = vld [vmem:[%s16005_s3 + $0x230] sm:$0xff] }
 0x428   :  { %v6614_v20 = vcombine.low %v6606_v16, %v6613_v5  ;;  %5343 = vmatpush1.msra.mxu1 %v3274_v33  ;;  %5414 = vmatpush1.msra.mxu0 %v1452_v14  ;;  %v3065_v33 = vld [vmem:[%s16005_s3 + $0x3b18] sm:$0xff]  ;;  %v1243_v14 = vld [vmem:[%s16005_s3 + $0x228] sm:$0xff] }
 0x429   :  { %5344 = vmatprep.subr.mxu1 %v3256_v17  ;;  %5415 = vmatprep.subr.mxu0 %v1434_v11  ;;  %v3047_v16 = vld [vmem:[%s16005_s3 + $0x3a88] sm:$0xff]  ;;  %v1225_v5 = vld [vmem:[%s16005_s3 + $0x198] sm:$0xff]  ;;  %v3046_v17 = vld [vmem:[%s16005_s3 + $0x3a80] sm:$0xff] }
 0x42a   :  { %6671 = vst [vmem:[#allocation2 + $0x8] sm:$0xff] %v6614_v20  ;;  %5345 = vmatpush1.msra.mxu1 %v3255_v19  ;;  %5416 = vmatpush1.msra.mxu0 %v1433_v41  ;;  %v1224_v11 = vld [vmem:[%s16005_s3 + $0x190] sm:$0xff]  ;;  %v1206_v41 = vld [vmem:[%s16005_s3 + $0x100] sm:$0xff]  ;;  %v3027_v20 = vld [vmem:[%s16005_s3 + $0x39e8] sm:$0xff] }
 0x42b   :  { %5346 = vmatprep.subr.mxu1 %v3237_v21  ;;  %5417 = vmatprep.subr.mxu0 %v1415_v23  ;;  %v3028_v19 = vld [vmem:[%s16005_s3 + $0x39f0] sm:$0xff]  ;;  %v1205_v21 = vld [vmem:[%s16005_s3 + $0xf8] sm:$0xff] }
 0x42c   :  { %5347 = vmatpush1.msra.mxu1 %v3236_v12  ;;  %5418 = vmatpush1.msra.mxu0 %v1414_v27  ;;  %v3009_v23 = vld [vmem:[%s16005_s3 + $0x3958] sm:$0xff]  ;;  %v1187_v12 = vld [vmem:[%s16005_s3 + $0x68] sm:$0xff]  ;;  %v3008_v27 = vld [vmem:[%s16005_s3 + $0x3950] sm:$0xff] }
 0x42d   :  { %5348 = vmatprep.subr.mxu1 %v3218_v59  ;;  %5419 = vmatprep.subr.mxu0 %v1396_v39  ;;  %v1186_v59 = vld [vmem:[%s16005_s3 + $0x60] sm:$0xff] }
 0x42e   :  { %5349 = vmatpush1.msra.mxu1 %v3217_v34  ;;  %5420 = vmatpush1.msra.mxu0 %v1395_v35  ;;  %v3598_v39 = vld [vmem:[%s16005_s3 + $0x4bc0] sm:$0xff]  ;;  %v1776_v34 = vld [vmem:[%s16005_s3 + $0x12d0] sm:$0xff]  ;;  %v3597_v35 = vld [vmem:[%s16005_s3 + $0x4bb8] sm:$0xff] }
 0x42f   :  { %5350 = vmatprep.subr.mxu1 %v3199_v37  ;;  %5421 = vmatprep.subr.mxu0 %v1377_v18  ;;  %v1775_v37 = vld [vmem:[%s16005_s3 + $0x12c8] sm:$0xff] }
 0x430   :  { %5351 = vmatpush1.msra.mxu1 %v3198_v38  ;;  %5422 = vmatpush1.msra.mxu0 %v1376_v40  ;;  %v3579_v18 = vld [vmem:[%s16005_s3 + $0x4b28] sm:$0xff]  ;;  %v1757_v38 = vld [vmem:[%s16005_s3 + $0x1238] sm:$0xff]  ;;  %v3578_v40 = vld [vmem:[%s16005_s3 + $0x4b20] sm:$0xff] }
 0x431   :  { %5352 = vmatprep.subr.mxu1 %v3180_v42  ;;  %5423 = vmatprep.subr.mxu0 %v1358_v43  ;;  %v1756_v42 = vld [vmem:[%s16005_s3 + $0x1230] sm:$0xff] }
 0x432   :  { %5353 = vmatpush1.msra.mxu1 %v3179_v24  ;;  %5424 = vmatpush1.msra.mxu0 %v1357_v45  ;;  %v3560_v43 = vld [vmem:[%s16005_s3 + $0x4a90] sm:$0xff]  ;;  %v1738_v24 = vld [vmem:[%s16005_s3 + $0x11a0] sm:$0xff]  ;;  %v3559_v45 = vld [vmem:[%s16005_s3 + $0x4a88] sm:$0xff] }
 0x433   :  { %5354 = vmatprep.subr.mxu1 %v3161_v26  ;;  %5425 = vmatprep.subr.mxu0 %v1339_v47  ;;  %v1737_v26 = vld [vmem:[%s16005_s3 + $0x1198] sm:$0xff] }
 0x434   :  { %5355 = vmatpush1.msra.mxu1 %v3160_v48  ;;  %5426 = vmatpush1.msra.mxu0 %v1338_v49  ;;  %v3541_v47 = vld [vmem:[%s16005_s3 + $0x49f8] sm:$0xff]  ;;  %v1719_v48 = vld [vmem:[%s16005_s3 + $0x1108] sm:$0xff]  ;;  %v3540_v49 = vld [vmem:[%s16005_s3 + $0x49f0] sm:$0xff] }
 0x435   :  { %5356 = vmatprep.subr.mxu1 %v3142_v50  ;;  %5427 = vmatprep.subr.mxu0 %v1320_v51  ;;  %v1718_v50 = vld [vmem:[%s16005_s3 + $0x1100] sm:$0xff] }
 0x436   :  { %5357 = vmatpush1.msra.mxu1 %v3141_v28  ;;  %5428 = vmatpush1.msra.mxu0 %v1319_v53  ;;  %v3522_v51 = vld [vmem:[%s16005_s3 + $0x4960] sm:$0xff]  ;;  %v1700_v28 = vld [vmem:[%s16005_s3 + $0x1070] sm:$0xff]  ;;  %v3521_v53 = vld [vmem:[%s16005_s3 + $0x4958] sm:$0xff] }
 0x437   :  { %5358 = vmatprep.subr.mxu1 %v3123_v54  ;;  %5429 = vmatprep.subr.mxu0 %v1301_v55  ;;  %v1699_v54 = vld [vmem:[%s16005_s3 + $0x1068] sm:$0xff] }
 0x438   :  { %5359 = vmatpush1.msra.mxu1 %v3122_v56  ;;  %5430 = vmatpush1.msra.mxu0 %v1300_v58  ;;  %v3503_v55 = vld [vmem:[%s16005_s3 + $0x48c8] sm:$0xff]  ;;  %v1681_v56 = vld [vmem:[%s16005_s3 + $0xfd8] sm:$0xff]  ;;  %v3502_v58 = vld [vmem:[%s16005_s3 + $0x48c0] sm:$0xff] }
 0x439   :  { %5360 = vmatprep.subr.mxu1 %v3104_v60  ;;  %5431 = vmatprep.subr.mxu0 %v1282_v63  ;;  %v1680_v60 = vld [vmem:[%s16005_s3 + $0xfd0] sm:$0xff] }
 0x43a   :  { %5361 = vmatpush1.msra.mxu1 %v3103_v1  ;;  %5432 = vmatpush1.msra.mxu0 %v1281_v2  ;;  %v3484_v63 = vld [vmem:[%s16005_s3 + $0x4830] sm:$0xff]  ;;  %v1662_v1 = vld [vmem:[%s16005_s3 + $0xf40] sm:$0xff]  ;;  %v3483_v2 = vld [vmem:[%s16005_s3 + $0x4828] sm:$0xff] }
 0x43b   :  { %5362 = vmatprep.subr.mxu1 %v3085_v8  ;;  %5433 = vmatprep.subr.mxu0 %v1263_v61  ;;  %v1661_v8 = vld [vmem:[%s16005_s3 + $0xf38] sm:$0xff] }
 0x43c   :  { %5363 = vmatpush1.msra.mxu1 %v3084_v62  ;;  %5434 = vmatpush1.msra.mxu0 %v1262_v7  ;;  %v3465_v61 = vld [vmem:[%s16005_s3 + $0x4798] sm:$0xff]  ;;  %v1643_v62 = vld [vmem:[%s16005_s3 + $0xea8] sm:$0xff]  ;;  %v3464_v7 = vld [vmem:[%s16005_s3 + $0x4790] sm:$0xff] }
 0x43d   :  { %5364 = vmatprep.subr.mxu1 %v3066_v9  ;;  %5435 = vmatprep.subr.mxu0 %v1244_v10  ;;  %v1642_v9 = vld [vmem:[%s16005_s3 + $0xea0] sm:$0xff] }
 0x43e   :  { %5365 = vmatpush1.msra.mxu1 %v3065_v33  ;;  %5436 = vmatpush1.msra.mxu0 %v1243_v14  ;;  %v3446_v10 = vld [vmem:[%s16005_s3 + $0x4700] sm:$0xff]  ;;  %v1624_v33 = vld [vmem:[%s16005_s3 + $0xe10] sm:$0xff]  ;;  %v3445_v14 = vld [vmem:[%s16005_s3 + $0x46f8] sm:$0xff] }
 0x43f   :  { %5366 = vmatprep.subr.mxu1 %v3047_v16  ;;  %5437 = vmatprep.subr.mxu0 %v1225_v5  ;;  %v1623_v16 = vld [vmem:[%s16005_s3 + $0xe08] sm:$0xff] }
 0x440   :  { %5367 = vmatpush1.msra.mxu1 %v3046_v17  ;;  %5438 = vmatpush1.msra.mxu0 %v1224_v11  ;;  %v3427_v5 = vld [vmem:[%s16005_s3 + $0x4668] sm:$0xff]  ;;  %v1605_v17 = vld [vmem:[%s16005_s3 + $0xd78] sm:$0xff]  ;;  %v3426_v11 = vld [vmem:[%s16005_s3 + $0x4660] sm:$0xff] }
 0x441   :  { %5368 = vmatprep.subr.mxu1 %v3028_v19  ;;  %5439 = vmatprep.subr.mxu0 %v1206_v41  ;;  %v1604_v19 = vld [vmem:[%s16005_s3 + $0xd70] sm:$0xff] }
 0x442   :  { %5369 = vmatpush1.msra.mxu1 %v3027_v20  ;;  %5440 = vmatpush1.msra.mxu0 %v1205_v21  ;;  %v3408_v41 = vld [vmem:[%s16005_s3 + $0x45d0] sm:$0xff]  ;;  %v1586_v20 = vld [vmem:[%s16005_s3 + $0xce0] sm:$0xff]  ;;  %v3407_v21 = vld [vmem:[%s16005_s3 + $0x45c8] sm:$0xff] }
 0x443   :  { %5370 = vmatprep.subr.mxu1 %v3009_v23  ;;  %5441 = vmatprep.subr.mxu0 %v1187_v12  ;;  %v1585_v23 = vld [vmem:[%s16005_s3 + $0xcd8] sm:$0xff] }
 0x444   :  { %5371 = vmatpush1.msra.mxu1 %v3008_v27  ;;  %5442 = vmatpush1.msra.mxu0 %v1186_v59  ;;  %v3389_v12 = vld [vmem:[%s16005_s3 + $0x4538] sm:$0xff]  ;;  %v1567_v27 = vld [vmem:[%s16005_s3 + $0xc48] sm:$0xff]  ;;  %v3388_v59 = vld [vmem:[%s16005_s3 + $0x4530] sm:$0xff] }
 0x445   :  { %5372 = vmatprep.subr.mxu1 %v3598_v39  ;;  %5443 = vmatprep.subr.mxu0 %v1776_v34  ;;  %v1566_v39 = vld [vmem:[%s16005_s3 + $0xc40] sm:$0xff] }
 0x446   :  { %5373 = vmatpush2.msra.mxu1 %v3597_v35  ;;  %5444 = vmatpush2.msra.mxu0 %v1775_v37  ;;  %v3370_v34 = vld [vmem:[%s16005_s3 + $0x44a0] sm:$0xff]  ;;  %v1548_v35 = vld [vmem:[%s16005_s3 + $0xbb0] sm:$0xff]  ;;  %v3369_v37 = vld [vmem:[%s16005_s3 + $0x4498] sm:$0xff] }
 0x447   :  { %5374 = vmatprep.subr.mxu1 %v3579_v18  ;;  %5445 = vmatprep.subr.mxu0 %v1757_v38  ;;  %v1547_v18 = vld [vmem:[%s16005_s3 + $0xba8] sm:$0xff] }
 0x448   :  { %5375 = vmatpush2.msra.mxu1 %v3578_v40  ;;  %5446 = vmatpush2.msra.mxu0 %v1756_v42  ;;  %v3351_v38 = vld [vmem:[%s16005_s3 + $0x4408] sm:$0xff]  ;;  %v1529_v40 = vld [vmem:[%s16005_s3 + $0xb18] sm:$0xff]  ;;  %v3350_v42 = vld [vmem:[%s16005_s3 + $0x4400] sm:$0xff] }
 0x449   :  { %5376 = vmatprep.subr.mxu1 %v3560_v43  ;;  %5447 = vmatprep.subr.mxu0 %v1738_v24  ;;  %v1528_v43 = vld [vmem:[%s16005_s3 + $0xb10] sm:$0xff] }
 0x44a   :  { %5377 = vmatpush2.msra.mxu1 %v3559_v45  ;;  %5448 = vmatpush2.msra.mxu0 %v1737_v26  ;;  %v3332_v24 = vld [vmem:[%s16005_s3 + $0x4370] sm:$0xff]  ;;  %v1510_v45 = vld [vmem:[%s16005_s3 + $0xa80] sm:$0xff]  ;;  %v3331_v26 = vld [vmem:[%s16005_s3 + $0x4368] sm:$0xff] }
 0x44b   :  { %5378 = vmatprep.subr.mxu1 %v3541_v47  ;;  %5449 = vmatprep.subr.mxu0 %v1719_v48  ;;  %v1509_v47 = vld [vmem:[%s16005_s3 + $0xa78] sm:$0xff] }
 0x44c   :  { %5379 = vmatpush2.msra.mxu1 %v3540_v49  ;;  %5450 = vmatpush2.msra.mxu0 %v1718_v50  ;;  %v3313_v48 = vld [vmem:[%s16005_s3 + $0x42d8] sm:$0xff]  ;;  %v1491_v49 = vld [vmem:[%s16005_s3 + $0x9e8] sm:$0xff]  ;;  %v3312_v50 = vld [vmem:[%s16005_s3 + $0x42d0] sm:$0xff] }
 0x44d   :  { %5380 = vmatprep.subr.mxu1 %v3522_v51  ;;  %5451 = vmatprep.subr.mxu0 %v1700_v28  ;;  %v1490_v51 = vld [vmem:[%s16005_s3 + $0x9e0] sm:$0xff]  ;;  %v2080_v28 = vld [vmem:[%s16005_s3 + $0x1c50] sm:$0xff] }
 0x44e   :  { %5381 = vmatpush2.msra.mxu1 %v3521_v53  ;;  %5452 = vmatpush2.msra.mxu0 %v1699_v54  ;;  %v2688_v53 = vld [vmem:[%s16005_s3 + $0x2f50] sm:$0xff]  ;;  %v2079_v54 = vld [vmem:[%s16005_s3 + $0x1c48] sm:$0xff] }
 0x44f   :  { %5382 = vmatprep.subr.mxu1 %v3503_v55  ;;  %5453 = vmatprep.subr.mxu0 %v1681_v56  ;;  %v2687_v55 = vld [vmem:[%s16005_s3 + $0x2f48] sm:$0xff]  ;;  %v2061_v56 = vld [vmem:[%s16005_s3 + $0x1bb8] sm:$0xff] }
 0x450   :  { %5383 = vmatpush2.msra.mxu1 %v3502_v58  ;;  %5454 = vmatpush2.msra.mxu0 %v1680_v60  ;;  %v2669_v58 = vld [vmem:[%s16005_s3 + $0x2eb8] sm:$0xff]  ;;  %v2060_v60 = vld [vmem:[%s16005_s3 + $0x1bb0] sm:$0xff] }
 0x451   :  { %5384 = vmatprep.subr.mxu1 %v3484_v63  ;;  %5455 = vmatprep.subr.mxu0 %v1662_v1  ;;  %v2668_v63 = vld [vmem:[%s16005_s3 + $0x2eb0] sm:$0xff]  ;;  %v2042_v1 = vld [vmem:[%s16005_s3 + $0x1b20] sm:$0xff] }
 0x452   :  { %5385 = vmatpush2.msra.mxu1 %v3483_v2  ;;  %5456 = vmatpush2.msra.mxu0 %v1661_v8  ;;  %v2650_v2 = vld [vmem:[%s16005_s3 + $0x2e20] sm:$0xff]  ;;  %v2041_v8 = vld [vmem:[%s16005_s3 + $0x1b18] sm:$0xff] }
 0x453   :  { %5386 = vmatprep.subr.mxu1 %v3465_v61  ;;  %5457 = vmatprep.subr.mxu0 %v1643_v62  ;;  %v2649_v61 = vld [vmem:[%s16005_s3 + $0x2e18] sm:$0xff]  ;;  %v2023_v62 = vld [vmem:[%s16005_s3 + $0x1a88] sm:$0xff] }
 0x454   :  { %5387 = vmatpush2.msra.mxu1 %v3464_v7  ;;  %5458 = vmatpush2.msra.mxu0 %v1642_v9  ;;  %v2631_v7 = vld [vmem:[%s16005_s3 + $0x2d88] sm:$0xff]  ;;  %v2022_v9 = vld [vmem:[%s16005_s3 + $0x1a80] sm:$0xff] }
 0x455   :  { %5388 = vmatprep.subr.mxu1 %v3446_v10  ;;  %5459 = vmatprep.subr.mxu0 %v1624_v33  ;;  %v2630_v10 = vld [vmem:[%s16005_s3 + $0x2d80] sm:$0xff]  ;;  %v2004_v33 = vld [vmem:[%s16005_s3 + $0x19f0] sm:$0xff] }
 0x456   :  { %5389 = vmatpush2.msra.mxu1 %v3445_v14  ;;  %5460 = vmatpush2.msra.mxu0 %v1623_v16  ;;  %v2612_v14 = vld [vmem:[%s16005_s3 + $0x2cf0] sm:$0xff]  ;;  %v2003_v16 = vld [vmem:[%s16005_s3 + $0x19e8] sm:$0xff] }
 0x457   :  { %5390 = vmatprep.subr.mxu1 %v3427_v5  ;;  %5461 = vmatprep.subr.mxu0 %v1605_v17  ;;  %v2611_v5 = vld [vmem:[%s16005_s3 + $0x2ce8] sm:$0xff]  ;;  %v1985_v17 = vld [vmem:[%s16005_s3 + $0x1958] sm:$0xff] }
 0x458   :  { %5391 = vmatpush2.msra.mxu1 %v3426_v11  ;;  %5462 = vmatpush2.msra.mxu0 %v1604_v19  ;;  %v2593_v11 = vld [vmem:[%s16005_s3 + $0x2c58] sm:$0xff]  ;;  %v1984_v19 = vld [vmem:[%s16005_s3 + $0x1950] sm:$0xff] }
 0x459   :  { %5392 = vmatprep.subr.mxu1 %v3408_v41  ;;  %5463 = vmatprep.subr.mxu0 %v1586_v20  ;;  %v2592_v41 = vld [vmem:[%s16005_s3 + $0x2c50] sm:$0xff]  ;;  %v1966_v20 = vld [vmem:[%s16005_s3 + $0x18c0] sm:$0xff] }
 0x45a   :  { %5393 = vmatpush2.msra.mxu1 %v3407_v21  ;;  %5464 = vmatpush2.msra.mxu0 %v1585_v23  ;;  %v2574_v21 = vld [vmem:[%s16005_s3 + $0x2bc0] sm:$0xff]  ;;  %v1965_v23 = vld [vmem:[%s16005_s3 + $0x18b8] sm:$0xff] }
 0x45b   :  { %5394 = vmatprep.subr.mxu1 %v3389_v12  ;;  %5465 = vmatprep.subr.mxu0 %v1567_v27  ;;  %v2573_v12 = vld [vmem:[%s16005_s3 + $0x2bb8] sm:$0xff]  ;;  %v1947_v27 = vld [vmem:[%s16005_s3 + $0x1828] sm:$0xff] }
 0x45c   :  { %5395 = vmatpush2.msra.mxu1 %v3388_v59  ;;  %5466 = vmatpush2.msra.mxu0 %v1566_v39  ;;  %v2555_v59 = vld [vmem:[%s16005_s3 + $0x2b28] sm:$0xff]  ;;  %v1946_v39 = vld [vmem:[%s16005_s3 + $0x1820] sm:$0xff] }
 0x45d   :  { %5396 = vmatprep.subr.mxu1 %v3370_v34  ;;  %5467 = vmatprep.subr.mxu0 %v1548_v35  ;;  %v2554_v34 = vld [vmem:[%s16005_s3 + $0x2b20] sm:$0xff]  ;;  %v1928_v35 = vld [vmem:[%s16005_s3 + $0x1790] sm:$0xff] }
 0x45e   :  { %5397 = vmatpush2.msra.mxu1 %v3369_v37  ;;  %5468 = vmatpush2.msra.mxu0 %v1547_v18  ;;  %v2536_v37 = vld [vmem:[%s16005_s3 + $0x2a90] sm:$0xff]  ;;  %v1927_v18 = vld [vmem:[%s16005_s3 + $0x1788] sm:$0xff] }
 0x45f   :  { %5398 = vmatprep.subr.mxu1 %v3351_v38  ;;  %5469 = vmatprep.subr.mxu0 %v1529_v40  ;;  %v2535_v38 = vld [vmem:[%s16005_s3 + $0x2a88] sm:$0xff]  ;;  %v1909_v40 = vld [vmem:[%s16005_s3 + $0x16f8] sm:$0xff] }
 0x460   :  { %5399 = vmatpush2.msra.mxu1 %v3350_v42  ;;  %5470 = vmatpush2.msra.mxu0 %v1528_v43  ;;  %v2517_v42 = vld [vmem:[%s16005_s3 + $0x29f8] sm:$0xff]  ;;  %v1908_v43 = vld [vmem:[%s16005_s3 + $0x16f0] sm:$0xff] }
 0x461   :  { %5400 = vmatprep.subr.mxu1 %v3332_v24  ;;  %5471 = vmatprep.subr.mxu0 %v1510_v45  ;;  %v2516_v24 = vld [vmem:[%s16005_s3 + $0x29f0] sm:$0xff]  ;;  %v1890_v45 = vld [vmem:[%s16005_s3 + $0x1660] sm:$0xff] }
 0x462   :  { %5401 = vmatpush2.msra.mxu1 %v3331_v26  ;;  %5472 = vmatpush2.msra.mxu0 %v1509_v47  ;;  %v2498_v26 = vld [vmem:[%s16005_s3 + $0x2960] sm:$0xff]  ;;  %v1889_v47 = vld [vmem:[%s16005_s3 + $0x1658] sm:$0xff] }
 0x463   :  { %5402 = vmatprep.subr.mxu1 %v3313_v48  ;;  %5473 = vmatprep.subr.mxu0 %v1491_v49  ;;  %v2497_v48 = vld [vmem:[%s16005_s3 + $0x2958] sm:$0xff]  ;;  %v1871_v49 = vld [vmem:[%s16005_s3 + $0x15c8] sm:$0xff] }
 0x464   :  { %5403 = vmatpush2.msra.mxu1 %v3312_v50  ;;  %5474 = vmatpush2.msra.mxu0 %v1490_v51  ;;  %v2479_v50 = vld [vmem:[%s16005_s3 + $0x28c8] sm:$0xff]  ;;  %v1870_v51 = vld [vmem:[%s16005_s3 + $0x15c0] sm:$0xff] }
 0x465   :  { %5405 = vmatmul.mubr.f32.vlgmr.msra.gmra.mxu1 %v9518_v46  ;;  %5476 = vmatmul.mubr.f32.vlgmr.msra.gmra.mxu0 %v8883_v22 }
 0x466   :  { %5482 = vmatprep.subr.mxu1 %v2080_v28  ;;  %5553 = vmatprep.subr.mxu0 %v2688_v53  ;;  %v2478_v28 = vld [vmem:[%s16005_s3 + $0x28c0] sm:$0xff]  ;;  %v1852_v53 = vld [vmem:[%s16005_s3 + $0x1530] sm:$0xff] }
 0x467   :  { %5483 = vmatpush1.msra.mxu1 %v2079_v54  ;;  %5546 = vmatprep.mubr.f32.mxu1 %v8898_v29  ;;  %v2460_v54 = vld [vmem:[%s16005_s3 + $0x2830] sm:$0xff] }
 0x468   :  { %5554 = vmatpush1.msra.mxu0 %v2687_v55  ;;  %5617 = vmatprep.mubr.f32.mxu0 %v9297_v3  ;;  %v1851_v55 = vld [vmem:[%s16005_s3 + $0x1528] sm:$0xff] }
 0x469   :  { %5484 = vmatprep.subr.mxu1 %v2061_v56  ;;  %5555 = vmatprep.subr.mxu0 %v2669_v58  ;;  %v2459_v56 = vld [vmem:[%s16005_s3 + $0x2828] sm:$0xff]  ;;  %v1833_v58 = vld [vmem:[%s16005_s3 + $0x1498] sm:$0xff] }
 0x46a   :  { %5485 = vmatpush1.msra.mxu1 %v2060_v60  ;;  %5556 = vmatpush1.msra.mxu0 %v2668_v63  ;;  %v2441_v60 = vld [vmem:[%s16005_s3 + $0x2798] sm:$0xff]  ;;  %v1832_v63 = vld [vmem:[%s16005_s3 + $0x1490] sm:$0xff] }
 0x46b   :  { %5486 = vmatprep.subr.mxu1 %v2042_v1  ;;  %5557 = vmatprep.subr.mxu0 %v2650_v2  ;;  %v2440_v1 = vld [vmem:[%s16005_s3 + $0x2790] sm:$0xff]  ;;  %v1814_v2 = vld [vmem:[%s16005_s3 + $0x1400] sm:$0xff] }
 0x46c   :  { %5487 = vmatpush1.msra.mxu1 %v2041_v8  ;;  %5558 = vmatpush1.msra.mxu0 %v2649_v61  ;;  %v2422_v8 = vld [vmem:[%s16005_s3 + $0x2700] sm:$0xff]  ;;  %v1813_v61 = vld [vmem:[%s16005_s3 + $0x13f8] sm:$0xff] }
 0x46d   :  { %5488 = vmatprep.subr.mxu1 %v2023_v62  ;;  %5559 = vmatprep.subr.mxu0 %v2631_v7  ;;  %v2421_v62 = vld [vmem:[%s16005_s3 + $0x26f8] sm:$0xff]  ;;  %v1795_v7 = vld [vmem:[%s16005_s3 + $0x1368] sm:$0xff] }
 0x46e   :  { %5489 = vmatpush1.msra.mxu1 %v2022_v9  ;;  %5560 = vmatpush1.msra.mxu0 %v2630_v10  ;;  %v2403_v9 = vld [vmem:[%s16005_s3 + $0x2668] sm:$0xff]  ;;  %v1794_v10 = vld [vmem:[%s16005_s3 + $0x1360] sm:$0xff] }
 0x46f   :  { %5490 = vmatprep.subr.mxu1 %v2004_v33  ;;  %5561 = vmatprep.subr.mxu0 %v2612_v14  ;;  %v2402_v33 = vld [vmem:[%s16005_s3 + $0x2660] sm:$0xff]  ;;  %v2384_v14 = vld [vmem:[%s16005_s3 + $0x25d0] sm:$0xff] }
 0x470   :  { %5491 = vmatpush1.msra.mxu1 %v2003_v16  ;;  %5562 = vmatpush1.msra.mxu0 %v2611_v5  ;;  %v2992_v16 = vld [vmem:[%s16005_s3 + $0x38d0] sm:$0xff]  ;;  %v2383_v5 = vld [vmem:[%s16005_s3 + $0x25c8] sm:$0xff] }
 0x471   :  { %5492 = vmatprep.subr.mxu1 %v1985_v17  ;;  %5563 = vmatprep.subr.mxu0 %v2593_v11  ;;  %v2991_v17 = vld [vmem:[%s16005_s3 + $0x38c8] sm:$0xff]  ;;  %v2365_v11 = vld [vmem:[%s16005_s3 + $0x2538] sm:$0xff] }
 0x472   :  { %5493 = vmatpush1.msra.mxu1 %v1984_v19  ;;  %5564 = vmatpush1.msra.mxu0 %v2592_v41  ;;  %v2973_v19 = vld [vmem:[%s16005_s3 + $0x3838] sm:$0xff]  ;;  %v2364_v41 = vld [vmem:[%s16005_s3 + $0x2530] sm:$0xff] }
 0x473   :  { %5494 = vmatprep.subr.mxu1 %v1966_v20  ;;  %5565 = vmatprep.subr.mxu0 %v2574_v21  ;;  %v2972_v20 = vld [vmem:[%s16005_s3 + $0x3830] sm:$0xff]  ;;  %v2346_v21 = vld [vmem:[%s16005_s3 + $0x24a0] sm:$0xff] }
 0x474   :  { %5495 = vmatpush1.msra.mxu1 %v1965_v23  ;;  %5566 = vmatpush1.msra.mxu0 %v2573_v12  ;;  %v2954_v23 = vld [vmem:[%s16005_s3 + $0x37a0] sm:$0xff]  ;;  %v2345_v12 = vld [vmem:[%s16005_s3 + $0x2498] sm:$0xff] }
 0x475   :  { %5496 = vmatprep.subr.mxu1 %v1947_v27  ;;  %5567 = vmatprep.subr.mxu0 %v2555_v59  ;;  %v2953_v27 = vld [vmem:[%s16005_s3 + $0x3798] sm:$0xff]  ;;  %v2327_v59 = vld [vmem:[%s16005_s3 + $0x2408] sm:$0xff] }
 0x476   :  { %5497 = vmatpush1.msra.mxu1 %v1946_v39  ;;  %5568 = vmatpush1.msra.mxu0 %v2554_v34  ;;  %v2935_v39 = vld [vmem:[%s16005_s3 + $0x3708] sm:$0xff]  ;;  %v2326_v34 = vld [vmem:[%s16005_s3 + $0x2400] sm:$0xff] }
 0x477   :  { %5498 = vmatprep.subr.mxu1 %v1928_v35  ;;  %5569 = vmatprep.subr.mxu0 %v2536_v37  ;;  %v2934_v35 = vld [vmem:[%s16005_s3 + $0x3700] sm:$0xff]  ;;  %v2308_v37 = vld [vmem:[%s16005_s3 + $0x2370] sm:$0xff] }
 0x478   :  { %5499 = vmatpush1.msra.mxu1 %v1927_v18  ;;  %5570 = vmatpush1.msra.mxu0 %v2535_v38  ;;  %v2916_v18 = vld [vmem:[%s16005_s3 + $0x3670] sm:$0xff]  ;;  %v2307_v38 = vld [vmem:[%s16005_s3 + $0x2368] sm:$0xff] }
 0x479   :  { %5500 = vmatprep.subr.mxu1 %v1909_v40  ;;  %5571 = vmatprep.subr.mxu0 %v2517_v42  ;;  %v2915_v40 = vld [vmem:[%s16005_s3 + $0x3668] sm:$0xff]  ;;  %v2289_v42 = vld [vmem:[%s16005_s3 + $0x22d8] sm:$0xff] }
 0x47a   :  { %5501 = vmatpush1.msra.mxu1 %v1908_v43  ;;  %5572 = vmatpush1.msra.mxu0 %v2516_v24  ;;  %v2897_v43 = vld [vmem:[%s16005_s3 + $0x35d8] sm:$0xff]  ;;  %v2288_v24 = vld [vmem:[%s16005_s3 + $0x22d0] sm:$0xff] }
 0x47b   :  { %5502 = vmatprep.subr.mxu1 %v1890_v45  ;;  %5573 = vmatprep.subr.mxu0 %v2498_v26  ;;  %v2896_v45 = vld [vmem:[%s16005_s3 + $0x35d0] sm:$0xff]  ;;  %v2270_v26 = vld [vmem:[%s16005_s3 + $0x2240] sm:$0xff] }
 0x47c   :  { %5503 = vmatpush1.msra.mxu1 %v1889_v47  ;;  %5574 = vmatpush1.msra.mxu0 %v2497_v48  ;;  %v2878_v47 = vld [vmem:[%s16005_s3 + $0x3540] sm:$0xff]  ;;  %v2269_v48 = vld [vmem:[%s16005_s3 + $0x2238] sm:$0xff] }
 0x47d   :  { %5504 = vmatprep.subr.mxu1 %v1871_v49  ;;  %5575 = vmatprep.subr.mxu0 %v2479_v50  ;;  %v2877_v49 = vld [vmem:[%s16005_s3 + $0x3538] sm:$0xff]  ;;  %v2251_v50 = vld [vmem:[%s16005_s3 + $0x21a8] sm:$0xff] }
 0x47e   :  { %5505 = vmatpush1.msra.mxu1 %v1870_v51  ;;  %5576 = vmatpush1.msra.mxu0 %v2478_v28  ;;  %v2859_v51 = vld [vmem:[%s16005_s3 + $0x34a8] sm:$0xff]  ;;  %v2250_v28 = vld [vmem:[%s16005_s3 + $0x21a0] sm:$0xff] }
 0x47f   :  { %5506 = vmatprep.subr.mxu1 %v1852_v53  ;;  %5577 = vmatprep.subr.mxu0 %v2460_v54  ;;  %v2858_v53 = vld [vmem:[%s16005_s3 + $0x34a0] sm:$0xff]  ;;  %v2232_v54 = vld [vmem:[%s16005_s3 + $0x2110] sm:$0xff] }
 0x480   :  { %5507 = vmatpush1.msra.mxu1 %v1851_v55  ;;  %5578 = vmatpush1.msra.mxu0 %v2459_v56  ;;  %v2840_v55 = vld [vmem:[%s16005_s3 + $0x3410] sm:$0xff]  ;;  %v2231_v56 = vld [vmem:[%s16005_s3 + $0x2108] sm:$0xff] }
 0x481   :  { %5508 = vmatprep.subr.mxu1 %v1833_v58  ;;  %5579 = vmatprep.subr.mxu0 %v2441_v60  ;;  %v2839_v58 = vld [vmem:[%s16005_s3 + $0x3408] sm:$0xff]  ;;  %v2213_v60 = vld [vmem:[%s16005_s3 + $0x2078] sm:$0xff] }
 0x482   :  { %5509 = vmatpush1.msra.mxu1 %v1832_v63  ;;  %5580 = vmatpush1.msra.mxu0 %v2440_v1  ;;  %v2821_v63 = vld [vmem:[%s16005_s3 + $0x3378] sm:$0xff]  ;;  %v2212_v1 = vld [vmem:[%s16005_s3 + $0x2070] sm:$0xff] }
 0x483   :  { %5510 = vmatprep.subr.mxu1 %v1814_v2  ;;  %5581 = vmatprep.subr.mxu0 %v2422_v8  ;;  %v2820_v2 = vld [vmem:[%s16005_s3 + $0x3370] sm:$0xff]  ;;  %v2194_v8 = vld [vmem:[%s16005_s3 + $0x1fe0] sm:$0xff] }
 0x484   :  { %5511 = vmatpush1.msra.mxu1 %v1813_v61  ;;  %5582 = vmatpush1.msra.mxu0 %v2421_v62  ;;  %v2802_v61 = vld [vmem:[%s16005_s3 + $0x32e0] sm:$0xff]  ;;  %v2193_v62 = vld [vmem:[%s16005_s3 + $0x1fd8] sm:$0xff] }
 0x485   :  { %5512 = vmatprep.subr.mxu1 %v1795_v7  ;;  %5583 = vmatprep.subr.mxu0 %v2403_v9  ;;  %v2801_v7 = vld [vmem:[%s16005_s3 + $0x32d8] sm:$0xff]  ;;  %v2175_v9 = vld [vmem:[%s16005_s3 + $0x1f48] sm:$0xff] }
 0x486   :  { %5513 = vmatpush1.msra.mxu1 %v1794_v10  ;;  %5584 = vmatpush1.msra.mxu0 %v2402_v33  ;;  %v2783_v10 = vld [vmem:[%s16005_s3 + $0x3248] sm:$0xff]  ;;  %v2174_v33 = vld [vmem:[%s16005_s3 + $0x1f40] sm:$0xff] }
 0x487   :  { %5514 = vmatprep.subr.mxu1 %v2384_v14  ;;  %5585 = vmatprep.subr.mxu0 %v2992_v16  ;;  %v2782_v14 = vld [vmem:[%s16005_s3 + $0x3240] sm:$0xff]  ;;  %v2156_v16 = vld [vmem:[%s16005_s3 + $0x1eb0] sm:$0xff] }
 0x488   :  { %5515 = vmatpush2.msra.mxu1 %v2383_v5  ;;  %5586 = vmatpush2.msra.mxu0 %v2991_v17  ;;  %v2764_v5 = vld [vmem:[%s16005_s3 + $0x31b0] sm:$0xff]  ;;  %v2155_v17 = vld [vmem:[%s16005_s3 + $0x1ea8] sm:$0xff] }
 0x489   :  { %5516 = vmatprep.subr.mxu1 %v2365_v11  ;;  %5587 = vmatprep.subr.mxu0 %v2973_v19  ;;  %v2763_v11 = vld [vmem:[%s16005_s3 + $0x31a8] sm:$0xff]  ;;  %v2137_v19 = vld [vmem:[%s16005_s3 + $0x1e18] sm:$0xff] }
 0x48a   :  { %5517 = vmatpush2.msra.mxu1 %v2364_v41  ;;  %5588 = vmatpush2.msra.mxu0 %v2972_v20  ;;  %v2745_v41 = vld [vmem:[%s16005_s3 + $0x3118] sm:$0xff]  ;;  %v2136_v20 = vld [vmem:[%s16005_s3 + $0x1e10] sm:$0xff] }
 0x48b   :  { %5518 = vmatprep.subr.mxu1 %v2346_v21  ;;  %5589 = vmatprep.subr.mxu0 %v2954_v23  ;;  %v2744_v21 = vld [vmem:[%s16005_s3 + $0x3110] sm:$0xff]  ;;  %v2118_v23 = vld [vmem:[%s16005_s3 + $0x1d80] sm:$0xff] }
 0x48c   :  { %5519 = vmatpush2.msra.mxu1 %v2345_v12  ;;  %5590 = vmatpush2.msra.mxu0 %v2953_v27  ;;  %v2726_v12 = vld [vmem:[%s16005_s3 + $0x3080] sm:$0xff]  ;;  %v2117_v27 = vld [vmem:[%s16005_s3 + $0x1d78] sm:$0xff] }
 0x48d   :  { %5520 = vmatprep.subr.mxu1 %v2327_v59  ;;  %5591 = vmatprep.subr.mxu0 %v2935_v39  ;;  %v2725_v59 = vld [vmem:[%s16005_s3 + $0x3078] sm:$0xff]  ;;  %v2099_v39 = vld [vmem:[%s16005_s3 + $0x1ce8] sm:$0xff] }
 0x48e   :  { %5521 = vmatpush2.msra.mxu1 %v2326_v34  ;;  %5592 = vmatpush2.msra.mxu0 %v2934_v35  ;;  %v2707_v34 = vld [vmem:[%s16005_s3 + $0x2fe8] sm:$0xff]  ;;  %v2098_v35 = vld [vmem:[%s16005_s3 + $0x1ce0] sm:$0xff] }
 0x48f   :  { %5522 = vmatprep.subr.mxu1 %v2308_v37  ;;  %5593 = vmatprep.subr.mxu0 %v2916_v18  ;;  %v2706_v37 = vld [vmem:[%s16005_s3 + $0x2fe0] sm:$0xff]  ;;  %v3296_v18 = vld [vmem:[%s16005_s3 + $0x4250] sm:$0xff] }
 0x490   :  { %5523 = vmatpush2.msra.mxu1 %v2307_v38  ;;  %5594 = vmatpush2.msra.mxu0 %v2915_v40  ;;  %v1474_v38 = vld [vmem:[%s16005_s3 + $0x960] sm:$0xff]  ;;  %v3295_v40 = vld [vmem:[%s16005_s3 + $0x4248] sm:$0xff] }
 0x491   :  { %5524 = vmatprep.subr.mxu1 %v2289_v42  ;;  %5595 = vmatprep.subr.mxu0 %v2897_v43  ;;  %v1473_v42 = vld [vmem:[%s16005_s3 + $0x958] sm:$0xff] }
 0x492   :  { %5525 = vmatpush2.msra.mxu1 %v2288_v24  ;;  %5596 = vmatpush2.msra.mxu0 %v2896_v45  ;;  %v3277_v43 = vld [vmem:[%s16005_s3 + $0x41b8] sm:$0xff]  ;;  %v1455_v24 = vld [vmem:[%s16005_s3 + $0x8c8] sm:$0xff]  ;;  %v3276_v45 = vld [vmem:[%s16005_s3 + $0x41b0] sm:$0xff] }
 0x493   :  { %5526 = vmatprep.subr.mxu1 %v2270_v26  ;;  %5597 = vmatprep.subr.mxu0 %v2878_v47  ;;  %v1454_v26 = vld [vmem:[%s16005_s3 + $0x8c0] sm:$0xff] }
 0x494   :  { %5527 = vmatpush2.msra.mxu1 %v2269_v48  ;;  %5598 = vmatpush2.msra.mxu0 %v2877_v49  ;;  %v3258_v47 = vld [vmem:[%s16005_s3 + $0x4120] sm:$0xff]  ;;  %v1436_v48 = vld [vmem:[%s16005_s3 + $0x830] sm:$0xff]  ;;  %v3257_v49 = vld [vmem:[%s16005_s3 + $0x4118] sm:$0xff] }
 0x495   :  { %5528 = vmatprep.subr.mxu1 %v2251_v50  ;;  %5599 = vmatprep.subr.mxu0 %v2859_v51  ;;  %v1435_v50 = vld [vmem:[%s16005_s3 + $0x828] sm:$0xff] }
 0x496   :  { %5529 = vmatpush2.msra.mxu1 %v2250_v28  ;;  %5600 = vmatpush2.msra.mxu0 %v2858_v53  ;;  %v3239_v51 = vld [vmem:[%s16005_s3 + $0x4088] sm:$0xff]  ;;  %v1417_v28 = vld [vmem:[%s16005_s3 + $0x798] sm:$0xff]  ;;  %v3238_v53 = vld [vmem:[%s16005_s3 + $0x4080] sm:$0xff] }
 0x497   :  { %5530 = vmatprep.subr.mxu1 %v2232_v54  ;;  %5601 = vmatprep.subr.mxu0 %v2840_v55  ;;  %v1416_v54 = vld [vmem:[%s16005_s3 + $0x790] sm:$0xff] }
 0x498   :  { %5531 = vmatpush2.msra.mxu1 %v2231_v56  ;;  %5602 = vmatpush2.msra.mxu0 %v2839_v58  ;;  %v3220_v55 = vld [vmem:[%s16005_s3 + $0x3ff0] sm:$0xff]  ;;  %v1398_v56 = vld [vmem:[%s16005_s3 + $0x700] sm:$0xff]  ;;  %v3219_v58 = vld [vmem:[%s16005_s3 + $0x3fe8] sm:$0xff] }
 0x499   :  { %5532 = vmatprep.subr.mxu1 %v2213_v60  ;;  %5603 = vmatprep.subr.mxu0 %v2821_v63  ;;  %v1397_v60 = vld [vmem:[%s16005_s3 + $0x6f8] sm:$0xff] }
 0x49a   :  { %5533 = vmatpush2.msra.mxu1 %v2212_v1  ;;  %5604 = vmatpush2.msra.mxu0 %v2820_v2  ;;  %v3201_v63 = vld [vmem:[%s16005_s3 + $0x3f58] sm:$0xff]  ;;  %v1379_v1 = vld [vmem:[%s16005_s3 + $0x668] sm:$0xff]  ;;  %v3200_v2 = vld [vmem:[%s16005_s3 + $0x3f50] sm:$0xff] }
 0x49b   :  { %5534 = vmatprep.subr.mxu1 %v2194_v8  ;;  %5605 = vmatprep.subr.mxu0 %v2802_v61  ;;  %v1378_v8 = vld [vmem:[%s16005_s3 + $0x660] sm:$0xff] }
 0x49c   :  { %5535 = vmatpush2.msra.mxu1 %v2193_v62  ;;  %5606 = vmatpush2.msra.mxu0 %v2801_v7  ;;  %v3182_v61 = vld [vmem:[%s16005_s3 + $0x3ec0] sm:$0xff]  ;;  %v1360_v62 = vld [vmem:[%s16005_s3 + $0x5d0] sm:$0xff]  ;;  %v3181_v7 = vld [vmem:[%s16005_s3 + $0x3eb8] sm:$0xff] }
 0x49d   :  { %5536 = vmatprep.subr.mxu1 %v2175_v9  ;;  %5607 = vmatprep.subr.mxu0 %v2783_v10  ;;  %v1359_v9 = vld [vmem:[%s16005_s3 + $0x5c8] sm:$0xff] }
 0x49e   :  { %5537 = vmatpush2.msra.mxu1 %v2174_v33  ;;  %5608 = vmatpush2.msra.mxu0 %v2782_v14  ;;  %v3163_v10 = vld [vmem:[%s16005_s3 + $0x3e28] sm:$0xff]  ;;  %v1341_v33 = vld [vmem:[%s16005_s3 + $0x538] sm:$0xff]  ;;  %v3162_v14 = vld [vmem:[%s16005_s3 + $0x3e20] sm:$0xff] }
 0x49f   :  { %5538 = vmatprep.subr.mxu1 %v2156_v16  ;;  %5609 = vmatprep.subr.mxu0 %v2764_v5  ;;  %v1340_v16 = vld [vmem:[%s16005_s3 + $0x530] sm:$0xff] }
 0x4a0   :  { %5539 = vmatpush2.msra.mxu1 %v2155_v17  ;;  %5610 = vmatpush2.msra.mxu0 %v2763_v11  ;;  %v3144_v5 = vld [vmem:[%s16005_s3 + $0x3d90] sm:$0xff]  ;;  %v1322_v17 = vld [vmem:[%s16005_s3 + $0x4a0] sm:$0xff]  ;;  %v3143_v11 = vld [vmem:[%s16005_s3 + $0x3d88] sm:$0xff] }
 0x4a1   :  { %5540 = vmatprep.subr.mxu1 %v2137_v19  ;;  %5611 = vmatprep.subr.mxu0 %v2745_v41  ;;  %v1321_v19 = vld [vmem:[%s16005_s3 + $0x498] sm:$0xff] }
 0x4a2   :  { %5541 = vmatpush2.msra.mxu1 %v2136_v20  ;;  %5612 = vmatpush2.msra.mxu0 %v2744_v21  ;;  %v3125_v41 = vld [vmem:[%s16005_s3 + $0x3cf8] sm:$0xff]  ;;  %v1303_v20 = vld [vmem:[%s16005_s3 + $0x408] sm:$0xff]  ;;  %v3124_v21 = vld [vmem:[%s16005_s3 + $0x3cf0] sm:$0xff] }
 0x4a3   :  { %5542 = vmatprep.subr.mxu1 %v2118_v23  ;;  %5613 = vmatprep.subr.mxu0 %v2726_v12  ;;  %v1302_v23 = vld [vmem:[%s16005_s3 + $0x400] sm:$0xff] }
 0x4a4   :  { %5543 = vmatpush2.msra.mxu1 %v2117_v27  ;;  %5614 = vmatpush2.msra.mxu0 %v2725_v59  ;;  %v3106_v12 = vld [vmem:[%s16005_s3 + $0x3c60] sm:$0xff]  ;;  %v1284_v27 = vld [vmem:[%s16005_s3 + $0x370] sm:$0xff]  ;;  %v3105_v59 = vld [vmem:[%s16005_s3 + $0x3c58] sm:$0xff] }
 0x4a5   :  { %5544 = vmatprep.subr.mxu1 %v2099_v39  ;;  %5615 = vmatprep.subr.mxu0 %v2707_v34  ;;  %v1283_v39 = vld [vmem:[%s16005_s3 + $0x368] sm:$0xff] }
 0x4a6   :  { %5545 = vmatpush2.msra.mxu1 %v2098_v35  ;;  %5616 = vmatpush2.msra.mxu0 %v2706_v37  ;;  %v3087_v34 = vld [vmem:[%s16005_s3 + $0x3bc8] sm:$0xff]  ;;  %v1265_v35 = vld [vmem:[%s16005_s3 + $0x2d8] sm:$0xff]  ;;  %v3086_v37 = vld [vmem:[%s16005_s3 + $0x3bc0] sm:$0xff] }
 0x4a7   :  { %5547 = vmatmul.mubr.f32.vlgmr.msra.gmra.mxu1 %v8903_v32  ;;  %5618 = vmatmul.mubr.f32.vlgmr.msra.gmra.mxu0 %v9299_v6 }
 0x4a8   :  { %5624 = vmatprep.subr.mxu1 %v3296_v18  ;;  %5695 = vmatprep.subr.mxu0 %v1474_v38  ;;  %v1264_v18 = vld [vmem:[%s16005_s3 + $0x2d0] sm:$0xff] }
 0x4a9   :  { %5625 = vmatpush1.msra.mxu1 %v3295_v40  ;;  %5688 = vmatprep.mubr.f32.mxu1 %v9512_v44  ;;  %v3068_v38 = vld [vmem:[%s16005_s3 + $0x3b30] sm:$0xff]  ;;  %v1246_v40 = vld [vmem:[%s16005_s3 + $0x240] sm:$0xff] }
 0x4aa   :  { %5696 = vmatpush1.msra.mxu0 %v1473_v42  ;;  %5759 = vmatprep.mubr.f32.mxu0 %v8497_v4  ;;  %v3067_v42 = vld [vmem:[%s16005_s3 + $0x3b28] sm:$0xff] }
 0x4ab   :  { %5626 = vmatprep.subr.mxu1 %v3277_v43  ;;  %5697 = vmatprep.subr.mxu0 %v1455_v24  ;;  %v1245_v43 = vld [vmem:[%s16005_s3 + $0x238] sm:$0xff] }
 0x4ac   :  { %5627 = vmatpush1.msra.mxu1 %v3276_v45  ;;  %5698 = vmatpush1.msra.mxu0 %v1454_v26  ;;  %v3049_v24 = vld [vmem:[%s16005_s3 + $0x3a98] sm:$0xff]  ;;  %v1227_v45 = vld [vmem:[%s16005_s3 + $0x1a8] sm:$0xff]  ;;  %v3048_v26 = vld [vmem:[%s16005_s3 + $0x3a90] sm:$0xff] }
 0x4ad   :  { %5628 = vmatprep.subr.mxu1 %v3258_v47  ;;  %5699 = vmatprep.subr.mxu0 %v1436_v48  ;;  %v1226_v47 = vld [vmem:[%s16005_s3 + $0x1a0] sm:$0xff] }
 0x4ae   :  { %5629 = vmatpush1.msra.mxu1 %v3257_v49  ;;  %5700 = vmatpush1.msra.mxu0 %v1435_v50  ;;  %v3030_v48 = vld [vmem:[%s16005_s3 + $0x3a00] sm:$0xff]  ;;  %v1208_v49 = vld [vmem:[%s16005_s3 + $0x110] sm:$0xff]  ;;  %v3029_v50 = vld [vmem:[%s16005_s3 + $0x39f8] sm:$0xff] }
 0x4af   :  { %5630 = vmatprep.subr.mxu1 %v3239_v51  ;;  %5701 = vmatprep.subr.mxu0 %v1417_v28  ;;  %v1207_v51 = vld [vmem:[%s16005_s3 + $0x108] sm:$0xff] }
 0x4b0   :  { %5631 = vmatpush1.msra.mxu1 %v3238_v53  ;;  %5702 = vmatpush1.msra.mxu0 %v1416_v54  ;;  %v3011_v28 = vld [vmem:[%s16005_s3 + $0x3968] sm:$0xff]  ;;  %v1189_v53 = vld [vmem:[%s16005_s3 + $0x78] sm:$0xff]  ;;  %v3010_v54 = vld [vmem:[%s16005_s3 + $0x3960] sm:$0xff] }
 0x4b1   :  { %5632 = vmatprep.subr.mxu1 %v3220_v55  ;;  %5703 = vmatprep.subr.mxu0 %v1398_v56  ;;  %v1188_v55 = vld [vmem:[%s16005_s3 + $0x70] sm:$0xff] }
 0x4b2   :  { %5633 = vmatpush1.msra.mxu1 %v3219_v58  ;;  %5704 = vmatpush1.msra.mxu0 %v1397_v60  ;;  %v3600_v56 = vld [vmem:[%s16005_s3 + $0x4bd0] sm:$0xff]  ;;  %v1778_v58 = vld [vmem:[%s16005_s3 + $0x12e0] sm:$0xff]  ;;  %v3599_v60 = vld [vmem:[%s16005_s3 + $0x4bc8] sm:$0xff] }
 0x4b3   :  { %5634 = vmatprep.subr.mxu1 %v3201_v63  ;;  %5705 = vmatprep.subr.mxu0 %v1379_v1  ;;  %v1777_v63 = vld [vmem:[%s16005_s3 + $0x12d8] sm:$0xff] }
 0x4b4   :  { %5635 = vmatpush1.msra.mxu1 %v3200_v2  ;;  %5706 = vmatpush1.msra.mxu0 %v1378_v8  ;;  %v3581_v1 = vld [vmem:[%s16005_s3 + $0x4b38] sm:$0xff]  ;;  %v1759_v2 = vld [vmem:[%s16005_s3 + $0x1248] sm:$0xff]  ;;  %v3580_v8 = vld [vmem:[%s16005_s3 + $0x4b30] sm:$0xff] }
 0x4b5   :  { %5636 = vmatprep.subr.mxu1 %v3182_v61  ;;  %5707 = vmatprep.subr.mxu0 %v1360_v62  ;;  %v1758_v61 = vld [vmem:[%s16005_s3 + $0x1240] sm:$0xff] }
 0x4b6   :  { %5637 = vmatpush1.msra.mxu1 %v3181_v7  ;;  %5708 = vmatpush1.msra.mxu0 %v1359_v9  ;;  %v3562_v62 = vld [vmem:[%s16005_s3 + $0x4aa0] sm:$0xff]  ;;  %v1740_v7 = vld [vmem:[%s16005_s3 + $0x11b0] sm:$0xff]  ;;  %v3561_v9 = vld [vmem:[%s16005_s3 + $0x4a98] sm:$0xff] }
 0x4b7   :  { %5638 = vmatprep.subr.mxu1 %v3163_v10  ;;  %5709 = vmatprep.subr.mxu0 %v1341_v33  ;;  %v1739_v10 = vld [vmem:[%s16005_s3 + $0x11a8] sm:$0xff] }
 0x4b8   :  { %5639 = vmatpush1.msra.mxu1 %v3162_v14  ;;  %5710 = vmatpush1.msra.mxu0 %v1340_v16  ;;  %v3543_v33 = vld [vmem:[%s16005_s3 + $0x4a08] sm:$0xff]  ;;  %v1721_v14 = vld [vmem:[%s16005_s3 + $0x1118] sm:$0xff]  ;;  %v3542_v16 = vld [vmem:[%s16005_s3 + $0x4a00] sm:$0xff] }
 0x4b9   :  { %5640 = vmatprep.subr.mxu1 %v3144_v5  ;;  %5711 = vmatprep.subr.mxu0 %v1322_v17  ;;  %v1720_v5 = vld [vmem:[%s16005_s3 + $0x1110] sm:$0xff] }
 0x4ba   :  { %5641 = vmatpush1.msra.mxu1 %v3143_v11  ;;  %5712 = vmatpush1.msra.mxu0 %v1321_v19  ;;  %v3524_v17 = vld [vmem:[%s16005_s3 + $0x4970] sm:$0xff]  ;;  %v1702_v11 = vld [vmem:[%s16005_s3 + $0x1080] sm:$0xff]  ;;  %v3523_v19 = vld [vmem:[%s16005_s3 + $0x4968] sm:$0xff] }
 0x4bb   :  { %5642 = vmatprep.subr.mxu1 %v3125_v41  ;;  %5713 = vmatprep.subr.mxu0 %v1303_v20  ;;  %v1701_v41 = vld [vmem:[%s16005_s3 + $0x1078] sm:$0xff] }
 0x4bc   :  { %5643 = vmatpush1.msra.mxu1 %v3124_v21  ;;  %5714 = vmatpush1.msra.mxu0 %v1302_v23  ;;  %v3505_v20 = vld [vmem:[%s16005_s3 + $0x48d8] sm:$0xff]  ;;  %v1683_v21 = vld [vmem:[%s16005_s3 + $0xfe8] sm:$0xff]  ;;  %v3504_v23 = vld [vmem:[%s16005_s3 + $0x48d0] sm:$0xff] }
 0x4bd   :  { %5644 = vmatprep.subr.mxu1 %v3106_v12  ;;  %5715 = vmatprep.subr.mxu0 %v1284_v27  ;;  %v1682_v12 = vld [vmem:[%s16005_s3 + $0xfe0] sm:$0xff] }
 0x4be   :  { %5645 = vmatpush1.msra.mxu1 %v3105_v59  ;;  %5716 = vmatpush1.msra.mxu0 %v1283_v39  ;;  %v3486_v27 = vld [vmem:[%s16005_s3 + $0x4840] sm:$0xff]  ;;  %v1664_v59 = vld [vmem:[%s16005_s3 + $0xf50] sm:$0xff]  ;;  %v3485_v39 = vld [vmem:[%s16005_s3 + $0x4838] sm:$0xff] }
 0x4bf   :  { %5646 = vmatprep.subr.mxu1 %v3087_v34  ;;  %5717 = vmatprep.subr.mxu0 %v1265_v35  ;;  %v1663_v34 = vld [vmem:[%s16005_s3 + $0xf48] sm:$0xff] }
 0x4c0   :  { %5647 = vmatpush1.msra.mxu1 %v3086_v37  ;;  %5718 = vmatpush1.msra.mxu0 %v1264_v18  ;;  %v3467_v35 = vld [vmem:[%s16005_s3 + $0x47a8] sm:$0xff]  ;;  %v1645_v37 = vld [vmem:[%s16005_s3 + $0xeb8] sm:$0xff]  ;;  %v3466_v18 = vld [vmem:[%s16005_s3 + $0x47a0] sm:$0xff] }
 0x4c1   :  { %5648 = vmatprep.subr.mxu1 %v3068_v38  ;;  %5719 = vmatprep.subr.mxu0 %v1246_v40  ;;  %v1644_v38 = vld [vmem:[%s16005_s3 + $0xeb0] sm:$0xff] }
 0x4c2   :  { %5649 = vmatpush1.msra.mxu1 %v3067_v42  ;;  %5720 = vmatpush1.msra.mxu0 %v1245_v43  ;;  %v3448_v40 = vld [vmem:[%s16005_s3 + $0x4710] sm:$0xff]  ;;  %v1626_v42 = vld [vmem:[%s16005_s3 + $0xe20] sm:$0xff]  ;;  %v3447_v43 = vld [vmem:[%s16005_s3 + $0x4708] sm:$0xff] }
 0x4c3   :  { %5650 = vmatprep.subr.mxu1 %v3049_v24  ;;  %5721 = vmatprep.subr.mxu0 %v1227_v45  ;;  %v1625_v24 = vld [vmem:[%s16005_s3 + $0xe18] sm:$0xff] }
 0x4c4   :  { %5651 = vmatpush1.msra.mxu1 %v3048_v26  ;;  %5722 = vmatpush1.msra.mxu0 %v1226_v47  ;;  %v3429_v45 = vld [vmem:[%s16005_s3 + $0x4678] sm:$0xff]  ;;  %v1607_v26 = vld [vmem:[%s16005_s3 + $0xd88] sm:$0xff]  ;;  %v3428_v47 = vld [vmem:[%s16005_s3 + $0x4670] sm:$0xff] }
 0x4c5   :  { %5652 = vmatprep.subr.mxu1 %v3030_v48  ;;  %5723 = vmatprep.subr.mxu0 %v1208_v49  ;;  %v1606_v48 = vld [vmem:[%s16005_s3 + $0xd80] sm:$0xff] }
 0x4c6   :  { %5653 = vmatpush1.msra.mxu1 %v3029_v50  ;;  %5724 = vmatpush1.msra.mxu0 %v1207_v51  ;;  %v3410_v49 = vld [vmem:[%s16005_s3 + $0x45e0] sm:$0xff]  ;;  %v1588_v50 = vld [vmem:[%s16005_s3 + $0xcf0] sm:$0xff]  ;;  %v3409_v51 = vld [vmem:[%s16005_s3 + $0x45d8] sm:$0xff] }
 0x4c7   :  { %5654 = vmatprep.subr.mxu1 %v3011_v28  ;;  %5725 = vmatprep.subr.mxu0 %v1189_v53  ;;  %v1587_v28 = vld [vmem:[%s16005_s3 + $0xce8] sm:$0xff] }
 0x4c8   :  { %5655 = vmatpush1.msra.mxu1 %v3010_v54  ;;  %5726 = vmatpush1.msra.mxu0 %v1188_v55  ;;  %v3391_v53 = vld [vmem:[%s16005_s3 + $0x4548] sm:$0xff]  ;;  %v1569_v54 = vld [vmem:[%s16005_s3 + $0xc58] sm:$0xff]  ;;  %v3390_v55 = vld [vmem:[%s16005_s3 + $0x4540] sm:$0xff] }
 0x4c9   :  { %5656 = vmatprep.subr.mxu1 %v3600_v56  ;;  %5727 = vmatprep.subr.mxu0 %v1778_v58  ;;  %v1568_v56 = vld [vmem:[%s16005_s3 + $0xc50] sm:$0xff] }
 0x4ca   :  { %5657 = vmatpush2.msra.mxu1 %v3599_v60  ;;  %5728 = vmatpush2.msra.mxu0 %v1777_v63  ;;  %v3372_v58 = vld [vmem:[%s16005_s3 + $0x44b0] sm:$0xff]  ;;  %v1550_v60 = vld [vmem:[%s16005_s3 + $0xbc0] sm:$0xff]  ;;  %v3371_v63 = vld [vmem:[%s16005_s3 + $0x44a8] sm:$0xff] }
 0x4cb   :  { %5658 = vmatprep.subr.mxu1 %v3581_v1  ;;  %5729 = vmatprep.subr.mxu0 %v1759_v2  ;;  %v1549_v1 = vld [vmem:[%s16005_s3 + $0xbb8] sm:$0xff] }
 0x4cc   :  { %5659 = vmatpush2.msra.mxu1 %v3580_v8  ;;  %5730 = vmatpush2.msra.mxu0 %v1758_v61  ;;  %v3353_v2 = vld [vmem:[%s16005_s3 + $0x4418] sm:$0xff]  ;;  %v1531_v8 = vld [vmem:[%s16005_s3 + $0xb28] sm:$0xff]  ;;  %v3352_v61 = vld [vmem:[%s16005_s3 + $0x4410] sm:$0xff] }
 0x4cd   :  { %5660 = vmatprep.subr.mxu1 %v3562_v62  ;;  %5731 = vmatprep.subr.mxu0 %v1740_v7  ;;  %v1530_v62 = vld [vmem:[%s16005_s3 + $0xb20] sm:$0xff] }
 0x4ce   :  { %5661 = vmatpush2.msra.mxu1 %v3561_v9  ;;  %5732 = vmatpush2.msra.mxu0 %v1739_v10  ;;  %v3334_v7 = vld [vmem:[%s16005_s3 + $0x4380] sm:$0xff]  ;;  %v1512_v9 = vld [vmem:[%s16005_s3 + $0xa90] sm:$0xff]  ;;  %v3333_v10 = vld [vmem:[%s16005_s3 + $0x4378] sm:$0xff] }
 0x4cf   :  { %5662 = vmatprep.subr.mxu1 %v3543_v33  ;;  %5733 = vmatprep.subr.mxu0 %v1721_v14  ;;  %v1511_v33 = vld [vmem:[%s16005_s3 + $0xa88] sm:$0xff] }
 0x4d0   :  { %5663 = vmatpush2.msra.mxu1 %v3542_v16  ;;  %5734 = vmatpush2.msra.mxu0 %v1720_v5  ;;  %v3315_v14 = vld [vmem:[%s16005_s3 + $0x42e8] sm:$0xff]  ;;  %v1493_v16 = vld [vmem:[%s16005_s3 + $0x9f8] sm:$0xff]  ;;  %v3314_v5 = vld [vmem:[%s16005_s3 + $0x42e0] sm:$0xff] }
 0x4d1   :  { %5664 = vmatprep.subr.mxu1 %v3524_v17  ;;  %5735 = vmatprep.subr.mxu0 %v1702_v11  ;;  %v1492_v17 = vld [vmem:[%s16005_s3 + $0x9f0] sm:$0xff]  ;;  %v2082_v11 = vld [vmem:[%s16005_s3 + $0x1c60] sm:$0xff] }
 0x4d2   :  { %5665 = vmatpush2.msra.mxu1 %v3523_v19  ;;  %5736 = vmatpush2.msra.mxu0 %v1701_v41  ;;  %v2690_v19 = vld [vmem:[%s16005_s3 + $0x2f60] sm:$0xff]  ;;  %v2081_v41 = vld [vmem:[%s16005_s3 + $0x1c58] sm:$0xff] }
 0x4d3   :  { %5666 = vmatprep.subr.mxu1 %v3505_v20  ;;  %5737 = vmatprep.subr.mxu0 %v1683_v21  ;;  %v2689_v20 = vld [vmem:[%s16005_s3 + $0x2f58] sm:$0xff]  ;;  %v2063_v21 = vld [vmem:[%s16005_s3 + $0x1bc8] sm:$0xff] }
 0x4d4   :  { %5667 = vmatpush2.msra.mxu1 %v3504_v23  ;;  %5738 = vmatpush2.msra.mxu0 %v1682_v12  ;;  %v2671_v23 = vld [vmem:[%s16005_s3 + $0x2ec8] sm:$0xff]  ;;  %v2062_v12 = vld [vmem:[%s16005_s3 + $0x1bc0] sm:$0xff] }
 0x4d5   :  { %5668 = vmatprep.subr.mxu1 %v3486_v27  ;;  %5739 = vmatprep.subr.mxu0 %v1664_v59  ;;  %v2670_v27 = vld [vmem:[%s16005_s3 + $0x2ec0] sm:$0xff]  ;;  %v2044_v59 = vld [vmem:[%s16005_s3 + $0x1b30] sm:$0xff] }
 0x4d6   :  { %5669 = vmatpush2.msra.mxu1 %v3485_v39  ;;  %5740 = vmatpush2.msra.mxu0 %v1663_v34  ;;  %v2652_v39 = vld [vmem:[%s16005_s3 + $0x2e30] sm:$0xff]  ;;  %v2043_v34 = vld [vmem:[%s16005_s3 + $0x1b28] sm:$0xff] }
 0x4d7   :  { %5670 = vmatprep.subr.mxu1 %v3467_v35  ;;  %5741 = vmatprep.subr.mxu0 %v1645_v37  ;;  %v2651_v35 = vld [vmem:[%s16005_s3 + $0x2e28] sm:$0xff]  ;;  %v2025_v37 = vld [vmem:[%s16005_s3 + $0x1a98] sm:$0xff] }
 0x4d8   :  { %5671 = vmatpush2.msra.mxu1 %v3466_v18  ;;  %5742 = vmatpush2.msra.mxu0 %v1644_v38  ;;  %v2633_v18 = vld [vmem:[%s16005_s3 + $0x2d98] sm:$0xff]  ;;  %v2024_v38 = vld [vmem:[%s16005_s3 + $0x1a90] sm:$0xff] }
 0x4d9   :  { %5672 = vmatprep.subr.mxu1 %v3448_v40  ;;  %5743 = vmatprep.subr.mxu0 %v1626_v42  ;;  %v2632_v40 = vld [vmem:[%s16005_s3 + $0x2d90] sm:$0xff]  ;;  %v2006_v42 = vld [vmem:[%s16005_s3 + $0x1a00] sm:$0xff] }
 0x4da   :  { %5673 = vmatpush2.msra.mxu1 %v3447_v43  ;;  %5744 = vmatpush2.msra.mxu0 %v1625_v24  ;;  %v2614_v43 = vld [vmem:[%s16005_s3 + $0x2d00] sm:$0xff]  ;;  %v2005_v24 = vld [vmem:[%s16005_s3 + $0x19f8] sm:$0xff] }
 0x4db   :  { %5674 = vmatprep.subr.mxu1 %v3429_v45  ;;  %5745 = vmatprep.subr.mxu0 %v1607_v26  ;;  %v2613_v45 = vld [vmem:[%s16005_s3 + $0x2cf8] sm:$0xff]  ;;  %v1987_v26 = vld [vmem:[%s16005_s3 + $0x1968] sm:$0xff] }
 0x4dc   :  { %5675 = vmatpush2.msra.mxu1 %v3428_v47  ;;  %5746 = vmatpush2.msra.mxu0 %v1606_v48  ;;  %v2595_v47 = vld [vmem:[%s16005_s3 + $0x2c68] sm:$0xff]  ;;  %v1986_v48 = vld [vmem:[%s16005_s3 + $0x1960] sm:$0xff] }
 0x4dd   :  { %5676 = vmatprep.subr.mxu1 %v3410_v49  ;;  %5747 = vmatprep.subr.mxu0 %v1588_v50  ;;  %v2594_v49 = vld [vmem:[%s16005_s3 + $0x2c60] sm:$0xff]  ;;  %v1968_v50 = vld [vmem:[%s16005_s3 + $0x18d0] sm:$0xff] }
 0x4de   :  { %5677 = vmatpush2.msra.mxu1 %v3409_v51  ;;  %5748 = vmatpush2.msra.mxu0 %v1587_v28  ;;  %v2576_v51 = vld [vmem:[%s16005_s3 + $0x2bd0] sm:$0xff]  ;;  %v1967_v28 = vld [vmem:[%s16005_s3 + $0x18c8] sm:$0xff] }
 0x4df   :  { %5678 = vmatprep.subr.mxu1 %v3391_v53  ;;  %5749 = vmatprep.subr.mxu0 %v1569_v54  ;;  %v2575_v53 = vld [vmem:[%s16005_s3 + $0x2bc8] sm:$0xff]  ;;  %v1949_v54 = vld [vmem:[%s16005_s3 + $0x1838] sm:$0xff] }
 0x4e0   :  { %5679 = vmatpush2.msra.mxu1 %v3390_v55  ;;  %5750 = vmatpush2.msra.mxu0 %v1568_v56  ;;  %v2557_v55 = vld [vmem:[%s16005_s3 + $0x2b38] sm:$0xff]  ;;  %v1948_v56 = vld [vmem:[%s16005_s3 + $0x1830] sm:$0xff] }
 0x4e1   :  { %5680 = vmatprep.subr.mxu1 %v3372_v58  ;;  %5751 = vmatprep.subr.mxu0 %v1550_v60  ;;  %v2556_v58 = vld [vmem:[%s16005_s3 + $0x2b30] sm:$0xff]  ;;  %v1930_v60 = vld [vmem:[%s16005_s3 + $0x17a0] sm:$0xff] }
 0x4e2   :  { %5681 = vmatpush2.msra.mxu1 %v3371_v63  ;;  %5752 = vmatpush2.msra.mxu0 %v1549_v1  ;;  %v2538_v63 = vld [vmem:[%s16005_s3 + $0x2aa0] sm:$0xff]  ;;  %v1929_v1 = vld [vmem:[%s16005_s3 + $0x1798] sm:$0xff] }
 0x4e3   :  { %5682 = vmatprep.subr.mxu1 %v3353_v2  ;;  %5753 = vmatprep.subr.mxu0 %v1531_v8  ;;  %v2537_v2 = vld [vmem:[%s16005_s3 + $0x2a98] sm:$0xff]  ;;  %v1911_v8 = vld [vmem:[%s16005_s3 + $0x1708] sm:$0xff] }
 0x4e4   :  { %5683 = vmatpush2.msra.mxu1 %v3352_v61  ;;  %5754 = vmatpush2.msra.mxu0 %v1530_v62  ;;  %v2519_v61 = vld [vmem:[%s16005_s3 + $0x2a08] sm:$0xff]  ;;  %v1910_v62 = vld [vmem:[%s16005_s3 + $0x1700] sm:$0xff] }
 0x4e5   :  { %5684 = vmatprep.subr.mxu1 %v3334_v7  ;;  %5755 = vmatprep.subr.mxu0 %v1512_v9  ;;  %v2518_v7 = vld [vmem:[%s16005_s3 + $0x2a00] sm:$0xff]  ;;  %v1892_v9 = vld [vmem:[%s16005_s3 + $0x1670] sm:$0xff] }
 0x4e6   :  { %5685 = vmatpush2.msra.mxu1 %v3333_v10  ;;  %5756 = vmatpush2.msra.mxu0 %v1511_v33  ;;  %v2500_v10 = vld [vmem:[%s16005_s3 + $0x2970] sm:$0xff]  ;;  %v1891_v33 = vld [vmem:[%s16005_s3 + $0x1668] sm:$0xff] }
 0x4e7   :  { %5686 = vmatprep.subr.mxu1 %v3315_v14  ;;  %5757 = vmatprep.subr.mxu0 %v1493_v16  ;;  %v2499_v14 = vld [vmem:[%s16005_s3 + $0x2968] sm:$0xff]  ;;  %v1873_v16 = vld [vmem:[%s16005_s3 + $0x15d8] sm:$0xff] }
 0x4e8   :  { %5687 = vmatpush2.msra.mxu1 %v3314_v5  ;;  %5758 = vmatpush2.msra.mxu0 %v1492_v17  ;;  %v2481_v5 = vld [vmem:[%s16005_s3 + $0x28d8] sm:$0xff]  ;;  %v1872_v17 = vld [vmem:[%s16005_s3 + $0x15d0] sm:$0xff] }
 0x4e9   :  { %5689 = vmatmul.mubr.f32.vlgmr.msra.gmra.mxu1 %v9518_v46  ;;  %5760 = vmatmul.mubr.f32.vlgmr.msra.gmra.mxu0 %v8883_v22 }
 0x4ea   :  { %5766 = vmatprep.subr.mxu1 %v2082_v11  ;;  %5837 = vmatprep.subr.mxu0 %v2690_v19  ;;  %v2480_v11 = vld [vmem:[%s16005_s3 + $0x28d0] sm:$0xff]  ;;  %v1854_v19 = vld [vmem:[%s16005_s3 + $0x1540] sm:$0xff] }
 0x4eb   :  { %5767 = vmatpush1.msra.mxu1 %v2081_v41  ;;  %5830 = vmatprep.mubr.f32.mxu1 %v8898_v29  ;;  %v2462_v41 = vld [vmem:[%s16005_s3 + $0x2840] sm:$0xff] }
 0x4ec   :  { %5838 = vmatpush1.msra.mxu0 %v2689_v20  ;;  %5901 = vmatprep.mubr.f32.mxu0 %v9297_v3  ;;  %v1853_v20 = vld [vmem:[%s16005_s3 + $0x1538] sm:$0xff] }
 0x4ed   :  { %5768 = vmatprep.subr.mxu1 %v2063_v21  ;;  %5839 = vmatprep.subr.mxu0 %v2671_v23  ;;  %v2461_v21 = vld [vmem:[%s16005_s3 + $0x2838] sm:$0xff]  ;;  %v1835_v23 = vld [vmem:[%s16005_s3 + $0x14a8] sm:$0xff] }
 0x4ee   :  { %5769 = vmatpush1.msra.mxu1 %v2062_v12  ;;  %5840 = vmatpush1.msra.mxu0 %v2670_v27  ;;  %v2443_v12 = vld [vmem:[%s16005_s3 + $0x27a8] sm:$0xff]  ;;  %v1834_v27 = vld [vmem:[%s16005_s3 + $0x14a0] sm:$0xff] }
 0x4ef   :  { %5770 = vmatprep.subr.mxu1 %v2044_v59  ;;  %5841 = vmatprep.subr.mxu0 %v2652_v39  ;;  %v2442_v59 = vld [vmem:[%s16005_s3 + $0x27a0] sm:$0xff]  ;;  %v1816_v39 = vld [vmem:[%s16005_s3 + $0x1410] sm:$0xff] }
 0x4f0   :  { %5771 = vmatpush1.msra.mxu1 %v2043_v34  ;;  %5842 = vmatpush1.msra.mxu0 %v2651_v35  ;;  %v2424_v34 = vld [vmem:[%s16005_s3 + $0x2710] sm:$0xff]  ;;  %v1815_v35 = vld [vmem:[%s16005_s3 + $0x1408] sm:$0xff] }
 0x4f1   :  { %5772 = vmatprep.subr.mxu1 %v2025_v37  ;;  %5843 = vmatprep.subr.mxu0 %v2633_v18  ;;  %v2423_v37 = vld [vmem:[%s16005_s3 + $0x2708] sm:$0xff]  ;;  %v1797_v18 = vld [vmem:[%s16005_s3 + $0x1378] sm:$0xff] }
 0x4f2   :  { %5773 = vmatpush1.msra.mxu1 %v2024_v38  ;;  %5844 = vmatpush1.msra.mxu0 %v2632_v40  ;;  %v2405_v38 = vld [vmem:[%s16005_s3 + $0x2678] sm:$0xff]  ;;  %v1796_v40 = vld [vmem:[%s16005_s3 + $0x1370] sm:$0xff] }
 0x4f3   :  { %5774 = vmatprep.subr.mxu1 %v2006_v42  ;;  %5845 = vmatprep.subr.mxu0 %v2614_v43  ;;  %v2404_v42 = vld [vmem:[%s16005_s3 + $0x2670] sm:$0xff]  ;;  %v2386_v43 = vld [vmem:[%s16005_s3 + $0x25e0] sm:$0xff] }
 0x4f4   :  { %5775 = vmatpush1.msra.mxu1 %v2005_v24  ;;  %5846 = vmatpush1.msra.mxu0 %v2613_v45  ;;  %v2994_v24 = vld [vmem:[%s16005_s3 + $0x38e0] sm:$0xff]  ;;  %v2385_v45 = vld [vmem:[%s16005_s3 + $0x25d8] sm:$0xff] }
 0x4f5   :  { %5776 = vmatprep.subr.mxu1 %v1987_v26  ;;  %5847 = vmatprep.subr.mxu0 %v2595_v47  ;;  %v2993_v26 = vld [vmem:[%s16005_s3 + $0x38d8] sm:$0xff]  ;;  %v2367_v47 = vld [vmem:[%s16005_s3 + $0x2548] sm:$0xff] }
 0x4f6   :  { %5777 = vmatpush1.msra.mxu1 %v1986_v48  ;;  %5848 = vmatpush1.msra.mxu0 %v2594_v49  ;;  %v2975_v48 = vld [vmem:[%s16005_s3 + $0x3848] sm:$0xff]  ;;  %v2366_v49 = vld [vmem:[%s16005_s3 + $0x2540] sm:$0xff] }
 0x4f7   :  { %5778 = vmatprep.subr.mxu1 %v1968_v50  ;;  %5849 = vmatprep.subr.mxu0 %v2576_v51  ;;  %v2974_v50 = vld [vmem:[%s16005_s3 + $0x3840] sm:$0xff]  ;;  %v2348_v51 = vld [vmem:[%s16005_s3 + $0x24b0] sm:$0xff] }
 0x4f8   :  { %5779 = vmatpush1.msra.mxu1 %v1967_v28  ;;  %5850 = vmatpush1.msra.mxu0 %v2575_v53  ;;  %v2956_v28 = vld [vmem:[%s16005_s3 + $0x37b0] sm:$0xff]  ;;  %v14429_v53 = vpop.f32.mrf.mxu0 }
 0x4f9   :  { %5780 = vmatprep.subr.mxu1 %v1949_v54  ;;  %5851 = vmatprep.subr.mxu0 %v2557_v55  ;;  %v2347_v54 = vld [vmem:[%s16005_s3 + $0x24a8] sm:$0xff] }
 0x4fa   :  { %5781 = vmatpush1.msra.mxu1 %v1948_v56  ;;  %5852 = vmatpush1.msra.mxu0 %v2556_v58  ;;  %v2955_v55 = vld [vmem:[%s16005_s3 + $0x37a8] sm:$0xff]  ;;  %v2329_v56 = vld [vmem:[%s16005_s3 + $0x2418] sm:$0xff] }
 0x4fb   :  { %5782 = vmatprep.subr.mxu1 %v1930_v60  ;;  %5853 = vmatprep.subr.mxu0 %v2538_v63  ;;  %v2937_v58 = vld [vmem:[%s16005_s3 + $0x3718] sm:$0xff]  ;;  %v14443_v60 = vpop.f32.mrf.mxu1  ;;  %v2328_v63 = vld [vmem:[%s16005_s3 + $0x2410] sm:$0xff] }
 0x4fc   :  { %5783 = vmatpush1.msra.mxu1 %v1929_v1  ;;  %5854 = vmatpush1.msra.mxu0 %v2537_v2  ;;  %v2936_v1 = vld [vmem:[%s16005_s3 + $0x3710] sm:$0xff]  ;;  %v2310_v2 = vld [vmem:[%s16005_s3 + $0x2380] sm:$0xff] }
 0x4fd   :  { %5784 = vmatprep.subr.mxu1 %v1911_v8  ;;  %5855 = vmatprep.subr.mxu0 %v2519_v61  ;;  %v2918_v8 = vld [vmem:[%s16005_s3 + $0x3680] sm:$0xff]  ;;  %v4911_v61 = vpop.f32.mrf.mxu0 }
 0x4fe   :  { %5785 = vmatpush1.msra.mxu1 %v1910_v62  ;;  %5856 = vmatpush1.msra.mxu0 %v2518_v7  ;;  %v2309_v62 = vld [vmem:[%s16005_s3 + $0x2378] sm:$0xff] }
 0x4ff   :  { %5786 = vmatprep.subr.mxu1 %v1892_v9  ;;  %5857 = vmatprep.subr.mxu0 %v2500_v10  ;;  %v2917_v7 = vld [vmem:[%s16005_s3 + $0x3678] sm:$0xff]  ;;  %v2291_v9 = vld [vmem:[%s16005_s3 + $0x22e8] sm:$0xff] }
 0x500   :  { %5787 = vmatpush1.msra.mxu1 %v1891_v33  ;;  %5858 = vmatpush1.msra.mxu0 %v2499_v14  ;;  %v2899_v10 = vld [vmem:[%s16005_s3 + $0x35e8] sm:$0xff]  ;;  %v14469_v33 = vpop.f32.mrf.mxu0  ;;  %v4982_v14 = vpop.f32.mrf.mxu1 }
 0x501   :  { %5788 = vmatprep.subr.mxu1 %v1873_v16  ;;  %5859 = vmatprep.subr.mxu0 %v2481_v5  ;;  %v2290_v16 = vld [vmem:[%s16005_s3 + $0x22e0] sm:$0xff] }
 0x502   :  { %5789 = vmatpush1.msra.mxu1 %v1872_v17  ;;  %5860 = vmatpush1.msra.mxu0 %v2480_v11  ;;  %v2898_v5 = vld [vmem:[%s16005_s3 + $0x35e0] sm:$0xff]  ;;  %v2272_v17 = vld [vmem:[%s16005_s3 + $0x2250] sm:$0xff] }
 0x503   :  { %5790 = vmatprep.subr.mxu1 %v1854_v19  ;;  %5861 = vmatprep.subr.mxu0 %v2462_v41  ;;  %v2880_v11 = vld [vmem:[%s16005_s3 + $0x3550] sm:$0xff]  ;;  %v14486_v19 = vld [vmem:[%s16006_s4 + $0x8] sm:$0xff]  ;;  %v14488_v41 = vpop.f32.mrf.mxu1 }
 0x504   :  { %5791 = vmatpush1.msra.mxu1 %v1853_v20  ;;  %5862 = vmatpush1.msra.mxu0 %v2461_v21  ;;  %v2271_v20 = vld [vmem:[%s16005_s3 + $0x2248] sm:$0xff] }
 0x505   :  { %5792 = vmatprep.subr.mxu1 %v1835_v23  ;;  %5863 = vmatprep.subr.mxu0 %v2443_v12  ;;  %v2879_v21 = vld [vmem:[%s16005_s3 + $0x3548] sm:$0xff]  ;;  %v3651_v23 = vrot.slane %v14486_v19, %v8431_v36  ;;  %v2253_v12 = vld [vmem:[%s16005_s3 + $0x21b8] sm:$0xff] }
 0x506   :  { %5793 = vmatpush1.msra.mxu1 %v1834_v27  ;;  %5864 = vmatpush1.msra.mxu0 %v2442_v59  ;;  %v2861_v27 = vld [vmem:[%s16005_s3 + $0x34b8] sm:$0xff]  ;;  %v5053_v59 = vpop.f32.mrf.mxu0 }
 0x507   :  { %5794 = vmatprep.subr.mxu1 %v1816_v39  ;;  %5865 = vmatprep.subr.mxu0 %v2424_v34  ;;  %v2252_v39 = vld [vmem:[%s16005_s3 + $0x21b0] sm:$0xff] }
 0x508   :  { %5795 = vmatpush1.msra.mxu1 %v1815_v35  ;;  %5866 = vmatpush1.msra.mxu0 %v2423_v37  ;;  %v2860_v34 = vld [vmem:[%s16005_s3 + $0x34b0] sm:$0xff]  ;;  %v3647_v35 = vrot.slane %v14486_v19, %v8411_v30  ;;  %v2234_v37 = vld [vmem:[%s16005_s3 + $0x2120] sm:$0xff] }
 0x509   :  { %5796 = vmatprep.subr.mxu1 %v1797_v18  ;;  %5867 = vmatprep.subr.mxu0 %v2405_v38  ;;  %v2842_v18 = vld [vmem:[%s16005_s3 + $0x3420] sm:$0xff]  ;;  %v5193_v38 = vpop.f32.mrf.mxu0 }
 0x50a   :  { %5797 = vmatpush1.msra.mxu1 %v1796_v40  ;;  %5868 = vmatpush1.msra.mxu0 %v2404_v42  ;;  %v5124_v40 = vpop.f32.mrf.mxu1  ;;  %v2233_v42 = vld [vmem:[%s16005_s3 + $0x2118] sm:$0xff] }
 0x50b   :  { %5798 = vmatprep.subr.mxu1 %v2386_v43  ;;  %5869 = vmatprep.subr.mxu0 %v2994_v24  ;;  %v2841_v43 = vld [vmem:[%s16005_s3 + $0x3418] sm:$0xff]  ;;  %v4912_v24 = vadd.f32 %v4911_v61, %v3651_v23  ;;  %v2139_v23 = vld [vmem:[%s16005_s3 + $0x1e28] sm:$0xff] }
 0x50c   :  { %5799 = vmatpush2.msra.mxu1 %v2385_v45  ;;  %5870 = vmatpush2.msra.mxu0 %v2993_v26  ;;  %v3655_v45 = vrot.slane %v14486_v19, %v8816_v57  ;;  %v2215_v26 = vld [vmem:[%s16005_s3 + $0x2088] sm:$0xff] }
 0x50d   :  { %5800 = vmatprep.subr.mxu1 %v2367_v47  ;;  %5871 = vmatprep.subr.mxu0 %v2975_v48  ;;  %v2823_v47 = vld [vmem:[%s16005_s3 + $0x3388] sm:$0xff]  ;;  %v5264_v48 = vpop.f32.mrf.mxu1 }
 0x50e   :  { %5801 = vmatpush2.msra.mxu1 %v2366_v49  ;;  %5872 = vmatpush2.msra.mxu0 %v2974_v50  ;;  %v2214_v49 = vld [vmem:[%s16005_s3 + $0x2080] sm:$0xff] }
 0x50f   :  { %5802 = vmatprep.subr.mxu1 %v2348_v51  ;;  %5873 = vmatprep.subr.mxu0 %v2956_v28  ;;  %v2822_v50 = vld [vmem:[%s16005_s3 + $0x3380] sm:$0xff]  ;;  %v4910_v51 = vadd.f32 %v14429_v53, %v3647_v35  ;;  %v4983_v28 = vadd.f32 %v4982_v14, %v4912_v24  ;;  %v2195_v53 = vld [vmem:[%s16005_s3 + $0x1fe8] sm:$0xff]  ;;  %v5266_v61 = vpop.f32.mrf.mxu1  ;;  %v2728_v35 = vld [vmem:[%s16005_s3 + $0x3090] sm:$0xff] }
 0x510   :  { %5803 = vmatpush2.msra.mxu1 %v2347_v54  ;;  %5874 = vmatpush2.msra.mxu0 %v2955_v55  ;;  %v3659_v54 = vrot.slane %v14486_v19, %v8831_v0  ;;  %v2196_v55 = vld [vmem:[%s16005_s3 + $0x1ff0] sm:$0xff]  ;;  %v2803_v0 = vld [vmem:[%s16005_s3 + $0x32e8] sm:$0xff]  ;;  %v2158_v14 = vld [vmem:[%s16005_s3 + $0x1ec0] sm:$0xff] }
 0x511   :  { %5804 = vmatprep.subr.mxu1 %v2329_v56  ;;  %5875 = vmatprep.subr.mxu0 %v2937_v58  ;;  %v2804_v56 = vld [vmem:[%s16005_s3 + $0x32f0] sm:$0xff]  ;;  %v5195_v58 = vpop.f32.mrf.mxu0  ;;  %v2709_v24 = vld [vmem:[%s16005_s3 + $0x2ff8] sm:$0xff] }
 0x512   :  { %5805 = vmatpush2.msra.mxu1 %v2328_v63  ;;  %5876 = vmatpush2.msra.mxu0 %v2936_v1  ;;  %v4981_v63 = vadd.f32 %v14443_v60, %v4910_v51  ;;  %v5194_v1 = vadd.f32 %v5193_v38, %v3655_v45  ;;  %v2784_v60 = vld [vmem:[%s16005_s3 + $0x3250] sm:$0xff]  ;;  %v3298_v51 = vld [vmem:[%s16005_s3 + $0x4260] sm:$0xff] }
 0x513   :  { %5806 = vmatprep.subr.mxu1 %v2310_v2  ;;  %5877 = vmatprep.subr.mxu0 %v2918_v8  ;;  %v2177_v2 = vld [vmem:[%s16005_s3 + $0x1f58] sm:$0xff] }
 0x514   :  { %5807 = vmatpush2.msra.mxu1 %v2309_v62  ;;  %5878 = vmatpush2.msra.mxu0 %v2917_v7  ;;  %v2785_v8 = vld [vmem:[%s16005_s3 + $0x3258] sm:$0xff]  ;;  %v2176_v62 = vld [vmem:[%s16005_s3 + $0x1f50] sm:$0xff]  ;;  %v5054_v7 = vadd.f32 %v5053_v59, %v4983_v28  ;;  %v5052_v19 = vadd.f32 %v14469_v33, %v4981_v63  ;;  %v2746_v33 = vld [vmem:[%s16005_s3 + $0x3120] sm:$0xff] }
 0x515   :  { %5808 = vmatprep.subr.mxu1 %v2291_v9  ;;  %5879 = vmatprep.subr.mxu0 %v2899_v10  ;;  %v5196_v9 = vadd.f32 %v5195_v58, %v3659_v54  ;;  %v5265_v10 = vadd.f32 %v5264_v48, %v5194_v1  ;;  %v1476_v28 = vld [vmem:[%s16005_s3 + $0x970] sm:$0xff]  ;;  %v3279_v63 = vld [vmem:[%s16005_s3 + $0x41c8] sm:$0xff]  ;;  %v1457_v1 = vld [vmem:[%s16005_s3 + $0x8d8] sm:$0xff] }
 0x516   :  { %5809 = vmatpush2.msra.mxu1 %v2290_v16  ;;  %5880 = vmatpush2.msra.mxu0 %v2898_v5  ;;  %v2766_v16 = vld [vmem:[%s16005_s3 + $0x31c0] sm:$0xff]  ;;  %v5335_v5 = vpop.f32.mrf.mxu0  ;;  %v5123_v59 = vadd.f32 %v14488_v41, %v5052_v19  ;;  %v2727_v41 = vld [vmem:[%s16005_s3 + $0x3088] sm:$0xff] }
 0x517   :  { %5810 = vmatprep.subr.mxu1 %v2272_v17  ;;  %5881 = vmatprep.subr.mxu0 %v2880_v11  ;;  %v2157_v17 = vld [vmem:[%s16005_s3 + $0x1eb8] sm:$0xff]  ;;  %v3222_v19 = vld [vmem:[%s16005_s3 + $0x4000] sm:$0xff] }
 0x518   :  { %5811 = vmatpush2.msra.mxu1 %v2271_v20  ;;  %5882 = vmatpush2.msra.mxu0 %v2879_v21  ;;  %v2765_v11 = vld [vmem:[%s16005_s3 + $0x31b8] sm:$0xff]  ;;  %v5125_v20 = vadd.f32 %v5124_v40, %v5054_v7  ;;  %v5267_v21 = vadd.f32 %v5266_v61, %v5196_v9  ;;  %v1438_v7 = vld [vmem:[%s16005_s3 + $0x840] sm:$0xff]  ;;  %v3259_v9 = vld [vmem:[%s16005_s3 + $0x4128] sm:$0xff] }
 0x519   :  { %5812 = vmatprep.subr.mxu1 %v2253_v12  ;;  %5883 = vmatprep.subr.mxu0 %v2861_v27  ;;  %v2747_v12 = vld [vmem:[%s16005_s3 + $0x3128] sm:$0xff]  ;;  %v2138_v27 = vld [vmem:[%s16005_s3 + $0x1e20] sm:$0xff] }
 0x51a   :  { %5813 = vmatpush2.msra.mxu1 %v2252_v39  ;;  %5884 = vmatpush2.msra.mxu0 %v2860_v34  ;;  %v5336_v39 = vadd.f32 %v5335_v5, %v5265_v10  ;;  %v2120_v34 = vld [vmem:[%s16005_s3 + $0x1d90] sm:$0xff]  ;;  %v6552_v40 = vmax.f32 %v5125_v20, 0.0  ;;  %v1437_v10 = vld [vmem:[%s16005_s3 + $0x838] sm:$0xff]  ;;  %v1419_v5 = vld [vmem:[%s16005_s3 + $0x7a8] sm:$0xff] }
 0x51b   :  { %5814 = vmatprep.subr.mxu1 %v2234_v37  ;;  %5885 = vmatprep.subr.mxu0 %v2842_v18  ;;  %v5337_v37 = vpop.f32.mrf.mxu0  ;;  %v2119_v18 = vld [vmem:[%s16005_s3 + $0x1d88] sm:$0xff]  ;;  %v1400_v20 = vld [vmem:[%s16005_s3 + $0x710] sm:$0xff] }
 0x51c   :  { %5815 = vmatpush2.msra.mxu1 %v2233_v42  ;;  %5886 = vmatpush2.msra.mxu0 %v2841_v43  ;;  %v5338_v42 = vadd.f32 %v5337_v37, %v5267_v21  ;;  %v2101_v43 = vld [vmem:[%s16005_s3 + $0x1cf8] sm:$0xff] }
 0x51d   :  { %5816 = vmatprep.subr.mxu1 %v2215_v26  ;;  %5887 = vmatprep.subr.mxu0 %v2823_v47  ;;  %v2100_v26 = vld [vmem:[%s16005_s3 + $0x1cf0] sm:$0xff]  ;;  %v3221_v21 = vld [vmem:[%s16005_s3 + $0x3ff8] sm:$0xff] }
 0x51e   :  { %5817 = vmatpush2.msra.mxu1 %v2214_v49  ;;  %5888 = vmatpush2.msra.mxu0 %v2822_v50  ;;  %v2708_v47 = vld [vmem:[%s16005_s3 + $0x2ff0] sm:$0xff]  ;;  %v6551_v49 = vmax.f32 %v5123_v59, 0.0  ;;  %v1361_v37 = vld [vmem:[%s16005_s3 + $0x5d8] sm:$0xff] }
 0x51f   :  { %5818 = vmatprep.subr.mxu1 %v2196_v55  ;;  %5889 = vmatprep.subr.mxu0 %v2804_v56  ;;  %v3297_v56 = vld [vmem:[%s16005_s3 + $0x4258] sm:$0xff]  ;;  %v1380_v59 = vld [vmem:[%s16005_s3 + $0x670] sm:$0xff] }
 0x520   :  { %5819 = vmatpush2.msra.mxu1 %v2195_v53  ;;  %5890 = vmatpush2.msra.mxu0 %v2803_v0  ;;  %v6615_v54 = vcombine.low %v6551_v49, %v6552_v40  ;;  %v1475_v53 = vld [vmem:[%s16005_s3 + $0x968] sm:$0xff]  ;;  %v1342_v40 = vld [vmem:[%s16005_s3 + $0x540] sm:$0xff]  ;;  %v1304_v49 = vld [vmem:[%s16005_s3 + $0x410] sm:$0xff] }
 0x521   :  { %5820 = vmatprep.subr.mxu1 %v2177_v2  ;;  %5891 = vmatprep.subr.mxu0 %v2785_v8  ;;  %v3278_v2 = vld [vmem:[%s16005_s3 + $0x41c0] sm:$0xff]  ;;  %v1456_v8 = vld [vmem:[%s16005_s3 + $0x8d0] sm:$0xff] }
 0x522   :  { %5821 = vmatpush2.msra.mxu1 %v2176_v62  ;;  %5892 = vmatpush2.msra.mxu0 %v2784_v60  ;;  %v6623_v61 = vrot.slane %v6615_v54, %v7230_v52  ;;  %v3260_v60 = vld [vmem:[%s16005_s3 + $0x4130] sm:$0xff]  ;;  %v1285_v54 = vld [vmem:[%s16005_s3 + $0x378] sm:$0xff] }
 0x523   :  { %5822 = vmatprep.subr.mxu1 %v2158_v14  ;;  %5893 = vmatprep.subr.mxu0 %v2766_v16  ;;  %v3241_v16 = vld [vmem:[%s16005_s3 + $0x4098] sm:$0xff] }
 0x524   :  { %5823 = vmatpush2.msra.mxu1 %v2157_v17  ;;  %5894 = vmatpush2.msra.mxu0 %v2765_v11  ;;  %v3240_v17 = vld [vmem:[%s16005_s3 + $0x4090] sm:$0xff]  ;;  %v1418_v11 = vld [vmem:[%s16005_s3 + $0x7a0] sm:$0xff] }
 0x525   :  { %5824 = vmatprep.subr.mxu1 %v2139_v23  ;;  %5895 = vmatprep.subr.mxu0 %v2747_v12  ;;  %v5406_v38 = vpop.f32.mrf.mxu1  ;;  %v1399_v23 = vld [vmem:[%s16005_s3 + $0x708] sm:$0xff] }
 0x526   :  { %5825 = vmatpush2.msra.mxu1 %v2138_v27  ;;  %5896 = vmatpush2.msra.mxu0 %v2746_v33  ;;  %v5407_v45 = vadd.f32 %v5406_v38, %v5336_v39  ;;  %v3203_v12 = vld [vmem:[%s16005_s3 + $0x3f68] sm:$0xff]  ;;  %v1381_v27 = vld [vmem:[%s16005_s3 + $0x678] sm:$0xff]  ;;  %v3202_v33 = vld [vmem:[%s16005_s3 + $0x3f60] sm:$0xff] }
 0x527   :  { %5826 = vmatprep.subr.mxu1 %v2120_v34  ;;  %5897 = vmatprep.subr.mxu0 %v2728_v35  ;;  %v5408_v48 = vpop.f32.mrf.mxu1  ;;  %v3184_v39 = vld [vmem:[%s16005_s3 + $0x3ed0] sm:$0xff]  ;;  %v1362_v34 = vld [vmem:[%s16005_s3 + $0x5e0] sm:$0xff]  ;;  %v3183_v35 = vld [vmem:[%s16005_s3 + $0x3ec8] sm:$0xff] }
 0x528   :  { %5827 = vmatpush2.msra.mxu1 %v2119_v18  ;;  %5898 = vmatpush2.msra.mxu0 %v2727_v41  ;;  %v5409_v50 = vadd.f32 %v5408_v48, %v5338_v42  ;;  %v6553_v55 = vmax.f32 %v5407_v45, 0.0  ;;  %v3165_v18 = vld [vmem:[%s16005_s3 + $0x3e38] sm:$0xff]  ;;  %v1343_v41 = vld [vmem:[%s16005_s3 + $0x548] sm:$0xff]  ;;  %v3164_v38 = vld [vmem:[%s16005_s3 + $0x3e30] sm:$0xff] }
 0x529   :  { %5828 = vmatprep.subr.mxu1 %v2101_v43  ;;  %5899 = vmatprep.subr.mxu0 %v2709_v24  ;;  %v3146_v42 = vld [vmem:[%s16005_s3 + $0x3da0] sm:$0xff]  ;;  %v1324_v43 = vld [vmem:[%s16005_s3 + $0x4b0] sm:$0xff]  ;;  %v3145_v24 = vld [vmem:[%s16005_s3 + $0x3d98] sm:$0xff] }
 0x52a   :  { %5829 = vmatpush2.msra.mxu1 %v2100_v26  ;;  %5900 = vmatpush2.msra.mxu0 %v2708_v47  ;;  %v6554_v58 = vmax.f32 %v5409_v50, 0.0  ;;  %v1323_v45 = vld [vmem:[%s16005_s3 + $0x4a8] sm:$0xff]  ;;  %v1305_v47 = vld [vmem:[%s16005_s3 + $0x418] sm:$0xff]  ;;  %v3126_v48 = vld [vmem:[%s16005_s3 + $0x3d00] sm:$0xff] }
 0x52b   :  { %5831 = vmatmul.mubr.f32.vlgmr.msra.gmra.mxu1 %v8903_v32  ;;  %5902 = vmatmul.mubr.f32.vlgmr.msra.gmra.mxu0 %v9299_v6  ;;  %v3127_v26 = vld [vmem:[%s16005_s3 + $0x3d08] sm:$0xff]  ;;  %v3108_v50 = vld [vmem:[%s16005_s3 + $0x3c70] sm:$0xff] }
 0x52c   :  { %5908 = vmatprep.subr.mxu1 %v3298_v51  ;;  %5979 = vmatprep.subr.mxu0 %v1476_v28  ;;  %v6616_v0 = vcombine.low %v6553_v55, %v6554_v58  ;;  %v1286_v51 = vld [vmem:[%s16005_s3 + $0x380] sm:$0xff]  ;;  %v3107_v28 = vld [vmem:[%s16005_s3 + $0x3c68] sm:$0xff]  ;;  %v3089_v55 = vld [vmem:[%s16005_s3 + $0x3bd8] sm:$0xff] }
 0x52d   :  { %5909 = vmatpush1.msra.mxu1 %v3297_v56  ;;  %5972 = vmatprep.mubr.f32.mxu1 %v9512_v44  ;;  %v1267_v56 = vld [vmem:[%s16005_s3 + $0x2e8] sm:$0xff]  ;;  %v3088_v58 = vld [vmem:[%s16005_s3 + $0x3bd0] sm:$0xff] }
 0x52e   :  { %5980 = vmatpush1.msra.mxu0 %v1475_v53  ;;  %6043 = vmatprep.mubr.f32.mxu0 %v8497_v4  ;;  %v6630_v62 = vrot.slane %v6616_v0, %v7230_v52  ;;  %v1266_v53 = vld [vmem:[%s16005_s3 + $0x2e0] sm:$0xff] }
 0x52f   :  { %5910 = vmatprep.subr.mxu1 %v3279_v63  ;;  %5981 = vmatprep.subr.mxu0 %v1457_v1  ;;  %v3070_v0 = vld [vmem:[%s16005_s3 + $0x3b40] sm:$0xff]  ;;  %v1248_v63 = vld [vmem:[%s16005_s3 + $0x250] sm:$0xff]  ;;  %v3069_v1 = vld [vmem:[%s16005_s3 + $0x3b38] sm:$0xff] }
 0x530   :  { %v6631_v14 = vcombine.low %v6623_v61, %v6630_v62  ;;  %5911 = vmatpush1.msra.mxu1 %v3278_v2  ;;  %5982 = vmatpush1.msra.mxu0 %v1456_v8  ;;  %v1247_v2 = vld [vmem:[%s16005_s3 + $0x248] sm:$0xff]  ;;  %v1229_v61 = vld [vmem:[%s16005_s3 + $0x1b8] sm:$0xff]  ;;  %v3050_v62 = vld [vmem:[%s16005_s3 + $0x3aa0] sm:$0xff] }
 0x531   :  { %5912 = vmatprep.subr.mxu1 %v3260_v60  ;;  %5983 = vmatprep.subr.mxu0 %v1438_v7  ;;  %v3051_v8 = vld [vmem:[%s16005_s3 + $0x3aa8] sm:$0xff]  ;;  %v1228_v60 = vld [vmem:[%s16005_s3 + $0x1b0] sm:$0xff] }
 0x532   :  { %6672 = vst [vmem:[#allocation2 + $0x10] sm:$0xff] %v6631_v14  ;;  %5913 = vmatpush1.msra.mxu1 %v3259_v9  ;;  %5984 = vmatpush1.msra.mxu0 %v1437_v10  ;;  %v3032_v7 = vld [vmem:[%s16005_s3 + $0x3a10] sm:$0xff]  ;;  %v1210_v9 = vld [vmem:[%s16005_s3 + $0x120] sm:$0xff]  ;;  %v3031_v10 = vld [vmem:[%s16005_s3 + $0x3a08] sm:$0xff] }
 0x533   :  { %5914 = vmatprep.subr.mxu1 %v3241_v16  ;;  %5985 = vmatprep.subr.mxu0 %v1419_v5  ;;  %v1209_v14 = vld [vmem:[%s16005_s3 + $0x118] sm:$0xff]  ;;  %v1191_v5 = vld [vmem:[%s16005_s3 + $0x88] sm:$0xff] }
 0x534   :  { %5915 = vmatpush1.msra.mxu1 %v3240_v17  ;;  %5986 = vmatpush1.msra.mxu0 %v1418_v11  ;;  %v3013_v16 = vld [vmem:[%s16005_s3 + $0x3978] sm:$0xff]  ;;  %v3012_v17 = vld [vmem:[%s16005_s3 + $0x3970] sm:$0xff]  ;;  %v1190_v11 = vld [vmem:[%s16005_s3 + $0x80] sm:$0xff] }
 0x535   :  { %5916 = vmatprep.subr.mxu1 %v3222_v19  ;;  %5987 = vmatprep.subr.mxu0 %v1400_v20  ;;  %v3602_v19 = vld [vmem:[%s16005_s3 + $0x4be0] sm:$0xff]  ;;  %v1780_v20 = vld [vmem:[%s16005_s3 + $0x12f0] sm:$0xff] }
 0x536   :  { %5917 = vmatpush1.msra.mxu1 %v3221_v21  ;;  %5988 = vmatpush1.msra.mxu0 %v1399_v23  ;;  %v3601_v21 = vld [vmem:[%s16005_s3 + $0x4bd8] sm:$0xff]  ;;  %v1779_v23 = vld [vmem:[%s16005_s3 + $0x12e8] sm:$0xff] }
 0x537   :  { %5918 = vmatprep.subr.mxu1 %v3203_v12  ;;  %5989 = vmatprep.subr.mxu0 %v1381_v27  ;;  %v3583_v12 = vld [vmem:[%s16005_s3 + $0x4b48] sm:$0xff]  ;;  %v1761_v27 = vld [vmem:[%s16005_s3 + $0x1258] sm:$0xff] }
 0x538   :  { %5919 = vmatpush1.msra.mxu1 %v3202_v33  ;;  %5990 = vmatpush1.msra.mxu0 %v1380_v59  ;;  %v3582_v33 = vld [vmem:[%s16005_s3 + $0x4b40] sm:$0xff]  ;;  %v1760_v59 = vld [vmem:[%s16005_s3 + $0x1250] sm:$0xff] }
 0x539   :  { %5920 = vmatprep.subr.mxu1 %v3184_v39  ;;  %5991 = vmatprep.subr.mxu0 %v1362_v34  ;;  %v3564_v39 = vld [vmem:[%s16005_s3 + $0x4ab0] sm:$0xff]  ;;  %v1742_v34 = vld [vmem:[%s16005_s3 + $0x11c0] sm:$0xff] }
 0x53a   :  { %5921 = vmatpush1.msra.mxu1 %v3183_v35  ;;  %5992 = vmatpush1.msra.mxu0 %v1361_v37  ;;  %v3563_v35 = vld [vmem:[%s16005_s3 + $0x4aa8] sm:$0xff]  ;;  %v1741_v37 = vld [vmem:[%s16005_s3 + $0x11b8] sm:$0xff] }
 0x53b   :  { %5922 = vmatprep.subr.mxu1 %v3165_v18  ;;  %5993 = vmatprep.subr.mxu0 %v1343_v41  ;;  %v3545_v18 = vld [vmem:[%s16005_s3 + $0x4a18] sm:$0xff]  ;;  %v1723_v41 = vld [vmem:[%s16005_s3 + $0x1128] sm:$0xff] }
 0x53c   :  { %5923 = vmatpush1.msra.mxu1 %v3164_v38  ;;  %5994 = vmatpush1.msra.mxu0 %v1342_v40  ;;  %v3544_v38 = vld [vmem:[%s16005_s3 + $0x4a10] sm:$0xff]  ;;  %v1722_v40 = vld [vmem:[%s16005_s3 + $0x1120] sm:$0xff] }
 0x53d   :  { %5924 = vmatprep.subr.mxu1 %v3146_v42  ;;  %5995 = vmatprep.subr.mxu0 %v1324_v43  ;;  %v3526_v42 = vld [vmem:[%s16005_s3 + $0x4980] sm:$0xff]  ;;  %v1704_v43 = vld [vmem:[%s16005_s3 + $0x1090] sm:$0xff] }
 0x53e   :  { %5925 = vmatpush1.msra.mxu1 %v3145_v24  ;;  %5996 = vmatpush1.msra.mxu0 %v1323_v45  ;;  %v3525_v24 = vld [vmem:[%s16005_s3 + $0x4978] sm:$0xff]  ;;  %v1703_v45 = vld [vmem:[%s16005_s3 + $0x1088] sm:$0xff] }
 0x53f   :  { %5926 = vmatprep.subr.mxu1 %v3127_v26  ;;  %5997 = vmatprep.subr.mxu0 %v1305_v47  ;;  %v3507_v26 = vld [vmem:[%s16005_s3 + $0x48e8] sm:$0xff]  ;;  %v1685_v47 = vld [vmem:[%s16005_s3 + $0xff8] sm:$0xff] }
 0x540   :  { %5927 = vmatpush1.msra.mxu1 %v3126_v48  ;;  %5998 = vmatpush1.msra.mxu0 %v1304_v49  ;;  %v3506_v48 = vld [vmem:[%s16005_s3 + $0x48e0] sm:$0xff]  ;;  %v1684_v49 = vld [vmem:[%s16005_s3 + $0xff0] sm:$0xff] }
 0x541   :  { %5928 = vmatprep.subr.mxu1 %v3108_v50  ;;  %5999 = vmatprep.subr.mxu0 %v1286_v51  ;;  %v3488_v50 = vld [vmem:[%s16005_s3 + $0x4850] sm:$0xff]  ;;  %v1666_v51 = vld [vmem:[%s16005_s3 + $0xf60] sm:$0xff] }
 0x542   :  { %5929 = vmatpush1.msra.mxu1 %v3107_v28  ;;  %6000 = vmatpush1.msra.mxu0 %v1285_v54  ;;  %v3487_v28 = vld [vmem:[%s16005_s3 + $0x4848] sm:$0xff]  ;;  %v1665_v54 = vld [vmem:[%s16005_s3 + $0xf58] sm:$0xff] }
 0x543   :  { %5930 = vmatprep.subr.mxu1 %v3089_v55  ;;  %6001 = vmatprep.subr.mxu0 %v1267_v56  ;;  %v3469_v55 = vld [vmem:[%s16005_s3 + $0x47b8] sm:$0xff]  ;;  %v1647_v56 = vld [vmem:[%s16005_s3 + $0xec8] sm:$0xff] }
 0x544   :  { %5931 = vmatpush1.msra.mxu1 %v3088_v58  ;;  %6002 = vmatpush1.msra.mxu0 %v1266_v53  ;;  %v3468_v58 = vld [vmem:[%s16005_s3 + $0x47b0] sm:$0xff]  ;;  %v1646_v53 = vld [vmem:[%s16005_s3 + $0xec0] sm:$0xff] }
 0x545   :  { %5932 = vmatprep.subr.mxu1 %v3070_v0  ;;  %6003 = vmatprep.subr.mxu0 %v1248_v63  ;;  %v3450_v0 = vld [vmem:[%s16005_s3 + $0x4720] sm:$0xff]  ;;  %v1628_v63 = vld [vmem:[%s16005_s3 + $0xe30] sm:$0xff] }
 0x546   :  { %5933 = vmatpush1.msra.mxu1 %v3069_v1  ;;  %6004 = vmatpush1.msra.mxu0 %v1247_v2  ;;  %v3449_v1 = vld [vmem:[%s16005_s3 + $0x4718] sm:$0xff]  ;;  %v1627_v2 = vld [vmem:[%s16005_s3 + $0xe28] sm:$0xff] }
 0x547   :  { %5934 = vmatprep.subr.mxu1 %v3051_v8  ;;  %6005 = vmatprep.subr.mxu0 %v1229_v61  ;;  %v3431_v8 = vld [vmem:[%s16005_s3 + $0x4688] sm:$0xff]  ;;  %v1609_v61 = vld [vmem:[%s16005_s3 + $0xd98] sm:$0xff] }
 0x548   :  { %5935 = vmatpush1.msra.mxu1 %v3050_v62  ;;  %6006 = vmatpush1.msra.mxu0 %v1228_v60  ;;  %v3430_v62 = vld [vmem:[%s16005_s3 + $0x4680] sm:$0xff]  ;;  %v1608_v60 = vld [vmem:[%s16005_s3 + $0xd90] sm:$0xff] }
 0x549   :  { %5936 = vmatprep.subr.mxu1 %v3032_v7  ;;  %6007 = vmatprep.subr.mxu0 %v1210_v9  ;;  %v3412_v7 = vld [vmem:[%s16005_s3 + $0x45f0] sm:$0xff]  ;;  %v1590_v9 = vld [vmem:[%s16005_s3 + $0xd00] sm:$0xff] }
 0x54a   :  { %5937 = vmatpush1.msra.mxu1 %v3031_v10  ;;  %6008 = vmatpush1.msra.mxu0 %v1209_v14  ;;  %v3411_v10 = vld [vmem:[%s16005_s3 + $0x45e8] sm:$0xff]  ;;  %v1589_v14 = vld [vmem:[%s16005_s3 + $0xcf8] sm:$0xff] }
 0x54b   :  { %5938 = vmatprep.subr.mxu1 %v3013_v16  ;;  %6009 = vmatprep.subr.mxu0 %v1191_v5  ;;  %v3393_v16 = vld [vmem:[%s16005_s3 + $0x4558] sm:$0xff]  ;;  %v1571_v5 = vld [vmem:[%s16005_s3 + $0xc68] sm:$0xff] }
 0x54c   :  { %5939 = vmatpush1.msra.mxu1 %v3012_v17  ;;  %6010 = vmatpush1.msra.mxu0 %v1190_v11  ;;  %v3392_v17 = vld [vmem:[%s16005_s3 + $0x4550] sm:$0xff]  ;;  %v1570_v11 = vld [vmem:[%s16005_s3 + $0xc60] sm:$0xff] }
 0x54d   :  { %5940 = vmatprep.subr.mxu1 %v3602_v19  ;;  %6011 = vmatprep.subr.mxu0 %v1780_v20  ;;  %v3374_v19 = vld [vmem:[%s16005_s3 + $0x44c0] sm:$0xff]  ;;  %v1552_v20 = vld [vmem:[%s16005_s3 + $0xbd0] sm:$0xff] }
 0x54e   :  { %5941 = vmatpush2.msra.mxu1 %v3601_v21  ;;  %6012 = vmatpush2.msra.mxu0 %v1779_v23  ;;  %v3373_v21 = vld [vmem:[%s16005_s3 + $0x44b8] sm:$0xff]  ;;  %v1551_v23 = vld [vmem:[%s16005_s3 + $0xbc8] sm:$0xff] }
 0x54f   :  { %5942 = vmatprep.subr.mxu1 %v3583_v12  ;;  %6013 = vmatprep.subr.mxu0 %v1761_v27  ;;  %v3355_v12 = vld [vmem:[%s16005_s3 + $0x4428] sm:$0xff]  ;;  %v1533_v27 = vld [vmem:[%s16005_s3 + $0xb38] sm:$0xff] }
 0x550   :  { %5943 = vmatpush2.msra.mxu1 %v3582_v33  ;;  %6014 = vmatpush2.msra.mxu0 %v1760_v59  ;;  %v3354_v33 = vld [vmem:[%s16005_s3 + $0x4420] sm:$0xff]  ;;  %v1532_v59 = vld [vmem:[%s16005_s3 + $0xb30] sm:$0xff] }
 0x551   :  { %5944 = vmatprep.subr.mxu1 %v3564_v39  ;;  %6015 = vmatprep.subr.mxu0 %v1742_v34  ;;  %v3336_v39 = vld [vmem:[%s16005_s3 + $0x4390] sm:$0xff]  ;;  %v1514_v34 = vld [vmem:[%s16005_s3 + $0xaa0] sm:$0xff] }
 0x552   :  { %5945 = vmatpush2.msra.mxu1 %v3563_v35  ;;  %6016 = vmatpush2.msra.mxu0 %v1741_v37  ;;  %v3335_v35 = vld [vmem:[%s16005_s3 + $0x4388] sm:$0xff]  ;;  %v1513_v37 = vld [vmem:[%s16005_s3 + $0xa98] sm:$0xff] }
 0x553   :  { %5946 = vmatprep.subr.mxu1 %v3545_v18  ;;  %6017 = vmatprep.subr.mxu0 %v1723_v41  ;;  %v3317_v18 = vld [vmem:[%s16005_s3 + $0x42f8] sm:$0xff]  ;;  %v1495_v41 = vld [vmem:[%s16005_s3 + $0xa08] sm:$0xff] }
 0x554   :  { %5947 = vmatpush2.msra.mxu1 %v3544_v38  ;;  %6018 = vmatpush2.msra.mxu0 %v1722_v40  ;;  %v3316_v38 = vld [vmem:[%s16005_s3 + $0x42f0] sm:$0xff]  ;;  %v1494_v40 = vld [vmem:[%s16005_s3 + $0xa00] sm:$0xff] }
 0x555   :  { %5948 = vmatprep.subr.mxu1 %v3526_v42  ;;  %6019 = vmatprep.subr.mxu0 %v1704_v43  ;;  %v2084_v42 = vld [vmem:[%s16005_s3 + $0x1c70] sm:$0xff] }
 0x556   :  { %5949 = vmatpush2.msra.mxu1 %v3525_v24  ;;  %6020 = vmatpush2.msra.mxu0 %v1703_v45  ;;  %v2692_v43 = vld [vmem:[%s16005_s3 + $0x2f70] sm:$0xff]  ;;  %v2083_v24 = vld [vmem:[%s16005_s3 + $0x1c68] sm:$0xff] }
 0x557   :  { %5950 = vmatprep.subr.mxu1 %v3507_v26  ;;  %6021 = vmatprep.subr.mxu0 %v1685_v47  ;;  %v2691_v45 = vld [vmem:[%s16005_s3 + $0x2f68] sm:$0xff]  ;;  %v2065_v26 = vld [vmem:[%s16005_s3 + $0x1bd8] sm:$0xff] }
 0x558   :  { %5951 = vmatpush2.msra.mxu1 %v3506_v48  ;;  %6022 = vmatpush2.msra.mxu0 %v1684_v49  ;;  %v2673_v47 = vld [vmem:[%s16005_s3 + $0x2ed8] sm:$0xff]  ;;  %v2064_v48 = vld [vmem:[%s16005_s3 + $0x1bd0] sm:$0xff] }
 0x559   :  { %5952 = vmatprep.subr.mxu1 %v3488_v50  ;;  %6023 = vmatprep.subr.mxu0 %v1666_v51  ;;  %v2672_v49 = vld [vmem:[%s16005_s3 + $0x2ed0] sm:$0xff]  ;;  %v2046_v50 = vld [vmem:[%s16005_s3 + $0x1b40] sm:$0xff] }
 0x55a   :  { %5953 = vmatpush2.msra.mxu1 %v3487_v28  ;;  %6024 = vmatpush2.msra.mxu0 %v1665_v54  ;;  %v2654_v51 = vld [vmem:[%s16005_s3 + $0x2e40] sm:$0xff]  ;;  %v2045_v28 = vld [vmem:[%s16005_s3 + $0x1b38] sm:$0xff] }
 0x55b   :  { %5954 = vmatprep.subr.mxu1 %v3469_v55  ;;  %6025 = vmatprep.subr.mxu0 %v1647_v56  ;;  %v2653_v54 = vld [vmem:[%s16005_s3 + $0x2e38] sm:$0xff]  ;;  %v2027_v55 = vld [vmem:[%s16005_s3 + $0x1aa8] sm:$0xff] }
 0x55c   :  { %5955 = vmatpush2.msra.mxu1 %v3468_v58  ;;  %6026 = vmatpush2.msra.mxu0 %v1646_v53  ;;  %v2635_v56 = vld [vmem:[%s16005_s3 + $0x2da8] sm:$0xff]  ;;  %v2026_v58 = vld [vmem:[%s16005_s3 + $0x1aa0] sm:$0xff] }
 0x55d   :  { %5956 = vmatprep.subr.mxu1 %v3450_v0  ;;  %6027 = vmatprep.subr.mxu0 %v1628_v63  ;;  %v2634_v53 = vld [vmem:[%s16005_s3 + $0x2da0] sm:$0xff]  ;;  %v2008_v0 = vld [vmem:[%s16005_s3 + $0x1a10] sm:$0xff] }
 0x55e   :  { %5957 = vmatpush2.msra.mxu1 %v3449_v1  ;;  %6028 = vmatpush2.msra.mxu0 %v1627_v2  ;;  %v2616_v63 = vld [vmem:[%s16005_s3 + $0x2d10] sm:$0xff]  ;;  %v2007_v1 = vld [vmem:[%s16005_s3 + $0x1a08] sm:$0xff] }
 0x55f   :  { %5958 = vmatprep.subr.mxu1 %v3431_v8  ;;  %6029 = vmatprep.subr.mxu0 %v1609_v61  ;;  %v2615_v2 = vld [vmem:[%s16005_s3 + $0x2d08] sm:$0xff]  ;;  %v1989_v8 = vld [vmem:[%s16005_s3 + $0x1978] sm:$0xff] }
 0x560   :  { %5959 = vmatpush2.msra.mxu1 %v3430_v62  ;;  %6030 = vmatpush2.msra.mxu0 %v1608_v60  ;;  %v2597_v61 = vld [vmem:[%s16005_s3 + $0x2c78] sm:$0xff]  ;;  %v1988_v62 = vld [vmem:[%s16005_s3 + $0x1970] sm:$0xff] }
 0x561   :  { %5960 = vmatprep.subr.mxu1 %v3412_v7  ;;  %6031 = vmatprep.subr.mxu0 %v1590_v9  ;;  %v2596_v60 = vld [vmem:[%s16005_s3 + $0x2c70] sm:$0xff]  ;;  %v1970_v7 = vld [vmem:[%s16005_s3 + $0x18e0] sm:$0xff] }
 0x562   :  { %5961 = vmatpush2.msra.mxu1 %v3411_v10  ;;  %6032 = vmatpush2.msra.mxu0 %v1589_v14  ;;  %v2578_v9 = vld [vmem:[%s16005_s3 + $0x2be0] sm:$0xff]  ;;  %v1969_v10 = vld [vmem:[%s16005_s3 + $0x18d8] sm:$0xff] }
 0x563   :  { %5962 = vmatprep.subr.mxu1 %v3393_v16  ;;  %6033 = vmatprep.subr.mxu0 %v1571_v5  ;;  %v2577_v14 = vld [vmem:[%s16005_s3 + $0x2bd8] sm:$0xff]  ;;  %v1951_v16 = vld [vmem:[%s16005_s3 + $0x1848] sm:$0xff] }
 0x564   :  { %5963 = vmatpush2.msra.mxu1 %v3392_v17  ;;  %6034 = vmatpush2.msra.mxu0 %v1570_v11  ;;  %v2559_v5 = vld [vmem:[%s16005_s3 + $0x2b48] sm:$0xff]  ;;  %v1950_v17 = vld [vmem:[%s16005_s3 + $0x1840] sm:$0xff] }
 0x565   :  { %5964 = vmatprep.subr.mxu1 %v3374_v19  ;;  %6035 = vmatprep.subr.mxu0 %v1552_v20  ;;  %v2558_v11 = vld [vmem:[%s16005_s3 + $0x2b40] sm:$0xff]  ;;  %v1932_v19 = vld [vmem:[%s16005_s3 + $0x17b0] sm:$0xff] }
 0x566   :  { %5965 = vmatpush2.msra.mxu1 %v3373_v21  ;;  %6036 = vmatpush2.msra.mxu0 %v1551_v23  ;;  %v2540_v20 = vld [vmem:[%s16005_s3 + $0x2ab0] sm:$0xff]  ;;  %v1931_v21 = vld [vmem:[%s16005_s3 + $0x17a8] sm:$0xff] }
 0x567   :  { %5966 = vmatprep.subr.mxu1 %v3355_v12  ;;  %6037 = vmatprep.subr.mxu0 %v1533_v27  ;;  %v2539_v23 = vld [vmem:[%s16005_s3 + $0x2aa8] sm:$0xff]  ;;  %v1913_v12 = vld [vmem:[%s16005_s3 + $0x1718] sm:$0xff] }
 0x568   :  { %5967 = vmatpush2.msra.mxu1 %v3354_v33  ;;  %6038 = vmatpush2.msra.mxu0 %v1532_v59  ;;  %v2521_v27 = vld [vmem:[%s16005_s3 + $0x2a18] sm:$0xff]  ;;  %v1912_v33 = vld [vmem:[%s16005_s3 + $0x1710] sm:$0xff] }
 0x569   :  { %5968 = vmatprep.subr.mxu1 %v3336_v39  ;;  %6039 = vmatprep.subr.mxu0 %v1514_v34  ;;  %v2520_v59 = vld [vmem:[%s16005_s3 + $0x2a10] sm:$0xff]  ;;  %v1894_v39 = vld [vmem:[%s16005_s3 + $0x1680] sm:$0xff] }
 0x56a   :  { %5969 = vmatpush2.msra.mxu1 %v3335_v35  ;;  %6040 = vmatpush2.msra.mxu0 %v1513_v37  ;;  %v2502_v34 = vld [vmem:[%s16005_s3 + $0x2980] sm:$0xff]  ;;  %v1893_v35 = vld [vmem:[%s16005_s3 + $0x1678] sm:$0xff] }
 0x56b   :  { %5970 = vmatprep.subr.mxu1 %v3317_v18  ;;  %6041 = vmatprep.subr.mxu0 %v1495_v41  ;;  %v2501_v37 = vld [vmem:[%s16005_s3 + $0x2978] sm:$0xff]  ;;  %v1875_v18 = vld [vmem:[%s16005_s3 + $0x15e8] sm:$0xff] }
 0x56c   :  { %5971 = vmatpush2.msra.mxu1 %v3316_v38  ;;  %6042 = vmatpush2.msra.mxu0 %v1494_v40  ;;  %v2483_v41 = vld [vmem:[%s16005_s3 + $0x28e8] sm:$0xff]  ;;  %v1874_v38 = vld [vmem:[%s16005_s3 + $0x15e0] sm:$0xff] }
 0x56d   :  { %5973 = vmatmul.mubr.f32.vlgmr.msra.gmra.mxu1 %v9518_v46  ;;  %6044 = vmatmul.mubr.f32.vlgmr.msra.gmra.mxu0 %v8883_v22  ;;  %v2482_v40 = vld [vmem:[%s16005_s3 + $0x28e0] sm:$0xff] }
 0x56e   :  { %6050 = vmatprep.subr.mxu1 %v2084_v42  ;;  %6121 = vmatprep.subr.mxu0 %v2692_v43  ;;  %v1856_v42 = vld [vmem:[%s16005_s3 + $0x1550] sm:$0xff] }
 0x56f   :  { %6051 = vmatpush1.msra.mxu1 %v2083_v24  ;;  %6114 = vmatprep.mubr.f32.mxu1 %v8898_v29  ;;  %v2464_v43 = vld [vmem:[%s16005_s3 + $0x2850] sm:$0xff]  ;;  %v1855_v24 = vld [vmem:[%s16005_s3 + $0x1548] sm:$0xff] }
 0x570   :  { %6122 = vmatpush1.msra.mxu0 %v2691_v45  ;;  %6185 = vmatprep.mubr.f32.mxu0 %v9297_v3  ;;  %v2463_v45 = vld [vmem:[%s16005_s3 + $0x2848] sm:$0xff] }
 0x571   :  { %6052 = vmatprep.subr.mxu1 %v2065_v26  ;;  %6123 = vmatprep.subr.mxu0 %v2673_v47  ;;  %v1837_v26 = vld [vmem:[%s16005_s3 + $0x14b8] sm:$0xff] }
 0x572   :  { %6053 = vmatpush1.msra.mxu1 %v2064_v48  ;;  %6124 = vmatpush1.msra.mxu0 %v2672_v49  ;;  %v2445_v47 = vld [vmem:[%s16005_s3 + $0x27b8] sm:$0xff]  ;;  %v1836_v48 = vld [vmem:[%s16005_s3 + $0x14b0] sm:$0xff] }
 0x573   :  { %6054 = vmatprep.subr.mxu1 %v2046_v50  ;;  %6125 = vmatprep.subr.mxu0 %v2654_v51  ;;  %v2444_v49 = vld [vmem:[%s16005_s3 + $0x27b0] sm:$0xff]  ;;  %v1818_v50 = vld [vmem:[%s16005_s3 + $0x1420] sm:$0xff] }
 0x574   :  { %6055 = vmatpush1.msra.mxu1 %v2045_v28  ;;  %6126 = vmatpush1.msra.mxu0 %v2653_v54  ;;  %v2426_v51 = vld [vmem:[%s16005_s3 + $0x2720] sm:$0xff]  ;;  %v1817_v28 = vld [vmem:[%s16005_s3 + $0x1418] sm:$0xff] }
 0x575   :  { %6056 = vmatprep.subr.mxu1 %v2027_v55  ;;  %6127 = vmatprep.subr.mxu0 %v2635_v56  ;;  %v2425_v54 = vld [vmem:[%s16005_s3 + $0x2718] sm:$0xff]  ;;  %v1799_v55 = vld [vmem:[%s16005_s3 + $0x1388] sm:$0xff] }
 0x576   :  { %6057 = vmatpush1.msra.mxu1 %v2026_v58  ;;  %6128 = vmatpush1.msra.mxu0 %v2634_v53  ;;  %v2407_v56 = vld [vmem:[%s16005_s3 + $0x2688] sm:$0xff]  ;;  %v1798_v58 = vld [vmem:[%s16005_s3 + $0x1380] sm:$0xff] }
 0x577   :  { %6058 = vmatprep.subr.mxu1 %v2008_v0  ;;  %6129 = vmatprep.subr.mxu0 %v2616_v63  ;;  %v2406_v53 = vld [vmem:[%s16005_s3 + $0x2680] sm:$0xff]  ;;  %v2388_v0 = vld [vmem:[%s16005_s3 + $0x25f0] sm:$0xff] }
 0x578   :  { %6059 = vmatpush1.msra.mxu1 %v2007_v1  ;;  %6130 = vmatpush1.msra.mxu0 %v2615_v2  ;;  %v2996_v63 = vld [vmem:[%s16005_s3 + $0x38f0] sm:$0xff]  ;;  %v2387_v1 = vld [vmem:[%s16005_s3 + $0x25e8] sm:$0xff] }
 0x579   :  { %6060 = vmatprep.subr.mxu1 %v1989_v8  ;;  %6131 = vmatprep.subr.mxu0 %v2597_v61  ;;  %v2995_v2 = vld [vmem:[%s16005_s3 + $0x38e8] sm:$0xff]  ;;  %v2369_v8 = vld [vmem:[%s16005_s3 + $0x2558] sm:$0xff] }
 0x57a   :  { %6061 = vmatpush1.msra.mxu1 %v1988_v62  ;;  %6132 = vmatpush1.msra.mxu0 %v2596_v60  ;;  %v2977_v61 = vld [vmem:[%s16005_s3 + $0x3858] sm:$0xff]  ;;  %v2368_v62 = vld [vmem:[%s16005_s3 + $0x2550] sm:$0xff] }
 0x57b   :  { %6062 = vmatprep.subr.mxu1 %v1970_v7  ;;  %6133 = vmatprep.subr.mxu0 %v2578_v9  ;;  %v2976_v60 = vld [vmem:[%s16005_s3 + $0x3850] sm:$0xff]  ;;  %v2350_v7 = vld [vmem:[%s16005_s3 + $0x24c0] sm:$0xff] }
 0x57c   :  { %6063 = vmatpush1.msra.mxu1 %v1969_v10  ;;  %6134 = vmatpush1.msra.mxu0 %v2577_v14  ;;  %v2958_v9 = vld [vmem:[%s16005_s3 + $0x37c0] sm:$0xff]  ;;  %v2349_v10 = vld [vmem:[%s16005_s3 + $0x24b8] sm:$0xff] }
 0x57d   :  { %6064 = vmatprep.subr.mxu1 %v1951_v16  ;;  %6135 = vmatprep.subr.mxu0 %v2559_v5  ;;  %v2957_v14 = vld [vmem:[%s16005_s3 + $0x37b8] sm:$0xff]  ;;  %v2331_v16 = vld [vmem:[%s16005_s3 + $0x2428] sm:$0xff] }
 0x57e   :  { %6065 = vmatpush1.msra.mxu1 %v1950_v17  ;;  %6136 = vmatpush1.msra.mxu0 %v2558_v11  ;;  %v2939_v5 = vld [vmem:[%s16005_s3 + $0x3728] sm:$0xff]  ;;  %v2330_v17 = vld [vmem:[%s16005_s3 + $0x2420] sm:$0xff] }
 0x57f   :  { %6066 = vmatprep.subr.mxu1 %v1932_v19  ;;  %6137 = vmatprep.subr.mxu0 %v2540_v20  ;;  %v2938_v11 = vld [vmem:[%s16005_s3 + $0x3720] sm:$0xff]  ;;  %v2312_v19 = vld [vmem:[%s16005_s3 + $0x2390] sm:$0xff] }
 0x580   :  { %6067 = vmatpush1.msra.mxu1 %v1931_v21  ;;  %6138 = vmatpush1.msra.mxu0 %v2539_v23  ;;  %v2920_v20 = vld [vmem:[%s16005_s3 + $0x3690] sm:$0xff]  ;;  %v2311_v21 = vld [vmem:[%s16005_s3 + $0x2388] sm:$0xff] }
 0x581   :  { %6068 = vmatprep.subr.mxu1 %v1913_v12  ;;  %6139 = vmatprep.subr.mxu0 %v2521_v27  ;;  %v2919_v23 = vld [vmem:[%s16005_s3 + $0x3688] sm:$0xff]  ;;  %v2293_v12 = vld [vmem:[%s16005_s3 + $0x22f8] sm:$0xff] }
 0x582   :  { %6069 = vmatpush1.msra.mxu1 %v1912_v33  ;;  %6140 = vmatpush1.msra.mxu0 %v2520_v59  ;;  %v2901_v27 = vld [vmem:[%s16005_s3 + $0x35f8] sm:$0xff]  ;;  %v2292_v33 = vld [vmem:[%s16005_s3 + $0x22f0] sm:$0xff] }
 0x583   :  { %6070 = vmatprep.subr.mxu1 %v1894_v39  ;;  %6141 = vmatprep.subr.mxu0 %v2502_v34  ;;  %v2900_v59 = vld [vmem:[%s16005_s3 + $0x35f0] sm:$0xff]  ;;  %v2274_v39 = vld [vmem:[%s16005_s3 + $0x2260] sm:$0xff] }
 0x584   :  { %6071 = vmatpush1.msra.mxu1 %v1893_v35  ;;  %6142 = vmatpush1.msra.mxu0 %v2501_v37  ;;  %v2882_v34 = vld [vmem:[%s16005_s3 + $0x3560] sm:$0xff]  ;;  %v2273_v35 = vld [vmem:[%s16005_s3 + $0x2258] sm:$0xff] }
 0x585   :  { %6072 = vmatprep.subr.mxu1 %v1875_v18  ;;  %6143 = vmatprep.subr.mxu0 %v2483_v41  ;;  %v2881_v37 = vld [vmem:[%s16005_s3 + $0x3558] sm:$0xff]  ;;  %v2255_v18 = vld [vmem:[%s16005_s3 + $0x21c8] sm:$0xff] }
 0x586   :  { %6073 = vmatpush1.msra.mxu1 %v1874_v38  ;;  %6144 = vmatpush1.msra.mxu0 %v2482_v40  ;;  %v2863_v41 = vld [vmem:[%s16005_s3 + $0x34c8] sm:$0xff]  ;;  %v2254_v38 = vld [vmem:[%s16005_s3 + $0x21c0] sm:$0xff] }
 0x587   :  { %6074 = vmatprep.subr.mxu1 %v1856_v42  ;;  %6145 = vmatprep.subr.mxu0 %v2464_v43  ;;  %v2862_v40 = vld [vmem:[%s16005_s3 + $0x34c0] sm:$0xff]  ;;  %v2236_v42 = vld [vmem:[%s16005_s3 + $0x2130] sm:$0xff] }
 0x588   :  { %6075 = vmatpush1.msra.mxu1 %v1855_v24  ;;  %6146 = vmatpush1.msra.mxu0 %v2463_v45  ;;  %v2844_v43 = vld [vmem:[%s16005_s3 + $0x3430] sm:$0xff]  ;;  %v2235_v24 = vld [vmem:[%s16005_s3 + $0x2128] sm:$0xff] }
 0x589   :  { %6076 = vmatprep.subr.mxu1 %v1837_v26  ;;  %6147 = vmatprep.subr.mxu0 %v2445_v47  ;;  %v2843_v45 = vld [vmem:[%s16005_s3 + $0x3428] sm:$0xff]  ;;  %v2217_v26 = vld [vmem:[%s16005_s3 + $0x2098] sm:$0xff] }
 0x58a   :  { %6077 = vmatpush1.msra.mxu1 %v1836_v48  ;;  %6148 = vmatpush1.msra.mxu0 %v2444_v49  ;;  %v2825_v47 = vld [vmem:[%s16005_s3 + $0x3398] sm:$0xff]  ;;  %v2216_v48 = vld [vmem:[%s16005_s3 + $0x2090] sm:$0xff] }
 0x58b   :  { %6078 = vmatprep.subr.mxu1 %v1818_v50  ;;  %6149 = vmatprep.subr.mxu0 %v2426_v51  ;;  %v2824_v49 = vld [vmem:[%s16005_s3 + $0x3390] sm:$0xff]  ;;  %v2198_v50 = vld [vmem:[%s16005_s3 + $0x2000] sm:$0xff] }
 0x58c   :  { %6079 = vmatpush1.msra.mxu1 %v1817_v28  ;;  %6150 = vmatpush1.msra.mxu0 %v2425_v54  ;;  %v2806_v51 = vld [vmem:[%s16005_s3 + $0x3300] sm:$0xff]  ;;  %v2197_v28 = vld [vmem:[%s16005_s3 + $0x1ff8] sm:$0xff] }
 0x58d   :  { %6080 = vmatprep.subr.mxu1 %v1799_v55  ;;  %6151 = vmatprep.subr.mxu0 %v2407_v56  ;;  %v2805_v54 = vld [vmem:[%s16005_s3 + $0x32f8] sm:$0xff]  ;;  %v2179_v55 = vld [vmem:[%s16005_s3 + $0x1f68] sm:$0xff] }
 0x58e   :  { %6081 = vmatpush1.msra.mxu1 %v1798_v58  ;;  %6152 = vmatpush1.msra.mxu0 %v2406_v53  ;;  %v2787_v56 = vld [vmem:[%s16005_s3 + $0x3268] sm:$0xff]  ;;  %v2178_v58 = vld [vmem:[%s16005_s3 + $0x1f60] sm:$0xff] }
 0x58f   :  { %6082 = vmatprep.subr.mxu1 %v2388_v0  ;;  %6153 = vmatprep.subr.mxu0 %v2996_v63  ;;  %v2786_v53 = vld [vmem:[%s16005_s3 + $0x3260] sm:$0xff]  ;;  %v2160_v0 = vld [vmem:[%s16005_s3 + $0x1ed0] sm:$0xff] }
 0x590   :  { %6083 = vmatpush2.msra.mxu1 %v2387_v1  ;;  %6154 = vmatpush2.msra.mxu0 %v2995_v2  ;;  %v2768_v63 = vld [vmem:[%s16005_s3 + $0x31d0] sm:$0xff]  ;;  %v2159_v1 = vld [vmem:[%s16005_s3 + $0x1ec8] sm:$0xff] }
 0x591   :  { %6084 = vmatprep.subr.mxu1 %v2369_v8  ;;  %6155 = vmatprep.subr.mxu0 %v2977_v61  ;;  %v2767_v2 = vld [vmem:[%s16005_s3 + $0x31c8] sm:$0xff]  ;;  %v2141_v8 = vld [vmem:[%s16005_s3 + $0x1e38] sm:$0xff] }
 0x592   :  { %6085 = vmatpush2.msra.mxu1 %v2368_v62  ;;  %6156 = vmatpush2.msra.mxu0 %v2976_v60  ;;  %v2749_v61 = vld [vmem:[%s16005_s3 + $0x3138] sm:$0xff]  ;;  %v2140_v62 = vld [vmem:[%s16005_s3 + $0x1e30] sm:$0xff] }
 0x593   :  { %6086 = vmatprep.subr.mxu1 %v2350_v7  ;;  %6157 = vmatprep.subr.mxu0 %v2958_v9  ;;  %v2748_v60 = vld [vmem:[%s16005_s3 + $0x3130] sm:$0xff]  ;;  %v2122_v7 = vld [vmem:[%s16005_s3 + $0x1da0] sm:$0xff] }
 0x594   :  { %6087 = vmatpush2.msra.mxu1 %v2349_v10  ;;  %6158 = vmatpush2.msra.mxu0 %v2957_v14  ;;  %v2730_v9 = vld [vmem:[%s16005_s3 + $0x30a0] sm:$0xff]  ;;  %v2121_v10 = vld [vmem:[%s16005_s3 + $0x1d98] sm:$0xff] }
 0x595   :  { %6088 = vmatprep.subr.mxu1 %v2331_v16  ;;  %6159 = vmatprep.subr.mxu0 %v2939_v5  ;;  %v2729_v14 = vld [vmem:[%s16005_s3 + $0x3098] sm:$0xff]  ;;  %v2103_v16 = vld [vmem:[%s16005_s3 + $0x1d08] sm:$0xff] }
 0x596   :  { %6089 = vmatpush2.msra.mxu1 %v2330_v17  ;;  %6160 = vmatpush2.msra.mxu0 %v2938_v11  ;;  %v2711_v5 = vld [vmem:[%s16005_s3 + $0x3008] sm:$0xff]  ;;  %v2102_v17 = vld [vmem:[%s16005_s3 + $0x1d00] sm:$0xff] }
 0x597   :  { %6090 = vmatprep.subr.mxu1 %v2312_v19  ;;  %6161 = vmatprep.subr.mxu0 %v2920_v20  ;;  %v2710_v11 = vld [vmem:[%s16005_s3 + $0x3000] sm:$0xff]  ;;  %v3300_v19 = vld [vmem:[%s16005_s3 + $0x4270] sm:$0xff]  ;;  %v1781_v20 = vld [vmem:[%s16005_s3 + $0x12f8] sm:$0xff] }
 0x598   :  { %6091 = vmatpush2.msra.mxu1 %v2311_v21  ;;  %6162 = vmatpush2.msra.mxu0 %v2919_v23  ;;  %v3299_v21 = vld [vmem:[%s16005_s3 + $0x4268] sm:$0xff]  ;;  %v1477_v23 = vld [vmem:[%s16005_s3 + $0x978] sm:$0xff] }
 0x599   :  { %6092 = vmatprep.subr.mxu1 %v2293_v12  ;;  %6163 = vmatprep.subr.mxu0 %v2901_v27  ;;  %v3281_v12 = vld [vmem:[%s16005_s3 + $0x41d8] sm:$0xff]  ;;  %v1762_v27 = vld [vmem:[%s16005_s3 + $0x1260] sm:$0xff] }
 0x59a   :  { %6093 = vmatpush2.msra.mxu1 %v2292_v33  ;;  %6164 = vmatpush2.msra.mxu0 %v2900_v59  ;;  %v3280_v33 = vld [vmem:[%s16005_s3 + $0x41d0] sm:$0xff]  ;;  %v1458_v59 = vld [vmem:[%s16005_s3 + $0x8e0] sm:$0xff] }
 0x59b   :  { %6094 = vmatprep.subr.mxu1 %v2274_v39  ;;  %6165 = vmatprep.subr.mxu0 %v2882_v34  ;;  %v3262_v39 = vld [vmem:[%s16005_s3 + $0x4140] sm:$0xff]  ;;  %v1743_v34 = vld [vmem:[%s16005_s3 + $0x11c8] sm:$0xff] }
 0x59c   :  { %6095 = vmatpush2.msra.mxu1 %v2273_v35  ;;  %6166 = vmatpush2.msra.mxu0 %v2881_v37  ;;  %v3261_v35 = vld [vmem:[%s16005_s3 + $0x4138] sm:$0xff]  ;;  %v1439_v37 = vld [vmem:[%s16005_s3 + $0x848] sm:$0xff] }
 0x59d   :  { %6096 = vmatprep.subr.mxu1 %v2255_v18  ;;  %6167 = vmatprep.subr.mxu0 %v2863_v41  ;;  %v1724_v18 = vld [vmem:[%s16005_s3 + $0x1130] sm:$0xff]  ;;  %v3242_v41 = vld [vmem:[%s16005_s3 + $0x40a0] sm:$0xff] }
 0x59e   :  { %6097 = vmatpush2.msra.mxu1 %v2254_v38  ;;  %6168 = vmatpush2.msra.mxu0 %v2862_v40  ;;  %v1420_v38 = vld [vmem:[%s16005_s3 + $0x7b0] sm:$0xff] }
 0x59f   :  { %6098 = vmatprep.subr.mxu1 %v2236_v42  ;;  %6169 = vmatprep.subr.mxu0 %v2844_v43  ;;  %v3224_v40 = vld [vmem:[%s16005_s3 + $0x4010] sm:$0xff]  ;;  %v1705_v42 = vld [vmem:[%s16005_s3 + $0x1098] sm:$0xff]  ;;  %v3223_v43 = vld [vmem:[%s16005_s3 + $0x4008] sm:$0xff] }
 0x5a0   :  { %6099 = vmatpush2.msra.mxu1 %v2235_v24  ;;  %6170 = vmatpush2.msra.mxu0 %v2843_v45  ;;  %v1401_v24 = vld [vmem:[%s16005_s3 + $0x718] sm:$0xff] }
 0x5a1   :  { %6100 = vmatprep.subr.mxu1 %v2217_v26  ;;  %6171 = vmatprep.subr.mxu0 %v2825_v47  ;;  %v3205_v45 = vld [vmem:[%s16005_s3 + $0x3f78] sm:$0xff]  ;;  %v1686_v26 = vld [vmem:[%s16005_s3 + $0x1000] sm:$0xff]  ;;  %v3204_v47 = vld [vmem:[%s16005_s3 + $0x3f70] sm:$0xff] }
 0x5a2   :  { %6101 = vmatpush2.msra.mxu1 %v2216_v48  ;;  %6172 = vmatpush2.msra.mxu0 %v2824_v49  ;;  %v1382_v48 = vld [vmem:[%s16005_s3 + $0x680] sm:$0xff] }
 0x5a3   :  { %6102 = vmatprep.subr.mxu1 %v2198_v50  ;;  %6173 = vmatprep.subr.mxu0 %v2806_v51  ;;  %v3186_v49 = vld [vmem:[%s16005_s3 + $0x3ee0] sm:$0xff]  ;;  %v1667_v50 = vld [vmem:[%s16005_s3 + $0xf68] sm:$0xff]  ;;  %v3185_v51 = vld [vmem:[%s16005_s3 + $0x3ed8] sm:$0xff] }
 0x5a4   :  { %6103 = vmatpush2.msra.mxu1 %v2197_v28  ;;  %6174 = vmatpush2.msra.mxu0 %v2805_v54  ;;  %v1363_v28 = vld [vmem:[%s16005_s3 + $0x5e8] sm:$0xff] }
 0x5a5   :  { %6104 = vmatprep.subr.mxu1 %v2179_v55  ;;  %6175 = vmatprep.subr.mxu0 %v2787_v56  ;;  %v3167_v54 = vld [vmem:[%s16005_s3 + $0x3e48] sm:$0xff]  ;;  %v1648_v55 = vld [vmem:[%s16005_s3 + $0xed0] sm:$0xff]  ;;  %v3166_v56 = vld [vmem:[%s16005_s3 + $0x3e40] sm:$0xff] }
 0x5a6   :  { %6105 = vmatpush2.msra.mxu1 %v2178_v58  ;;  %6176 = vmatpush2.msra.mxu0 %v2786_v53  ;;  %v1344_v58 = vld [vmem:[%s16005_s3 + $0x550] sm:$0xff] }
 0x5a7   :  { %6106 = vmatprep.subr.mxu1 %v2160_v0  ;;  %6177 = vmatprep.subr.mxu0 %v2768_v63  ;;  %v3148_v53 = vld [vmem:[%s16005_s3 + $0x3db0] sm:$0xff]  ;;  %v1629_v0 = vld [vmem:[%s16005_s3 + $0xe38] sm:$0xff]  ;;  %v3147_v63 = vld [vmem:[%s16005_s3 + $0x3da8] sm:$0xff] }
 0x5a8   :  { %6107 = vmatpush2.msra.mxu1 %v2159_v1  ;;  %6178 = vmatpush2.msra.mxu0 %v2767_v2  ;;  %v1325_v1 = vld [vmem:[%s16005_s3 + $0x4b8] sm:$0xff] }
 0x5a9   :  { %6108 = vmatprep.subr.mxu1 %v2141_v8  ;;  %6179 = vmatprep.subr.mxu0 %v2749_v61  ;;  %v3129_v2 = vld [vmem:[%s16005_s3 + $0x3d18] sm:$0xff]  ;;  %v1610_v8 = vld [vmem:[%s16005_s3 + $0xda0] sm:$0xff]  ;;  %v3128_v61 = vld [vmem:[%s16005_s3 + $0x3d10] sm:$0xff] }
 0x5aa   :  { %6109 = vmatpush2.msra.mxu1 %v2140_v62  ;;  %6180 = vmatpush2.msra.mxu0 %v2748_v60  ;;  %v1306_v62 = vld [vmem:[%s16005_s3 + $0x420] sm:$0xff] }
 0x5ab   :  { %6110 = vmatprep.subr.mxu1 %v2122_v7  ;;  %6181 = vmatprep.subr.mxu0 %v2730_v9  ;;  %v3110_v60 = vld [vmem:[%s16005_s3 + $0x3c80] sm:$0xff]  ;;  %v1591_v7 = vld [vmem:[%s16005_s3 + $0xd08] sm:$0xff]  ;;  %v3109_v9 = vld [vmem:[%s16005_s3 + $0x3c78] sm:$0xff] }
 0x5ac   :  { %6111 = vmatpush2.msra.mxu1 %v2121_v10  ;;  %6182 = vmatpush2.msra.mxu0 %v2729_v14  ;;  %v1287_v10 = vld [vmem:[%s16005_s3 + $0x388] sm:$0xff] }
 0x5ad   :  { %6112 = vmatprep.subr.mxu1 %v2103_v16  ;;  %6183 = vmatprep.subr.mxu0 %v2711_v5  ;;  %v3091_v14 = vld [vmem:[%s16005_s3 + $0x3be8] sm:$0xff]  ;;  %v1572_v16 = vld [vmem:[%s16005_s3 + $0xc70] sm:$0xff]  ;;  %v3090_v5 = vld [vmem:[%s16005_s3 + $0x3be0] sm:$0xff] }
 0x5ae   :  { %6113 = vmatpush2.msra.mxu1 %v2102_v17  ;;  %6184 = vmatpush2.msra.mxu0 %v2710_v11  ;;  %v1268_v17 = vld [vmem:[%s16005_s3 + $0x2f0] sm:$0xff] }
 0x5af   :  { %6115 = vmatmul.mubr.f32.vlgmr.msra.gmra.mxu1 %v8903_v32  ;;  %6186 = vmatmul.mubr.f32.vlgmr.msra.gmra.mxu0 %v9299_v6  ;;  %v3072_v11 = vld [vmem:[%s16005_s3 + $0x3b50] sm:$0xff] }
 0x5b0   :  { %6192 = vmatprep.subr.mxu1 %v3300_v19  ;;  %6694 = vmatprep.subr.mxu0 %v1781_v20  ;;  %v1553_v19 = vld [vmem:[%s16005_s3 + $0xbd8] sm:$0xff]  ;;  %v3071_v20 = vld [vmem:[%s16005_s3 + $0x3b48] sm:$0xff] }
 0x5b1   :  { %6193 = vmatpush1.msra.mxu1 %v3299_v21  ;;  %6256 = vmatprep.mubr.f32.mxu1 %v9512_v44  ;;  %v1249_v21 = vld [vmem:[%s16005_s3 + $0x258] sm:$0xff] }
 0x5b2   :  { %6695 = vmatpush3.msra.mxu0 %v1477_v23  ;;  %6327 = vmatprep.mubr.f32.mxu0 %v8497_v4  ;;  %v3243_v4 = vld [vmem:[%s16005_s3 + $0x40a8] sm:$0xff]  ;;  %v3053_v23 = vld [vmem:[%s16005_s3 + $0x3ab8] sm:$0xff] }
 0x5b3   :  { %6194 = vmatprep.subr.mxu1 %v3281_v12  ;;  %6696 = vmatprep.subr.mxu0 %v1762_v27  ;;  %v1534_v12 = vld [vmem:[%s16005_s3 + $0xb40] sm:$0xff]  ;;  %v3052_v27 = vld [vmem:[%s16005_s3 + $0x3ab0] sm:$0xff] }
 0x5b4   :  { %6195 = vmatpush1.msra.mxu1 %v3280_v33  ;;  %6697 = vmatpush3.msra.mxu0 %v1458_v59  ;;  %v1230_v33 = vld [vmem:[%s16005_s3 + $0x1c0] sm:$0xff] }
 0x5b5   :  { %6196 = vmatprep.subr.mxu1 %v3262_v39  ;;  %6698 = vmatprep.subr.mxu0 %v1743_v34  ;;  %v3034_v59 = vld [vmem:[%s16005_s3 + $0x3a20] sm:$0xff]  ;;  %v1515_v39 = vld [vmem:[%s16005_s3 + $0xaa8] sm:$0xff]  ;;  %v3033_v34 = vld [vmem:[%s16005_s3 + $0x3a18] sm:$0xff] }
 0x5b6   :  { %6197 = vmatpush1.msra.mxu1 %v3261_v35  ;;  %6699 = vmatpush3.msra.mxu0 %v1439_v37  ;;  %v1211_v35 = vld [vmem:[%s16005_s3 + $0x128] sm:$0xff] }
 0x5b7   :  { %6198 = vmatprep.subr.mxu1 %v3243_v4  ;;  %6700 = vmatprep.subr.mxu0 %v1724_v18  ;;  %v3015_v37 = vld [vmem:[%s16005_s3 + $0x3988] sm:$0xff]  ;;  %v1496_v4 = vld [vmem:[%s16005_s3 + $0xa10] sm:$0xff]  ;;  %v3014_v18 = vld [vmem:[%s16005_s3 + $0x3980] sm:$0xff] }
 0x5b8   :  { %6199 = vmatpush1.msra.mxu1 %v3242_v41  ;;  %6701 = vmatpush3.msra.mxu0 %v1420_v38  ;;  %v1192_v41 = vld [vmem:[%s16005_s3 + $0x90] sm:$0xff] }
 0x5b9   :  { %6200 = vmatprep.subr.mxu1 %v3224_v40  ;;  %6702 = vmatprep.subr.mxu0 %v1705_v42  ;;  %v3604_v38 = vld [vmem:[%s16005_s3 + $0x4bf0] sm:$0xff]  ;;  %v2997_v40 = vld [vmem:[%s16005_s3 + $0x38f8] sm:$0xff]  ;;  %v3603_v42 = vld [vmem:[%s16005_s3 + $0x4be8] sm:$0xff] }
 0x5ba   :  { %6201 = vmatpush1.msra.mxu1 %v3223_v43  ;;  %6703 = vmatpush3.msra.mxu0 %v1401_v24  ;;  %v2693_v43 = vld [vmem:[%s16005_s3 + $0x2f78] sm:$0xff] }
 0x5bb   :  { %6202 = vmatprep.subr.mxu1 %v3205_v45  ;;  %6704 = vmatprep.subr.mxu0 %v1686_v26  ;;  %v3585_v24 = vld [vmem:[%s16005_s3 + $0x4b58] sm:$0xff]  ;;  %v2978_v45 = vld [vmem:[%s16005_s3 + $0x3860] sm:$0xff]  ;;  %v3584_v26 = vld [vmem:[%s16005_s3 + $0x4b50] sm:$0xff] }
 0x5bc   :  { %6203 = vmatpush1.msra.mxu1 %v3204_v47  ;;  %6705 = vmatpush3.msra.mxu0 %v1382_v48  ;;  %v2674_v47 = vld [vmem:[%s16005_s3 + $0x2ee0] sm:$0xff]  ;;  %v2959_v48 = vld [vmem:[%s16005_s3 + $0x37c8] sm:$0xff] }
 0x5bd   :  { %6204 = vmatprep.subr.mxu1 %v3186_v49  ;;  %6706 = vmatprep.subr.mxu0 %v1667_v50  ;;  %v3565_v49 = vld [vmem:[%s16005_s3 + $0x4ab8] sm:$0xff]  ;;  %v2655_v50 = vld [vmem:[%s16005_s3 + $0x2e48] sm:$0xff] }
 0x5be   :  { %6205 = vmatpush1.msra.mxu1 %v3185_v51  ;;  %6707 = vmatpush3.msra.mxu0 %v1363_v28  ;;  %v2940_v51 = vld [vmem:[%s16005_s3 + $0x3730] sm:$0xff]  ;;  %v3546_v28 = vld [vmem:[%s16005_s3 + $0x4a20] sm:$0xff] }
 0x5bf   :  { %6206 = vmatprep.subr.mxu1 %v3167_v54  ;;  %6708 = vmatprep.subr.mxu0 %v1648_v55  ;;  %v2636_v54 = vld [vmem:[%s16005_s3 + $0x2db0] sm:$0xff] }
 0x5c0   :  { %6207 = vmatpush1.msra.mxu1 %v3166_v56  ;;  %6709 = vmatpush3.msra.mxu0 %v1344_v58  ;;  %v3528_v55 = vld [vmem:[%s16005_s3 + $0x4990] sm:$0xff]  ;;  %v2921_v56 = vld [vmem:[%s16005_s3 + $0x3698] sm:$0xff]  ;;  %v3527_v58 = vld [vmem:[%s16005_s3 + $0x4988] sm:$0xff] }
 0x5c1   :  { %6208 = vmatprep.subr.mxu1 %v3148_v53  ;;  %6710 = vmatprep.subr.mxu0 %v1629_v0  ;;  %v2617_v53 = vld [vmem:[%s16005_s3 + $0x2d18] sm:$0xff] }
 0x5c2   :  { %6209 = vmatpush1.msra.mxu1 %v3147_v63  ;;  %6711 = vmatpush3.msra.mxu0 %v1325_v1  ;;  %v3509_v0 = vld [vmem:[%s16005_s3 + $0x48f8] sm:$0xff]  ;;  %v2902_v63 = vld [vmem:[%s16005_s3 + $0x3600] sm:$0xff]  ;;  %v3508_v1 = vld [vmem:[%s16005_s3 + $0x48f0] sm:$0xff] }
 0x5c3   :  { %6210 = vmatprep.subr.mxu1 %v3129_v2  ;;  %6712 = vmatprep.subr.mxu0 %v1610_v8  ;;  %v2598_v2 = vld [vmem:[%s16005_s3 + $0x2c80] sm:$0xff] }
 0x5c4   :  { %6211 = vmatpush1.msra.mxu1 %v3128_v61  ;;  %6713 = vmatpush3.msra.mxu0 %v1306_v62  ;;  %v3490_v8 = vld [vmem:[%s16005_s3 + $0x4860] sm:$0xff]  ;;  %v2883_v61 = vld [vmem:[%s16005_s3 + $0x3568] sm:$0xff]  ;;  %v3489_v62 = vld [vmem:[%s16005_s3 + $0x4858] sm:$0xff] }
 0x5c5   :  { %6212 = vmatprep.subr.mxu1 %v3110_v60  ;;  %6714 = vmatprep.subr.mxu0 %v1591_v7  ;;  %v2579_v60 = vld [vmem:[%s16005_s3 + $0x2be8] sm:$0xff] }
 0x5c6   :  { %6213 = vmatpush1.msra.mxu1 %v3109_v9  ;;  %6715 = vmatpush3.msra.mxu0 %v1287_v10  ;;  %v3471_v7 = vld [vmem:[%s16005_s3 + $0x47c8] sm:$0xff]  ;;  %v2864_v9 = vld [vmem:[%s16005_s3 + $0x34d0] sm:$0xff]  ;;  %v3470_v10 = vld [vmem:[%s16005_s3 + $0x47c0] sm:$0xff] }
 0x5c7   :  { %6214 = vmatprep.subr.mxu1 %v3091_v14  ;;  %6716 = vmatprep.subr.mxu0 %v1572_v16  ;;  %v2560_v14 = vld [vmem:[%s16005_s3 + $0x2b50] sm:$0xff] }
 0x5c8   :  { %6215 = vmatpush1.msra.mxu1 %v3090_v5  ;;  %6717 = vmatpush3.msra.mxu0 %v1268_v17  ;;  %v3452_v16 = vld [vmem:[%s16005_s3 + $0x4730] sm:$0xff]  ;;  %v2845_v5 = vld [vmem:[%s16005_s3 + $0x3438] sm:$0xff]  ;;  %v3451_v17 = vld [vmem:[%s16005_s3 + $0x4728] sm:$0xff] }
 0x5c9   :  { %6216 = vmatprep.subr.mxu1 %v3072_v11  ;;  %6718 = vmatprep.subr.mxu0 %v1553_v19  ;;  %v2541_v11 = vld [vmem:[%s16005_s3 + $0x2ab8] sm:$0xff] }
 0x5ca   :  { %6217 = vmatpush1.msra.mxu1 %v3071_v20  ;;  %6719 = vmatpush3.msra.mxu0 %v1249_v21  ;;  %v3433_v19 = vld [vmem:[%s16005_s3 + $0x4698] sm:$0xff]  ;;  %v2826_v20 = vld [vmem:[%s16005_s3 + $0x33a0] sm:$0xff]  ;;  %v3432_v21 = vld [vmem:[%s16005_s3 + $0x4690] sm:$0xff] }
 0x5cb   :  { %6218 = vmatprep.subr.mxu1 %v3053_v23  ;;  %6720 = vmatprep.subr.mxu0 %v1534_v12  ;;  %v2522_v23 = vld [vmem:[%s16005_s3 + $0x2a20] sm:$0xff] }
 0x5cc   :  { %6219 = vmatpush1.msra.mxu1 %v3052_v27  ;;  %6721 = vmatpush3.msra.mxu0 %v1230_v33  ;;  %v3414_v12 = vld [vmem:[%s16005_s3 + $0x4600] sm:$0xff]  ;;  %v2807_v27 = vld [vmem:[%s16005_s3 + $0x3308] sm:$0xff]  ;;  %v3413_v33 = vld [vmem:[%s16005_s3 + $0x45f8] sm:$0xff] }
 0x5cd   :  { %6220 = vmatprep.subr.mxu1 %v3034_v59  ;;  %6722 = vmatprep.subr.mxu0 %v1515_v39  ;;  %v2503_v59 = vld [vmem:[%s16005_s3 + $0x2988] sm:$0xff] }
 0x5ce   :  { %6221 = vmatpush1.msra.mxu1 %v3033_v34  ;;  %6723 = vmatpush3.msra.mxu0 %v1211_v35  ;;  %v3395_v39 = vld [vmem:[%s16005_s3 + $0x4568] sm:$0xff]  ;;  %v2788_v34 = vld [vmem:[%s16005_s3 + $0x3270] sm:$0xff]  ;;  %v3394_v35 = vld [vmem:[%s16005_s3 + $0x4560] sm:$0xff] }
 0x5cf   :  { %6222 = vmatprep.subr.mxu1 %v3015_v37  ;;  %6724 = vmatprep.subr.mxu0 %v1496_v4  ;;  %v2484_v37 = vld [vmem:[%s16005_s3 + $0x28f0] sm:$0xff] }
 0x5d0   :  { %6223 = vmatpush1.msra.mxu1 %v3014_v18  ;;  %6725 = vmatpush3.msra.mxu0 %v1192_v41  ;;  %v3376_v4 = vld [vmem:[%s16005_s3 + $0x44d0] sm:$0xff]  ;;  %v2769_v18 = vld [vmem:[%s16005_s3 + $0x31d8] sm:$0xff]  ;;  %v3375_v41 = vld [vmem:[%s16005_s3 + $0x44c8] sm:$0xff] }
 0x5d1   :  { %6224 = vmatprep.subr.mxu1 %v3604_v38  ;;  %6328 = vmatmul.mubr.f32.vlgmr.msra.gmra.mxu0 %v8883_v22  ;;  %v3566_v22 = vld [vmem:[%s16005_s3 + $0x4ac0] sm:$0xff]  ;;  %v2465_v38 = vld [vmem:[%s16005_s3 + $0x2858] sm:$0xff] }
 0x5d2   :  { %6764 = vmatprep.subr.mxu0 %v2997_v40  ;;  %6225 = vmatpush2.msra.mxu1 %v3603_v42  ;;  %v3357_v40 = vld [vmem:[%s16005_s3 + $0x4438] sm:$0xff]  ;;  %v2750_v42 = vld [vmem:[%s16005_s3 + $0x3140] sm:$0xff] }
 0x5d3   :  { %6765 = vmatpush3.msra.mxu0 %v2693_v43  ;;  %6467 = vmatprep.mubr.f32.mxu0 %v9297_v3  ;;  %v3547_v3 = vld [vmem:[%s16005_s3 + $0x4a28] sm:$0xff]  ;;  %v3356_v43 = vld [vmem:[%s16005_s3 + $0x4430] sm:$0xff] }
 0x5d4   :  { %6226 = vmatprep.subr.mxu1 %v3585_v24  ;;  %6766 = vmatprep.subr.mxu0 %v2978_v45  ;;  %v2446_v24 = vld [vmem:[%s16005_s3 + $0x27c0] sm:$0xff] }
 0x5d5   :  { %6227 = vmatpush2.msra.mxu1 %v3584_v26  ;;  %6767 = vmatpush3.msra.mxu0 %v2674_v47  ;;  %v3338_v45 = vld [vmem:[%s16005_s3 + $0x43a0] sm:$0xff]  ;;  %v2731_v26 = vld [vmem:[%s16005_s3 + $0x30a8] sm:$0xff]  ;;  %v3337_v47 = vld [vmem:[%s16005_s3 + $0x4398] sm:$0xff] }
 0x5d6   :  { %6228 = vmatprep.subr.mxu1 %v3566_v22  ;;  %6768 = vmatprep.subr.mxu0 %v2959_v48  ;;  %v2427_v22 = vld [vmem:[%s16005_s3 + $0x2728] sm:$0xff] }
 0x5d7   :  { %6229 = vmatpush2.msra.mxu1 %v3565_v49  ;;  %6769 = vmatpush3.msra.mxu0 %v2655_v50  ;;  %v3319_v48 = vld [vmem:[%s16005_s3 + $0x4308] sm:$0xff]  ;;  %v2712_v49 = vld [vmem:[%s16005_s3 + $0x3010] sm:$0xff]  ;;  %v3318_v50 = vld [vmem:[%s16005_s3 + $0x4300] sm:$0xff] }
 0x5d8   :  { %6230 = vmatprep.subr.mxu1 %v3547_v3  ;;  %6770 = vmatprep.subr.mxu0 %v2940_v51  ;;  %v2408_v3 = vld [vmem:[%s16005_s3 + $0x2690] sm:$0xff]  ;;  %v2389_v51 = vld [vmem:[%s16005_s3 + $0x25f8] sm:$0xff] }
 0x5d9   :  { %6231 = vmatpush2.msra.mxu1 %v3546_v28  ;;  %6771 = vmatpush3.msra.mxu0 %v2636_v54  ;;  %v2085_v28 = vld [vmem:[%s16005_s3 + $0x1c78] sm:$0xff]  ;;  %v2370_v54 = vld [vmem:[%s16005_s3 + $0x2560] sm:$0xff] }
 0x5da   :  { %6232 = vmatprep.subr.mxu1 %v3528_v55  ;;  %6772 = vmatprep.subr.mxu0 %v2921_v56  ;;  %v2066_v55 = vld [vmem:[%s16005_s3 + $0x1be0] sm:$0xff]  ;;  %v2351_v56 = vld [vmem:[%s16005_s3 + $0x24c8] sm:$0xff] }
 0x5db   :  { %6233 = vmatpush2.msra.mxu1 %v3527_v58  ;;  %6773 = vmatpush3.msra.mxu0 %v2617_v53  ;;  %v2047_v58 = vld [vmem:[%s16005_s3 + $0x1b48] sm:$0xff]  ;;  %v2332_v53 = vld [vmem:[%s16005_s3 + $0x2430] sm:$0xff] }
 0x5dc   :  { %6234 = vmatprep.subr.mxu1 %v3509_v0  ;;  %6774 = vmatprep.subr.mxu0 %v2902_v63  ;;  %v2009_v0 = vld [vmem:[%s16005_s3 + $0x1a18] sm:$0xff]  ;;  %v2294_v63 = vld [vmem:[%s16005_s3 + $0x2300] sm:$0xff] }
 0x5dd   :  { %6235 = vmatpush2.msra.mxu1 %v3508_v1  ;;  %6775 = vmatpush3.msra.mxu0 %v2598_v2  ;;  %v1990_v1 = vld [vmem:[%s16005_s3 + $0x1980] sm:$0xff]  ;;  %v2275_v2 = vld [vmem:[%s16005_s3 + $0x2268] sm:$0xff] }
 0x5de   :  { %6236 = vmatprep.subr.mxu1 %v3490_v8  ;;  %6776 = vmatprep.subr.mxu0 %v2883_v61  ;;  %v1971_v8 = vld [vmem:[%s16005_s3 + $0x18e8] sm:$0xff]  ;;  %v2256_v61 = vld [vmem:[%s16005_s3 + $0x21d0] sm:$0xff] }
 0x5df   :  { %6237 = vmatpush2.msra.mxu1 %v3489_v62  ;;  %6777 = vmatpush3.msra.mxu0 %v2579_v60  ;;  %v1952_v62 = vld [vmem:[%s16005_s3 + $0x1850] sm:$0xff]  ;;  %v2237_v60 = vld [vmem:[%s16005_s3 + $0x2138] sm:$0xff] }
 0x5e0   :  { %6238 = vmatprep.subr.mxu1 %v3471_v7  ;;  %6778 = vmatprep.subr.mxu0 %v2864_v9  ;;  %v1933_v7 = vld [vmem:[%s16005_s3 + $0x17b8] sm:$0xff]  ;;  %v2218_v9 = vld [vmem:[%s16005_s3 + $0x20a0] sm:$0xff] }
 0x5e1   :  { %6239 = vmatpush2.msra.mxu1 %v3470_v10  ;;  %6779 = vmatpush3.msra.mxu0 %v2560_v14  ;;  %v1914_v10 = vld [vmem:[%s16005_s3 + $0x1720] sm:$0xff]  ;;  %v2199_v14 = vld [vmem:[%s16005_s3 + $0x2008] sm:$0xff] }
 0x5e2   :  { %6240 = vmatprep.subr.mxu1 %v3452_v16  ;;  %6780 = vmatprep.subr.mxu0 %v2845_v5  ;;  %v1895_v16 = vld [vmem:[%s16005_s3 + $0x1688] sm:$0xff]  ;;  %v2180_v5 = vld [vmem:[%s16005_s3 + $0x1f70] sm:$0xff] }
 0x5e3   :  { %6241 = vmatpush2.msra.mxu1 %v3451_v17  ;;  %6781 = vmatpush3.msra.mxu0 %v2541_v11  ;;  %v1876_v17 = vld [vmem:[%s16005_s3 + $0x15f0] sm:$0xff]  ;;  %v2161_v11 = vld [vmem:[%s16005_s3 + $0x1ed8] sm:$0xff] }
 0x5e4   :  { %6242 = vmatprep.subr.mxu1 %v3433_v19  ;;  %6782 = vmatprep.subr.mxu0 %v2826_v20  ;;  %v1857_v19 = vld [vmem:[%s16005_s3 + $0x1558] sm:$0xff]  ;;  %v2142_v20 = vld [vmem:[%s16005_s3 + $0x1e40] sm:$0xff] }
 0x5e5   :  { %6243 = vmatpush2.msra.mxu1 %v3432_v21  ;;  %6783 = vmatpush3.msra.mxu0 %v2522_v23  ;;  %v1838_v21 = vld [vmem:[%s16005_s3 + $0x14c0] sm:$0xff]  ;;  %v2123_v23 = vld [vmem:[%s16005_s3 + $0x1da8] sm:$0xff] }
 0x5e6   :  { %6244 = vmatprep.subr.mxu1 %v3414_v12  ;;  %6784 = vmatprep.subr.mxu0 %v2807_v27  ;;  %v1819_v12 = vld [vmem:[%s16005_s3 + $0x1428] sm:$0xff]  ;;  %v2104_v27 = vld [vmem:[%s16005_s3 + $0x1d10] sm:$0xff] }
 0x5e7   :  { %6245 = vmatpush2.msra.mxu1 %v3413_v33  ;;  %6785 = vmatpush3.msra.mxu0 %v2503_v59  ;;  %v1800_v33 = vld [vmem:[%s16005_s3 + $0x1390] sm:$0xff]  ;;  %v3605_v59 = vld [vmem:[%s16005_s3 + $0x4bf8] sm:$0xff] }
 0x5e8   :  { %6246 = vmatprep.subr.mxu1 %v3395_v39  ;;  %6786 = vmatprep.subr.mxu0 %v2788_v34  ;;  %v3301_v39 = vld [vmem:[%s16005_s3 + $0x4278] sm:$0xff]  ;;  %v3586_v34 = vld [vmem:[%s16005_s3 + $0x4b60] sm:$0xff] }
 0x5e9   :  { %6247 = vmatpush2.msra.mxu1 %v3394_v35  ;;  %6787 = vmatpush3.msra.mxu0 %v2484_v37  ;;  %v3282_v35 = vld [vmem:[%s16005_s3 + $0x41e0] sm:$0xff]  ;;  %v3567_v37 = vld [vmem:[%s16005_s3 + $0x4ac8] sm:$0xff] }
 0x5ea   :  { %6248 = vmatprep.subr.mxu1 %v3376_v4  ;;  %6788 = vmatprep.subr.mxu0 %v2769_v18  ;;  %v3263_v4 = vld [vmem:[%s16005_s3 + $0x4148] sm:$0xff]  ;;  %v5477_v18 = vpop.f32.mrf.mxu0 }
 0x5eb   :  { %6249 = vmatpush2.msra.mxu1 %v3375_v41  ;;  %6789 = vmatpush3.msra.mxu0 %v2465_v38  ;;  %v5548_v41 = vpop.f32.mrf.mxu1  ;;  %v3529_v38 = vld [vmem:[%s16005_s3 + $0x4998] sm:$0xff] }
 0x5ec   :  { %6250 = vmatprep.subr.mxu1 %v3357_v40  ;;  %6790 = vmatprep.subr.mxu0 %v2750_v42  ;;  %v3225_v40 = vld [vmem:[%s16005_s3 + $0x4018] sm:$0xff]  ;;  %v5479_v42 = vpop.f32.mrf.mxu0 }
 0x5ed   :  { %6251 = vmatpush2.msra.mxu1 %v3356_v43  ;;  %6791 = vmatpush3.msra.mxu0 %v2446_v24  ;;  %v3510_v43 = vld [vmem:[%s16005_s3 + $0x4900] sm:$0xff] }
 0x5ee   :  { %6252 = vmatprep.subr.mxu1 %v3338_v45  ;;  %6792 = vmatprep.subr.mxu0 %v2731_v26  ;;  %v3206_v24 = vld [vmem:[%s16005_s3 + $0x3f80] sm:$0xff]  ;;  %v5619_v45 = vpop.f32.mrf.mxu0  ;;  %v5550_v26 = vpop.f32.mrf.mxu1 }
 0x5ef   :  { %6253 = vmatpush2.msra.mxu1 %v3337_v47  ;;  %6793 = vmatpush3.msra.mxu0 %v2427_v22  ;;  %v3491_v47 = vld [vmem:[%s16005_s3 + $0x4868] sm:$0xff] }
 0x5f0   :  { %6254 = vmatprep.subr.mxu1 %v3319_v48  ;;  %6794 = vmatprep.subr.mxu0 %v2712_v49  ;;  %v3187_v22 = vld [vmem:[%s16005_s3 + $0x3ee8] sm:$0xff]  ;;  %v5690_v48 = vpop.f32.mrf.mxu1  ;;  %v3472_v49 = vld [vmem:[%s16005_s3 + $0x47d0] sm:$0xff] }
 0x5f1   :  { %6255 = vmatpush2.msra.mxu1 %v3318_v50  ;;  %6795 = vmatpush3.msra.mxu0 %v2408_v3  ;;  %v6839_v50 = vld [vmem:[%s16006_s4 + $0x8] sm:$0xff] }
 0x5f2   :  { %6257 = vmatmul.mubr.f32.vlgmr.msra.gmra.mxu1 %v9518_v46  ;;  %6729 = vmatprep.subr.mxu1 %v2389_v51  ;;  %v3667_v3 = vrot.slane %v6839_v50, %v9229_v31  ;;  %v3168_v51 = vld [vmem:[%s16005_s3 + $0x3e50] sm:$0xff]  ;;  %v5692_v31 = vpop.f32.mrf.mxu1 }
 0x5f3   :  { %6468 = vmatmul.mubr.f32.vlgmr.msra.gmra.mxu0 %v9299_v6  ;;  %6730 = vmatpush3.msra.mxu1 %v2085_v28  ;;  %v2028_v6 = vld [vmem:[%s16005_s3 + $0x1ab0] sm:$0xff]  ;;  %v5621_v28 = vpop.f32.mrf.mxu0 }
 0x5f4   :  { %6397 = vmatprep.mubr.f32.mxu1 %v8898_v29  ;;  %6731 = vmatprep.subr.mxu1 %v2370_v54  ;;  %v2313_v29 = vld [vmem:[%s16005_s3 + $0x2398] sm:$0xff] }
 0x5f5   :  { %6732 = vmatpush3.msra.mxu1 %v2066_v55  ;;  %v3453_v54 = vld [vmem:[%s16005_s3 + $0x4738] sm:$0xff]  ;;  %v3663_v55 = vrot.slane %v6839_v50, %v9214_v25  ;;  %v3130_v25 = vld [vmem:[%s16005_s3 + $0x3d20] sm:$0xff] }
 0x5f6   :  { %6733 = vmatprep.subr.mxu1 %v2351_v56  ;;  %v3149_v56 = vld [vmem:[%s16005_s3 + $0x3db8] sm:$0xff] }
 0x5f7   :  { %6734 = vmatpush3.msra.mxu1 %v2047_v58  ;;  %v5761_v58 = vpop.f32.mrf.mxu0 }
 0x5f8   :  { %6735 = vmatprep.subr.mxu1 %v2332_v53  ;;  %v3434_v53 = vld [vmem:[%s16005_s3 + $0x46a0] sm:$0xff] }
 0x5f9   :  { %6736 = vmatpush3.msra.mxu1 %v2028_v6  ;;  %v5480_v6 = vadd.f32 %v5479_v42, %v3667_v3 }
 0x5fa   :  { %6737 = vmatprep.subr.mxu1 %v2313_v29  ;;  %v3671_v29 = vrot.slane %v6839_v50, %v9464_v13  ;;  %v3111_v13 = vld [vmem:[%s16005_s3 + $0x3c88] sm:$0xff] }
 0x5fb   :  { %6738 = vmatpush3.msra.mxu1 %v2009_v0  ;;  %v5832_v0 = vpop.f32.mrf.mxu1 }
 0x5fc   :  { %6739 = vmatprep.subr.mxu1 %v2294_v63  ;;  %v3415_v63 = vld [vmem:[%s16005_s3 + $0x4608] sm:$0xff] }
 0x5fd   :  { %6740 = vmatpush3.msra.mxu1 %v1990_v1  ;;  %v5478_v1 = vadd.f32 %v5477_v18, %v3663_v55 }
 0x5fe   :  { %6741 = vmatprep.subr.mxu1 %v2275_v2  ;;  %v5551_v2 = vadd.f32 %v5550_v26, %v5480_v6 }
 0x5ff   :  { %6742 = vmatpush3.msra.mxu1 %v1971_v8  ;;  %v3675_v8 = vrot.slane %v6839_v50, %v9473_v15  ;;  %v3377_v15 = vld [vmem:[%s16005_s3 + $0x44d8] sm:$0xff] }
 0x600   :  { %6743 = vmatprep.subr.mxu1 %v2256_v61  ;;  %v5763_v61 = vpop.f32.mrf.mxu0 }
 0x601   :  { %6744 = vmatpush3.msra.mxu1 %v1952_v62  ;;  %v3396_v62 = vld [vmem:[%s16005_s3 + $0x4570] sm:$0xff] }
 0x602   :  { %6745 = vmatprep.subr.mxu1 %v2237_v60  ;;  %v5549_v60 = vadd.f32 %v5548_v41, %v5478_v1 }
 0x603   :  { %6746 = vmatpush3.msra.mxu1 %v1933_v7  ;;  %v5762_v7 = vadd.f32 %v5761_v58, %v3671_v29 }
 0x604   :  { %6747 = vmatprep.subr.mxu1 %v2218_v9  ;;  %v3092_v9 = vld [vmem:[%s16005_s3 + $0x3bf0] sm:$0xff] }
 0x605   :  { %6748 = vmatpush3.msra.mxu1 %v1914_v10  ;;  %v5834_v10 = vpop.f32.mrf.mxu1 }
 0x606   :  { %6749 = vmatprep.subr.mxu1 %v2199_v14  ;;  %v5622_v14 = vadd.f32 %v5621_v28, %v5551_v2 }
 0x607   :  { %6750 = vmatpush3.msra.mxu1 %v1895_v16  ;;  %v5764_v16 = vadd.f32 %v5763_v61, %v3675_v8 }
 0x608   :  { %6751 = vmatprep.subr.mxu1 %v2180_v5  ;;  %v5833_v5 = vadd.f32 %v5832_v0, %v5762_v7 }
 0x609   :  { %6752 = vmatpush3.msra.mxu1 %v1876_v17  ;;  %v3073_v17 = vld [vmem:[%s16005_s3 + $0x3b58] sm:$0xff] }
 0x60a   :  { %6753 = vmatprep.subr.mxu1 %v2161_v11  ;;  %v5903_v11 = vpop.f32.mrf.mxu0 }
 0x60b   :  { %6754 = vmatpush3.msra.mxu1 %v1857_v19  ;;  %v3358_v19 = vld [vmem:[%s16005_s3 + $0x4440] sm:$0xff] }
 0x60c   :  { %6755 = vmatprep.subr.mxu1 %v2142_v20  ;;  %v5620_v20 = vadd.f32 %v5619_v45, %v5549_v60 }
 0x60d   :  { %6756 = vmatpush3.msra.mxu1 %v1838_v21  ;;  %v5693_v21 = vadd.f32 %v5692_v31, %v5622_v14 }
 0x60e   :  { %6757 = vmatprep.subr.mxu1 %v2123_v23  ;;  %v5835_v23 = vadd.f32 %v5834_v10, %v5764_v16 }
 0x60f   :  { %6758 = vmatpush3.msra.mxu1 %v1819_v12  ;;  %v3054_v12 = vld [vmem:[%s16005_s3 + $0x3ac0] sm:$0xff] }
 0x610   :  { %6759 = vmatprep.subr.mxu1 %v2104_v27  ;;  %v3339_v27 = vld [vmem:[%s16005_s3 + $0x43a8] sm:$0xff] }
 0x611   :  { %6760 = vmatpush3.msra.mxu1 %v1800_v33  ;;  %v5691_v33 = vadd.f32 %v5690_v48, %v5620_v20 }
 0x612   :  { %6398 = vmatmul.mubr.f32.vlgmr.msra.gmra.mxu1 %v8903_v32  ;;  %6799 = vmatprep.subr.mxu1 %v3605_v59  ;;  %v3548_v32 = vld [vmem:[%s16005_s3 + $0x4a30] sm:$0xff]  ;;  %v5904_v59 = vadd.f32 %v5903_v11, %v5833_v5 }
 0x613   :  { %6800 = vmatpush3.msra.mxu1 %v3301_v39  ;;  %6537 = vmatprep.mubr.f32.mxu1 %v9512_v44  ;;  %v3244_v44 = vld [vmem:[%s16005_s3 + $0x40b0] sm:$0xff]  ;;  %v3035_v39 = vld [vmem:[%s16005_s3 + $0x3a28] sm:$0xff] }
 0x614   :  { %6801 = vmatprep.subr.mxu1 %v3586_v34  ;;  %v5905_v34 = vpop.f32.mrf.mxu0 }
 0x615   :  { %6802 = vmatpush3.msra.mxu1 %v3282_v35  ;;  %v3320_v35 = vld [vmem:[%s16005_s3 + $0x4310] sm:$0xff]  ;;  %v5906_v18 = vadd.f32 %v5905_v34, %v5835_v23 }
 0x616   :  { %6803 = vmatprep.subr.mxu1 %v3567_v37 }
 0x617   :  { %6804 = vmatpush3.msra.mxu1 %v3263_v4  ;;  %v6556_v4 = vmax.f32 %v5693_v21, 0.0 }
 0x618   :  { %6805 = vmatprep.subr.mxu1 %v3548_v32  ;;  %v3016_v32 = vld [vmem:[%s16005_s3 + $0x3990] sm:$0xff] }
 0x619   :  { %6806 = vmatpush3.msra.mxu1 %v3244_v44 }
 0x61a   :  { %6807 = vmatprep.subr.mxu1 %v3529_v38  ;;  %v6555_v38 = vmax.f32 %v5691_v33, 0.0 }
 0x61b   :  { %6808 = vmatpush3.msra.mxu1 %v3225_v40 }
 0x61c   :  { %6809 = vmatprep.subr.mxu1 %v3510_v43  ;;  %v6632_v42 = vcombine.low %v6555_v38, %v6556_v4 }
 0x61d   :  { %6810 = vmatpush3.msra.mxu1 %v3206_v24 }
 0x61e   :  { %6811 = vmatprep.subr.mxu1 %v3491_v47  ;;  %v6640_v26 = vrot.slane %v6632_v42, %v7230_v52 }
 0x61f   :  { %6812 = vmatpush3.msra.mxu1 %v3187_v22 }
 0x620   :  { %6813 = vmatprep.subr.mxu1 %v3472_v49 }
 0x621   :  { %6814 = vmatpush3.msra.mxu1 %v3168_v51 }
 0x622   :  { %6815 = vmatprep.subr.mxu1 %v3453_v54  ;;  %v3608_v54 = vld [vmem:[%s16006_s4 + $0x10] sm:$0x7]  ;;  %s6863_s4 = smov [#allocation2]  }
 0x623   :  { %6816 = vmatpush3.msra.mxu1 %v3149_v56  ;;  %v3679_v31 = vrot.slane %v3608_v54, %v8411_v30  ;;  %v3687_v2 = vrot.slane %v3608_v54, %v8816_v57  ;;  %s6686_s8 = sshll.u32 %s6863_s4, 4  ;;  %s6687_s8 = int_to_ptr.vmem [resolvable:$true] %s6686_s8 }
 0x624   :  { %6817 = vmatprep.subr.mxu1 %v3434_v53  ;;  %s6840_s9 = scalar_lea.vmem %s6687_s8, 608  ;;  %p6845_p1 = scmp.lt.s32.totalorder %s6687_s8, %s6687_s8 }
 0x625   :  { %6818 = vmatpush3.msra.mxu1 %v3130_v25  ;;  %p6841_p0 = scmp.ne.s32.totalorder %s6687_s8, %s6840_s9  ;;  %p6846_p2 = scmp.lt.s32.totalorder %s6840_s9, %s6840_s9 }
 0x626   :  { %6819 = vmatprep.subr.mxu1 %v3415_v63 }
 0x627   :  { %6820 = vmatpush3.msra.mxu1 %v3111_v13  ;;  %p6847_p3 = por %p6846_p2, %p6845_p1 }
 0x628   :  { %6821 = vmatprep.subr.mxu1 %v3396_v62 }
 0x629   :  { %6822 = vmatpush3.msra.mxu1 %v3092_v9  ;;  %p6848_p4 = pnand %p6847_p3, %p6841_p0 }
 0x62a   :  { %6823 = vmatprep.subr.mxu1 %v3377_v15 }
 0x62b   :  { %6824 = vmatpush3.msra.mxu1 %v3073_v17 }
 0x62c   :  { %6825 = vmatprep.subr.mxu1 %v3358_v19 }
 0x62d   :  { %6826 = vmatpush3.msra.mxu1 %v3054_v12  ;;  %v5974_v37 = vpop.f32.mrf.mxu1  ;;  %v6045_v48 = vpop.f32.mrf.mxu0 }
 0x62e   :  { %6827 = vmatprep.subr.mxu1 %v3339_v27  ;;  %v5975_v44 = vadd.f32 %v5974_v37, %v5904_v59  ;;  %v6046_v25 = vadd.f32 %v6045_v48, %v3679_v31 }
 0x62f   :  { %6828 = vmatpush3.msra.mxu1 %v3035_v39  ;;  %v5976_v41 = vpop.f32.mrf.mxu1  ;;  %v6047_v50 = vpop.f32.mrf.mxu0 }
 0x630   :  { %6829 = vmatprep.subr.mxu1 %v3320_v35  ;;  %v5977_v40 = vadd.f32 %v5976_v41, %v5906_v18  ;;  %v6557_v43 = vmax.f32 %v5975_v44, 0.0 }
 0x631   :  { %6830 = vmatpush3.msra.mxu1 %v3016_v32 }
 0x632   :  { %6538 = vmatmul.mubr.f32.vlgmr.msra.gmra.mxu1 %v9518_v46  ;;  %v6558_v24 = vmax.f32 %v5977_v40, 0.0  ;;  %v3683_v46 = vrot.slane %v3608_v54, %v8431_v36 }
 0x634   :  { %v6633_v45 = vcombine.low %v6557_v43, %v6558_v24  ;;  %v6048_v6 = vadd.f32 %v6047_v50, %v3683_v46 }
 0x636   :  { %v6647_v47 = vrot.slane %v6633_v45, %v7230_v52 }
 0x638   :  { %v6648_v22 = vcombine.low %v6640_v26, %v6647_v47 }
 0x63a   :  { %6673 = vst [vmem:[#allocation2 + $0x18] sm:$0xff] %v6648_v22 }
 0x66f   :  { %v6116_v49 = vpop.f32.mrf.mxu1  ;;  %v6187_v3 = vpop.f32.mrf.mxu0 }
 0x670   :  { %v6117_v1 = vadd.f32 %v6116_v49, %v6046_v25 }
 0x671   :  { %v6118_v51 = vpop.f32.mrf.mxu1  ;;  %v6189_v55 = vpop.f32.mrf.mxu0 }
 0x672   :  { %v6119_v0 = vadd.f32 %v6118_v51, %v6048_v6  ;;  %v6188_v60 = vadd.f32 %v6187_v3, %v6117_v1 }
 0x674   :  { %v6190_v61 = vadd.f32 %v6189_v55, %v6119_v0 }
 0x691   :  { %v6726_v56 = vpop.f32.mrf.mxu0 }
 0x693   :  { %v6727_v29 = vpop.f32.mrf.mxu0 }
 0x694   :  { %v6728_v8 = vadd.f32 %v6727_v29, %v6726_v56 }
 0x696   :  { %v6330_v7 = vadd.f32 %v6728_v8, %v3687_v2 }
 0x6b2   :  { %v6258_v28 = vpop.f32.mrf.mxu1 }
 0x6b3   :  { %v6796_v13 = vpop.f32.mrf.mxu0  ;;  %v6259_v10 = vadd.f32 %v6258_v28, %v6188_v60 }
 0x6b4   :  { %v6260_v58 = vpop.f32.mrf.mxu1 }
 0x6b5   :  { %v6261_v36 = vadd.f32 %v6260_v58, %v6190_v61  ;;  %v6797_v9 = vpop.f32.mrf.mxu0  ;;  %v6559_v17 = vmax.f32 %v6259_v10, 0.0 }
 0x6b6   :  { %v6798_v16 = vadd.f32 %v6797_v9, %v6796_v13 }
 0x6b7   :  { %v6560_v14 = vmax.f32 %v6261_v36, 0.0 }
 0x6b9   :  { %v6649_v57 = vcombine.low %v6559_v17, %v6560_v14 }
 0x6bb   :  { %v6656_v23 = vrot.slane %v6649_v57, %v7230_v52 }
 0x6d2   :  { %v6761_v53 = vpop.f32.mrf.mxu1 }
 0x6d4   :  { %v6762_v63 = vpop.f32.mrf.mxu1 }
 0x6d5   :  { %v6763_v62 = vadd.f32 %v6762_v63, %v6761_v53 }
 0x6d7   :  { %v6400_v15 = vadd.f32 %v6763_v62, %v6330_v7 }
 0x6d9   :  { %v6470_v11 = vadd.f32 %v6798_v16, %v6400_v15 }
 0x6f2   :  { %v6831_v30 = vpop.f32.mrf.mxu1 }
 0x6f4   :  { %v6832_v5 = vpop.f32.mrf.mxu1 }
 0x6f5   :  { %v6833_v19 = vadd.f32 %v6832_v5, %v6831_v30 }
 0x6f7   :  { %v6540_v20 = vadd.f32 %v6833_v19, %v6470_v11 }
 0x6f9   :  { %v6561_v21 = vmax.f32 %v6540_v20, 0.0 }
 0x6fb   :  { %v6663_v12 = vrot.slane %v6561_v21, %v7230_v52 }
 0x6fd   :  { %v6664_v27 = vcombine.low %v6656_v23, %v6663_v12 }
 0x6ff   :  { %6679 = vst.msk [vmem:[#allocation2 + $0x20] sm:$0x3f] %vm6678_vm4, %v6664_v27 }
 0x700   :  { %6851 = shalt.err (!%p6848_p4)
}
 0x701   :  { %6689 = dma.vmem_to_hbm [thread:$0]  %s6687_s8, 608, %s16007_s5, [#allocation3]  }
 0x702   :  { %6860 = dma.done.wait [#allocation3], 608  }
 0x703   :  { %6861 = vsyncadd [#allocation3], 4294966688 }
 0x704   :  { %6693 = vsyncpa [#allocation3], 1 }

</bundles_post_ra>
